<compile_context>
chip_gen: v5e
topology: v5e:2x2
jax: 0.10.0
libtpu: 0.0.40
codegen_flags: <defaults>
</compile_context>

<pallas_src>
import functools

import jax
import jax.numpy as jnp
from jax.experimental import pallas as pl
from jax.experimental.pallas import tpu as pltpu

L = 50        # node-feature dim
C = 1         # pooled clusters
CLASSES = 2
NEG_SLOPE = 0.01
LANE = 128


# --------------------------------------------------------------------------
# small padding / hardware helpers (wrapper-side plumbing only)
# --------------------------------------------------------------------------
def _pad_last(x, mult):
    pad = (-x.shape[-1]) % mult
    if pad == 0:
        return x
    widths = [(0, 0)] * (x.ndim - 1) + [(0, pad)]
    return jnp.pad(x, widths)


def _pad_to(x, shape):
    widths = [(0, t - s) for s, t in zip(x.shape, shape)]
    return jnp.pad(x, widths)


def _num_parallel_tensorcores():
    """2 on v7x (two TensorCores per chip share 'parallel' grid axes);
    1 on single-TC v5e / v6e.  Defaults to 1 when unknown."""
    try:
        kind = jax.devices()[0].device_kind.lower()
    except Exception:
        return 1
    return 2 if "v7" in kind else 1


# --------------------------------------------------------------------------
# Kernel A: fused conv1 (im2col matmul, bf16) + 2x2/stride-2 max-pool
# --------------------------------------------------------------------------
def _conv_relu_pool_kernel(p_ref, w_ref, b_ref, o_ref):
    # p_ref: (4, TP, KP) bf16 patches; group axis = 4 pool-window offsets.
    # Running max of the raw matmul results, then ONE bias-add + ReLU
    # (valid because the bias is shared across pool offsets and ReLU is
    # monotone): max_g relu(x_g + b) == relu(max_g x_g + b).
    w = w_ref[...]
    acc = jnp.dot(p_ref[0], w, preferred_element_type=jnp.float32)
    for g in range(1, 4):
        acc = jnp.maximum(
            acc, jnp.dot(p_ref[g], w, preferred_element_type=jnp.float32))
    o_ref[...] = jnp.maximum(acc + b_ref[...], 0.0).astype(o_ref.dtype)


def conv_relu_pool(patches4, w_pad, b_pad, *, out_dtype=jnp.float32):
    """patches4: (4, R, KP) bf16; w_pad: (KP, NP) bf16; b_pad: (1, NP) f32."""
    _, rows, kp = patches4.shape
    np_ = w_pad.shape[1]
    tc = _num_parallel_tensorcores()
    # Split into 2 "parallel" steps only when a second TensorCore exists and
    # the halves stay bf16-sublane aligned; otherwise one full slab.
    steps = tc if (tc > 1 and rows % tc == 0 and (rows // tc) % 16 == 0) else 1
    tp = rows // steps
    return pl.pallas_call(
        _conv_relu_pool_kernel,
        out_shape=jax.ShapeDtypeStruct((rows, np_), out_dtype),
        grid=(steps,),
        in_specs=[
            pl.BlockSpec((4, tp, kp), lambda i: (0, i, 0)),
            pl.BlockSpec((kp, np_), lambda i: (0, 0)),
            pl.BlockSpec((1, np_), lambda i: (0, 0)),
        ],
        out_specs=pl.BlockSpec((tp, np_), lambda i: (i, 0)),
        compiler_params=pltpu.CompilerParams(
            dimension_semantics=("parallel",)),
    )(patches4, w_pad, b_pad)


def _pooling_patches(x_nhwc, ksize, *, spatial_major=False):
    """im2col for a valid `ksize` conv followed by a 2x2/stride-2 max-pool.

    Returns (4, rows, ksize*ksize*Cin): group axis = the 4 pool-window
    offsets; patch-flat index (dy*ksize + dx)*Cin + ci (matches torch weights
    after transpose(w, (2, 3, 1, 0)).reshape(-1, Cout)).
    rows order: (image, hp, wp) by default, or (hp, wp, image) when
    spatial_major=True (lets a fused consumer slice per spatial position with
    static, aligned row slices).
    """
    n, h, w, c = x_nhwc.shape
    ho, wo = h - ksize + 1, w - ksize + 1
    parts = [x_nhwc[:, dy:dy + ho, dx:dx + wo, :]
             for dy in range(ksize) for dx in range(ksize)]
    p = jnp.concatenate(parts, axis=-1)                  # (n, ho, wo, k*k*c)
    hp, wp = ho // 2, wo // 2
    p = p.reshape(n, hp, 2, wp, 2, ksize * ksize * c)
    if spatial_major:
        p = jnp.transpose(p, (2, 4, 1, 3, 0, 5))         # (dy,dx,hp,wp,n,patch)
    else:
        p = jnp.transpose(p, (2, 4, 0, 1, 3, 5))         # (dy,dx,n,hp,wp,patch)
    return p.reshape(4, n * hp * wp, ksize * ksize * c)


# --------------------------------------------------------------------------
# Kernel B: fused conv2 + FC + GNN head (SAGE, aux losses, diff-pool, MLP)
# --------------------------------------------------------------------------
def _leaky(v):
    return jnp.where(v > 0, v, NEG_SLOPE * v)


def _softmax_lastdim(v):
    m = jnp.max(v, axis=-1, keepdims=True)
    e = jnp.exp(v - m)
    return e / jnp.sum(e, axis=-1, keepdims=True)


def _conv2_head_kernel(p_ref, w_ref, b_ref,
                       wfc_ref, bfc_ref,
                       wrel_ref, wroot_ref, brt_ref,
                       wl1_ref, bl1_ref, wl2_ref, bl2_ref,
                       prob_ref, loss_ref, y2_ref, *, k_nodes):
    Kf = float(k_nodes)

    # ---- conv2 (im2col matmul) + fused max-pool + bias + ReLU ----
    w = w_ref[...]
    acc = jnp.dot(p_ref[0], w, preferred_element_type=jnp.float32)
    for g in range(1, 4):
        acc = jnp.maximum(
            acc, jnp.dot(p_ref[g], w, preferred_element_type=jnp.float32))
    # rows ordered (spatial r in 0..24, image k); padded channels are zero.
    y2_ref[...] = jnp.maximum(acc + b_ref[...], 0.0)     # (25*K, 128) f32

    # ---- feature_extractor_part2: Linear(1250, 50) + ReLU ----
    # fc weight pre-permuted wrapper-side to (25, 128, 50):
    #   H[k, o] = sum_r sum_c y2[r*K + k, c] * wfc[r, c, o]
    H = jnp.dot(y2_ref[0:k_nodes, :], wfc_ref[0],
                preferred_element_type=jnp.float32)
    for r in range(1, 25):
        H = H + jnp.dot(y2_ref[r * k_nodes:(r + 1) * k_nodes, :], wfc_ref[r],
                        preferred_element_type=jnp.float32)
    H = jnp.maximum(H + bfc_ref[...], 0.0)               # (K, L)

    # ---- gnn_embd on the fully connected graph (A = ones(K,K)) ----
    # DenseSAGEConv: mean neighbour aggregation -> lin_rel(agg) + lin_root(x).
    agg = jnp.sum(H, axis=0, keepdims=True) * (1.0 / Kf)  # (1, L)
    Z = (jnp.dot(agg, wrel_ref[...], preferred_element_type=jnp.float32)
         + jnp.dot(H, wroot_ref[...], preferred_element_type=jnp.float32)
         + brt_ref[...])
    Z = _leaky(Z)                                         # (K, L)

    # auxiliary_loss(A=1, Z): ||A - softmax(Z) softmax(Z)^T||_F / K^2
    S1 = _softmax_lastdim(Z)
    gram = jax.lax.dot_general(S1, S1, (((1,), (1,)), ((), ())),
                               preferred_element_type=jnp.float32)   # (K, K)
    d = 1.0 - gram
    t = jnp.sum(jnp.sum(d * d, axis=1, keepdims=True), axis=0, keepdims=True)
    loss1 = jnp.sqrt(t) / (Kf * Kf)                       # (1, 1)

    # dense_diff_pool with C=1: the assignment softmax over a size-1 last dim
    # is exactly all-ones, so s = ones(K,1), X2 = s^T Z, A2 = s^T A s = K^2,
    # and the returned link loss l1 = ||A - s s^T||_F / K^2 == 0 exactly.
    # (The gnn_pool / mlp branch that produces s is dead code and is omitted.)
    X2 = jnp.sum(Z, axis=0, keepdims=True)                # (1, L)
    A2 = Kf * Kf

    # second gnn_embd pass on the pooled 1-node graph (same weights);
    # aggregation (A2 * X2) / clamp(A2, 1) == X2.
    X3 = (jnp.dot(X2, wrel_ref[...], preferred_element_type=jnp.float32)
          + jnp.dot(X2, wroot_ref[...], preferred_element_type=jnp.float32)
          + brt_ref[...])
    X3 = _leaky(X3)                                       # (1, L)

    # auxiliary_loss(A2, X3): A2 is 1x1, Frobenius norm == abs, numel == 1.
    S3 = _softmax_lastdim(X3)
    loss2 = jnp.abs(A2 - jnp.sum(S3 * S3, axis=-1, keepdims=True))   # (1, 1)

    # classifier head
    X5 = _leaky(jnp.dot(X3, wl1_ref[...], preferred_element_type=jnp.float32)
                + bl1_ref[...])                           # (1, 25)
    X6 = _leaky(jnp.dot(X5, wl2_ref[...], preferred_element_type=jnp.float32)
                + bl2_ref[...])                           # (1, 2)
    prob_ref[...] = _softmax_lastdim(X6)
    loss_ref[...] = loss1 + loss2


def conv2_head(patches4, params, k):
    """patches4: (4, 25*k, 512) bf16 conv2 patches, rows spatial-major."""
    rows = patches4.shape[1]
    w2 = jnp.transpose(params["conv2_w"], (2, 3, 1, 0)).reshape(500, 50)
    w2 = _pad_to(w2, (patches4.shape[-1], LANE)).astype(jnp.bfloat16)
    b2 = _pad_to(params["conv2_b"].reshape(1, 50), (1, LANE))
    # fc_w is (50, 1250) indexed [out, c*25 + r] -> permute to [r, c, out]
    # and zero-pad the (conv2-channel) axis 50 -> 128.
    wfc = jnp.transpose(params["fc_w"].reshape(L, 50, 25), (2, 1, 0))
    wfc = _pad_to(wfc, (25, LANE, L))                     # (25, 128, 50)

    vmem = pl.BlockSpec(memory_space=pltpu.MemorySpace.VMEM)
    probs, loss = pl.pallas_call(
        functools.partial(_conv2_head_kernel, k_nodes=k),
        out_shape=(jax.ShapeDtypeStruct((1, CLASSES), jnp.float32),
                   jax.ShapeDtypeStruct((1, 1), jnp.float32)),
        in_specs=[vmem] * 12,
        out_specs=(vmem, vmem),
        scratch_shapes=[pltpu.VMEM((rows, LANE), jnp.float32)],
    )(patches4, w2, b2, wfc, params["fc_b"].reshape(1, L),
      params["sage_rel_w"], params["sage_root_w"], params["sage_root_b"],
      params["lin1_w"], params["lin1_b"], params["lin2_w"], params["lin2_b"])
    return probs[0], loss[0, 0]


# --------------------------------------------------------------------------
# Parameters (deterministic synthetic init — shapes follow the PyTorch module)
# --------------------------------------------------------------------------
def init_params(key):
    ks = jax.random.split(key, 20)

    def w(k, shape, scale):
        return scale * jax.random.normal(k, shape, dtype=jnp.float32)

    p = {}
    # feature_extractor_part1
    p["conv1_w"] = w(ks[0], (20, 3, 5, 5), 0.10)      # torch (Cout, Cin, KH, KW)
    p["conv1_b"] = w(ks[1], (20,), 0.10)
    p["conv2_w"] = w(ks[2], (50, 20, 5, 5), 0.05)
    p["conv2_b"] = w(ks[3], (50,), 0.05)
    # feature_extractor_part2: Linear(1250, 50)
    p["fc_w"] = w(ks[4], (50, 1250), 0.02)
    p["fc_b"] = w(ks[5], (50,), 0.02)
    # gnn_embd: DenseSAGEConv(50, 50) -> lin_rel (no bias) + lin_root (bias)
    p["sage_rel_w"] = w(ks[6], (50, 50), 0.10).T      # stored (in, out)
    p["sage_root_w"] = w(ks[7], (50, 50), 0.10).T
    p["sage_root_b"] = w(ks[8], (50,), 0.10).reshape(1, 50)
    # gnn_pool / mlp: declared by the module; provably never affect forward()
    # outputs (C=1 softmax degeneracy), so they are not passed to any kernel.
    p["pool_rel_w"] = w(ks[9], (1, 50), 0.10).T
    p["pool_root_w"] = w(ks[10], (1, 50), 0.10).T
    p["pool_root_b"] = w(ks[11], (1,), 0.10).reshape(1, 1)
    p["mlp_w"] = w(ks[12], (1, 1), 0.10)
    p["mlp_b"] = w(ks[13], (1,), 0.10).reshape(1, 1)
    # classifier: Linear(50, 25), Linear(25, 2)
    p["lin1_w"] = w(ks[14], (25, 50), 0.10).T
    p["lin1_b"] = w(ks[15], (25,), 0.10).reshape(1, 25)
    p["lin2_w"] = w(ks[16], (2, 25), 0.10).T
    p["lin2_b"] = w(ks[17], (2,), 0.10).reshape(1, 2)
    # bn1 / bn2 / bn3 and gnn_embd2 are declared in __init__ but never used in
    # forward(), so they are intentionally omitted.
    return p


# --------------------------------------------------------------------------
# Forward pass (mirrors GraphBased32x32x3.forward)
# --------------------------------------------------------------------------
def forward(x, params):
    # x = x.squeeze(0); unsqueeze if 3-D
    if x.ndim == 5:
        x = jnp.squeeze(x, axis=0)
    if x.ndim == 3:
        x = x[None]
    k = x.shape[0]
    # NCHW -> NHWC and bf16 so the im2col slab written through HBM is half-size.
    xh = jnp.transpose(x, (0, 2, 3, 1)).astype(jnp.bfloat16)

    # conv1 5x5 (3 -> 20) + ReLU + 2x2 max-pool (single fused kernel, bf16 out)
    # TODO(synk): building the 5x5 patch taps inside the kernel from the raw
    # 98 KB image slab would cut the remaining im2col HBM expansion further.
    p1 = _pad_last(_pooling_patches(xh, 5), LANE)              # (4, k*196, 128)
    w1 = jnp.transpose(params["conv1_w"], (2, 3, 1, 0)).reshape(75, 20)
    w1 = _pad_to(w1, (p1.shape[-1], LANE)).astype(jnp.bfloat16)
    b1 = _pad_to(params["conv1_b"].reshape(1, 20), (1, LANE))
    y1 = conv_relu_pool(p1, w1, b1, out_dtype=jnp.bfloat16)    # (k*196, 128)
    y1 = y1.reshape(k, 14, 14, LANE)[..., :20]                 # drop zero pad

    # conv2 5x5 (20 -> 50) + ReLU + 2x2 max-pool + FC + GNN head: one kernel.
    # Rows are spatial-major so the fused FC uses static aligned slices; the
    # conv2 activation never leaves VMEM.
    p2 = _pad_last(_pooling_patches(y1, 5, spatial_major=True), LANE)  # (4, 25k, 512)
    return conv2_head(p2, params, k)


if __name__ == "__main__":
    key = jax.random.PRNGKey(0)
    kx, kp = jax.random.split(key)
    params = init_params(kp)
    # bag of 8 RGB 32x32 images, PyTorch layout (1, K, 3, 32, 32)
    x = jax.random.normal(kx, (1, 8, 3, 32, 32), dtype=jnp.float32)

    probs, loss = jax.jit(lambda a: forward(a, params))(x)
    probs = jax.block_until_ready(probs)
    loss = jax.block_until_ready(loss)

    assert probs.shape == (CLASSES,)
    assert bool(jnp.all(jnp.isfinite(probs))) and bool(jnp.isfinite(loss))
    assert abs(float(jnp.sum(probs)) - 1.0) < 1e-4
    print("KERNEL_OK")
</pallas_src>

<mosaic_0001>
module attributes {stable_mosaic.version = 11 : i64} {
  func.func @_conv_relu_pool_kernel(%arg0: i32, %arg1: memref<4x1568x128xbf16, #tpu.memory_space<vmem>>, %arg2: memref<128x128xbf16, #tpu.memory_space<vmem>>, %arg3: memref<1x128xf32, #tpu.memory_space<vmem>>, %arg4: memref<1568x128xbf16, #tpu.memory_space<vmem>>) attributes {dimension_semantics = [#tpu.dimension_semantics<parallel>], iteration_bounds = array<i64: 1>, scalar_prefetch = 0 : i64, scratch_operands = 0 : i64, tpu.core_type = #tpu.core_type<tc>, window_params = [{transform_indices = @transform_0, window_bounds = array<i64: 4, 1568, 128>}, {pipeline_mode = #tpu.pipeline_mode<synchronous>, transform_indices = @transform_1, window_bounds = array<i64: 128, 128>}, {pipeline_mode = #tpu.pipeline_mode<synchronous>, transform_indices = @transform_2, window_bounds = array<i64: 1, 128>}, {transform_indices = @transform_3, window_bounds = array<i64: 1568, 128>}]} {
    %c0 = arith.constant 0 : index
    %c0_0 = arith.constant 0 : index
    %0 = vector.load %arg2[%c0, %c0_0] : memref<128x128xbf16, #tpu.memory_space<vmem>>, vector<128x128xbf16>
    %c0_1 = arith.constant 0 : index
    %c0_2 = arith.constant 0 : index
    %c0_3 = arith.constant 0 : index
    %1 = vector.load %arg1[%c0_1, %c0_2, %c0_3] : memref<4x1568x128xbf16, #tpu.memory_space<vmem>>, vector<1x1568x128xbf16>
    %2 = vector.shape_cast %1 : vector<1x1568x128xbf16> to vector<1568x128xbf16>
    %cst = arith.constant dense<0.000000e+00> : vector<1568x128xf32>
    %3 = tpu.matmul %2, %0, %cst {dimension_numbers = #tpu.dot_dimension_numbers<[1], [0], [0], [1], [0, 0, 1, 1], [], []>} : vector<1568x128xbf16>, vector<128x128xbf16>, vector<1568x128xf32> -> vector<1568x128xf32>
    %c1 = arith.constant 1 : index
    %c0_4 = arith.constant 0 : index
    %c0_5 = arith.constant 0 : index
    %4 = vector.load %arg1[%c1, %c0_4, %c0_5] : memref<4x1568x128xbf16, #tpu.memory_space<vmem>>, vector<1x1568x128xbf16>
    %5 = vector.shape_cast %4 : vector<1x1568x128xbf16> to vector<1568x128xbf16>
    %cst_6 = arith.constant dense<0.000000e+00> : vector<1568x128xf32>
    %6 = tpu.matmul %5, %0, %cst_6 {dimension_numbers = #tpu.dot_dimension_numbers<[1], [0], [0], [1], [0, 0, 1, 1], [], []>} : vector<1568x128xbf16>, vector<128x128xbf16>, vector<1568x128xf32> -> vector<1568x128xf32>
    %7 = arith.maximumf %3, %6 : vector<1568x128xf32>
    %c2 = arith.constant 2 : index
    %c0_7 = arith.constant 0 : index
    %c0_8 = arith.constant 0 : index
    %8 = vector.load %arg1[%c2, %c0_7, %c0_8] : memref<4x1568x128xbf16, #tpu.memory_space<vmem>>, vector<1x1568x128xbf16>
    %9 = vector.shape_cast %8 : vector<1x1568x128xbf16> to vector<1568x128xbf16>
    %cst_9 = arith.constant dense<0.000000e+00> : vector<1568x128xf32>
    %10 = tpu.matmul %9, %0, %cst_9 {dimension_numbers = #tpu.dot_dimension_numbers<[1], [0], [0], [1], [0, 0, 1, 1], [], []>} : vector<1568x128xbf16>, vector<128x128xbf16>, vector<1568x128xf32> -> vector<1568x128xf32>
    %11 = arith.maximumf %7, %10 : vector<1568x128xf32>
    %c3 = arith.constant 3 : index
    %c0_10 = arith.constant 0 : index
    %c0_11 = arith.constant 0 : index
    %12 = vector.load %arg1[%c3, %c0_10, %c0_11] : memref<4x1568x128xbf16, #tpu.memory_space<vmem>>, vector<1x1568x128xbf16>
    %13 = vector.shape_cast %12 : vector<1x1568x128xbf16> to vector<1568x128xbf16>
    %cst_12 = arith.constant dense<0.000000e+00> : vector<1568x128xf32>
    %14 = tpu.matmul %13, %0, %cst_12 {dimension_numbers = #tpu.dot_dimension_numbers<[1], [0], [0], [1], [0, 0, 1, 1], [], []>} : vector<1568x128xbf16>, vector<128x128xbf16>, vector<1568x128xf32> -> vector<1568x128xf32>
    %15 = arith.maximumf %11, %14 : vector<1568x128xf32>
    %c0_13 = arith.constant 0 : index
    %c0_14 = arith.constant 0 : index
    %16 = vector.load %arg3[%c0_13, %c0_14] : memref<1x128xf32, #tpu.memory_space<vmem>>, vector<1x128xf32>
    %17 = vector.broadcast %16 : vector<1x128xf32> to vector<1568x128xf32>
    %18 = arith.addf %15, %17 : vector<1568x128xf32>
    %cst_15 = arith.constant 0.000000e+00 : f32
    %19 = vector.broadcast %cst_15 : f32 to vector<1568x128xf32>
    %20 = arith.maximumf %18, %19 : vector<1568x128xf32>
    %21 = arith.truncf %20 : vector<1568x128xf32> to vector<1568x128xbf16>
    %c0_16 = arith.constant 0 : index
    %c0_17 = arith.constant 0 : index
    %22 = vector.load %arg4[%c0_16, %c0_17] : memref<1568x128xbf16, #tpu.memory_space<vmem>>, vector<1568x128xbf16>
    tpu.vector_store %arg4[%c0_16, %c0_17], %21 {strides = array<i32>} : memref<1568x128xbf16, #tpu.memory_space<vmem>>, vector<1568x128xbf16>,
    return
  }
  func.func @transform_0(%arg0: i32) -> (i32, i32, i32) {
    %c0_i32 = arith.constant 0 : i32
    %c0_i32_0 = arith.constant 0 : i32
    %c0_i32_1 = arith.constant 0 : i32
    return %c0_i32, %arg0, %c0_i32_0 : i32, i32, i32
  }
  func.func @transform_1(%arg0: i32) -> (i32, i32) {
    %c0_i32 = arith.constant 0 : i32
    %c0_i32_0 = arith.constant 0 : i32
    %c0_i32_1 = arith.constant 0 : i32
    return %c0_i32, %c0_i32_0 : i32, i32
  }
  func.func @transform_2(%arg0: i32) -> (i32, i32) {
    %c0_i32 = arith.constant 0 : i32
    %c0_i32_0 = arith.constant 0 : i32
    %c0_i32_1 = arith.constant 0 : i32
    return %c0_i32, %c0_i32_0 : i32, i32
  }
  func.func @transform_3(%arg0: i32) -> (i32, i32) {
    %c0_i32 = arith.constant 0 : i32
    %c0_i32_0 = arith.constant 0 : i32
    return %arg0, %c0_i32 : i32, i32
  }
}

module attributes {stable_mosaic.version = 11 : i64} {
  func.func @_conv2_head_kernel(%arg0: memref<4x200x512xbf16, #tpu.memory_space<vmem>>, %arg1: memref<512x128xbf16, #tpu.memory_space<vmem>>, %arg2: memref<1x128xf32, #tpu.memory_space<vmem>>, %arg3: memref<25x128x50xf32, #tpu.memory_space<vmem>>, %arg4: memref<1x50xf32, #tpu.memory_space<vmem>>, %arg5: memref<50x50xf32, #tpu.memory_space<vmem>>, %arg6: memref<50x50xf32, #tpu.memory_space<vmem>>, %arg7: memref<1x50xf32, #tpu.memory_space<vmem>>, %arg8: memref<50x25xf32, #tpu.memory_space<vmem>>, %arg9: memref<1x25xf32, #tpu.memory_space<vmem>>, %arg10: memref<25x2xf32, #tpu.memory_space<vmem>>, %arg11: memref<1x2xf32, #tpu.memory_space<vmem>>, %arg12: memref<1x2xf32, #tpu.memory_space<vmem>>, %arg13: memref<1x1xf32, #tpu.memory_space<vmem>>, %arg14: memref<200x128xf32, #tpu.memory_space<vmem>>) attributes {dimension_semantics = [], scalar_prefetch = 0 : i64, scratch_operands = 1 : i64, tpu.core_type = #tpu.core_type<tc>} {
    %c0 = arith.constant 0 : index
    %c0_0 = arith.constant 0 : index
    %0 = vector.load %arg1[%c0, %c0_0] : memref<512x128xbf16, #tpu.memory_space<vmem>>, vector<512x128xbf16>
    %c0_1 = arith.constant 0 : index
    %c0_2 = arith.constant 0 : index
    %c0_3 = arith.constant 0 : index
    %1 = vector.load %arg0[%c0_1, %c0_2, %c0_3] : memref<4x200x512xbf16, #tpu.memory_space<vmem>>, vector<1x200x512xbf16>
    %2 = vector.shape_cast %1 : vector<1x200x512xbf16> to vector<200x512xbf16>
    %cst = arith.constant dense<0.000000e+00> : vector<200x128xf32>
    %3 = tpu.matmul %2, %0, %cst {dimension_numbers = #tpu.dot_dimension_numbers<[1], [0], [0], [1], [0, 0, 1, 1], [], []>} : vector<200x512xbf16>, vector<512x128xbf16>, vector<200x128xf32> -> vector<200x128xf32>
    %c1 = arith.constant 1 : index
    %c0_4 = arith.constant 0 : index
    %c0_5 = arith.constant 0 : index
    %4 = vector.load %arg0[%c1, %c0_4, %c0_5] : memref<4x200x512xbf16, #tpu.memory_space<vmem>>, vector<1x200x512xbf16>
    %5 = vector.shape_cast %4 : vector<1x200x512xbf16> to vector<200x512xbf16>
    %cst_6 = arith.constant dense<0.000000e+00> : vector<200x128xf32>
    %6 = tpu.matmul %5, %0, %cst_6 {dimension_numbers = #tpu.dot_dimension_numbers<[1], [0], [0], [1], [0, 0, 1, 1], [], []>} : vector<200x512xbf16>, vector<512x128xbf16>, vector<200x128xf32> -> vector<200x128xf32>
    %7 = arith.maximumf %3, %6 : vector<200x128xf32>
    %c2 = arith.constant 2 : index
    %c0_7 = arith.constant 0 : index
    %c0_8 = arith.constant 0 : index
    %8 = vector.load %arg0[%c2, %c0_7, %c0_8] : memref<4x200x512xbf16, #tpu.memory_space<vmem>>, vector<1x200x512xbf16>
    %9 = vector.shape_cast %8 : vector<1x200x512xbf16> to vector<200x512xbf16>
    %cst_9 = arith.constant dense<0.000000e+00> : vector<200x128xf32>
    %10 = tpu.matmul %9, %0, %cst_9 {dimension_numbers = #tpu.dot_dimension_numbers<[1], [0], [0], [1], [0, 0, 1, 1], [], []>} : vector<200x512xbf16>, vector<512x128xbf16>, vector<200x128xf32> -> vector<200x128xf32>
    %11 = arith.maximumf %7, %10 : vector<200x128xf32>
    %c3 = arith.constant 3 : index
    %c0_10 = arith.constant 0 : index
    %c0_11 = arith.constant 0 : index
    %12 = vector.load %arg0[%c3, %c0_10, %c0_11] : memref<4x200x512xbf16, #tpu.memory_space<vmem>>, vector<1x200x512xbf16>
    %13 = vector.shape_cast %12 : vector<1x200x512xbf16> to vector<200x512xbf16>
    %cst_12 = arith.constant dense<0.000000e+00> : vector<200x128xf32>
    %14 = tpu.matmul %13, %0, %cst_12 {dimension_numbers = #tpu.dot_dimension_numbers<[1], [0], [0], [1], [0, 0, 1, 1], [], []>} : vector<200x512xbf16>, vector<512x128xbf16>, vector<200x128xf32> -> vector<200x128xf32>
    %15 = arith.maximumf %11, %14 : vector<200x128xf32>
    %c0_13 = arith.constant 0 : index
    %c0_14 = arith.constant 0 : index
    %16 = vector.load %arg2[%c0_13, %c0_14] : memref<1x128xf32, #tpu.memory_space<vmem>>, vector<1x128xf32>
    %17 = vector.broadcast %16 : vector<1x128xf32> to vector<200x128xf32>
    %18 = arith.addf %15, %17 : vector<200x128xf32>
    %cst_15 = arith.constant 0.000000e+00 : f32
    %19 = vector.broadcast %cst_15 : f32 to vector<200x128xf32>
    %20 = arith.maximumf %18, %19 : vector<200x128xf32>
    %c0_16 = arith.constant 0 : index
    %c0_17 = arith.constant 0 : index
    %21 = vector.load %arg14[%c0_16, %c0_17] : memref<200x128xf32, #tpu.memory_space<vmem>>, vector<200x128xf32>
    tpu.vector_store %arg14[%c0_16, %c0_17], %20 {strides = array<i32>} : memref<200x128xf32, #tpu.memory_space<vmem>>, vector<200x128xf32>,
    %c0_18 = arith.constant 0 : index
    %c0_19 = arith.constant 0 : index
    %22 = vector.load %arg14[%c0_18, %c0_19] : memref<200x128xf32, #tpu.memory_space<vmem>>, vector<8x128xf32>
    %c0_20 = arith.constant 0 : index
    %c0_21 = arith.constant 0 : index
    %c0_22 = arith.constant 0 : index
    %23 = vector.load %arg3[%c0_20, %c0_21, %c0_22] : memref<25x128x50xf32, #tpu.memory_space<vmem>>, vector<1x128x50xf32>
    %24 = vector.shape_cast %23 : vector<1x128x50xf32> to vector<128x50xf32>
    %cst_23 = arith.constant dense<0.000000e+00> : vector<8x50xf32>
    %25 = tpu.matmul %22, %24, %cst_23 {dimension_numbers = #tpu.dot_dimension_numbers<[1], [0], [0], [1], [0, 0, 1, 1], [], []>} : vector<8x128xf32>, vector<128x50xf32>, vector<8x50xf32> -> vector<8x50xf32>
    %c8 = arith.constant 8 : index
    %c0_24 = arith.constant 0 : index
    %26 = vector.load %arg14[%c8, %c0_24] : memref<200x128xf32, #tpu.memory_space<vmem>>, vector<8x128xf32>
    %c1_25 = arith.constant 1 : index
    %c0_26 = arith.constant 0 : index
    %c0_27 = arith.constant 0 : index
    %27 = vector.load %arg3[%c1_25, %c0_26, %c0_27] : memref<25x128x50xf32, #tpu.memory_space<vmem>>, vector<1x128x50xf32>
    %28 = vector.shape_cast %27 : vector<1x128x50xf32> to vector<128x50xf32>
    %cst_28 = arith.constant dense<0.000000e+00> : vector<8x50xf32>
    %29 = tpu.matmul %26, %28, %cst_28 {dimension_numbers = #tpu.dot_dimension_numbers<[1], [0], [0], [1], [0, 0, 1, 1], [], []>} : vector<8x128xf32>, vector<128x50xf32>, vector<8x50xf32> -> vector<8x50xf32>
    %30 = arith.addf %25, %29 : vector<8x50xf32>
    %c16 = arith.constant 16 : index
    %c0_29 = arith.constant 0 : index
    %31 = vector.load %arg14[%c16, %c0_29] : memref<200x128xf32, #tpu.memory_space<vmem>>, vector<8x128xf32>
    %c2_30 = arith.constant 2 : index
    %c0_31 = arith.constant 0 : index
    %c0_32 = arith.constant 0 : index
    %32 = vector.load %arg3[%c2_30, %c0_31, %c0_32] : memref<25x128x50xf32, #tpu.memory_space<vmem>>, vector<1x128x50xf32>
    %33 = vector.shape_cast %32 : vector<1x128x50xf32> to vector<128x50xf32>
    %cst_33 = arith.constant dense<0.000000e+00> : vector<8x50xf32>
    %34 = tpu.matmul %31, %33, %cst_33 {dimension_numbers = #tpu.dot_dimension_numbers<[1], [0], [0], [1], [0, 0, 1, 1], [], []>} : vector<8x128xf32>, vector<128x50xf32>, vector<8x50xf32> -> vector<8x50xf32>
    %35 = arith.addf %30, %34 : vector<8x50xf32>
    %c24 = arith.constant 24 : index
    %c0_34 = arith.constant 0 : index
    %36 = vector.load %arg14[%c24, %c0_34] : memref<200x128xf32, #tpu.memory_space<vmem>>, vector<8x128xf32>
    %c3_35 = arith.constant 3 : index
    %c0_36 = arith.constant 0 : index
    %c0_37 = arith.constant 0 : index
    %37 = vector.load %arg3[%c3_35, %c0_36, %c0_37] : memref<25x128x50xf32, #tpu.memory_space<vmem>>, vector<1x128x50xf32>
    %38 = vector.shape_cast %37 : vector<1x128x50xf32> to vector<128x50xf32>
    %cst_38 = arith.constant dense<0.000000e+00> : vector<8x50xf32>
    %39 = tpu.matmul %36, %38, %cst_38 {dimension_numbers = #tpu.dot_dimension_numbers<[1], [0], [0], [1], [0, 0, 1, 1], [], []>} : vector<8x128xf32>, vector<128x50xf32>, vector<8x50xf32> -> vector<8x50xf32>
    %40 = arith.addf %35, %39 : vector<8x50xf32>
    %c32 = arith.constant 32 : index
    %c0_39 = arith.constant 0 : index
    %41 = vector.load %arg14[%c32, %c0_39] : memref<200x128xf32, #tpu.memory_space<vmem>>, vector<8x128xf32>
    %c4 = arith.constant 4 : index
    %c0_40 = arith.constant 0 : index
    %c0_41 = arith.constant 0 : index
    %42 = vector.load %arg3[%c4, %c0_40, %c0_41] : memref<25x128x50xf32, #tpu.memory_space<vmem>>, vector<1x128x50xf32>
    %43 = vector.shape_cast %42 : vector<1x128x50xf32> to vector<128x50xf32>
    %cst_42 = arith.constant dense<0.000000e+00> : vector<8x50xf32>
    %44 = tpu.matmul %41, %43, %cst_42 {dimension_numbers = #tpu.dot_dimension_numbers<[1], [0], [0], [1], [0, 0, 1, 1], [], []>} : vector<8x128xf32>, vector<128x50xf32>, vector<8x50xf32> -> vector<8x50xf32>
    %45 = arith.addf %40, %44 : vector<8x50xf32>
    %c40 = arith.constant 40 : index
    %c0_43 = arith.constant 0 : index
    %46 = vector.load %arg14[%c40, %c0_43] : memref<200x128xf32, #tpu.memory_space<vmem>>, vector<8x128xf32>
    %c5 = arith.constant 5 : index
    %c0_44 = arith.constant 0 : index
    %c0_45 = arith.constant 0 : index
    %47 = vector.load %arg3[%c5, %c0_44, %c0_45] : memref<25x128x50xf32, #tpu.memory_space<vmem>>, vector<1x128x50xf32>
    %48 = vector.shape_cast %47 : vector<1x128x50xf32> to vector<128x50xf32>
    %cst_46 = arith.constant dense<0.000000e+00> : vector<8x50xf32>
    %49 = tpu.matmul %46, %48, %cst_46 {dimension_numbers = #tpu.dot_dimension_numbers<[1], [0], [0], [1], [0, 0, 1, 1], [], []>} : vector<8x128xf32>, vector<128x50xf32>, vector<8x50xf32> -> vector<8x50xf32>
    %50 = arith.addf %45, %49 : vector<8x50xf32>
    %c48 = arith.constant 48 : index
    %c0_47 = arith.constant 0 : index
    %51 = vector.load %arg14[%c48, %c0_47] : memref<200x128xf32, #tpu.memory_space<vmem>>, vector<8x128xf32>
    %c6 = arith.constant 6 : index
    %c0_48 = arith.constant 0 : index
    %c0_49 = arith.constant 0 : index
    %52 = vector.load %arg3[%c6, %c0_48, %c0_49] : memref<25x128x50xf32, #tpu.memory_space<vmem>>, vector<1x128x50xf32>
    %53 = vector.shape_cast %52 : vector<1x128x50xf32> to vector<128x50xf32>
    %cst_50 = arith.constant dense<0.000000e+00> : vector<8x50xf32>
    %54 = tpu.matmul %51, %53, %cst_50 {dimension_numbers = #tpu.dot_dimension_numbers<[1], [0], [0], [1], [0, 0, 1, 1], [], []>} : vector<8x128xf32>, vector<128x50xf32>, vector<8x50xf32> -> vector<8x50xf32>
    %55 = arith.addf %50, %54 : vector<8x50xf32>
    %c56 = arith.constant 56 : index
    %c0_51 = arith.constant 0 : index
    %56 = vector.load %arg14[%c56, %c0_51] : memref<200x128xf32, #tpu.memory_space<vmem>>, vector<8x128xf32>
    %c7 = arith.constant 7 : index
    %c0_52 = arith.constant 0 : index
    %c0_53 = arith.constant 0 : index
    %57 = vector.load %arg3[%c7, %c0_52, %c0_53] : memref<25x128x50xf32, #tpu.memory_space<vmem>>, vector<1x128x50xf32>
    %58 = vector.shape_cast %57 : vector<1x128x50xf32> to vector<128x50xf32>
    %cst_54 = arith.constant dense<0.000000e+00> : vector<8x50xf32>
    %59 = tpu.matmul %56, %58, %cst_54 {dimension_numbers = #tpu.dot_dimension_numbers<[1], [0], [0], [1], [0, 0, 1, 1], [], []>} : vector<8x128xf32>, vector<128x50xf32>, vector<8x50xf32> -> vector<8x50xf32>
    %60 = arith.addf %55, %59 : vector<8x50xf32>
    %c64 = arith.constant 64 : index
    %c0_55 = arith.constant 0 : index
    %61 = vector.load %arg14[%c64, %c0_55] : memref<200x128xf32, #tpu.memory_space<vmem>>, vector<8x128xf32>
    %c8_56 = arith.constant 8 : index
    %c0_57 = arith.constant 0 : index
    %c0_58 = arith.constant 0 : index
    %62 = vector.load %arg3[%c8_56, %c0_57, %c0_58] : memref<25x128x50xf32, #tpu.memory_space<vmem>>, vector<1x128x50xf32>
    %63 = vector.shape_cast %62 : vector<1x128x50xf32> to vector<128x50xf32>
    %cst_59 = arith.constant dense<0.000000e+00> : vector<8x50xf32>
    %64 = tpu.matmul %61, %63, %cst_59 {dimension_numbers = #tpu.dot_dimension_numbers<[1], [0], [0], [1], [0, 0, 1, 1], [], []>} : vector<8x128xf32>, vector<128x50xf32>, vector<8x50xf32> -> vector<8x50xf32>
    %65 = arith.addf %60, %64 : vector<8x50xf32>
    %c72 = arith.constant 72 : index
    %c0_60 = arith.constant 0 : index
    %66 = vector.load %arg14[%c72, %c0_60] : memref<200x128xf32, #tpu.memory_space<vmem>>, vector<8x128xf32>
    %c9 = arith.constant 9 : index
    %c0_61 = arith.constant 0 : index
    %c0_62 = arith.constant 0 : index
    %67 = vector.load %arg3[%c9, %c0_61, %c0_62] : memref<25x128x50xf32, #tpu.memory_space<vmem>>, vector<1x128x50xf32>
    %68 = vector.shape_cast %67 : vector<1x128x50xf32> to vector<128x50xf32>
    %cst_63 = arith.constant dense<0.000000e+00> : vector<8x50xf32>
    %69 = tpu.matmul %66, %68, %cst_63 {dimension_numbers = #tpu.dot_dimension_numbers<[1], [0], [0], [1], [0, 0, 1, 1], [], []>} : vector<8x128xf32>, vector<128x50xf32>, vector<8x50xf32> -> vector<8x50xf32>
    %70 = arith.addf %65, %69 : vector<8x50xf32>
    %c80 = arith.constant 80 : index
    %c0_64 = arith.constant 0 : index
    %71 = vector.load %arg14[%c80, %c0_64] : memref<200x128xf32, #tpu.memory_space<vmem>>, vector<8x128xf32>
    %c10 = arith.constant 10 : index
    %c0_65 = arith.constant 0 : index
    %c0_66 = arith.constant 0 : index
    %72 = vector.load %arg3[%c10, %c0_65, %c0_66] : memref<25x128x50xf32, #tpu.memory_space<vmem>>, vector<1x128x50xf32>
    %73 = vector.shape_cast %72 : vector<1x128x50xf32> to vector<128x50xf32>
    %cst_67 = arith.constant dense<0.000000e+00> : vector<8x50xf32>
    %74 = tpu.matmul %71, %73, %cst_67 {dimension_numbers = #tpu.dot_dimension_numbers<[1], [0], [0], [1], [0, 0, 1, 1], [], []>} : vector<8x128xf32>, vector<128x50xf32>, vector<8x50xf32> -> vector<8x50xf32>
    %75 = arith.addf %70, %74 : vector<8x50xf32>
    %c88 = arith.constant 88 : index
    %c0_68 = arith.constant 0 : index
    %76 = vector.load %arg14[%c88, %c0_68] : memref<200x128xf32, #tpu.memory_space<vmem>>, vector<8x128xf32>
    %c11 = arith.constant 11 : index
    %c0_69 = arith.constant 0 : index
    %c0_70 = arith.constant 0 : index
    %77 = vector.load %arg3[%c11, %c0_69, %c0_70] : memref<25x128x50xf32, #tpu.memory_space<vmem>>, vector<1x128x50xf32>
    %78 = vector.shape_cast %77 : vector<1x128x50xf32> to vector<128x50xf32>
    %cst_71 = arith.constant dense<0.000000e+00> : vector<8x50xf32>
    %79 = tpu.matmul %76, %78, %cst_71 {dimension_numbers = #tpu.dot_dimension_numbers<[1], [0], [0], [1], [0, 0, 1, 1], [], []>} : vector<8x128xf32>, vector<128x50xf32>, vector<8x50xf32> -> vector<8x50xf32>
    %80 = arith.addf %75, %79 : vector<8x50xf32>
    %c96 = arith.constant 96 : index
    %c0_72 = arith.constant 0 : index
    %81 = vector.load %arg14[%c96, %c0_72] : memref<200x128xf32, #tpu.memory_space<vmem>>, vector<8x128xf32>
    %c12 = arith.constant 12 : index
    %c0_73 = arith.constant 0 : index
    %c0_74 = arith.constant 0 : index
    %82 = vector.load %arg3[%c12, %c0_73, %c0_74] : memref<25x128x50xf32, #tpu.memory_space<vmem>>, vector<1x128x50xf32>
    %83 = vector.shape_cast %82 : vector<1x128x50xf32> to vector<128x50xf32>
    %cst_75 = arith.constant dense<0.000000e+00> : vector<8x50xf32>
    %84 = tpu.matmul %81, %83, %cst_75 {dimension_numbers = #tpu.dot_dimension_numbers<[1], [0], [0], [1], [0, 0, 1, 1], [], []>} : vector<8x128xf32>, vector<128x50xf32>, vector<8x50xf32> -> vector<8x50xf32>
    %85 = arith.addf %80, %84 : vector<8x50xf32>
    %c104 = arith.constant 104 : index
    %c0_76 = arith.constant 0 : index
    %86 = vector.load %arg14[%c104, %c0_76] : memref<200x128xf32, #tpu.memory_space<vmem>>, vector<8x128xf32>
    %c13 = arith.constant 13 : index
    %c0_77 = arith.constant 0 : index
    %c0_78 = arith.constant 0 : index
    %87 = vector.load %arg3[%c13, %c0_77, %c0_78] : memref<25x128x50xf32, #tpu.memory_space<vmem>>, vector<1x128x50xf32>
    %88 = vector.shape_cast %87 : vector<1x128x50xf32> to vector<128x50xf32>
    %cst_79 = arith.constant dense<0.000000e+00> : vector<8x50xf32>
    %89 = tpu.matmul %86, %88, %cst_79 {dimension_numbers = #tpu.dot_dimension_numbers<[1], [0], [0], [1], [0, 0, 1, 1], [], []>} : vector<8x128xf32>, vector<128x50xf32>, vector<8x50xf32> -> vector<8x50xf32>
    %90 = arith.addf %85, %89 : vector<8x50xf32>
    %c112 = arith.constant 112 : index
    %c0_80 = arith.constant 0 : index
    %91 = vector.load %arg14[%c112, %c0_80] : memref<200x128xf32, #tpu.memory_space<vmem>>, vector<8x128xf32>
    %c14 = arith.constant 14 : index
    %c0_81 = arith.constant 0 : index
    %c0_82 = arith.constant 0 : index
    %92 = vector.load %arg3[%c14, %c0_81, %c0_82] : memref<25x128x50xf32, #tpu.memory_space<vmem>>, vector<1x128x50xf32>
    %93 = vector.shape_cast %92 : vector<1x128x50xf32> to vector<128x50xf32>
    %cst_83 = arith.constant dense<0.000000e+00> : vector<8x50xf32>
    %94 = tpu.matmul %91, %93, %cst_83 {dimension_numbers = #tpu.dot_dimension_numbers<[1], [0], [0], [1], [0, 0, 1, 1], [], []>} : vector<8x128xf32>, vector<128x50xf32>, vector<8x50xf32> -> vector<8x50xf32>
    %95 = arith.addf %90, %94 : vector<8x50xf32>
    %c120 = arith.constant 120 : index
    %c0_84 = arith.constant 0 : index
    %96 = vector.load %arg14[%c120, %c0_84] : memref<200x128xf32, #tpu.memory_space<vmem>>, vector<8x128xf32>
    %c15 = arith.constant 15 : index
    %c0_85 = arith.constant 0 : index
    %c0_86 = arith.constant 0 : index
    %97 = vector.load %arg3[%c15, %c0_85, %c0_86] : memref<25x128x50xf32, #tpu.memory_space<vmem>>, vector<1x128x50xf32>
    %98 = vector.shape_cast %97 : vector<1x128x50xf32> to vector<128x50xf32>
    %cst_87 = arith.constant dense<0.000000e+00> : vector<8x50xf32>
    %99 = tpu.matmul %96, %98, %cst_87 {dimension_numbers = #tpu.dot_dimension_numbers<[1], [0], [0], [1], [0, 0, 1, 1], [], []>} : vector<8x128xf32>, vector<128x50xf32>, vector<8x50xf32> -> vector<8x50xf32>
    %100 = arith.addf %95, %99 : vector<8x50xf32>
    %c128 = arith.constant 128 : index
    %c0_88 = arith.constant 0 : index
    %101 = vector.load %arg14[%c128, %c0_88] : memref<200x128xf32, #tpu.memory_space<vmem>>, vector<8x128xf32>
    %c16_89 = arith.constant 16 : index
    %c0_90 = arith.constant 0 : index
    %c0_91 = arith.constant 0 : index
    %102 = vector.load %arg3[%c16_89, %c0_90, %c0_91] : memref<25x128x50xf32, #tpu.memory_space<vmem>>, vector<1x128x50xf32>
    %103 = vector.shape_cast %102 : vector<1x128x50xf32> to vector<128x50xf32>
    %cst_92 = arith.constant dense<0.000000e+00> : vector<8x50xf32>
    %104 = tpu.matmul %101, %103, %cst_92 {dimension_numbers = #tpu.dot_dimension_numbers<[1], [0], [0], [1], [0, 0, 1, 1], [], []>} : vector<8x128xf32>, vector<128x50xf32>, vector<8x50xf32> -> vector<8x50xf32>
    %105 = arith.addf %100, %104 : vector<8x50xf32>
    %c136 = arith.constant 136 : index
    %c0_93 = arith.constant 0 : index
    %106 = vector.load %arg14[%c136, %c0_93] : memref<200x128xf32, #tpu.memory_space<vmem>>, vector<8x128xf32>
    %c17 = arith.constant 17 : index
    %c0_94 = arith.constant 0 : index
    %c0_95 = arith.constant 0 : index
    %107 = vector.load %arg3[%c17, %c0_94, %c0_95] : memref<25x128x50xf32, #tpu.memory_space<vmem>>, vector<1x128x50xf32>
    %108 = vector.shape_cast %107 : vector<1x128x50xf32> to vector<128x50xf32>
    %cst_96 = arith.constant dense<0.000000e+00> : vector<8x50xf32>
    %109 = tpu.matmul %106, %108, %cst_96 {dimension_numbers = #tpu.dot_dimension_numbers<[1], [0], [0], [1], [0, 0, 1, 1], [], []>} : vector<8x128xf32>, vector<128x50xf32>, vector<8x50xf32> -> vector<8x50xf32>
    %110 = arith.addf %105, %109 : vector<8x50xf32>
    %c144 = arith.constant 144 : index
    %c0_97 = arith.constant 0 : index
    %111 = vector.load %arg14[%c144, %c0_97] : memref<200x128xf32, #tpu.memory_space<vmem>>, vector<8x128xf32>
    %c18 = arith.constant 18 : index
    %c0_98 = arith.constant 0 : index
    %c0_99 = arith.constant 0 : index
    %112 = vector.load %arg3[%c18, %c0_98, %c0_99] : memref<25x128x50xf32, #tpu.memory_space<vmem>>, vector<1x128x50xf32>
    %113 = vector.shape_cast %112 : vector<1x128x50xf32> to vector<128x50xf32>
    %cst_100 = arith.constant dense<0.000000e+00> : vector<8x50xf32>
    %114 = tpu.matmul %111, %113, %cst_100 {dimension_numbers = #tpu.dot_dimension_numbers<[1], [0], [0], [1], [0, 0, 1, 1], [], []>} : vector<8x128xf32>, vector<128x50xf32>, vector<8x50xf32> -> vector<8x50xf32>
    %115 = arith.addf %110, %114 : vector<8x50xf32>
    %c152 = arith.constant 152 : index
    %c0_101 = arith.constant 0 : index
    %116 = vector.load %arg14[%c152, %c0_101] : memref<200x128xf32, #tpu.memory_space<vmem>>, vector<8x128xf32>
    %c19 = arith.constant 19 : index
    %c0_102 = arith.constant 0 : index
    %c0_103 = arith.constant 0 : index
    %117 = vector.load %arg3[%c19, %c0_102, %c0_103] : memref<25x128x50xf32, #tpu.memory_space<vmem>>, vector<1x128x50xf32>
    %118 = vector.shape_cast %117 : vector<1x128x50xf32> to vector<128x50xf32>
    %cst_104 = arith.constant dense<0.000000e+00> : vector<8x50xf32>
    %119 = tpu.matmul %116, %118, %cst_104 {dimension_numbers = #tpu.dot_dimension_numbers<[1], [0], [0], [1], [0, 0, 1, 1], [], []>} : vector<8x128xf32>, vector<128x50xf32>, vector<8x50xf32> -> vector<8x50xf32>
    %120 = arith.addf %115, %119 : vector<8x50xf32>
    %c160 = arith.constant 160 : index
    %c0_105 = arith.constant 0 : index
    %121 = vector.load %arg14[%c160, %c0_105] : memref<200x128xf32, #tpu.memory_space<vmem>>, vector<8x128xf32>
    %c20 = arith.constant 20 : index
    %c0_106 = arith.constant 0 : index
    %c0_107 = arith.constant 0 : index
    %122 = vector.load %arg3[%c20, %c0_106, %c0_107] : memref<25x128x50xf32, #tpu.memory_space<vmem>>, vector<1x128x50xf32>
    %123 = vector.shape_cast %122 : vector<1x128x50xf32> to vector<128x50xf32>
    %cst_108 = arith.constant dense<0.000000e+00> : vector<8x50xf32>
    %124 = tpu.matmul %121, %123, %cst_108 {dimension_numbers = #tpu.dot_dimension_numbers<[1], [0], [0], [1], [0, 0, 1, 1], [], []>} : vector<8x128xf32>, vector<128x50xf32>, vector<8x50xf32> -> vector<8x50xf32>
    %125 = arith.addf %120, %124 : vector<8x50xf32>
    %c168 = arith.constant 168 : index
    %c0_109 = arith.constant 0 : index
    %126 = vector.load %arg14[%c168, %c0_109] : memref<200x128xf32, #tpu.memory_space<vmem>>, vector<8x128xf32>
    %c21 = arith.constant 21 : index
    %c0_110 = arith.constant 0 : index
    %c0_111 = arith.constant 0 : index
    %127 = vector.load %arg3[%c21, %c0_110, %c0_111] : memref<25x128x50xf32, #tpu.memory_space<vmem>>, vector<1x128x50xf32>
    %128 = vector.shape_cast %127 : vector<1x128x50xf32> to vector<128x50xf32>
    %cst_112 = arith.constant dense<0.000000e+00> : vector<8x50xf32>
    %129 = tpu.matmul %126, %128, %cst_112 {dimension_numbers = #tpu.dot_dimension_numbers<[1], [0], [0], [1], [0, 0, 1, 1], [], []>} : vector<8x128xf32>, vector<128x50xf32>, vector<8x50xf32> -> vector<8x50xf32>
    %130 = arith.addf %125, %129 : vector<8x50xf32>
    %c176 = arith.constant 176 : index
    %c0_113 = arith.constant 0 : index
    %131 = vector.load %arg14[%c176, %c0_113] : memref<200x128xf32, #tpu.memory_space<vmem>>, vector<8x128xf32>
    %c22 = arith.constant 22 : index
    %c0_114 = arith.constant 0 : index
    %c0_115 = arith.constant 0 : index
    %132 = vector.load %arg3[%c22, %c0_114, %c0_115] : memref<25x128x50xf32, #tpu.memory_space<vmem>>, vector<1x128x50xf32>
    %133 = vector.shape_cast %132 : vector<1x128x50xf32> to vector<128x50xf32>
    %cst_116 = arith.constant dense<0.000000e+00> : vector<8x50xf32>
    %134 = tpu.matmul %131, %133, %cst_116 {dimension_numbers = #tpu.dot_dimension_numbers<[1], [0], [0], [1], [0, 0, 1, 1], [], []>} : vector<8x128xf32>, vector<128x50xf32>, vector<8x50xf32> -> vector<8x50xf32>
    %135 = arith.addf %130, %134 : vector<8x50xf32>
    %c184 = arith.constant 184 : index
    %c0_117 = arith.constant 0 : index
    %136 = vector.load %arg14[%c184, %c0_117] : memref<200x128xf32, #tpu.memory_space<vmem>>, vector<8x128xf32>
    %c23 = arith.constant 23 : index
    %c0_118 = arith.constant 0 : index
    %c0_119 = arith.constant 0 : index
    %137 = vector.load %arg3[%c23, %c0_118, %c0_119] : memref<25x128x50xf32, #tpu.memory_space<vmem>>, vector<1x128x50xf32>
    %138 = vector.shape_cast %137 : vector<1x128x50xf32> to vector<128x50xf32>
    %cst_120 = arith.constant dense<0.000000e+00> : vector<8x50xf32>
    %139 = tpu.matmul %136, %138, %cst_120 {dimension_numbers = #tpu.dot_dimension_numbers<[1], [0], [0], [1], [0, 0, 1, 1], [], []>} : vector<8x128xf32>, vector<128x50xf32>, vector<8x50xf32> -> vector<8x50xf32>
    %140 = arith.addf %135, %139 : vector<8x50xf32>
    %c192 = arith.constant 192 : index
    %c0_121 = arith.constant 0 : index
    %141 = vector.load %arg14[%c192, %c0_121] : memref<200x128xf32, #tpu.memory_space<vmem>>, vector<8x128xf32>
    %c24_122 = arith.constant 24 : index
    %c0_123 = arith.constant 0 : index
    %c0_124 = arith.constant 0 : index
    %142 = vector.load %arg3[%c24_122, %c0_123, %c0_124] : memref<25x128x50xf32, #tpu.memory_space<vmem>>, vector<1x128x50xf32>
    %143 = vector.shape_cast %142 : vector<1x128x50xf32> to vector<128x50xf32>
    %cst_125 = arith.constant dense<0.000000e+00> : vector<8x50xf32>
    %144 = tpu.matmul %141, %143, %cst_125 {dimension_numbers = #tpu.dot_dimension_numbers<[1], [0], [0], [1], [0, 0, 1, 1], [], []>} : vector<8x128xf32>, vector<128x50xf32>, vector<8x50xf32> -> vector<8x50xf32>
    %145 = arith.addf %140, %144 : vector<8x50xf32>
    %c0_126 = arith.constant 0 : index
    %c0_127 = arith.constant 0 : index
    %146 = vector.load %arg4[%c0_126, %c0_127] : memref<1x50xf32, #tpu.memory_space<vmem>>, vector<1x50xf32>
    %147 = vector.broadcast %146 : vector<1x50xf32> to vector<8x50xf32>
    %148 = arith.addf %145, %147 : vector<8x50xf32>
    %cst_128 = arith.constant 0.000000e+00 : f32
    %149 = vector.broadcast %cst_128 : f32 to vector<8x50xf32>
    %150 = arith.maximumf %148, %149 : vector<8x50xf32>
    %cst_129 = arith.constant dense<0.000000e+00> : vector<50xf32>
    %151 = vector.multi_reduction <add>, %150, %cst_129 [0] : vector<8x50xf32> to vector<50xf32>
    %152 = vector.shape_cast %151 : vector<50xf32> to vector<1x50xf32>
    %cst_130 = arith.constant 1.250000e-01 : f32
    %153 = vector.broadcast %cst_130 : f32 to vector<1x50xf32>
    %154 = arith.mulf %152, %153 : vector<1x50xf32>
    %c0_131 = arith.constant 0 : index
    %c0_132 = arith.constant 0 : index
    %155 = vector.load %arg5[%c0_131, %c0_132] : memref<50x50xf32, #tpu.memory_space<vmem>>, vector<50x50xf32>
    %cst_133 = arith.constant dense<0.000000e+00> : vector<1x50xf32>
    %156 = tpu.matmul %154, %155, %cst_133 {dimension_numbers = #tpu.dot_dimension_numbers<[1], [0], [0], [1], [0, 0, 1, 1], [], []>} : vector<1x50xf32>, vector<50x50xf32>, vector<1x50xf32> -> vector<1x50xf32>
    %c0_134 = arith.constant 0 : index
    %c0_135 = arith.constant 0 : index
    %157 = vector.load %arg6[%c0_134, %c0_135] : memref<50x50xf32, #tpu.memory_space<vmem>>, vector<50x50xf32>
    %cst_136 = arith.constant dense<0.000000e+00> : vector<8x50xf32>
    %158 = tpu.matmul %150, %157, %cst_136 {dimension_numbers = #tpu.dot_dimension_numbers<[1], [0], [0], [1], [0, 0, 1, 1], [], []>} : vector<8x50xf32>, vector<50x50xf32>, vector<8x50xf32> -> vector<8x50xf32>
    %159 = vector.broadcast %156 : vector<1x50xf32> to vector<8x50xf32>
    %160 = arith.addf %159, %158 : vector<8x50xf32>
    %c0_137 = arith.constant 0 : index
    %c0_138 = arith.constant 0 : index
    %161 = vector.load %arg7[%c0_137, %c0_138] : memref<1x50xf32, #tpu.memory_space<vmem>>, vector<1x50xf32>
    %162 = vector.broadcast %161 : vector<1x50xf32> to vector<8x50xf32>
    %163 = arith.addf %160, %162 : vector<8x50xf32>
    %cst_139 = arith.constant 0.000000e+00 : f32
    %164 = vector.broadcast %cst_139 : f32 to vector<8x50xf32>
    %165 = arith.cmpf ogt, %163, %164 : vector<8x50xf32>
    %cst_140 = arith.constant 0.00999999977 : f32
    %166 = vector.broadcast %cst_140 : f32 to vector<8x50xf32>
    %167 = arith.mulf %166, %163 : vector<8x50xf32>
    %168 = arith.select %165, %163, %167 : vector<8x50xi1>, vector<8x50xf32>
    %cst_141 = arith.constant dense<0xFF800000> : vector<8xf32>
    %169 = vector.multi_reduction <maximumf>, %168, %cst_141 [1] : vector<8x50xf32> to vector<8xf32>
    %170 = vector.shape_cast %169 : vector<8xf32> to vector<8x1xf32>
    %171 = vector.broadcast %170 : vector<8x1xf32> to vector<8x50xf32>
    %172 = arith.subf %168, %171 : vector<8x50xf32>
    %173 = math.exp %172 : vector<8x50xf32>
    %cst_142 = arith.constant dense<0.000000e+00> : vector<8xf32>
    %174 = vector.multi_reduction <add>, %173, %cst_142 [1] : vector<8x50xf32> to vector<8xf32>
    %175 = vector.shape_cast %174 : vector<8xf32> to vector<8x1xf32>
    %176 = vector.broadcast %175 : vector<8x1xf32> to vector<8x50xf32>
    %177 = arith.divf %173, %176 : vector<8x50xf32>
    %cst_143 = arith.constant dense<0.000000e+00> : vector<8x8xf32>
    %178 = tpu.matmul %177, %177, %cst_143 {dimension_numbers = #tpu.dot_dimension_numbers<[1], [1], [0], [0], [0, 0, 1, 0], [], []>} : vector<8x50xf32>, vector<8x50xf32>, vector<8x8xf32> -> vector<8x8xf32>
    %cst_144 = arith.constant 1.000000e+00 : f32
    %179 = vector.broadcast %cst_144 : f32 to vector<8x8xf32>
    %180 = arith.subf %179, %178 : vector<8x8xf32>
    %181 = arith.mulf %180, %180 : vector<8x8xf32>
    %cst_145 = arith.constant dense<0.000000e+00> : vector<8xf32>
    %182 = vector.multi_reduction <add>, %181, %cst_145 [1] : vector<8x8xf32> to vector<8xf32>
    %183 = vector.shape_cast %182 : vector<8xf32> to vector<8x1xf32>
    %cst_146 = arith.constant dense<0.000000e+00> : vector<1xf32>
    %184 = vector.multi_reduction <add>, %183, %cst_146 [0] : vector<8x1xf32> to vector<1xf32>
    %185 = vector.shape_cast %184 : vector<1xf32> to vector<1x1xf32>
    %186 = math.sqrt %185 : vector<1x1xf32>
    %cst_147 = arith.constant 6.400000e+01 : f32
    %187 = vector.broadcast %cst_147 : f32 to vector<1x1xf32>
    %188 = arith.divf %186, %187 : vector<1x1xf32>
    %cst_148 = arith.constant dense<0.000000e+00> : vector<50xf32>
    %189 = vector.multi_reduction <add>, %168, %cst_148 [0] : vector<8x50xf32> to vector<50xf32>
    %190 = vector.shape_cast %189 : vector<50xf32> to vector<1x50xf32>
    %c0_149 = arith.constant 0 : index
    %c0_150 = arith.constant 0 : index
    %191 = vector.load %arg5[%c0_149, %c0_150] : memref<50x50xf32, #tpu.memory_space<vmem>>, vector<50x50xf32>
    %cst_151 = arith.constant dense<0.000000e+00> : vector<1x50xf32>
    %192 = tpu.matmul %190, %191, %cst_151 {dimension_numbers = #tpu.dot_dimension_numbers<[1], [0], [0], [1], [0, 0, 1, 1], [], []>} : vector<1x50xf32>, vector<50x50xf32>, vector<1x50xf32> -> vector<1x50xf32>
    %c0_152 = arith.constant 0 : index
    %c0_153 = arith.constant 0 : index
    %193 = vector.load %arg6[%c0_152, %c0_153] : memref<50x50xf32, #tpu.memory_space<vmem>>, vector<50x50xf32>
    %cst_154 = arith.constant dense<0.000000e+00> : vector<1x50xf32>
    %194 = tpu.matmul %190, %193, %cst_154 {dimension_numbers = #tpu.dot_dimension_numbers<[1], [0], [0], [1], [0, 0, 1, 1], [], []>} : vector<1x50xf32>, vector<50x50xf32>, vector<1x50xf32> -> vector<1x50xf32>
    %195 = arith.addf %192, %194 : vector<1x50xf32>
    %c0_155 = arith.constant 0 : index
    %c0_156 = arith.constant 0 : index
    %196 = vector.load %arg7[%c0_155, %c0_156] : memref<1x50xf32, #tpu.memory_space<vmem>>, vector<1x50xf32>
    %197 = arith.addf %195, %196 : vector<1x50xf32>
    %cst_157 = arith.constant 0.000000e+00 : f32
    %198 = vector.broadcast %cst_157 : f32 to vector<1x50xf32>
    %199 = arith.cmpf ogt, %197, %198 : vector<1x50xf32>
    %cst_158 = arith.constant 0.00999999977 : f32
    %200 = vector.broadcast %cst_158 : f32 to vector<1x50xf32>
    %201 = arith.mulf %200, %197 : vector<1x50xf32>
    %202 = arith.select %199, %197, %201 : vector<1x50xi1>, vector<1x50xf32>
    %cst_159 = arith.constant dense<0xFF800000> : vector<1xf32>
    %203 = vector.multi_reduction <maximumf>, %202, %cst_159 [1] : vector<1x50xf32> to vector<1xf32>
    %204 = vector.shape_cast %203 : vector<1xf32> to vector<1x1xf32>
    %205 = vector.broadcast %204 : vector<1x1xf32> to vector<1x50xf32>
    %206 = arith.subf %202, %205 : vector<1x50xf32>
    %207 = math.exp %206 : vector<1x50xf32>
    %cst_160 = arith.constant dense<0.000000e+00> : vector<1xf32>
    %208 = vector.multi_reduction <add>, %207, %cst_160 [1] : vector<1x50xf32> to vector<1xf32>
    %209 = vector.shape_cast %208 : vector<1xf32> to vector<1x1xf32>
    %210 = vector.broadcast %209 : vector<1x1xf32> to vector<1x50xf32>
    %211 = arith.divf %207, %210 : vector<1x50xf32>
    %212 = arith.mulf %211, %211 : vector<1x50xf32>
    %cst_161 = arith.constant dense<0.000000e+00> : vector<1xf32>
    %213 = vector.multi_reduction <add>, %212, %cst_161 [1] : vector<1x50xf32> to vector<1xf32>
    %214 = vector.shape_cast %213 : vector<1xf32> to vector<1x1xf32>
    %cst_162 = arith.constant 6.400000e+01 : f32
    %215 = vector.broadcast %cst_162 : f32 to vector<1x1xf32>
    %216 = arith.subf %215, %214 : vector<1x1xf32>
    %217 = math.absf %216 : vector<1x1xf32>
    %c0_163 = arith.constant 0 : index
    %c0_164 = arith.constant 0 : index
    %218 = vector.load %arg8[%c0_163, %c0_164] : memref<50x25xf32, #tpu.memory_space<vmem>>, vector<50x25xf32>
    %cst_165 = arith.constant dense<0.000000e+00> : vector<1x25xf32>
    %219 = tpu.matmul %202, %218, %cst_165 {dimension_numbers = #tpu.dot_dimension_numbers<[1], [0], [0], [1], [0, 0, 1, 1], [], []>} : vector<1x50xf32>, vector<50x25xf32>, vector<1x25xf32> -> vector<1x25xf32>
    %c0_166 = arith.constant 0 : index
    %c0_167 = arith.constant 0 : index
    %220 = vector.load %arg9[%c0_166, %c0_167] : memref<1x25xf32, #tpu.memory_space<vmem>>, vector<1x25xf32>
    %221 = arith.addf %219, %220 : vector<1x25xf32>
    %cst_168 = arith.constant 0.000000e+00 : f32
    %222 = vector.broadcast %cst_168 : f32 to vector<1x25xf32>
    %223 = arith.cmpf ogt, %221, %222 : vector<1x25xf32>
    %cst_169 = arith.constant 0.00999999977 : f32
    %224 = vector.broadcast %cst_169 : f32 to vector<1x25xf32>
    %225 = arith.mulf %224, %221 : vector<1x25xf32>
    %226 = arith.select %223, %221, %225 : vector<1x25xi1>, vector<1x25xf32>
    %c0_170 = arith.constant 0 : index
    %c0_171 = arith.constant 0 : index
    %227 = vector.load %arg10[%c0_170, %c0_171] : memref<25x2xf32, #tpu.memory_space<vmem>>, vector<25x2xf32>
    %cst_172 = arith.constant dense<0.000000e+00> : vector<1x2xf32>
    %228 = tpu.matmul %226, %227, %cst_172 {dimension_numbers = #tpu.dot_dimension_numbers<[1], [0], [0], [1], [0, 0, 1, 1], [], []>} : vector<1x25xf32>, vector<25x2xf32>, vector<1x2xf32> -> vector<1x2xf32>
    %c0_173 = arith.constant 0 : index
    %c0_174 = arith.constant 0 : index
    %229 = vector.load %arg11[%c0_173, %c0_174] : memref<1x2xf32, #tpu.memory_space<vmem>>, vector<1x2xf32>
    %230 = arith.addf %228, %229 : vector<1x2xf32>
    %cst_175 = arith.constant 0.000000e+00 : f32
    %231 = vector.broadcast %cst_175 : f32 to vector<1x2xf32>
    %232 = arith.cmpf ogt, %230, %231 : vector<1x2xf32>
    %cst_176 = arith.constant 0.00999999977 : f32
    %233 = vector.broadcast %cst_176 : f32 to vector<1x2xf32>
    %234 = arith.mulf %233, %230 : vector<1x2xf32>
    %235 = arith.select %232, %230, %234 : vector<1x2xi1>, vector<1x2xf32>
    %cst_177 = arith.constant dense<0xFF800000> : vector<1xf32>
    %236 = vector.multi_reduction <maximumf>, %235, %cst_177 [1] : vector<1x2xf32> to vector<1xf32>
    %237 = vector.shape_cast %236 : vector<1xf32> to vector<1x1xf32>
    %238 = vector.broadcast %237 : vector<1x1xf32> to vector<1x2xf32>
    %239 = arith.subf %235, %238 : vector<1x2xf32>
    %240 = math.exp %239 : vector<1x2xf32>
    %cst_178 = arith.constant dense<0.000000e+00> : vector<1xf32>
    %241 = vector.multi_reduction <add>, %240, %cst_178 [1] : vector<1x2xf32> to vector<1xf32>
    %242 = vector.shape_cast %241 : vector<1xf32> to vector<1x1xf32>
    %243 = vector.broadcast %242 : vector<1x1xf32> to vector<1x2xf32>
    %244 = arith.divf %240, %243 : vector<1x2xf32>
    %c0_179 = arith.constant 0 : index
    %c0_180 = arith.constant 0 : index
    %245 = vector.load %arg12[%c0_179, %c0_180] : memref<1x2xf32, #tpu.memory_space<vmem>>, vector<1x2xf32>
    tpu.vector_store %arg12[%c0_179, %c0_180], %244 {strides = array<i32>} : memref<1x2xf32, #tpu.memory_space<vmem>>, vector<1x2xf32>,
    %246 = arith.addf %188, %217 : vector<1x1xf32>
    %c0_181 = arith.constant 0 : index
    %c0_182 = arith.constant 0 : index
    %247 = vector.load %arg13[%c0_181, %c0_182] : memref<1x1xf32, #tpu.memory_space<vmem>>, vector<1x1xf32>
    tpu.vector_store %arg13[%c0_181, %c0_182], %246 {strides = array<i32>} : memref<1x1xf32, #tpu.memory_space<vmem>>, vector<1x1xf32>,
    return
  }
}

</mosaic_0001>

<bundles_post_ra>
// kernel: _lambda_.2
= control target key start
LH: loop header
LB: loop body
LE: loop exit
PB: predicated region body
PF: predicated region fallthrough
CT: control target
= control target key end

     0   :  { %s11508_s1 = inlined_call_operand.vmem [shape: bf16[128,128], index: 1, kind: input, shape index: {}]   ;;  %s11509_s0 = inlined_call_operand.vmem [shape: bf16[4,1568,128], index: 0, kind: input, shape index: {}]   ;;  %s11510_s2 = inlined_call_operand.vmem [shape: f32[1,128], index: 2, kind: input, shape index: {}]   ;;  %s11511_s3 = inlined_call_operand.vmem [shape: bf16[1568,128], index: 3, kind: output, shape index: {}]  }
   0x1   :  { %v8788_v0 = vld [vmem:[%s11508_s1 + $0x38] sm:$0xff]  ;;  %v8787_v1 = vld [vmem:[%s11508_s1 + $0x30] sm:$0xff]  ;;  %v8786_v2 = vld [vmem:[%s11508_s1 + $0x28] sm:$0xff] }
   0x2   :  { %862 = vmatpush.bf16.msra.mxu0 %v8788_v0  ;;  %2146 = vmatpush.bf16.msra.mxu1 %v8788_v0  ;;  %v8785_v3 = vld [vmem:[%s11508_s1 + $0x20] sm:$0xff]  ;;  %v8784_v4 = vld [vmem:[%s11508_s1 + $0x18] sm:$0xff]  ;;  %v8783_v5 = vld [vmem:[%s11508_s1 + $0x10] sm:$0xff] }
   0x3   :  { %3626 = vmatpush.bf16.msra.mxu2 %v8788_v0  ;;  %5106 = vmatpush.bf16.msra.mxu3 %v8788_v0  ;;  %v8782_v6 = vld [vmem:[%s11508_s1 + $0x8] sm:$0xff]  ;;  %v8781_v7 = vld [vmem:[%s11508_s1] sm:$0xff]  ;;  %v8887_v9 = vld [vmem:[%s11509_s0 + $0x310] sm:$0xff] }
   0x4   :  { %v8789_v8 = vld [vmem:[%s11509_s0] sm:$0xff]  ;;  %v9083_v11 = vld [vmem:[%s11509_s0 + $0x930] sm:$0xff]  ;;  %v8790_v12 = vld [vmem:[%s11509_s0 + $0x8] sm:$0xff] }
   0x5   :  { %v8985_v10 = vld [vmem:[%s11509_s0 + $0x620] sm:$0xff]  ;;  %v8888_v13 = vld [vmem:[%s11509_s0 + $0x318] sm:$0xff]  ;;  %v8986_v14 = vld [vmem:[%s11509_s0 + $0x628] sm:$0xff] }
   0x6   :  { %863 = vmatpush.bf16.msra.mxu0 %v8787_v1  ;;  %2147 = vmatpush.bf16.msra.mxu1 %v8787_v1  ;;  %v9084_v15 = vld [vmem:[%s11509_s0 + $0x938] sm:$0xff]  ;;  %v8791_v16 = vld [vmem:[%s11509_s0 + $0x10] sm:$0xff]  ;;  %v8889_v17 = vld [vmem:[%s11509_s0 + $0x320] sm:$0xff] }
   0x7   :  { %3627 = vmatpush.bf16.msra.mxu2 %v8787_v1  ;;  %5107 = vmatpush.bf16.msra.mxu3 %v8787_v1  ;;  %v8987_v18 = vld [vmem:[%s11509_s0 + $0x630] sm:$0xff]  ;;  %v9085_v19 = vld [vmem:[%s11509_s0 + $0x940] sm:$0xff]  ;;  %v8792_v20 = vld [vmem:[%s11509_s0 + $0x18] sm:$0xff] }
   0x8   :  { %v8890_v21 = vld [vmem:[%s11509_s0 + $0x328] sm:$0xff]  ;;  %v8988_v22 = vld [vmem:[%s11509_s0 + $0x638] sm:$0xff]  ;;  %v8793_v24 = vld [vmem:[%s11509_s0 + $0x20] sm:$0xff] }
   0x9   :  { %v9086_v23 = vld [vmem:[%s11509_s0 + $0x948] sm:$0xff]  ;;  %v8891_v25 = vld [vmem:[%s11509_s0 + $0x330] sm:$0xff]  ;;  %v8989_v26 = vld [vmem:[%s11509_s0 + $0x640] sm:$0xff] }
   0xa   :  { %864 = vmatpush.bf16.msra.mxu0 %v8786_v2  ;;  %2148 = vmatpush.bf16.msra.mxu1 %v8786_v2  ;;  %v9087_v27 = vld [vmem:[%s11509_s0 + $0x950] sm:$0xff]  ;;  %v8794_v28 = vld [vmem:[%s11509_s0 + $0x28] sm:$0xff]  ;;  %v8892_v29 = vld [vmem:[%s11509_s0 + $0x338] sm:$0xff] }
   0xb   :  { %3628 = vmatpush.bf16.msra.mxu2 %v8786_v2  ;;  %5108 = vmatpush.bf16.msra.mxu3 %v8786_v2  ;;  %v8990_v30 = vld [vmem:[%s11509_s0 + $0x648] sm:$0xff]  ;;  %v9088_v31 = vld [vmem:[%s11509_s0 + $0x958] sm:$0xff]  ;;  %v8795_v32 = vld [vmem:[%s11509_s0 + $0x30] sm:$0xff] }
   0xc   :  { %v8893_v33 = vld [vmem:[%s11509_s0 + $0x340] sm:$0xff]  ;;  %v8991_v34 = vld [vmem:[%s11509_s0 + $0x650] sm:$0xff]  ;;  %v8796_v36 = vld [vmem:[%s11509_s0 + $0x38] sm:$0xff] }
   0xd   :  { %v9089_v35 = vld [vmem:[%s11509_s0 + $0x960] sm:$0xff]  ;;  %v8894_v37 = vld [vmem:[%s11509_s0 + $0x348] sm:$0xff]  ;;  %v8992_v38 = vld [vmem:[%s11509_s0 + $0x658] sm:$0xff] }
   0xe   :  { %865 = vmatpush.bf16.msra.mxu0 %v8785_v3  ;;  %2149 = vmatpush.bf16.msra.mxu1 %v8785_v3  ;;  %v9090_v39 = vld [vmem:[%s11509_s0 + $0x968] sm:$0xff]  ;;  %v8797_v40 = vld [vmem:[%s11509_s0 + $0x40] sm:$0xff]  ;;  %v8895_v41 = vld [vmem:[%s11509_s0 + $0x350] sm:$0xff] }
   0xf   :  { %3629 = vmatpush.bf16.msra.mxu2 %v8785_v3  ;;  %5109 = vmatpush.bf16.msra.mxu3 %v8785_v3  ;;  %v8993_v44 = vld [vmem:[%s11509_s0 + $0x660] sm:$0xff]  ;;  %v9091_v45 = vld [vmem:[%s11509_s0 + $0x970] sm:$0xff]  ;;  %v8798_v57 = vld [vmem:[%s11509_s0 + $0x48] sm:$0xff] }
  0x10   :  { %v9929_v53 = vld [vmem:[%s11510_s2] ss:$0 sm:$0xff]  ;;  %v8896_v58 = vld [vmem:[%s11509_s0 + $0x358] sm:$0xff]  ;;  %v8994_v62 = vld [vmem:[%s11509_s0 + $0x668] sm:$0xff] }
  0x11   :  { %v9092_v63 = vld [vmem:[%s11509_s0 + $0x978] sm:$0xff] }
  0x12   :  { %866 = vmatpush.bf16.msra.mxu0 %v8784_v4  ;;  %2150 = vmatpush.bf16.msra.mxu1 %v8784_v4 }
  0x13   :  { %3630 = vmatpush.bf16.msra.mxu2 %v8784_v4  ;;  %5110 = vmatpush.bf16.msra.mxu3 %v8784_v4 }
  0x16   :  { %867 = vmatpush.bf16.msra.mxu0 %v8783_v5  ;;  %2151 = vmatpush.bf16.msra.mxu1 %v8783_v5 }
  0x17   :  { %3631 = vmatpush.bf16.msra.mxu2 %v8783_v5  ;;  %5111 = vmatpush.bf16.msra.mxu3 %v8783_v5 }
  0x1a   :  { %868 = vmatpush.bf16.msra.mxu0 %v8782_v6  ;;  %2152 = vmatpush.bf16.msra.mxu1 %v8782_v6 }
  0x1b   :  { %3632 = vmatpush.bf16.msra.mxu2 %v8782_v6  ;;  %5112 = vmatpush.bf16.msra.mxu3 %v8782_v6 }
  0x1e   :  { %869 = vmatpush.bf16.msra.mxu0 %v8781_v7  ;;  %2153 = vmatpush.bf16.msra.mxu1 %v8781_v7 }
  0x1f   :  { %3633 = vmatpush.bf16.msra.mxu2 %v8781_v7  ;;  %5113 = vmatpush.bf16.msra.mxu3 %v8781_v7 }
  0x21   :  { %870 = vmatmul.bf16.vlgmr.msra.gmra.mxu0 %v8789_v8  ;;  %2154 = vmatmul.bf16.vlgmr.msra.gmra.mxu1 %v8887_v9 }
  0x22   :  { %3634 = vmatmul.bf16.vlgmr.msra.gmra.mxu2 %v8985_v10  ;;  %5114 = vmatmul.bf16.vlgmr.msra.gmra.mxu3 %v9083_v11 }
  0x31   :  { %875 = vmatmul.bf16.gmra.mxu0 %v8790_v12  ;;  %2159 = vmatmul.bf16.gmra.mxu1 %v8888_v13 }
  0x32   :  { %3639 = vmatmul.bf16.gmra.mxu2 %v8986_v14  ;;  %5119 = vmatmul.bf16.gmra.mxu3 %v9084_v15 }
  0x41   :  { %880 = vmatmul.bf16.gmra.mxu0 %v8791_v16  ;;  %2164 = vmatmul.bf16.gmra.mxu1 %v8889_v17  ;;  %v8799_v16 = vld [vmem:[%s11509_s0 + $0x50] sm:$0xff]  ;;  %v8897_v17 = vld [vmem:[%s11509_s0 + $0x360] sm:$0xff] }
  0x42   :  { %3644 = vmatmul.bf16.gmra.mxu2 %v8987_v18  ;;  %5124 = vmatmul.bf16.gmra.mxu3 %v9085_v19 }
  0x51   :  { %885 = vmatmul.bf16.gmra.mxu0 %v8792_v20  ;;  %2169 = vmatmul.bf16.gmra.mxu1 %v8890_v21  ;;  %v8995_v21 = vld [vmem:[%s11509_s0 + $0x670] sm:$0xff] }
  0x52   :  { %3649 = vmatmul.bf16.gmra.mxu2 %v8988_v22  ;;  %5129 = vmatmul.bf16.gmra.mxu3 %v9086_v23  ;;  %v9093_v22 = vld [vmem:[%s11509_s0 + $0x980] sm:$0xff] }
  0x61   :  { %890 = vmatmul.bf16.gmra.mxu0 %v8793_v24  ;;  %2174 = vmatmul.bf16.gmra.mxu1 %v8891_v25 }
  0x62   :  { %3654 = vmatmul.bf16.gmra.mxu2 %v8989_v26  ;;  %5134 = vmatmul.bf16.gmra.mxu3 %v9087_v27 }
  0x71   :  { %895 = vmatmul.bf16.gmra.mxu0 %v8794_v28  ;;  %2179 = vmatmul.bf16.gmra.mxu1 %v8892_v29 }
  0x72   :  { %3659 = vmatmul.bf16.gmra.mxu2 %v8990_v30  ;;  %5139 = vmatmul.bf16.gmra.mxu3 %v9088_v31 }
  0x81   :  { %900 = vmatmul.bf16.gmra.mxu0 %v8795_v32  ;;  %2184 = vmatmul.bf16.gmra.mxu1 %v8893_v33 }
  0x82   :  { %3664 = vmatmul.bf16.gmra.mxu2 %v8991_v34  ;;  %5144 = vmatmul.bf16.gmra.mxu3 %v9089_v35 }
  0x91   :  { %905 = vmatmul.bf16.gmra.mxu0 %v8796_v36  ;;  %2189 = vmatmul.bf16.gmra.mxu1 %v8894_v37 }
  0x92   :  { %3669 = vmatmul.bf16.gmra.mxu2 %v8992_v38  ;;  %5149 = vmatmul.bf16.gmra.mxu3 %v9090_v39  ;;  %v8800_v39 = vld [vmem:[%s11509_s0 + $0x58] sm:$0xff] }
  0x9e   :  { %v871_v42 = vpop.f32.mrf.mxu0  ;;  %v2155_v43 = vpop.f32.mrf.mxu1 }
  0x9f   :  { %v2645_v46 = vmax.f32 %v871_v42, %v2155_v43 }
  0xa1   :  { %910 = vmatmul.bf16.gmra.mxu0 %v8797_v40  ;;  %2194 = vmatmul.bf16.gmra.mxu1 %v8895_v41  ;;  %v8898_v40 = vld [vmem:[%s11509_s0 + $0x368] sm:$0xff] }
  0xa2   :  { %3674 = vmatmul.bf16.gmra.mxu2 %v8993_v44  ;;  %5154 = vmatmul.bf16.gmra.mxu3 %v9091_v45  ;;  %v8996_v44 = vld [vmem:[%s11509_s0 + $0x678] sm:$0xff]  ;;  %v9094_v45 = vld [vmem:[%s11509_s0 + $0x988] sm:$0xff] }
  0xa5   :  { %v3635_v47 = vpop.f32.mrf.mxu2  ;;  %v5115_v48 = vpop.f32.mrf.mxu3 }
  0xa6   :  { %v873_v49 = vpop.f32.mrf.mxu0  ;;  %v2157_v50 = vpop.f32.mrf.mxu1  ;;  %v4125_v51 = vmax.f32 %v2645_v46, %v3635_v47 }
  0xa7   :  { %v2646_v54 = vmax.f32 %v873_v49, %v2157_v50 }
  0xa8   :  { %v5605_v52 = vmax.f32 %v4125_v51, %v5115_v48 }
  0xaa   :  { %v5805_v0 = vadd.f32 %v9929_v53, %v5605_v52 }
  0xac   :  { %v6001_v3 = vmax.f32 %v5805_v0, 0.0  ;;  %v8899_v0 = vld [vmem:[%s11509_s0 + $0x370] sm:$0xff] }
  0xad   :  { %v3637_v55 = vpop.f32.mrf.mxu2  ;;  %v5117_v56 = vpop.f32.mrf.mxu3 }
  0xae   :  { %v4126_v59 = vmax.f32 %v2646_v54, %v3637_v55  ;;  %v876_v60 = vpop.f32.mrf.mxu0  ;;  %v2160_v61 = vpop.f32.mrf.mxu1 }
  0xaf   :  { %v2647_v5 = vmax.f32 %v876_v60, %v2160_v61 }
  0xb0   :  { %v5606_v1 = vmax.f32 %v4126_v59, %v5117_v56 }
  0xb1   :  { %915 = vmatmul.bf16.gmra.mxu0 %v8798_v57  ;;  %2199 = vmatmul.bf16.gmra.mxu1 %v8896_v58 }
  0xb2   :  { %v5806_v2 = vadd.f32 %v9929_v53, %v5606_v1  ;;  %3679 = vmatmul.bf16.gmra.mxu2 %v8994_v62  ;;  %5159 = vmatmul.bf16.gmra.mxu3 %v9092_v63  ;;  %v8801_v63 = vld [vmem:[%s11509_s0 + $0x60] sm:$0xff] }
  0xb4   :  { %v6002_v4 = vmax.f32 %v5806_v2, 0.0 }
  0xb5   :  { %v3640_v6 = vpop.f32.mrf.mxu2  ;;  %v5120_v7 = vpop.f32.mrf.mxu3 }
  0xb6   :  { %v9184_v8 = vpack.c.bf16 %v6002_v4, %v6001_v3  ;;  %v878_v9 = vpop.f32.mrf.mxu0  ;;  %v2162_v10 = vpop.f32.mrf.mxu1  ;;  %v4127_v11 = vmax.f32 %v2647_v5, %v3640_v6  ;;  %v8997_v4 = vld [vmem:[%s11509_s0 + $0x680] sm:$0xff]  ;;  %v9095_v5 = vld [vmem:[%s11509_s0 + $0x990] sm:$0xff] }
  0xb7   :  { %v2648_v13 = vmax.f32 %v878_v9, %v2162_v10 }
  0xb8   :  { %9185 = vst [vmem:[%s11511_s3] sm:$0xff] %v9184_v8   ;;  %v5607_v12 = vmax.f32 %v4127_v11, %v5120_v7 }
  0xba   :  { %v5807_v23 = vadd.f32 %v9929_v53, %v5607_v12 }
  0xbc   :  { %v6003_v26 = vmax.f32 %v5807_v23, 0.0  ;;  %v8900_v23 = vld [vmem:[%s11509_s0 + $0x378] sm:$0xff] }
  0xbd   :  { %v3642_v14 = vpop.f32.mrf.mxu2  ;;  %v5122_v15 = vpop.f32.mrf.mxu3 }
  0xbe   :  { %v4128_v18 = vmax.f32 %v2648_v13, %v3642_v14  ;;  %v881_v19 = vpop.f32.mrf.mxu0  ;;  %v2165_v20 = vpop.f32.mrf.mxu1 }
  0xbf   :  { %v2649_v28 = vmax.f32 %v881_v19, %v2165_v20 }
  0xc0   :  { %v5608_v24 = vmax.f32 %v4128_v18, %v5122_v15 }
  0xc1   :  { %920 = vmatmul.bf16.gmra.mxu0 %v8799_v16  ;;  %2204 = vmatmul.bf16.gmra.mxu1 %v8897_v17 }
  0xc2   :  { %v5808_v25 = vadd.f32 %v9929_v53, %v5608_v24  ;;  %3684 = vmatmul.bf16.gmra.mxu2 %v8995_v21  ;;  %5164 = vmatmul.bf16.gmra.mxu3 %v9093_v22  ;;  %v8802_v22 = vld [vmem:[%s11509_s0 + $0x68] sm:$0xff] }
  0xc4   :  { %v6004_v27 = vmax.f32 %v5808_v25, 0.0 }
  0xc5   :  { %v3645_v29 = vpop.f32.mrf.mxu2  ;;  %v5125_v30 = vpop.f32.mrf.mxu3 }
  0xc6   :  { %v9189_v31 = vpack.c.bf16 %v6004_v27, %v6003_v26  ;;  %v883_v32 = vpop.f32.mrf.mxu0  ;;  %v2167_v33 = vpop.f32.mrf.mxu1  ;;  %v4129_v34 = vmax.f32 %v2649_v28, %v3645_v29  ;;  %v8998_v27 = vld [vmem:[%s11509_s0 + $0x688] sm:$0xff]  ;;  %v9096_v28 = vld [vmem:[%s11509_s0 + $0x998] sm:$0xff] }
  0xc7   :  { %v2650_v36 = vmax.f32 %v883_v32, %v2167_v33 }
  0xc8   :  { %9671 = vst [vmem:[%s11511_s3 + $0x8] sm:$0xff] %v9189_v31   ;;  %v5609_v35 = vmax.f32 %v4129_v34, %v5125_v30 }
  0xca   :  { %v5809_v46 = vadd.f32 %v9929_v53, %v5609_v35 }
  0xcc   :  { %v6005_v49 = vmax.f32 %v5809_v46, 0.0  ;;  %v8901_v46 = vld [vmem:[%s11509_s0 + $0x380] sm:$0xff] }
  0xcd   :  { %v3647_v37 = vpop.f32.mrf.mxu2  ;;  %v5127_v38 = vpop.f32.mrf.mxu3 }
  0xce   :  { %v4130_v41 = vmax.f32 %v2650_v36, %v3647_v37  ;;  %v886_v42 = vpop.f32.mrf.mxu0  ;;  %v2170_v43 = vpop.f32.mrf.mxu1 }
  0xcf   :  { %v2651_v51 = vmax.f32 %v886_v42, %v2170_v43 }
  0xd0   :  { %v5610_v47 = vmax.f32 %v4130_v41, %v5127_v38 }
  0xd1   :  { %925 = vmatmul.bf16.gmra.mxu0 %v8800_v39  ;;  %2209 = vmatmul.bf16.gmra.mxu1 %v8898_v40 }
  0xd2   :  { %v5810_v48 = vadd.f32 %v9929_v53, %v5610_v47  ;;  %3689 = vmatmul.bf16.gmra.mxu2 %v8996_v44  ;;  %5169 = vmatmul.bf16.gmra.mxu3 %v9094_v45  ;;  %v8803_v45 = vld [vmem:[%s11509_s0 + $0x70] sm:$0xff] }
  0xd4   :  { %v6006_v50 = vmax.f32 %v5810_v48, 0.0 }
  0xd5   :  { %v3650_v52 = vpop.f32.mrf.mxu2  ;;  %v5130_v54 = vpop.f32.mrf.mxu3 }
  0xd6   :  { %v9194_v55 = vpack.c.bf16 %v6006_v50, %v6005_v49  ;;  %v888_v56 = vpop.f32.mrf.mxu0  ;;  %v2172_v57 = vpop.f32.mrf.mxu1  ;;  %v4131_v58 = vmax.f32 %v2651_v51, %v3650_v52  ;;  %v8999_v50 = vld [vmem:[%s11509_s0 + $0x690] sm:$0xff]  ;;  %v9097_v51 = vld [vmem:[%s11509_s0 + $0x9a0] sm:$0xff] }
  0xd7   :  { %v2652_v60 = vmax.f32 %v888_v56, %v2172_v57 }
  0xd8   :  { %9672 = vst [vmem:[%s11511_s3 + $0x10] sm:$0xff] %v9194_v55   ;;  %v5611_v59 = vmax.f32 %v4131_v58, %v5130_v54 }
  0xda   :  { %v5811_v6 = vadd.f32 %v9929_v53, %v5611_v59 }
  0xdc   :  { %v6007_v9 = vmax.f32 %v5811_v6, 0.0  ;;  %v8902_v6 = vld [vmem:[%s11509_s0 + $0x388] sm:$0xff] }
  0xdd   :  { %v3652_v61 = vpop.f32.mrf.mxu2  ;;  %v5132_v62 = vpop.f32.mrf.mxu3 }
  0xde   :  { %v4132_v1 = vmax.f32 %v2652_v60, %v3652_v61  ;;  %v891_v2 = vpop.f32.mrf.mxu0  ;;  %v2175_v3 = vpop.f32.mrf.mxu1 }
  0xdf   :  { %v2653_v11 = vmax.f32 %v891_v2, %v2175_v3 }
  0xe0   :  { %v5612_v7 = vmax.f32 %v4132_v1, %v5132_v62 }
  0xe1   :  { %930 = vmatmul.bf16.gmra.mxu0 %v8801_v63  ;;  %2214 = vmatmul.bf16.gmra.mxu1 %v8899_v0 }
  0xe2   :  { %v5812_v8 = vadd.f32 %v9929_v53, %v5612_v7  ;;  %3694 = vmatmul.bf16.gmra.mxu2 %v8997_v4  ;;  %5174 = vmatmul.bf16.gmra.mxu3 %v9095_v5  ;;  %v8804_v5 = vld [vmem:[%s11509_s0 + $0x78] sm:$0xff] }
  0xe4   :  { %v6008_v10 = vmax.f32 %v5812_v8, 0.0 }
  0xe5   :  { %v3655_v12 = vpop.f32.mrf.mxu2  ;;  %v5135_v13 = vpop.f32.mrf.mxu3 }
  0xe6   :  { %v9199_v14 = vpack.c.bf16 %v6008_v10, %v6007_v9  ;;  %v893_v15 = vpop.f32.mrf.mxu0  ;;  %v2177_v16 = vpop.f32.mrf.mxu1  ;;  %v4133_v17 = vmax.f32 %v2653_v11, %v3655_v12  ;;  %v9000_v10 = vld [vmem:[%s11509_s0 + $0x698] sm:$0xff]  ;;  %v9098_v11 = vld [vmem:[%s11509_s0 + $0x9a8] sm:$0xff] }
  0xe7   :  { %v2654_v19 = vmax.f32 %v893_v15, %v2177_v16 }
  0xe8   :  { %9673 = vst [vmem:[%s11511_s3 + $0x18] sm:$0xff] %v9199_v14   ;;  %v5613_v18 = vmax.f32 %v4133_v17, %v5135_v13 }
  0xea   :  { %v5813_v29 = vadd.f32 %v9929_v53, %v5613_v18 }
  0xec   :  { %v6009_v32 = vmax.f32 %v5813_v29, 0.0  ;;  %v8903_v29 = vld [vmem:[%s11509_s0 + $0x390] sm:$0xff] }
  0xed   :  { %v3657_v20 = vpop.f32.mrf.mxu2  ;;  %v5137_v21 = vpop.f32.mrf.mxu3 }
  0xee   :  { %v4134_v24 = vmax.f32 %v2654_v19, %v3657_v20  ;;  %v896_v25 = vpop.f32.mrf.mxu0  ;;  %v2180_v26 = vpop.f32.mrf.mxu1 }
  0xef   :  { %v2655_v34 = vmax.f32 %v896_v25, %v2180_v26 }
  0xf0   :  { %v5614_v30 = vmax.f32 %v4134_v24, %v5137_v21 }
  0xf1   :  { %935 = vmatmul.bf16.gmra.mxu0 %v8802_v22  ;;  %2219 = vmatmul.bf16.gmra.mxu1 %v8900_v23 }
  0xf2   :  { %v5814_v31 = vadd.f32 %v9929_v53, %v5614_v30  ;;  %3699 = vmatmul.bf16.gmra.mxu2 %v8998_v27  ;;  %5179 = vmatmul.bf16.gmra.mxu3 %v9096_v28  ;;  %v8805_v28 = vld [vmem:[%s11509_s0 + $0x80] sm:$0xff] }
  0xf4   :  { %v6010_v33 = vmax.f32 %v5814_v31, 0.0 }
  0xf5   :  { %v3660_v35 = vpop.f32.mrf.mxu2  ;;  %v5140_v36 = vpop.f32.mrf.mxu3 }
  0xf6   :  { %v9204_v37 = vpack.c.bf16 %v6010_v33, %v6009_v32  ;;  %v898_v38 = vpop.f32.mrf.mxu0  ;;  %v2182_v39 = vpop.f32.mrf.mxu1  ;;  %v4135_v40 = vmax.f32 %v2655_v34, %v3660_v35  ;;  %v9001_v33 = vld [vmem:[%s11509_s0 + $0x6a0] sm:$0xff]  ;;  %v9099_v34 = vld [vmem:[%s11509_s0 + $0x9b0] sm:$0xff] }
  0xf7   :  { %v2656_v42 = vmax.f32 %v898_v38, %v2182_v39 }
  0xf8   :  { %9674 = vst [vmem:[%s11511_s3 + $0x20] sm:$0xff] %v9204_v37   ;;  %v5615_v41 = vmax.f32 %v4135_v40, %v5140_v36 }
  0xfa   :  { %v5815_v52 = vadd.f32 %v9929_v53, %v5615_v41 }
  0xfc   :  { %v6011_v56 = vmax.f32 %v5815_v52, 0.0  ;;  %v8904_v52 = vld [vmem:[%s11509_s0 + $0x398] sm:$0xff] }
  0xfd   :  { %v3662_v43 = vpop.f32.mrf.mxu2  ;;  %v5142_v44 = vpop.f32.mrf.mxu3 }
  0xfe   :  { %v4136_v47 = vmax.f32 %v2656_v42, %v3662_v43  ;;  %v901_v48 = vpop.f32.mrf.mxu0  ;;  %v2185_v49 = vpop.f32.mrf.mxu1 }
  0xff   :  { %v2657_v58 = vmax.f32 %v901_v48, %v2185_v49 }
 0x100   :  { %v5616_v54 = vmax.f32 %v4136_v47, %v5142_v44 }
 0x101   :  { %940 = vmatmul.bf16.gmra.mxu0 %v8803_v45  ;;  %2224 = vmatmul.bf16.gmra.mxu1 %v8901_v46 }
 0x102   :  { %v5816_v55 = vadd.f32 %v9929_v53, %v5616_v54  ;;  %3704 = vmatmul.bf16.gmra.mxu2 %v8999_v50  ;;  %5184 = vmatmul.bf16.gmra.mxu3 %v9097_v51  ;;  %v8806_v51 = vld [vmem:[%s11509_s0 + $0x88] sm:$0xff] }
 0x104   :  { %v6012_v57 = vmax.f32 %v5816_v55, 0.0 }
 0x105   :  { %v3665_v59 = vpop.f32.mrf.mxu2  ;;  %v5145_v60 = vpop.f32.mrf.mxu3 }
 0x106   :  { %v9209_v61 = vpack.c.bf16 %v6012_v57, %v6011_v56  ;;  %v903_v62 = vpop.f32.mrf.mxu0  ;;  %v2187_v63 = vpop.f32.mrf.mxu1  ;;  %v4137_v0 = vmax.f32 %v2657_v58, %v3665_v59  ;;  %v9002_v57 = vld [vmem:[%s11509_s0 + $0x6a8] sm:$0xff]  ;;  %v9100_v58 = vld [vmem:[%s11509_s0 + $0x9b8] sm:$0xff] }
 0x107   :  { %v2658_v2 = vmax.f32 %v903_v62, %v2187_v63 }
 0x108   :  { %9675 = vst [vmem:[%s11511_s3 + $0x28] sm:$0xff] %v9209_v61   ;;  %v5617_v1 = vmax.f32 %v4137_v0, %v5145_v60 }
 0x10a   :  { %v5817_v12 = vadd.f32 %v9929_v53, %v5617_v1 }
 0x10c   :  { %v6013_v15 = vmax.f32 %v5817_v12, 0.0  ;;  %v8905_v12 = vld [vmem:[%s11509_s0 + $0x3a0] sm:$0xff] }
 0x10d   :  { %v3667_v3 = vpop.f32.mrf.mxu2  ;;  %v5147_v4 = vpop.f32.mrf.mxu3 }
 0x10e   :  { %v4138_v7 = vmax.f32 %v2658_v2, %v3667_v3  ;;  %v906_v8 = vpop.f32.mrf.mxu0  ;;  %v2190_v9 = vpop.f32.mrf.mxu1 }
 0x10f   :  { %v2659_v17 = vmax.f32 %v906_v8, %v2190_v9 }
 0x110   :  { %v5618_v13 = vmax.f32 %v4138_v7, %v5147_v4 }
 0x111   :  { %945 = vmatmul.bf16.gmra.mxu0 %v8804_v5  ;;  %2229 = vmatmul.bf16.gmra.mxu1 %v8902_v6 }
 0x112   :  { %v5818_v14 = vadd.f32 %v9929_v53, %v5618_v13  ;;  %3709 = vmatmul.bf16.gmra.mxu2 %v9000_v10  ;;  %5189 = vmatmul.bf16.gmra.mxu3 %v9098_v11  ;;  %v8807_v11 = vld [vmem:[%s11509_s0 + $0x90] sm:$0xff] }
 0x114   :  { %v6014_v16 = vmax.f32 %v5818_v14, 0.0 }
 0x115   :  { %v3670_v18 = vpop.f32.mrf.mxu2  ;;  %v5150_v19 = vpop.f32.mrf.mxu3 }
 0x116   :  { %v9214_v20 = vpack.c.bf16 %v6014_v16, %v6013_v15  ;;  %v908_v21 = vpop.f32.mrf.mxu0  ;;  %v2192_v22 = vpop.f32.mrf.mxu1  ;;  %v4139_v23 = vmax.f32 %v2659_v17, %v3670_v18  ;;  %v9003_v16 = vld [vmem:[%s11509_s0 + $0x6b0] sm:$0xff]  ;;  %v9101_v17 = vld [vmem:[%s11509_s0 + $0x9c0] sm:$0xff] }
 0x117   :  { %v2660_v25 = vmax.f32 %v908_v21, %v2192_v22 }
 0x118   :  { %9676 = vst [vmem:[%s11511_s3 + $0x30] sm:$0xff] %v9214_v20   ;;  %v5619_v24 = vmax.f32 %v4139_v23, %v5150_v19 }
 0x11a   :  { %v5819_v35 = vadd.f32 %v9929_v53, %v5619_v24 }
 0x11c   :  { %v6015_v38 = vmax.f32 %v5819_v35, 0.0  ;;  %v8906_v35 = vld [vmem:[%s11509_s0 + $0x3a8] sm:$0xff] }
 0x11d   :  { %v3672_v26 = vpop.f32.mrf.mxu2  ;;  %v5152_v27 = vpop.f32.mrf.mxu3 }
 0x11e   :  { %v4140_v30 = vmax.f32 %v2660_v25, %v3672_v26  ;;  %v911_v31 = vpop.f32.mrf.mxu0  ;;  %v2195_v32 = vpop.f32.mrf.mxu1 }
 0x11f   :  { %v2661_v40 = vmax.f32 %v911_v31, %v2195_v32 }
 0x120   :  { %v5620_v36 = vmax.f32 %v4140_v30, %v5152_v27 }
 0x121   :  { %950 = vmatmul.bf16.gmra.mxu0 %v8805_v28  ;;  %2234 = vmatmul.bf16.gmra.mxu1 %v8903_v29 }
 0x122   :  { %v5820_v37 = vadd.f32 %v9929_v53, %v5620_v36  ;;  %3714 = vmatmul.bf16.gmra.mxu2 %v9001_v33  ;;  %5194 = vmatmul.bf16.gmra.mxu3 %v9099_v34  ;;  %v8808_v34 = vld [vmem:[%s11509_s0 + $0x98] sm:$0xff] }
 0x124   :  { %v6016_v39 = vmax.f32 %v5820_v37, 0.0 }
 0x125   :  { %v3675_v41 = vpop.f32.mrf.mxu2  ;;  %v5155_v42 = vpop.f32.mrf.mxu3 }
 0x126   :  { %v9219_v43 = vpack.c.bf16 %v6016_v39, %v6015_v38  ;;  %v913_v44 = vpop.f32.mrf.mxu0  ;;  %v2197_v45 = vpop.f32.mrf.mxu1  ;;  %v4141_v46 = vmax.f32 %v2661_v40, %v3675_v41  ;;  %v9004_v39 = vld [vmem:[%s11509_s0 + $0x6b8] sm:$0xff]  ;;  %v9102_v40 = vld [vmem:[%s11509_s0 + $0x9c8] sm:$0xff] }
 0x127   :  { %v2662_v48 = vmax.f32 %v913_v44, %v2197_v45 }
 0x128   :  { %9677 = vst [vmem:[%s11511_s3 + $0x38] sm:$0xff] %v9219_v43   ;;  %v5621_v47 = vmax.f32 %v4141_v46, %v5155_v42 }
 0x12a   :  { %v5821_v59 = vadd.f32 %v9929_v53, %v5621_v47 }
 0x12c   :  { %v6017_v62 = vmax.f32 %v5821_v59, 0.0  ;;  %v8907_v59 = vld [vmem:[%s11509_s0 + $0x3b0] sm:$0xff] }
 0x12d   :  { %v3677_v49 = vpop.f32.mrf.mxu2  ;;  %v5157_v50 = vpop.f32.mrf.mxu3 }
 0x12e   :  { %v4142_v54 = vmax.f32 %v2662_v48, %v3677_v49  ;;  %v916_v55 = vpop.f32.mrf.mxu0  ;;  %v2200_v56 = vpop.f32.mrf.mxu1 }
 0x12f   :  { %v2663_v0 = vmax.f32 %v916_v55, %v2200_v56 }
 0x130   :  { %v5622_v60 = vmax.f32 %v4142_v54, %v5157_v50 }
 0x131   :  { %955 = vmatmul.bf16.gmra.mxu0 %v8806_v51  ;;  %2239 = vmatmul.bf16.gmra.mxu1 %v8904_v52 }
 0x132   :  { %v5822_v61 = vadd.f32 %v9929_v53, %v5622_v60  ;;  %3719 = vmatmul.bf16.gmra.mxu2 %v9002_v57  ;;  %5199 = vmatmul.bf16.gmra.mxu3 %v9100_v58  ;;  %v8809_v58 = vld [vmem:[%s11509_s0 + $0xa0] sm:$0xff] }
 0x134   :  { %v6018_v63 = vmax.f32 %v5822_v61, 0.0 }
 0x135   :  { %v3680_v1 = vpop.f32.mrf.mxu2  ;;  %v5160_v2 = vpop.f32.mrf.mxu3 }
 0x136   :  { %v9224_v3 = vpack.c.bf16 %v6018_v63, %v6017_v62  ;;  %v918_v4 = vpop.f32.mrf.mxu0  ;;  %v2202_v5 = vpop.f32.mrf.mxu1  ;;  %v4143_v6 = vmax.f32 %v2663_v0, %v3680_v1  ;;  %v9005_v63 = vld [vmem:[%s11509_s0 + $0x6c0] sm:$0xff]  ;;  %v9103_v0 = vld [vmem:[%s11509_s0 + $0x9d0] sm:$0xff] }
 0x137   :  { %v2664_v8 = vmax.f32 %v918_v4, %v2202_v5 }
 0x138   :  { %9678 = vst [vmem:[%s11511_s3 + $0x40] sm:$0xff] %v9224_v3   ;;  %v5623_v7 = vmax.f32 %v4143_v6, %v5160_v2 }
 0x13a   :  { %v5823_v18 = vadd.f32 %v9929_v53, %v5623_v7 }
 0x13c   :  { %v6019_v21 = vmax.f32 %v5823_v18, 0.0  ;;  %v8908_v18 = vld [vmem:[%s11509_s0 + $0x3b8] sm:$0xff] }
 0x13d   :  { %v3682_v9 = vpop.f32.mrf.mxu2  ;;  %v5162_v10 = vpop.f32.mrf.mxu3 }
 0x13e   :  { %v4144_v13 = vmax.f32 %v2664_v8, %v3682_v9  ;;  %v921_v14 = vpop.f32.mrf.mxu0  ;;  %v2205_v15 = vpop.f32.mrf.mxu1 }
 0x13f   :  { %v2665_v23 = vmax.f32 %v921_v14, %v2205_v15 }
 0x140   :  { %v5624_v19 = vmax.f32 %v4144_v13, %v5162_v10 }
 0x141   :  { %960 = vmatmul.bf16.gmra.mxu0 %v8807_v11  ;;  %2244 = vmatmul.bf16.gmra.mxu1 %v8905_v12 }
 0x142   :  { %v5824_v20 = vadd.f32 %v9929_v53, %v5624_v19  ;;  %3724 = vmatmul.bf16.gmra.mxu2 %v9003_v16  ;;  %5204 = vmatmul.bf16.gmra.mxu3 %v9101_v17  ;;  %v8810_v17 = vld [vmem:[%s11509_s0 + $0xa8] sm:$0xff] }
 0x144   :  { %v6020_v22 = vmax.f32 %v5824_v20, 0.0 }
 0x145   :  { %v3685_v24 = vpop.f32.mrf.mxu2  ;;  %v5165_v25 = vpop.f32.mrf.mxu3 }
 0x146   :  { %v9229_v26 = vpack.c.bf16 %v6020_v22, %v6019_v21  ;;  %v923_v27 = vpop.f32.mrf.mxu0  ;;  %v2207_v28 = vpop.f32.mrf.mxu1  ;;  %v4145_v29 = vmax.f32 %v2665_v23, %v3685_v24  ;;  %v9006_v22 = vld [vmem:[%s11509_s0 + $0x6c8] sm:$0xff]  ;;  %v9104_v23 = vld [vmem:[%s11509_s0 + $0x9d8] sm:$0xff] }
 0x147   :  { %v2666_v31 = vmax.f32 %v923_v27, %v2207_v28 }
 0x148   :  { %9679 = vst [vmem:[%s11511_s3 + $0x48] sm:$0xff] %v9229_v26   ;;  %v5625_v30 = vmax.f32 %v4145_v29, %v5165_v25 }
 0x14a   :  { %v5825_v41 = vadd.f32 %v9929_v53, %v5625_v30 }
 0x14c   :  { %v6021_v44 = vmax.f32 %v5825_v41, 0.0  ;;  %v8909_v41 = vld [vmem:[%s11509_s0 + $0x3c0] sm:$0xff] }
 0x14d   :  { %v3687_v32 = vpop.f32.mrf.mxu2  ;;  %v5167_v33 = vpop.f32.mrf.mxu3 }
 0x14e   :  { %v4146_v36 = vmax.f32 %v2666_v31, %v3687_v32  ;;  %v926_v37 = vpop.f32.mrf.mxu0  ;;  %v2210_v38 = vpop.f32.mrf.mxu1 }
 0x14f   :  { %v2667_v46 = vmax.f32 %v926_v37, %v2210_v38 }
 0x150   :  { %v5626_v42 = vmax.f32 %v4146_v36, %v5167_v33 }
 0x151   :  { %965 = vmatmul.bf16.gmra.mxu0 %v8808_v34  ;;  %2249 = vmatmul.bf16.gmra.mxu1 %v8906_v35 }
 0x152   :  { %v5826_v43 = vadd.f32 %v9929_v53, %v5626_v42  ;;  %3729 = vmatmul.bf16.gmra.mxu2 %v9004_v39  ;;  %5209 = vmatmul.bf16.gmra.mxu3 %v9102_v40  ;;  %v8811_v40 = vld [vmem:[%s11509_s0 + $0xb0] sm:$0xff] }
 0x154   :  { %v6022_v45 = vmax.f32 %v5826_v43, 0.0 }
 0x155   :  { %v3690_v47 = vpop.f32.mrf.mxu2  ;;  %v5170_v48 = vpop.f32.mrf.mxu3 }
 0x156   :  { %v9234_v49 = vpack.c.bf16 %v6022_v45, %v6021_v44  ;;  %v928_v50 = vpop.f32.mrf.mxu0  ;;  %v2212_v51 = vpop.f32.mrf.mxu1  ;;  %v4147_v52 = vmax.f32 %v2667_v46, %v3690_v47  ;;  %v9007_v45 = vld [vmem:[%s11509_s0 + $0x6d0] sm:$0xff]  ;;  %v9105_v46 = vld [vmem:[%s11509_s0 + $0x9e0] sm:$0xff] }
 0x157   :  { %v2668_v55 = vmax.f32 %v928_v50, %v2212_v51 }
 0x158   :  { %9680 = vst [vmem:[%s11511_s3 + $0x50] sm:$0xff] %v9234_v49   ;;  %v5627_v54 = vmax.f32 %v4147_v52, %v5170_v48 }
 0x15a   :  { %v5827_v1 = vadd.f32 %v9929_v53, %v5627_v54 }
 0x15c   :  { %v6023_v4 = vmax.f32 %v5827_v1, 0.0  ;;  %v8910_v1 = vld [vmem:[%s11509_s0 + $0x3c8] sm:$0xff] }
 0x15d   :  { %v3692_v56 = vpop.f32.mrf.mxu2  ;;  %v5172_v57 = vpop.f32.mrf.mxu3 }
 0x15e   :  { %v4148_v60 = vmax.f32 %v2668_v55, %v3692_v56  ;;  %v931_v61 = vpop.f32.mrf.mxu0  ;;  %v2215_v62 = vpop.f32.mrf.mxu1 }
 0x15f   :  { %v2669_v6 = vmax.f32 %v931_v61, %v2215_v62 }
 0x160   :  { %v5628_v2 = vmax.f32 %v4148_v60, %v5172_v57 }
 0x161   :  { %970 = vmatmul.bf16.gmra.mxu0 %v8809_v58  ;;  %2254 = vmatmul.bf16.gmra.mxu1 %v8907_v59 }
 0x162   :  { %v5828_v3 = vadd.f32 %v9929_v53, %v5628_v2  ;;  %3734 = vmatmul.bf16.gmra.mxu2 %v9005_v63  ;;  %5214 = vmatmul.bf16.gmra.mxu3 %v9103_v0  ;;  %v8812_v0 = vld [vmem:[%s11509_s0 + $0xb8] sm:$0xff] }
 0x164   :  { %v6024_v5 = vmax.f32 %v5828_v3, 0.0 }
 0x165   :  { %v3695_v7 = vpop.f32.mrf.mxu2  ;;  %v5175_v8 = vpop.f32.mrf.mxu3 }
 0x166   :  { %v9239_v9 = vpack.c.bf16 %v6024_v5, %v6023_v4  ;;  %v933_v10 = vpop.f32.mrf.mxu0  ;;  %v2217_v11 = vpop.f32.mrf.mxu1  ;;  %v4149_v12 = vmax.f32 %v2669_v6, %v3695_v7  ;;  %v9008_v5 = vld [vmem:[%s11509_s0 + $0x6d8] sm:$0xff]  ;;  %v9106_v6 = vld [vmem:[%s11509_s0 + $0x9e8] sm:$0xff] }
 0x167   :  { %v2670_v14 = vmax.f32 %v933_v10, %v2217_v11 }
 0x168   :  { %9681 = vst [vmem:[%s11511_s3 + $0x58] sm:$0xff] %v9239_v9   ;;  %v5629_v13 = vmax.f32 %v4149_v12, %v5175_v8 }
 0x16a   :  { %v5829_v24 = vadd.f32 %v9929_v53, %v5629_v13 }
 0x16c   :  { %v6025_v27 = vmax.f32 %v5829_v24, 0.0  ;;  %v8911_v24 = vld [vmem:[%s11509_s0 + $0x3d0] sm:$0xff] }
 0x16d   :  { %v3697_v15 = vpop.f32.mrf.mxu2  ;;  %v5177_v16 = vpop.f32.mrf.mxu3 }
 0x16e   :  { %v4150_v19 = vmax.f32 %v2670_v14, %v3697_v15  ;;  %v936_v20 = vpop.f32.mrf.mxu0  ;;  %v2220_v21 = vpop.f32.mrf.mxu1 }
 0x16f   :  { %v2671_v29 = vmax.f32 %v936_v20, %v2220_v21 }
 0x170   :  { %v5630_v25 = vmax.f32 %v4150_v19, %v5177_v16 }
 0x171   :  { %975 = vmatmul.bf16.gmra.mxu0 %v8810_v17  ;;  %2259 = vmatmul.bf16.gmra.mxu1 %v8908_v18 }
 0x172   :  { %v5830_v26 = vadd.f32 %v9929_v53, %v5630_v25  ;;  %3739 = vmatmul.bf16.gmra.mxu2 %v9006_v22  ;;  %5219 = vmatmul.bf16.gmra.mxu3 %v9104_v23  ;;  %v8813_v23 = vld [vmem:[%s11509_s0 + $0xc0] sm:$0xff] }
 0x174   :  { %v6026_v28 = vmax.f32 %v5830_v26, 0.0 }
 0x175   :  { %v3700_v30 = vpop.f32.mrf.mxu2  ;;  %v5180_v31 = vpop.f32.mrf.mxu3 }
 0x176   :  { %v9244_v32 = vpack.c.bf16 %v6026_v28, %v6025_v27  ;;  %v938_v33 = vpop.f32.mrf.mxu0  ;;  %v2222_v34 = vpop.f32.mrf.mxu1  ;;  %v4151_v35 = vmax.f32 %v2671_v29, %v3700_v30  ;;  %v9009_v28 = vld [vmem:[%s11509_s0 + $0x6e0] sm:$0xff]  ;;  %v9107_v29 = vld [vmem:[%s11509_s0 + $0x9f0] sm:$0xff] }
 0x177   :  { %v2672_v37 = vmax.f32 %v938_v33, %v2222_v34 }
 0x178   :  { %9682 = vst [vmem:[%s11511_s3 + $0x60] sm:$0xff] %v9244_v32   ;;  %v5631_v36 = vmax.f32 %v4151_v35, %v5180_v31 }
 0x17a   :  { %v5831_v47 = vadd.f32 %v9929_v53, %v5631_v36 }
 0x17c   :  { %v6027_v50 = vmax.f32 %v5831_v47, 0.0  ;;  %v8912_v47 = vld [vmem:[%s11509_s0 + $0x3d8] sm:$0xff] }
 0x17d   :  { %v3702_v38 = vpop.f32.mrf.mxu2  ;;  %v5182_v39 = vpop.f32.mrf.mxu3 }
 0x17e   :  { %v4152_v42 = vmax.f32 %v2672_v37, %v3702_v38  ;;  %v941_v43 = vpop.f32.mrf.mxu0  ;;  %v2225_v44 = vpop.f32.mrf.mxu1 }
 0x17f   :  { %v2673_v52 = vmax.f32 %v941_v43, %v2225_v44 }
 0x180   :  { %v5632_v48 = vmax.f32 %v4152_v42, %v5182_v39 }
 0x181   :  { %980 = vmatmul.bf16.gmra.mxu0 %v8811_v40  ;;  %2264 = vmatmul.bf16.gmra.mxu1 %v8909_v41 }
 0x182   :  { %v5832_v49 = vadd.f32 %v9929_v53, %v5632_v48  ;;  %3744 = vmatmul.bf16.gmra.mxu2 %v9007_v45  ;;  %5224 = vmatmul.bf16.gmra.mxu3 %v9105_v46  ;;  %v8814_v46 = vld [vmem:[%s11509_s0 + $0xc8] sm:$0xff] }
 0x184   :  { %v6028_v51 = vmax.f32 %v5832_v49, 0.0 }
 0x185   :  { %v3705_v54 = vpop.f32.mrf.mxu2  ;;  %v5185_v55 = vpop.f32.mrf.mxu3 }
 0x186   :  { %v9249_v56 = vpack.c.bf16 %v6028_v51, %v6027_v50  ;;  %v943_v57 = vpop.f32.mrf.mxu0  ;;  %v2227_v58 = vpop.f32.mrf.mxu1  ;;  %v4153_v59 = vmax.f32 %v2673_v52, %v3705_v54  ;;  %v9010_v51 = vld [vmem:[%s11509_s0 + $0x6e8] sm:$0xff]  ;;  %v9108_v52 = vld [vmem:[%s11509_s0 + $0x9f8] sm:$0xff] }
 0x187   :  { %v2674_v61 = vmax.f32 %v943_v57, %v2227_v58 }
 0x188   :  { %9683 = vst [vmem:[%s11511_s3 + $0x68] sm:$0xff] %v9249_v56   ;;  %v5633_v60 = vmax.f32 %v4153_v59, %v5185_v55 }
 0x18a   :  { %v5833_v7 = vadd.f32 %v9929_v53, %v5633_v60 }
 0x18c   :  { %v6029_v10 = vmax.f32 %v5833_v7, 0.0  ;;  %v8913_v7 = vld [vmem:[%s11509_s0 + $0x3e0] sm:$0xff] }
 0x18d   :  { %v3707_v62 = vpop.f32.mrf.mxu2  ;;  %v5187_v63 = vpop.f32.mrf.mxu3 }
 0x18e   :  { %v4154_v2 = vmax.f32 %v2674_v61, %v3707_v62  ;;  %v946_v3 = vpop.f32.mrf.mxu0  ;;  %v2230_v4 = vpop.f32.mrf.mxu1 }
 0x18f   :  { %v2675_v12 = vmax.f32 %v946_v3, %v2230_v4 }
 0x190   :  { %v5634_v8 = vmax.f32 %v4154_v2, %v5187_v63 }
 0x191   :  { %985 = vmatmul.bf16.gmra.mxu0 %v8812_v0  ;;  %2269 = vmatmul.bf16.gmra.mxu1 %v8910_v1 }
 0x192   :  { %v5834_v9 = vadd.f32 %v9929_v53, %v5634_v8  ;;  %3749 = vmatmul.bf16.gmra.mxu2 %v9008_v5  ;;  %5229 = vmatmul.bf16.gmra.mxu3 %v9106_v6  ;;  %v8815_v6 = vld [vmem:[%s11509_s0 + $0xd0] sm:$0xff] }
 0x194   :  { %v6030_v11 = vmax.f32 %v5834_v9, 0.0 }
 0x195   :  { %v3710_v13 = vpop.f32.mrf.mxu2  ;;  %v5190_v14 = vpop.f32.mrf.mxu3 }
 0x196   :  { %v9254_v15 = vpack.c.bf16 %v6030_v11, %v6029_v10  ;;  %v948_v16 = vpop.f32.mrf.mxu0  ;;  %v2232_v17 = vpop.f32.mrf.mxu1  ;;  %v4155_v18 = vmax.f32 %v2675_v12, %v3710_v13  ;;  %v9011_v11 = vld [vmem:[%s11509_s0 + $0x6f0] sm:$0xff]  ;;  %v9109_v12 = vld [vmem:[%s11509_s0 + $0xa00] sm:$0xff] }
 0x197   :  { %v2676_v20 = vmax.f32 %v948_v16, %v2232_v17 }
 0x198   :  { %9684 = vst [vmem:[%s11511_s3 + $0x70] sm:$0xff] %v9254_v15   ;;  %v5635_v19 = vmax.f32 %v4155_v18, %v5190_v14 }
 0x19a   :  { %v5835_v30 = vadd.f32 %v9929_v53, %v5635_v19 }
 0x19c   :  { %v6031_v33 = vmax.f32 %v5835_v30, 0.0 }
 0x19d   :  { %v3712_v21 = vpop.f32.mrf.mxu2  ;;  %v5192_v22 = vpop.f32.mrf.mxu3 }
 0x19e   :  { %v4156_v25 = vmax.f32 %v2676_v20, %v3712_v21  ;;  %v951_v26 = vpop.f32.mrf.mxu0  ;;  %v2235_v27 = vpop.f32.mrf.mxu1 }
 0x19f   :  { %v2677_v35 = vmax.f32 %v951_v26, %v2235_v27 }
 0x1a0   :  { %v5636_v31 = vmax.f32 %v4156_v25, %v5192_v22 }
 0x1a1   :  { %990 = vmatmul.bf16.gmra.mxu0 %v8813_v23  ;;  %2274 = vmatmul.bf16.gmra.mxu1 %v8911_v24 }
 0x1a2   :  { %v5836_v32 = vadd.f32 %v9929_v53, %v5636_v31  ;;  %3754 = vmatmul.bf16.gmra.mxu2 %v9009_v28  ;;  %5234 = vmatmul.bf16.gmra.mxu3 %v9107_v29  ;;  %v8914_v29 = vld [vmem:[%s11509_s0 + $0x3e8] sm:$0xff] }
 0x1a4   :  { %v6032_v34 = vmax.f32 %v5836_v32, 0.0 }
 0x1a5   :  { %v3715_v36 = vpop.f32.mrf.mxu2  ;;  %v5195_v37 = vpop.f32.mrf.mxu3 }
 0x1a6   :  { %v9259_v38 = vpack.c.bf16 %v6032_v34, %v6031_v33  ;;  %v953_v39 = vpop.f32.mrf.mxu0  ;;  %v2237_v40 = vpop.f32.mrf.mxu1  ;;  %v4157_v41 = vmax.f32 %v2677_v35, %v3715_v36  ;;  %v9012_v33 = vld [vmem:[%s11509_s0 + $0x6f8] sm:$0xff]  ;;  %v9110_v34 = vld [vmem:[%s11509_s0 + $0xa08] sm:$0xff]  ;;  %v10252_v35 = vld [vmem:[%s11510_s2] ss:$0 sm:$0xff] }
 0x1a7   :  { %v2678_v43 = vmax.f32 %v953_v39, %v2237_v40 }
 0x1a8   :  { %9685 = vst [vmem:[%s11511_s3 + $0x78] sm:$0xff] %v9259_v38   ;;  %v5637_v42 = vmax.f32 %v4157_v41, %v5195_v37 }
 0x1aa   :  { %v5837_v54 = vadd.f32 %v9929_v53, %v5637_v42 }
 0x1ac   :  { %v6033_v57 = vmax.f32 %v5837_v54, 0.0  ;;  %v8915_v54 = vld [vmem:[%s11509_s0 + $0x3f0] sm:$0xff] }
 0x1ad   :  { %v3717_v44 = vpop.f32.mrf.mxu2  ;;  %v5197_v45 = vpop.f32.mrf.mxu3 }
 0x1ae   :  { %v4158_v48 = vmax.f32 %v2678_v43, %v3717_v44  ;;  %v956_v49 = vpop.f32.mrf.mxu0  ;;  %v2240_v50 = vpop.f32.mrf.mxu1 }
 0x1af   :  { %v2679_v59 = vmax.f32 %v956_v49, %v2240_v50 }
 0x1b0   :  { %v5638_v55 = vmax.f32 %v4158_v48, %v5197_v45 }
 0x1b1   :  { %995 = vmatmul.bf16.gmra.mxu0 %v8814_v46  ;;  %2279 = vmatmul.bf16.gmra.mxu1 %v8912_v47 }
 0x1b2   :  { %v5838_v56 = vadd.f32 %v9929_v53, %v5638_v55  ;;  %3759 = vmatmul.bf16.gmra.mxu2 %v9010_v51  ;;  %5239 = vmatmul.bf16.gmra.mxu3 %v9108_v52  ;;  %v8817_v52 = vld [vmem:[%s11509_s0 + $0xe0] sm:$0xff] }
 0x1b4   :  { %v6034_v58 = vmax.f32 %v5838_v56, 0.0 }
 0x1b5   :  { %v3720_v60 = vpop.f32.mrf.mxu2  ;;  %v5200_v61 = vpop.f32.mrf.mxu3 }
 0x1b6   :  { %v9264_v62 = vpack.c.bf16 %v6034_v58, %v6033_v57  ;;  %v958_v63 = vpop.f32.mrf.mxu0  ;;  %v2242_v0 = vpop.f32.mrf.mxu1  ;;  %v4159_v1 = vmax.f32 %v2679_v59, %v3720_v60  ;;  %v9013_v58 = vld [vmem:[%s11509_s0 + $0x700] sm:$0xff]  ;;  %v9111_v59 = vld [vmem:[%s11509_s0 + $0xa10] sm:$0xff] }
 0x1b7   :  { %v2680_v3 = vmax.f32 %v958_v63, %v2242_v0 }
 0x1b8   :  { %9686 = vst [vmem:[%s11511_s3 + $0x80] sm:$0xff] %v9264_v62   ;;  %v5639_v2 = vmax.f32 %v4159_v1, %v5200_v61 }
 0x1ba   :  { %v5839_v13 = vadd.f32 %v9929_v53, %v5639_v2 }
 0x1bc   :  { %v6035_v16 = vmax.f32 %v5839_v13, 0.0  ;;  %v8916_v13 = vld [vmem:[%s11509_s0 + $0x3f8] sm:$0xff] }
 0x1bd   :  { %v3722_v4 = vpop.f32.mrf.mxu2  ;;  %v5202_v5 = vpop.f32.mrf.mxu3 }
 0x1be   :  { %v4160_v8 = vmax.f32 %v2680_v3, %v3722_v4  ;;  %v961_v9 = vpop.f32.mrf.mxu0  ;;  %v2245_v10 = vpop.f32.mrf.mxu1 }
 0x1bf   :  { %v2681_v18 = vmax.f32 %v961_v9, %v2245_v10 }
 0x1c0   :  { %v5640_v14 = vmax.f32 %v4160_v8, %v5202_v5 }
 0x1c1   :  { %1000 = vmatmul.bf16.gmra.mxu0 %v8815_v6  ;;  %2284 = vmatmul.bf16.gmra.mxu1 %v8913_v7 }
 0x1c2   :  { %v5840_v15 = vadd.f32 %v9929_v53, %v5640_v14  ;;  %3764 = vmatmul.bf16.gmra.mxu2 %v9011_v11  ;;  %5244 = vmatmul.bf16.gmra.mxu3 %v9109_v12  ;;  %v8816_v53 = vld [vmem:[%s11509_s0 + $0xd8] sm:$0xff]  ;;  %v8818_v12 = vld [vmem:[%s11509_s0 + $0xe8] sm:$0xff] }
 0x1c4   :  { %v6036_v17 = vmax.f32 %v5840_v15, 0.0 }
 0x1c5   :  { %v3725_v19 = vpop.f32.mrf.mxu2  ;;  %v5205_v20 = vpop.f32.mrf.mxu3 }
 0x1c6   :  { %v9269_v21 = vpack.c.bf16 %v6036_v17, %v6035_v16  ;;  %v963_v22 = vpop.f32.mrf.mxu0  ;;  %v2247_v23 = vpop.f32.mrf.mxu1  ;;  %v4161_v24 = vmax.f32 %v2681_v18, %v3725_v19  ;;  %v9014_v17 = vld [vmem:[%s11509_s0 + $0x708] sm:$0xff]  ;;  %v9112_v18 = vld [vmem:[%s11509_s0 + $0xa18] sm:$0xff] }
 0x1c7   :  { %v2682_v26 = vmax.f32 %v963_v22, %v2247_v23 }
 0x1c8   :  { %9687 = vst [vmem:[%s11511_s3 + $0x88] sm:$0xff] %v9269_v21   ;;  %v5641_v25 = vmax.f32 %v4161_v24, %v5205_v20 }
 0x1ca   :  { %v5841_v36 = vadd.f32 %v10252_v35, %v5641_v25 }
 0x1cc   :  { %v6037_v39 = vmax.f32 %v5841_v36, 0.0  ;;  %v8917_v36 = vld [vmem:[%s11509_s0 + $0x400] sm:$0xff] }
 0x1cd   :  { %v3727_v27 = vpop.f32.mrf.mxu2  ;;  %v5207_v28 = vpop.f32.mrf.mxu3 }
 0x1ce   :  { %v4162_v30 = vmax.f32 %v2682_v26, %v3727_v27  ;;  %v966_v31 = vpop.f32.mrf.mxu0  ;;  %v2250_v32 = vpop.f32.mrf.mxu1 }
 0x1cf   :  { %v2683_v41 = vmax.f32 %v966_v31, %v2250_v32 }
 0x1d0   :  { %v5642_v37 = vmax.f32 %v4162_v30, %v5207_v28 }
 0x1d1   :  { %1005 = vmatmul.bf16.gmra.mxu0 %v8816_v53  ;;  %2289 = vmatmul.bf16.gmra.mxu1 %v8914_v29 }
 0x1d2   :  { %v5842_v38 = vadd.f32 %v10252_v35, %v5642_v37  ;;  %3769 = vmatmul.bf16.gmra.mxu2 %v9012_v33  ;;  %5249 = vmatmul.bf16.gmra.mxu3 %v9110_v34  ;;  %v8819_v34 = vld [vmem:[%s11509_s0 + $0xf0] sm:$0xff] }
 0x1d4   :  { %v6038_v40 = vmax.f32 %v5842_v38, 0.0 }
 0x1d5   :  { %v3730_v42 = vpop.f32.mrf.mxu2  ;;  %v5210_v43 = vpop.f32.mrf.mxu3 }
 0x1d6   :  { %v9274_v44 = vpack.c.bf16 %v6038_v40, %v6037_v39  ;;  %v968_v45 = vpop.f32.mrf.mxu0  ;;  %v2252_v46 = vpop.f32.mrf.mxu1  ;;  %v4163_v47 = vmax.f32 %v2683_v41, %v3730_v42  ;;  %v9015_v40 = vld [vmem:[%s11509_s0 + $0x710] sm:$0xff]  ;;  %v9113_v41 = vld [vmem:[%s11509_s0 + $0xa20] sm:$0xff] }
 0x1d7   :  { %v2684_v49 = vmax.f32 %v968_v45, %v2252_v46 }
 0x1d8   :  { %9688 = vst [vmem:[%s11511_s3 + $0x90] sm:$0xff] %v9274_v44   ;;  %v5643_v48 = vmax.f32 %v4163_v47, %v5210_v43 }
 0x1da   :  { %v5843_v60 = vadd.f32 %v10252_v35, %v5643_v48 }
 0x1dc   :  { %v6039_v63 = vmax.f32 %v5843_v60, 0.0  ;;  %v8918_v60 = vld [vmem:[%s11509_s0 + $0x408] sm:$0xff] }
 0x1dd   :  { %v3732_v50 = vpop.f32.mrf.mxu2  ;;  %v5212_v51 = vpop.f32.mrf.mxu3 }
 0x1de   :  { %v4164_v55 = vmax.f32 %v2684_v49, %v3732_v50  ;;  %v971_v56 = vpop.f32.mrf.mxu0  ;;  %v2255_v57 = vpop.f32.mrf.mxu1 }
 0x1df   :  { %v2685_v1 = vmax.f32 %v971_v56, %v2255_v57 }
 0x1e0   :  { %v5644_v61 = vmax.f32 %v4164_v55, %v5212_v51 }
 0x1e1   :  { %1010 = vmatmul.bf16.gmra.mxu0 %v8817_v52  ;;  %2294 = vmatmul.bf16.gmra.mxu1 %v8915_v54 }
 0x1e2   :  { %v5844_v62 = vadd.f32 %v10252_v35, %v5644_v61  ;;  %3774 = vmatmul.bf16.gmra.mxu2 %v9013_v58  ;;  %5254 = vmatmul.bf16.gmra.mxu3 %v9111_v59  ;;  %v8820_v59 = vld [vmem:[%s11509_s0 + $0xf8] sm:$0xff] }
 0x1e4   :  { %v6040_v0 = vmax.f32 %v5844_v62, 0.0 }
 0x1e5   :  { %v3735_v2 = vpop.f32.mrf.mxu2  ;;  %v5215_v3 = vpop.f32.mrf.mxu3 }
 0x1e6   :  { %v9279_v4 = vpack.c.bf16 %v6040_v0, %v6039_v63  ;;  %v973_v5 = vpop.f32.mrf.mxu0  ;;  %v2257_v6 = vpop.f32.mrf.mxu1  ;;  %v4165_v7 = vmax.f32 %v2685_v1, %v3735_v2  ;;  %v9016_v0 = vld [vmem:[%s11509_s0 + $0x718] sm:$0xff]  ;;  %v9114_v1 = vld [vmem:[%s11509_s0 + $0xa28] sm:$0xff] }
 0x1e7   :  { %v2686_v9 = vmax.f32 %v973_v5, %v2257_v6 }
 0x1e8   :  { %9689 = vst [vmem:[%s11511_s3 + $0x98] sm:$0xff] %v9279_v4   ;;  %v5645_v8 = vmax.f32 %v4165_v7, %v5215_v3 }
 0x1ea   :  { %v5845_v19 = vadd.f32 %v10252_v35, %v5645_v8 }
 0x1ec   :  { %v6041_v22 = vmax.f32 %v5845_v19, 0.0  ;;  %v8919_v19 = vld [vmem:[%s11509_s0 + $0x410] sm:$0xff] }
 0x1ed   :  { %v3737_v10 = vpop.f32.mrf.mxu2  ;;  %v5217_v11 = vpop.f32.mrf.mxu3 }
 0x1ee   :  { %v4166_v14 = vmax.f32 %v2686_v9, %v3737_v10  ;;  %v976_v15 = vpop.f32.mrf.mxu0  ;;  %v2260_v16 = vpop.f32.mrf.mxu1 }
 0x1ef   :  { %v2687_v24 = vmax.f32 %v976_v15, %v2260_v16 }
 0x1f0   :  { %v5646_v20 = vmax.f32 %v4166_v14, %v5217_v11 }
 0x1f1   :  { %1015 = vmatmul.bf16.gmra.mxu0 %v8818_v12  ;;  %2299 = vmatmul.bf16.gmra.mxu1 %v8916_v13 }
 0x1f2   :  { %v5846_v21 = vadd.f32 %v10252_v35, %v5646_v20  ;;  %3779 = vmatmul.bf16.gmra.mxu2 %v9014_v17  ;;  %5259 = vmatmul.bf16.gmra.mxu3 %v9112_v18  ;;  %v8821_v18 = vld [vmem:[%s11509_s0 + $0x100] sm:$0xff] }
 0x1f4   :  { %v6042_v23 = vmax.f32 %v5846_v21, 0.0 }
 0x1f5   :  { %v3740_v25 = vpop.f32.mrf.mxu2  ;;  %v5220_v26 = vpop.f32.mrf.mxu3 }
 0x1f6   :  { %v9284_v27 = vpack.c.bf16 %v6042_v23, %v6041_v22  ;;  %v978_v28 = vpop.f32.mrf.mxu0  ;;  %v2262_v53 = vpop.f32.mrf.mxu1  ;;  %v4167_v29 = vmax.f32 %v2687_v24, %v3740_v25  ;;  %v9017_v23 = vld [vmem:[%s11509_s0 + $0x720] sm:$0xff]  ;;  %v9115_v24 = vld [vmem:[%s11509_s0 + $0xa30] sm:$0xff] }
 0x1f7   :  { %v2688_v31 = vmax.f32 %v978_v28, %v2262_v53 }
 0x1f8   :  { %9690 = vst [vmem:[%s11511_s3 + $0xa0] sm:$0xff] %v9284_v27   ;;  %v5647_v30 = vmax.f32 %v4167_v29, %v5220_v26 }
 0x1fa   :  { %v5847_v42 = vadd.f32 %v10252_v35, %v5647_v30 }
 0x1fc   :  { %v6043_v45 = vmax.f32 %v5847_v42, 0.0  ;;  %v8920_v42 = vld [vmem:[%s11509_s0 + $0x418] sm:$0xff] }
 0x1fd   :  { %v3742_v32 = vpop.f32.mrf.mxu2  ;;  %v5222_v33 = vpop.f32.mrf.mxu3 }
 0x1fe   :  { %v4168_v37 = vmax.f32 %v2688_v31, %v3742_v32  ;;  %v981_v38 = vpop.f32.mrf.mxu0  ;;  %v2265_v39 = vpop.f32.mrf.mxu1 }
 0x1ff   :  { %v2689_v47 = vmax.f32 %v981_v38, %v2265_v39 }
 0x200   :  { %v5648_v43 = vmax.f32 %v4168_v37, %v5222_v33 }
 0x201   :  { %1020 = vmatmul.bf16.gmra.mxu0 %v8819_v34  ;;  %2304 = vmatmul.bf16.gmra.mxu1 %v8917_v36 }
 0x202   :  { %v5848_v44 = vadd.f32 %v10252_v35, %v5648_v43  ;;  %3784 = vmatmul.bf16.gmra.mxu2 %v9015_v40  ;;  %5264 = vmatmul.bf16.gmra.mxu3 %v9113_v41  ;;  %v8822_v41 = vld [vmem:[%s11509_s0 + $0x108] sm:$0xff] }
 0x204   :  { %v6044_v46 = vmax.f32 %v5848_v44, 0.0 }
 0x205   :  { %v3745_v48 = vpop.f32.mrf.mxu2  ;;  %v5225_v49 = vpop.f32.mrf.mxu3 }
 0x206   :  { %v9289_v50 = vpack.c.bf16 %v6044_v46, %v6043_v45  ;;  %v983_v51 = vpop.f32.mrf.mxu0  ;;  %v2267_v52 = vpop.f32.mrf.mxu1  ;;  %v4169_v54 = vmax.f32 %v2689_v47, %v3745_v48  ;;  %v9018_v46 = vld [vmem:[%s11509_s0 + $0x728] sm:$0xff]  ;;  %v9116_v47 = vld [vmem:[%s11509_s0 + $0xa38] sm:$0xff] }
 0x207   :  { %v2690_v56 = vmax.f32 %v983_v51, %v2267_v52 }
 0x208   :  { %9691 = vst [vmem:[%s11511_s3 + $0xa8] sm:$0xff] %v9289_v50   ;;  %v5649_v55 = vmax.f32 %v4169_v54, %v5225_v49 }
 0x20a   :  { %v5849_v2 = vadd.f32 %v10252_v35, %v5649_v55 }
 0x20c   :  { %v6045_v5 = vmax.f32 %v5849_v2, 0.0  ;;  %v8921_v2 = vld [vmem:[%s11509_s0 + $0x420] sm:$0xff] }
 0x20d   :  { %v3747_v57 = vpop.f32.mrf.mxu2  ;;  %v5227_v58 = vpop.f32.mrf.mxu3 }
 0x20e   :  { %v4170_v61 = vmax.f32 %v2690_v56, %v3747_v57  ;;  %v986_v62 = vpop.f32.mrf.mxu0  ;;  %v2270_v63 = vpop.f32.mrf.mxu1 }
 0x20f   :  { %v2691_v7 = vmax.f32 %v986_v62, %v2270_v63 }
 0x210   :  { %v5650_v3 = vmax.f32 %v4170_v61, %v5227_v58 }
 0x211   :  { %1025 = vmatmul.bf16.gmra.mxu0 %v8820_v59  ;;  %2309 = vmatmul.bf16.gmra.mxu1 %v8918_v60 }
 0x212   :  { %v5850_v4 = vadd.f32 %v10252_v35, %v5650_v3  ;;  %3789 = vmatmul.bf16.gmra.mxu2 %v9016_v0  ;;  %5269 = vmatmul.bf16.gmra.mxu3 %v9114_v1  ;;  %v8823_v1 = vld [vmem:[%s11509_s0 + $0x110] sm:$0xff] }
 0x214   :  { %v6046_v6 = vmax.f32 %v5850_v4, 0.0 }
 0x215   :  { %v3750_v8 = vpop.f32.mrf.mxu2  ;;  %v5230_v9 = vpop.f32.mrf.mxu3 }
 0x216   :  { %v9294_v10 = vpack.c.bf16 %v6046_v6, %v6045_v5  ;;  %v988_v11 = vpop.f32.mrf.mxu0  ;;  %v2272_v12 = vpop.f32.mrf.mxu1  ;;  %v4171_v13 = vmax.f32 %v2691_v7, %v3750_v8  ;;  %v9019_v6 = vld [vmem:[%s11509_s0 + $0x730] sm:$0xff]  ;;  %v9117_v7 = vld [vmem:[%s11509_s0 + $0xa40] sm:$0xff] }
 0x217   :  { %v2692_v15 = vmax.f32 %v988_v11, %v2272_v12 }
 0x218   :  { %9692 = vst [vmem:[%s11511_s3 + $0xb0] sm:$0xff] %v9294_v10   ;;  %v5651_v14 = vmax.f32 %v4171_v13, %v5230_v9 }
 0x21a   :  { %v5851_v25 = vadd.f32 %v10252_v35, %v5651_v14 }
 0x21c   :  { %v6047_v28 = vmax.f32 %v5851_v25, 0.0  ;;  %v8922_v25 = vld [vmem:[%s11509_s0 + $0x428] sm:$0xff] }
 0x21d   :  { %v3752_v16 = vpop.f32.mrf.mxu2  ;;  %v5232_v17 = vpop.f32.mrf.mxu3 }
 0x21e   :  { %v4172_v20 = vmax.f32 %v2692_v15, %v3752_v16  ;;  %v991_v21 = vpop.f32.mrf.mxu0  ;;  %v2275_v22 = vpop.f32.mrf.mxu1 }
 0x21f   :  { %v2693_v29 = vmax.f32 %v991_v21, %v2275_v22 }
 0x220   :  { %v5652_v26 = vmax.f32 %v4172_v20, %v5232_v17 }
 0x221   :  { %1030 = vmatmul.bf16.gmra.mxu0 %v8821_v18  ;;  %2314 = vmatmul.bf16.gmra.mxu1 %v8919_v19 }
 0x222   :  { %v5852_v27 = vadd.f32 %v10252_v35, %v5652_v26  ;;  %3794 = vmatmul.bf16.gmra.mxu2 %v9017_v23  ;;  %5274 = vmatmul.bf16.gmra.mxu3 %v9115_v24  ;;  %v8824_v24 = vld [vmem:[%s11509_s0 + $0x118] sm:$0xff] }
 0x224   :  { %v6048_v53 = vmax.f32 %v5852_v27, 0.0 }
 0x225   :  { %v3755_v30 = vpop.f32.mrf.mxu2  ;;  %v5235_v31 = vpop.f32.mrf.mxu3 }
 0x226   :  { %v9299_v32 = vpack.c.bf16 %v6048_v53, %v6047_v28  ;;  %v993_v33 = vpop.f32.mrf.mxu0  ;;  %v2277_v34 = vpop.f32.mrf.mxu1  ;;  %v4173_v36 = vmax.f32 %v2693_v29, %v3755_v30  ;;  %v9020_v53 = vld [vmem:[%s11509_s0 + $0x738] sm:$0xff]  ;;  %v9118_v29 = vld [vmem:[%s11509_s0 + $0xa48] sm:$0xff] }
 0x227   :  { %v2694_v38 = vmax.f32 %v993_v33, %v2277_v34 }
 0x228   :  { %9693 = vst [vmem:[%s11511_s3 + $0xb8] sm:$0xff] %v9299_v32   ;;  %v5653_v37 = vmax.f32 %v4173_v36, %v5235_v31 }
 0x22a   :  { %v5853_v48 = vadd.f32 %v10252_v35, %v5653_v37 }
 0x22c   :  { %v6049_v51 = vmax.f32 %v5853_v48, 0.0  ;;  %v8923_v48 = vld [vmem:[%s11509_s0 + $0x430] sm:$0xff] }
 0x22d   :  { %v3757_v39 = vpop.f32.mrf.mxu2  ;;  %v5237_v40 = vpop.f32.mrf.mxu3 }
 0x22e   :  { %v4174_v43 = vmax.f32 %v2694_v38, %v3757_v39  ;;  %v996_v44 = vpop.f32.mrf.mxu0  ;;  %v2280_v45 = vpop.f32.mrf.mxu1 }
 0x22f   :  { %v2695_v54 = vmax.f32 %v996_v44, %v2280_v45 }
 0x230   :  { %v5654_v49 = vmax.f32 %v4174_v43, %v5237_v40 }
 0x231   :  { %1035 = vmatmul.bf16.gmra.mxu0 %v8822_v41  ;;  %2319 = vmatmul.bf16.gmra.mxu1 %v8920_v42 }
 0x232   :  { %v5854_v50 = vadd.f32 %v10252_v35, %v5654_v49  ;;  %3799 = vmatmul.bf16.gmra.mxu2 %v9018_v46  ;;  %5279 = vmatmul.bf16.gmra.mxu3 %v9116_v47  ;;  %v8825_v47 = vld [vmem:[%s11509_s0 + $0x120] sm:$0xff] }
 0x234   :  { %v6050_v52 = vmax.f32 %v5854_v50, 0.0 }
 0x235   :  { %v3760_v55 = vpop.f32.mrf.mxu2  ;;  %v5240_v56 = vpop.f32.mrf.mxu3 }
 0x236   :  { %v9304_v57 = vpack.c.bf16 %v6050_v52, %v6049_v51  ;;  %v998_v58 = vpop.f32.mrf.mxu0  ;;  %v2282_v59 = vpop.f32.mrf.mxu1  ;;  %v4175_v60 = vmax.f32 %v2695_v54, %v3760_v55  ;;  %v9021_v52 = vld [vmem:[%s11509_s0 + $0x740] sm:$0xff]  ;;  %v9119_v54 = vld [vmem:[%s11509_s0 + $0xa50] sm:$0xff] }
 0x237   :  { %v2696_v62 = vmax.f32 %v998_v58, %v2282_v59 }
 0x238   :  { %9694 = vst [vmem:[%s11511_s3 + $0xc0] sm:$0xff] %v9304_v57   ;;  %v5655_v61 = vmax.f32 %v4175_v60, %v5240_v56 }
 0x23a   :  { %v5855_v8 = vadd.f32 %v10252_v35, %v5655_v61 }
 0x23c   :  { %v6051_v11 = vmax.f32 %v5855_v8, 0.0  ;;  %v8924_v8 = vld [vmem:[%s11509_s0 + $0x438] sm:$0xff] }
 0x23d   :  { %v3762_v63 = vpop.f32.mrf.mxu2  ;;  %v5242_v0 = vpop.f32.mrf.mxu3 }
 0x23e   :  { %v4176_v3 = vmax.f32 %v2696_v62, %v3762_v63  ;;  %v1001_v4 = vpop.f32.mrf.mxu0  ;;  %v2285_v5 = vpop.f32.mrf.mxu1 }
 0x23f   :  { %v2697_v13 = vmax.f32 %v1001_v4, %v2285_v5 }
 0x240   :  { %v5656_v9 = vmax.f32 %v4176_v3, %v5242_v0 }
 0x241   :  { %1040 = vmatmul.bf16.gmra.mxu0 %v8823_v1  ;;  %2324 = vmatmul.bf16.gmra.mxu1 %v8921_v2 }
 0x242   :  { %v5856_v10 = vadd.f32 %v10252_v35, %v5656_v9  ;;  %3804 = vmatmul.bf16.gmra.mxu2 %v9019_v6  ;;  %5284 = vmatmul.bf16.gmra.mxu3 %v9117_v7  ;;  %v8826_v7 = vld [vmem:[%s11509_s0 + $0x128] sm:$0xff] }
 0x244   :  { %v6052_v12 = vmax.f32 %v5856_v10, 0.0 }
 0x245   :  { %v3765_v14 = vpop.f32.mrf.mxu2  ;;  %v5245_v15 = vpop.f32.mrf.mxu3 }
 0x246   :  { %v9309_v16 = vpack.c.bf16 %v6052_v12, %v6051_v11  ;;  %v1003_v17 = vpop.f32.mrf.mxu0  ;;  %v2287_v18 = vpop.f32.mrf.mxu1  ;;  %v4177_v19 = vmax.f32 %v2697_v13, %v3765_v14  ;;  %v9022_v12 = vld [vmem:[%s11509_s0 + $0x748] sm:$0xff]  ;;  %v9120_v13 = vld [vmem:[%s11509_s0 + $0xa58] sm:$0xff] }
 0x247   :  { %v2698_v21 = vmax.f32 %v1003_v17, %v2287_v18 }
 0x248   :  { %9695 = vst [vmem:[%s11511_s3 + $0xc8] sm:$0xff] %v9309_v16   ;;  %v5657_v20 = vmax.f32 %v4177_v19, %v5245_v15 }
 0x24a   :  { %v5857_v30 = vadd.f32 %v10252_v35, %v5657_v20 }
 0x24c   :  { %v6053_v33 = vmax.f32 %v5857_v30, 0.0  ;;  %v8925_v30 = vld [vmem:[%s11509_s0 + $0x440] sm:$0xff] }
 0x24d   :  { %v3767_v22 = vpop.f32.mrf.mxu2  ;;  %v5247_v23 = vpop.f32.mrf.mxu3 }
 0x24e   :  { %v4178_v26 = vmax.f32 %v2698_v21, %v3767_v22  ;;  %v1006_v27 = vpop.f32.mrf.mxu0  ;;  %v2290_v28 = vpop.f32.mrf.mxu1 }
 0x24f   :  { %v2699_v36 = vmax.f32 %v1006_v27, %v2290_v28 }
 0x250   :  { %v5658_v31 = vmax.f32 %v4178_v26, %v5247_v23 }
 0x251   :  { %1045 = vmatmul.bf16.gmra.mxu0 %v8824_v24  ;;  %2329 = vmatmul.bf16.gmra.mxu1 %v8922_v25 }
 0x252   :  { %v5858_v32 = vadd.f32 %v10252_v35, %v5658_v31  ;;  %3809 = vmatmul.bf16.gmra.mxu2 %v9020_v53  ;;  %5289 = vmatmul.bf16.gmra.mxu3 %v9118_v29  ;;  %v8827_v29 = vld [vmem:[%s11509_s0 + $0x130] sm:$0xff] }
 0x254   :  { %v6054_v34 = vmax.f32 %v5858_v32, 0.0 }
 0x255   :  { %v3770_v37 = vpop.f32.mrf.mxu2  ;;  %v5250_v38 = vpop.f32.mrf.mxu3 }
 0x256   :  { %v9314_v39 = vpack.c.bf16 %v6054_v34, %v6053_v33  ;;  %v1008_v40 = vpop.f32.mrf.mxu0  ;;  %v2292_v41 = vpop.f32.mrf.mxu1  ;;  %v4179_v42 = vmax.f32 %v2699_v36, %v3770_v37  ;;  %v9023_v34 = vld [vmem:[%s11509_s0 + $0x750] sm:$0xff]  ;;  %v9121_v36 = vld [vmem:[%s11509_s0 + $0xa60] sm:$0xff] }
 0x257   :  { %v2700_v44 = vmax.f32 %v1008_v40, %v2292_v41 }
 0x258   :  { %9696 = vst [vmem:[%s11511_s3 + $0xd0] sm:$0xff] %v9314_v39   ;;  %v5659_v43 = vmax.f32 %v4179_v42, %v5250_v38 }
 0x25a   :  { %v5859_v55 = vadd.f32 %v10252_v35, %v5659_v43 }
 0x25c   :  { %v6055_v58 = vmax.f32 %v5859_v55, 0.0  ;;  %v8926_v55 = vld [vmem:[%s11509_s0 + $0x448] sm:$0xff] }
 0x25d   :  { %v3772_v45 = vpop.f32.mrf.mxu2  ;;  %v5252_v46 = vpop.f32.mrf.mxu3 }
 0x25e   :  { %v4180_v49 = vmax.f32 %v2700_v44, %v3772_v45  ;;  %v1011_v50 = vpop.f32.mrf.mxu0  ;;  %v2295_v51 = vpop.f32.mrf.mxu1 }
 0x25f   :  { %v2701_v60 = vmax.f32 %v1011_v50, %v2295_v51 }
 0x260   :  { %v5660_v56 = vmax.f32 %v4180_v49, %v5252_v46 }
 0x261   :  { %1050 = vmatmul.bf16.gmra.mxu0 %v8825_v47  ;;  %2334 = vmatmul.bf16.gmra.mxu1 %v8923_v48 }
 0x262   :  { %v5860_v57 = vadd.f32 %v10252_v35, %v5660_v56  ;;  %3814 = vmatmul.bf16.gmra.mxu2 %v9021_v52  ;;  %5294 = vmatmul.bf16.gmra.mxu3 %v9119_v54  ;;  %v8828_v54 = vld [vmem:[%s11509_s0 + $0x138] sm:$0xff] }
 0x264   :  { %v6056_v59 = vmax.f32 %v5860_v57, 0.0 }
 0x265   :  { %v3775_v61 = vpop.f32.mrf.mxu2  ;;  %v5255_v62 = vpop.f32.mrf.mxu3 }
 0x266   :  { %v9319_v63 = vpack.c.bf16 %v6056_v59, %v6055_v58  ;;  %v1013_v0 = vpop.f32.mrf.mxu0  ;;  %v2297_v1 = vpop.f32.mrf.mxu1  ;;  %v4181_v2 = vmax.f32 %v2701_v60, %v3775_v61  ;;  %v9024_v59 = vld [vmem:[%s11509_s0 + $0x758] sm:$0xff]  ;;  %v9122_v60 = vld [vmem:[%s11509_s0 + $0xa68] sm:$0xff] }
 0x267   :  { %v2702_v4 = vmax.f32 %v1013_v0, %v2297_v1 }
 0x268   :  { %9697 = vst [vmem:[%s11511_s3 + $0xd8] sm:$0xff] %v9319_v63   ;;  %v5661_v3 = vmax.f32 %v4181_v2, %v5255_v62 }
 0x26a   :  { %v5861_v14 = vadd.f32 %v10252_v35, %v5661_v3 }
 0x26c   :  { %v6057_v17 = vmax.f32 %v5861_v14, 0.0  ;;  %v8927_v14 = vld [vmem:[%s11509_s0 + $0x450] sm:$0xff] }
 0x26d   :  { %v3777_v5 = vpop.f32.mrf.mxu2  ;;  %v5257_v6 = vpop.f32.mrf.mxu3 }
 0x26e   :  { %v4182_v9 = vmax.f32 %v2702_v4, %v3777_v5  ;;  %v1016_v10 = vpop.f32.mrf.mxu0  ;;  %v2300_v11 = vpop.f32.mrf.mxu1 }
 0x26f   :  { %v2703_v19 = vmax.f32 %v1016_v10, %v2300_v11 }
 0x270   :  { %v5662_v15 = vmax.f32 %v4182_v9, %v5257_v6 }
 0x271   :  { %1055 = vmatmul.bf16.gmra.mxu0 %v8826_v7  ;;  %2339 = vmatmul.bf16.gmra.mxu1 %v8924_v8 }
 0x272   :  { %v5862_v16 = vadd.f32 %v10252_v35, %v5662_v15  ;;  %3819 = vmatmul.bf16.gmra.mxu2 %v9022_v12  ;;  %5299 = vmatmul.bf16.gmra.mxu3 %v9120_v13  ;;  %v8829_v13 = vld [vmem:[%s11509_s0 + $0x140] sm:$0xff] }
 0x274   :  { %v6058_v18 = vmax.f32 %v5862_v16, 0.0 }
 0x275   :  { %v3780_v20 = vpop.f32.mrf.mxu2  ;;  %v5260_v21 = vpop.f32.mrf.mxu3 }
 0x276   :  { %v9324_v22 = vpack.c.bf16 %v6058_v18, %v6057_v17  ;;  %v1018_v23 = vpop.f32.mrf.mxu0  ;;  %v2302_v24 = vpop.f32.mrf.mxu1  ;;  %v4183_v25 = vmax.f32 %v2703_v19, %v3780_v20  ;;  %v9025_v18 = vld [vmem:[%s11509_s0 + $0x760] sm:$0xff]  ;;  %v9123_v19 = vld [vmem:[%s11509_s0 + $0xa70] sm:$0xff] }
 0x277   :  { %v2704_v27 = vmax.f32 %v1018_v23, %v2302_v24 }
 0x278   :  { %9698 = vst [vmem:[%s11511_s3 + $0xe0] sm:$0xff] %v9324_v22   ;;  %v5663_v26 = vmax.f32 %v4183_v25, %v5260_v21 }
 0x27a   :  { %v5863_v37 = vadd.f32 %v10252_v35, %v5663_v26 }
 0x27c   :  { %v6059_v40 = vmax.f32 %v5863_v37, 0.0  ;;  %v8928_v37 = vld [vmem:[%s11509_s0 + $0x458] sm:$0xff] }
 0x27d   :  { %v3782_v28 = vpop.f32.mrf.mxu2  ;;  %v5262_v53 = vpop.f32.mrf.mxu3 }
 0x27e   :  { %v4184_v31 = vmax.f32 %v2704_v27, %v3782_v28  ;;  %v1021_v32 = vpop.f32.mrf.mxu0  ;;  %v2305_v33 = vpop.f32.mrf.mxu1 }
 0x27f   :  { %v2705_v42 = vmax.f32 %v1021_v32, %v2305_v33 }
 0x280   :  { %v5664_v38 = vmax.f32 %v4184_v31, %v5262_v53 }
 0x281   :  { %1060 = vmatmul.bf16.gmra.mxu0 %v8827_v29  ;;  %2344 = vmatmul.bf16.gmra.mxu1 %v8925_v30 }
 0x282   :  { %v5864_v39 = vadd.f32 %v10252_v35, %v5664_v38  ;;  %3824 = vmatmul.bf16.gmra.mxu2 %v9023_v34  ;;  %5304 = vmatmul.bf16.gmra.mxu3 %v9121_v36  ;;  %v8830_v36 = vld [vmem:[%s11509_s0 + $0x148] sm:$0xff] }
 0x284   :  { %v6060_v41 = vmax.f32 %v5864_v39, 0.0 }
 0x285   :  { %v3785_v43 = vpop.f32.mrf.mxu2  ;;  %v5265_v44 = vpop.f32.mrf.mxu3 }
 0x286   :  { %v9329_v45 = vpack.c.bf16 %v6060_v41, %v6059_v40  ;;  %v1023_v46 = vpop.f32.mrf.mxu0  ;;  %v2307_v47 = vpop.f32.mrf.mxu1  ;;  %v4185_v48 = vmax.f32 %v2705_v42, %v3785_v43  ;;  %v9026_v41 = vld [vmem:[%s11509_s0 + $0x768] sm:$0xff]  ;;  %v9124_v42 = vld [vmem:[%s11509_s0 + $0xa78] sm:$0xff] }
 0x287   :  { %v2706_v50 = vmax.f32 %v1023_v46, %v2307_v47 }
 0x288   :  { %9699 = vst [vmem:[%s11511_s3 + $0xe8] sm:$0xff] %v9329_v45   ;;  %v5665_v49 = vmax.f32 %v4185_v48, %v5265_v44 }
 0x28a   :  { %v5865_v61 = vadd.f32 %v10252_v35, %v5665_v49 }
 0x28c   :  { %v6061_v0 = vmax.f32 %v5865_v61, 0.0  ;;  %v8929_v61 = vld [vmem:[%s11509_s0 + $0x460] sm:$0xff] }
 0x28d   :  { %v3787_v51 = vpop.f32.mrf.mxu2  ;;  %v5267_v52 = vpop.f32.mrf.mxu3 }
 0x28e   :  { %v4186_v56 = vmax.f32 %v2706_v50, %v3787_v51  ;;  %v1026_v57 = vpop.f32.mrf.mxu0  ;;  %v2310_v58 = vpop.f32.mrf.mxu1 }
 0x28f   :  { %v2707_v2 = vmax.f32 %v1026_v57, %v2310_v58 }
 0x290   :  { %v5666_v62 = vmax.f32 %v4186_v56, %v5267_v52 }
 0x291   :  { %1065 = vmatmul.bf16.gmra.mxu0 %v8828_v54  ;;  %2349 = vmatmul.bf16.gmra.mxu1 %v8926_v55 }
 0x292   :  { %v5866_v63 = vadd.f32 %v10252_v35, %v5666_v62  ;;  %3829 = vmatmul.bf16.gmra.mxu2 %v9024_v59  ;;  %5309 = vmatmul.bf16.gmra.mxu3 %v9122_v60  ;;  %v8831_v60 = vld [vmem:[%s11509_s0 + $0x150] sm:$0xff] }
 0x294   :  { %v6062_v1 = vmax.f32 %v5866_v63, 0.0 }
 0x295   :  { %v3790_v3 = vpop.f32.mrf.mxu2  ;;  %v5270_v4 = vpop.f32.mrf.mxu3 }
 0x296   :  { %v9334_v5 = vpack.c.bf16 %v6062_v1, %v6061_v0  ;;  %v1028_v6 = vpop.f32.mrf.mxu0  ;;  %v2312_v7 = vpop.f32.mrf.mxu1  ;;  %v4187_v8 = vmax.f32 %v2707_v2, %v3790_v3  ;;  %v9027_v1 = vld [vmem:[%s11509_s0 + $0x770] sm:$0xff]  ;;  %v9125_v2 = vld [vmem:[%s11509_s0 + $0xa80] sm:$0xff] }
 0x297   :  { %v2708_v10 = vmax.f32 %v1028_v6, %v2312_v7 }
 0x298   :  { %9700 = vst [vmem:[%s11511_s3 + $0xf0] sm:$0xff] %v9334_v5   ;;  %v5667_v9 = vmax.f32 %v4187_v8, %v5270_v4 }
 0x29a   :  { %v5867_v20 = vadd.f32 %v10252_v35, %v5667_v9 }
 0x29c   :  { %v6063_v23 = vmax.f32 %v5867_v20, 0.0  ;;  %v8930_v20 = vld [vmem:[%s11509_s0 + $0x468] sm:$0xff] }
 0x29d   :  { %v3792_v11 = vpop.f32.mrf.mxu2  ;;  %v5272_v12 = vpop.f32.mrf.mxu3 }
 0x29e   :  { %v4188_v15 = vmax.f32 %v2708_v10, %v3792_v11  ;;  %v1031_v16 = vpop.f32.mrf.mxu0  ;;  %v2315_v17 = vpop.f32.mrf.mxu1 }
 0x29f   :  { %v2709_v25 = vmax.f32 %v1031_v16, %v2315_v17 }
 0x2a0   :  { %v5668_v21 = vmax.f32 %v4188_v15, %v5272_v12 }
 0x2a1   :  { %1070 = vmatmul.bf16.gmra.mxu0 %v8829_v13  ;;  %2354 = vmatmul.bf16.gmra.mxu1 %v8927_v14 }
 0x2a2   :  { %v5868_v22 = vadd.f32 %v10252_v35, %v5668_v21  ;;  %3834 = vmatmul.bf16.gmra.mxu2 %v9025_v18  ;;  %5314 = vmatmul.bf16.gmra.mxu3 %v9123_v19  ;;  %v8832_v19 = vld [vmem:[%s11509_s0 + $0x158] sm:$0xff] }
 0x2a4   :  { %v6064_v24 = vmax.f32 %v5868_v22, 0.0 }
 0x2a5   :  { %v3795_v26 = vpop.f32.mrf.mxu2  ;;  %v5275_v27 = vpop.f32.mrf.mxu3 }
 0x2a6   :  { %v9339_v28 = vpack.c.bf16 %v6064_v24, %v6063_v23  ;;  %v1033_v53 = vpop.f32.mrf.mxu0  ;;  %v2317_v29 = vpop.f32.mrf.mxu1  ;;  %v4189_v30 = vmax.f32 %v2709_v25, %v3795_v26  ;;  %v9028_v24 = vld [vmem:[%s11509_s0 + $0x778] sm:$0xff]  ;;  %v9126_v25 = vld [vmem:[%s11509_s0 + $0xa88] sm:$0xff] }
 0x2a7   :  { %v2710_v32 = vmax.f32 %v1033_v53, %v2317_v29 }
 0x2a8   :  { %9701 = vst [vmem:[%s11511_s3 + $0xf8] sm:$0xff] %v9339_v28   ;;  %v5669_v31 = vmax.f32 %v4189_v30, %v5275_v27 }
 0x2aa   :  { %v5869_v43 = vadd.f32 %v10252_v35, %v5669_v31 }
 0x2ac   :  { %v6065_v46 = vmax.f32 %v5869_v43, 0.0  ;;  %v8931_v43 = vld [vmem:[%s11509_s0 + $0x470] sm:$0xff] }
 0x2ad   :  { %v3797_v33 = vpop.f32.mrf.mxu2  ;;  %v5277_v34 = vpop.f32.mrf.mxu3 }
 0x2ae   :  { %v4190_v38 = vmax.f32 %v2710_v32, %v3797_v33  ;;  %v1036_v39 = vpop.f32.mrf.mxu0  ;;  %v2320_v40 = vpop.f32.mrf.mxu1 }
 0x2af   :  { %v2711_v48 = vmax.f32 %v1036_v39, %v2320_v40 }
 0x2b0   :  { %v5670_v44 = vmax.f32 %v4190_v38, %v5277_v34 }
 0x2b1   :  { %1075 = vmatmul.bf16.gmra.mxu0 %v8830_v36  ;;  %2359 = vmatmul.bf16.gmra.mxu1 %v8928_v37 }
 0x2b2   :  { %v5870_v45 = vadd.f32 %v10252_v35, %v5670_v44  ;;  %3839 = vmatmul.bf16.gmra.mxu2 %v9026_v41  ;;  %5319 = vmatmul.bf16.gmra.mxu3 %v9124_v42  ;;  %v8833_v42 = vld [vmem:[%s11509_s0 + $0x160] sm:$0xff] }
 0x2b4   :  { %v6066_v47 = vmax.f32 %v5870_v45, 0.0 }
 0x2b5   :  { %v3800_v49 = vpop.f32.mrf.mxu2  ;;  %v5280_v50 = vpop.f32.mrf.mxu3 }
 0x2b6   :  { %v9344_v51 = vpack.c.bf16 %v6066_v47, %v6065_v46  ;;  %v1038_v52 = vpop.f32.mrf.mxu0  ;;  %v2322_v54 = vpop.f32.mrf.mxu1  ;;  %v4191_v55 = vmax.f32 %v2711_v48, %v3800_v49  ;;  %v9029_v47 = vld [vmem:[%s11509_s0 + $0x780] sm:$0xff]  ;;  %v9127_v48 = vld [vmem:[%s11509_s0 + $0xa90] sm:$0xff] }
 0x2b7   :  { %v2712_v57 = vmax.f32 %v1038_v52, %v2322_v54 }
 0x2b8   :  { %9702 = vst [vmem:[%s11511_s3 + $0x100] sm:$0xff] %v9344_v51   ;;  %v5671_v56 = vmax.f32 %v4191_v55, %v5280_v50 }
 0x2ba   :  { %v5871_v3 = vadd.f32 %v10252_v35, %v5671_v56 }
 0x2bc   :  { %v6067_v6 = vmax.f32 %v5871_v3, 0.0  ;;  %v8932_v3 = vld [vmem:[%s11509_s0 + $0x478] sm:$0xff] }
 0x2bd   :  { %v3802_v58 = vpop.f32.mrf.mxu2  ;;  %v5282_v59 = vpop.f32.mrf.mxu3 }
 0x2be   :  { %v4192_v62 = vmax.f32 %v2712_v57, %v3802_v58  ;;  %v1041_v63 = vpop.f32.mrf.mxu0  ;;  %v2325_v0 = vpop.f32.mrf.mxu1 }
 0x2bf   :  { %v2713_v8 = vmax.f32 %v1041_v63, %v2325_v0 }
 0x2c0   :  { %v5672_v4 = vmax.f32 %v4192_v62, %v5282_v59 }
 0x2c1   :  { %1080 = vmatmul.bf16.gmra.mxu0 %v8831_v60  ;;  %2364 = vmatmul.bf16.gmra.mxu1 %v8929_v61 }
 0x2c2   :  { %v5872_v5 = vadd.f32 %v10252_v35, %v5672_v4  ;;  %3844 = vmatmul.bf16.gmra.mxu2 %v9027_v1  ;;  %5324 = vmatmul.bf16.gmra.mxu3 %v9125_v2  ;;  %v8834_v2 = vld [vmem:[%s11509_s0 + $0x168] sm:$0xff] }
 0x2c4   :  { %v6068_v7 = vmax.f32 %v5872_v5, 0.0 }
 0x2c5   :  { %v3805_v9 = vpop.f32.mrf.mxu2  ;;  %v5285_v10 = vpop.f32.mrf.mxu3 }
 0x2c6   :  { %v9349_v11 = vpack.c.bf16 %v6068_v7, %v6067_v6  ;;  %v1043_v12 = vpop.f32.mrf.mxu0  ;;  %v2327_v13 = vpop.f32.mrf.mxu1  ;;  %v4193_v14 = vmax.f32 %v2713_v8, %v3805_v9  ;;  %v9030_v7 = vld [vmem:[%s11509_s0 + $0x788] sm:$0xff]  ;;  %v9128_v8 = vld [vmem:[%s11509_s0 + $0xa98] sm:$0xff] }
 0x2c7   :  { %v2714_v16 = vmax.f32 %v1043_v12, %v2327_v13 }
 0x2c8   :  { %9703 = vst [vmem:[%s11511_s3 + $0x108] sm:$0xff] %v9349_v11   ;;  %v5673_v15 = vmax.f32 %v4193_v14, %v5285_v10 }
 0x2ca   :  { %v5873_v26 = vadd.f32 %v10252_v35, %v5673_v15 }
 0x2cc   :  { %v6069_v53 = vmax.f32 %v5873_v26, 0.0 }
 0x2cd   :  { %v3807_v17 = vpop.f32.mrf.mxu2  ;;  %v5287_v18 = vpop.f32.mrf.mxu3 }
 0x2ce   :  { %v4194_v21 = vmax.f32 %v2714_v16, %v3807_v17  ;;  %v1046_v22 = vpop.f32.mrf.mxu0  ;;  %v2330_v23 = vpop.f32.mrf.mxu1 }
 0x2cf   :  { %v2715_v30 = vmax.f32 %v1046_v22, %v2330_v23 }
 0x2d0   :  { %v5674_v27 = vmax.f32 %v4194_v21, %v5287_v18 }
 0x2d1   :  { %1085 = vmatmul.bf16.gmra.mxu0 %v8832_v19  ;;  %2369 = vmatmul.bf16.gmra.mxu1 %v8930_v20 }
 0x2d2   :  { %v5874_v28 = vadd.f32 %v10252_v35, %v5674_v27  ;;  %3849 = vmatmul.bf16.gmra.mxu2 %v9028_v24  ;;  %5329 = vmatmul.bf16.gmra.mxu3 %v9126_v25  ;;  %v8933_v25 = vld [vmem:[%s11509_s0 + $0x480] sm:$0xff] }
 0x2d4   :  { %v6070_v29 = vmax.f32 %v5874_v28, 0.0 }
 0x2d5   :  { %v3810_v31 = vpop.f32.mrf.mxu2  ;;  %v5290_v32 = vpop.f32.mrf.mxu3 }
 0x2d6   :  { %v9354_v33 = vpack.c.bf16 %v6070_v29, %v6069_v53  ;;  %v1048_v34 = vpop.f32.mrf.mxu0  ;;  %v2332_v36 = vpop.f32.mrf.mxu1  ;;  %v4195_v37 = vmax.f32 %v2715_v30, %v3810_v31  ;;  %v9031_v53 = vld [vmem:[%s11509_s0 + $0x790] sm:$0xff]  ;;  %v9129_v29 = vld [vmem:[%s11509_s0 + $0xaa0] sm:$0xff] }
 0x2d7   :  { %v2716_v39 = vmax.f32 %v1048_v34, %v2332_v36  ;;  %v10580_v30 = vld [vmem:[%s11510_s2] ss:$0 sm:$0xff] }
 0x2d8   :  { %9704 = vst [vmem:[%s11511_s3 + $0x110] sm:$0xff] %v9354_v33   ;;  %v5675_v38 = vmax.f32 %v4195_v37, %v5290_v32 }
 0x2da   :  { %v5875_v49 = vadd.f32 %v10252_v35, %v5675_v38 }
 0x2dc   :  { %v6071_v52 = vmax.f32 %v5875_v49, 0.0  ;;  %v8934_v49 = vld [vmem:[%s11509_s0 + $0x488] sm:$0xff] }
 0x2dd   :  { %v3812_v40 = vpop.f32.mrf.mxu2  ;;  %v5292_v41 = vpop.f32.mrf.mxu3 }
 0x2de   :  { %v4196_v44 = vmax.f32 %v2716_v39, %v3812_v40  ;;  %v1051_v45 = vpop.f32.mrf.mxu0  ;;  %v2335_v46 = vpop.f32.mrf.mxu1 }
 0x2df   :  { %v2717_v55 = vmax.f32 %v1051_v45, %v2335_v46 }
 0x2e0   :  { %v5676_v50 = vmax.f32 %v4196_v44, %v5292_v41 }
 0x2e1   :  { %1090 = vmatmul.bf16.gmra.mxu0 %v8833_v42  ;;  %2374 = vmatmul.bf16.gmra.mxu1 %v8931_v43 }
 0x2e2   :  { %v5876_v51 = vadd.f32 %v10252_v35, %v5676_v50  ;;  %3854 = vmatmul.bf16.gmra.mxu2 %v9029_v47  ;;  %5334 = vmatmul.bf16.gmra.mxu3 %v9127_v48  ;;  %v8836_v48 = vld [vmem:[%s11509_s0 + $0x178] sm:$0xff] }
 0x2e4   :  { %v6072_v54 = vmax.f32 %v5876_v51, 0.0 }
 0x2e5   :  { %v3815_v56 = vpop.f32.mrf.mxu2  ;;  %v5295_v57 = vpop.f32.mrf.mxu3 }
 0x2e6   :  { %v9359_v58 = vpack.c.bf16 %v6072_v54, %v6071_v52  ;;  %v1053_v59 = vpop.f32.mrf.mxu0  ;;  %v2337_v60 = vpop.f32.mrf.mxu1  ;;  %v4197_v61 = vmax.f32 %v2717_v55, %v3815_v56  ;;  %v9032_v54 = vld [vmem:[%s11509_s0 + $0x798] sm:$0xff]  ;;  %v9130_v55 = vld [vmem:[%s11509_s0 + $0xaa8] sm:$0xff] }
 0x2e7   :  { %v2718_v63 = vmax.f32 %v1053_v59, %v2337_v60 }
 0x2e8   :  { %9705 = vst [vmem:[%s11511_s3 + $0x118] sm:$0xff] %v9359_v58   ;;  %v5677_v62 = vmax.f32 %v4197_v61, %v5295_v57 }
 0x2ea   :  { %v5877_v9 = vadd.f32 %v10252_v35, %v5677_v62 }
 0x2ec   :  { %v6073_v12 = vmax.f32 %v5877_v9, 0.0  ;;  %v8935_v9 = vld [vmem:[%s11509_s0 + $0x490] sm:$0xff] }
 0x2ed   :  { %v3817_v0 = vpop.f32.mrf.mxu2  ;;  %v5297_v1 = vpop.f32.mrf.mxu3 }
 0x2ee   :  { %v4198_v4 = vmax.f32 %v2718_v63, %v3817_v0  ;;  %v1056_v5 = vpop.f32.mrf.mxu0  ;;  %v2340_v6 = vpop.f32.mrf.mxu1 }
 0x2ef   :  { %v2719_v14 = vmax.f32 %v1056_v5, %v2340_v6 }
 0x2f0   :  { %v5678_v10 = vmax.f32 %v4198_v4, %v5297_v1 }
 0x2f1   :  { %1095 = vmatmul.bf16.gmra.mxu0 %v8834_v2  ;;  %2379 = vmatmul.bf16.gmra.mxu1 %v8932_v3 }
 0x2f2   :  { %v5878_v11 = vadd.f32 %v10252_v35, %v5678_v10  ;;  %3859 = vmatmul.bf16.gmra.mxu2 %v9030_v7  ;;  %5339 = vmatmul.bf16.gmra.mxu3 %v9128_v8  ;;  %v8835_v35 = vld [vmem:[%s11509_s0 + $0x170] sm:$0xff]  ;;  %v8837_v8 = vld [vmem:[%s11509_s0 + $0x180] sm:$0xff] }
 0x2f4   :  { %v6074_v13 = vmax.f32 %v5878_v11, 0.0 }
 0x2f5   :  { %v3820_v15 = vpop.f32.mrf.mxu2  ;;  %v5300_v16 = vpop.f32.mrf.mxu3 }
 0x2f6   :  { %v9364_v17 = vpack.c.bf16 %v6074_v13, %v6073_v12  ;;  %v1058_v18 = vpop.f32.mrf.mxu0  ;;  %v2342_v19 = vpop.f32.mrf.mxu1  ;;  %v4199_v20 = vmax.f32 %v2719_v14, %v3820_v15  ;;  %v9033_v13 = vld [vmem:[%s11509_s0 + $0x7a0] sm:$0xff]  ;;  %v9131_v14 = vld [vmem:[%s11509_s0 + $0xab0] sm:$0xff] }
 0x2f7   :  { %v2720_v22 = vmax.f32 %v1058_v18, %v2342_v19 }
 0x2f8   :  { %9706 = vst [vmem:[%s11511_s3 + $0x120] sm:$0xff] %v9364_v17   ;;  %v5679_v21 = vmax.f32 %v4199_v20, %v5300_v16 }
 0x2fa   :  { %v5879_v31 = vadd.f32 %v10580_v30, %v5679_v21 }
 0x2fc   :  { %v6075_v34 = vmax.f32 %v5879_v31, 0.0  ;;  %v8936_v31 = vld [vmem:[%s11509_s0 + $0x498] sm:$0xff] }
 0x2fd   :  { %v3822_v23 = vpop.f32.mrf.mxu2  ;;  %v5302_v24 = vpop.f32.mrf.mxu3 }
 0x2fe   :  { %v4200_v26 = vmax.f32 %v2720_v22, %v3822_v23  ;;  %v1061_v27 = vpop.f32.mrf.mxu0  ;;  %v2345_v28 = vpop.f32.mrf.mxu1 }
 0x2ff   :  { %v2721_v37 = vmax.f32 %v1061_v27, %v2345_v28 }
 0x300   :  { %v5680_v32 = vmax.f32 %v4200_v26, %v5302_v24 }
 0x301   :  { %1100 = vmatmul.bf16.gmra.mxu0 %v8835_v35  ;;  %2384 = vmatmul.bf16.gmra.mxu1 %v8933_v25 }
 0x302   :  { %v5880_v33 = vadd.f32 %v10580_v30, %v5680_v32  ;;  %3864 = vmatmul.bf16.gmra.mxu2 %v9031_v53  ;;  %5344 = vmatmul.bf16.gmra.mxu3 %v9129_v29  ;;  %v8838_v29 = vld [vmem:[%s11509_s0 + $0x188] sm:$0xff] }
 0x304   :  { %v6076_v36 = vmax.f32 %v5880_v33, 0.0 }
 0x305   :  { %v3825_v38 = vpop.f32.mrf.mxu2  ;;  %v5305_v39 = vpop.f32.mrf.mxu3 }
 0x306   :  { %v9369_v40 = vpack.c.bf16 %v6076_v36, %v6075_v34  ;;  %v1063_v41 = vpop.f32.mrf.mxu0  ;;  %v2347_v42 = vpop.f32.mrf.mxu1  ;;  %v4201_v43 = vmax.f32 %v2721_v37, %v3825_v38  ;;  %v9034_v36 = vld [vmem:[%s11509_s0 + $0x7a8] sm:$0xff]  ;;  %v9132_v37 = vld [vmem:[%s11509_s0 + $0xab8] sm:$0xff] }
 0x307   :  { %v2722_v45 = vmax.f32 %v1063_v41, %v2347_v42 }
 0x308   :  { %9707 = vst [vmem:[%s11511_s3 + $0x128] sm:$0xff] %v9369_v40   ;;  %v5681_v44 = vmax.f32 %v4201_v43, %v5305_v39 }
 0x30a   :  { %v5881_v56 = vadd.f32 %v10580_v30, %v5681_v44 }
 0x30c   :  { %v6077_v59 = vmax.f32 %v5881_v56, 0.0  ;;  %v8937_v56 = vld [vmem:[%s11509_s0 + $0x4a0] sm:$0xff] }
 0x30d   :  { %v3827_v46 = vpop.f32.mrf.mxu2  ;;  %v5307_v47 = vpop.f32.mrf.mxu3 }
 0x30e   :  { %v4202_v50 = vmax.f32 %v2722_v45, %v3827_v46  ;;  %v1066_v51 = vpop.f32.mrf.mxu0  ;;  %v2350_v52 = vpop.f32.mrf.mxu1 }
 0x30f   :  { %v2723_v61 = vmax.f32 %v1066_v51, %v2350_v52 }
 0x310   :  { %v5682_v57 = vmax.f32 %v4202_v50, %v5307_v47 }
 0x311   :  { %1105 = vmatmul.bf16.gmra.mxu0 %v8836_v48  ;;  %2389 = vmatmul.bf16.gmra.mxu1 %v8934_v49 }
 0x312   :  { %v5882_v58 = vadd.f32 %v10580_v30, %v5682_v57  ;;  %3869 = vmatmul.bf16.gmra.mxu2 %v9032_v54  ;;  %5349 = vmatmul.bf16.gmra.mxu3 %v9130_v55  ;;  %v8839_v55 = vld [vmem:[%s11509_s0 + $0x190] sm:$0xff] }
 0x314   :  { %v6078_v60 = vmax.f32 %v5882_v58, 0.0 }
 0x315   :  { %v3830_v62 = vpop.f32.mrf.mxu2  ;;  %v5310_v63 = vpop.f32.mrf.mxu3 }
 0x316   :  { %v9374_v0 = vpack.c.bf16 %v6078_v60, %v6077_v59  ;;  %v1068_v1 = vpop.f32.mrf.mxu0  ;;  %v2352_v2 = vpop.f32.mrf.mxu1  ;;  %v4203_v3 = vmax.f32 %v2723_v61, %v3830_v62  ;;  %v9035_v60 = vld [vmem:[%s11509_s0 + $0x7b0] sm:$0xff]  ;;  %v9133_v61 = vld [vmem:[%s11509_s0 + $0xac0] sm:$0xff] }
 0x317   :  { %v2724_v5 = vmax.f32 %v1068_v1, %v2352_v2 }
 0x318   :  { %9708 = vst [vmem:[%s11511_s3 + $0x130] sm:$0xff] %v9374_v0   ;;  %v5683_v4 = vmax.f32 %v4203_v3, %v5310_v63 }
 0x31a   :  { %v5883_v15 = vadd.f32 %v10580_v30, %v5683_v4 }
 0x31c   :  { %v6079_v18 = vmax.f32 %v5883_v15, 0.0  ;;  %v8938_v15 = vld [vmem:[%s11509_s0 + $0x4a8] sm:$0xff] }
 0x31d   :  { %v3832_v6 = vpop.f32.mrf.mxu2  ;;  %v5312_v7 = vpop.f32.mrf.mxu3 }
 0x31e   :  { %v4204_v10 = vmax.f32 %v2724_v5, %v3832_v6  ;;  %v1071_v11 = vpop.f32.mrf.mxu0  ;;  %v2355_v12 = vpop.f32.mrf.mxu1 }
 0x31f   :  { %v2725_v20 = vmax.f32 %v1071_v11, %v2355_v12 }
 0x320   :  { %v5684_v16 = vmax.f32 %v4204_v10, %v5312_v7 }
 0x321   :  { %1110 = vmatmul.bf16.gmra.mxu0 %v8837_v8  ;;  %2394 = vmatmul.bf16.gmra.mxu1 %v8935_v9 }
 0x322   :  { %v5884_v17 = vadd.f32 %v10580_v30, %v5684_v16  ;;  %3874 = vmatmul.bf16.gmra.mxu2 %v9033_v13  ;;  %5354 = vmatmul.bf16.gmra.mxu3 %v9131_v14  ;;  %v8840_v14 = vld [vmem:[%s11509_s0 + $0x198] sm:$0xff] }
 0x324   :  { %v6080_v19 = vmax.f32 %v5884_v17, 0.0 }
 0x325   :  { %v3835_v21 = vpop.f32.mrf.mxu2  ;;  %v5315_v22 = vpop.f32.mrf.mxu3 }
 0x326   :  { %v9379_v23 = vpack.c.bf16 %v6080_v19, %v6079_v18  ;;  %v1073_v24 = vpop.f32.mrf.mxu0  ;;  %v2357_v35 = vpop.f32.mrf.mxu1  ;;  %v4205_v25 = vmax.f32 %v2725_v20, %v3835_v21  ;;  %v9036_v19 = vld [vmem:[%s11509_s0 + $0x7b8] sm:$0xff]  ;;  %v9134_v20 = vld [vmem:[%s11509_s0 + $0xac8] sm:$0xff] }
 0x327   :  { %v2726_v27 = vmax.f32 %v1073_v24, %v2357_v35 }
 0x328   :  { %9709 = vst [vmem:[%s11511_s3 + $0x138] sm:$0xff] %v9379_v23   ;;  %v5685_v26 = vmax.f32 %v4205_v25, %v5315_v22 }
 0x32a   :  { %v5885_v38 = vadd.f32 %v10580_v30, %v5685_v26 }
 0x32c   :  { %v6081_v41 = vmax.f32 %v5885_v38, 0.0  ;;  %v8939_v38 = vld [vmem:[%s11509_s0 + $0x4b0] sm:$0xff] }
 0x32d   :  { %v3837_v28 = vpop.f32.mrf.mxu2  ;;  %v5317_v53 = vpop.f32.mrf.mxu3 }
 0x32e   :  { %v4206_v32 = vmax.f32 %v2726_v27, %v3837_v28  ;;  %v1076_v33 = vpop.f32.mrf.mxu0  ;;  %v2360_v34 = vpop.f32.mrf.mxu1 }
 0x32f   :  { %v2727_v43 = vmax.f32 %v1076_v33, %v2360_v34 }
 0x330   :  { %v5686_v39 = vmax.f32 %v4206_v32, %v5317_v53 }
 0x331   :  { %1115 = vmatmul.bf16.gmra.mxu0 %v8838_v29  ;;  %2399 = vmatmul.bf16.gmra.mxu1 %v8936_v31 }
 0x332   :  { %v5886_v40 = vadd.f32 %v10580_v30, %v5686_v39  ;;  %3879 = vmatmul.bf16.gmra.mxu2 %v9034_v36  ;;  %5359 = vmatmul.bf16.gmra.mxu3 %v9132_v37  ;;  %v8841_v37 = vld [vmem:[%s11509_s0 + $0x1a0] sm:$0xff] }
 0x334   :  { %v6082_v42 = vmax.f32 %v5886_v40, 0.0 }
 0x335   :  { %v3840_v44 = vpop.f32.mrf.mxu2  ;;  %v5320_v45 = vpop.f32.mrf.mxu3 }
 0x336   :  { %v9384_v46 = vpack.c.bf16 %v6082_v42, %v6081_v41  ;;  %v1078_v47 = vpop.f32.mrf.mxu0  ;;  %v2362_v48 = vpop.f32.mrf.mxu1  ;;  %v4207_v49 = vmax.f32 %v2727_v43, %v3840_v44  ;;  %v9037_v42 = vld [vmem:[%s11509_s0 + $0x7c0] sm:$0xff]  ;;  %v9135_v43 = vld [vmem:[%s11509_s0 + $0xad0] sm:$0xff] }
 0x337   :  { %v2728_v51 = vmax.f32 %v1078_v47, %v2362_v48 }
 0x338   :  { %9710 = vst [vmem:[%s11511_s3 + $0x140] sm:$0xff] %v9384_v46   ;;  %v5687_v50 = vmax.f32 %v4207_v49, %v5320_v45 }
 0x33a   :  { %v5887_v62 = vadd.f32 %v10580_v30, %v5687_v50 }
 0x33c   :  { %v6083_v1 = vmax.f32 %v5887_v62, 0.0  ;;  %v8940_v62 = vld [vmem:[%s11509_s0 + $0x4b8] sm:$0xff] }
 0x33d   :  { %v3842_v52 = vpop.f32.mrf.mxu2  ;;  %v5322_v54 = vpop.f32.mrf.mxu3 }
 0x33e   :  { %v4208_v57 = vmax.f32 %v2728_v51, %v3842_v52  ;;  %v1081_v58 = vpop.f32.mrf.mxu0  ;;  %v2365_v59 = vpop.f32.mrf.mxu1 }
 0x33f   :  { %v2729_v3 = vmax.f32 %v1081_v58, %v2365_v59 }
 0x340   :  { %v5688_v63 = vmax.f32 %v4208_v57, %v5322_v54 }
 0x341   :  { %1120 = vmatmul.bf16.gmra.mxu0 %v8839_v55  ;;  %2404 = vmatmul.bf16.gmra.mxu1 %v8937_v56 }
 0x342   :  { %v5888_v0 = vadd.f32 %v10580_v30, %v5688_v63  ;;  %3884 = vmatmul.bf16.gmra.mxu2 %v9035_v60  ;;  %5364 = vmatmul.bf16.gmra.mxu3 %v9133_v61  ;;  %v8842_v61 = vld [vmem:[%s11509_s0 + $0x1a8] sm:$0xff] }
 0x344   :  { %v6084_v2 = vmax.f32 %v5888_v0, 0.0 }
 0x345   :  { %v3845_v4 = vpop.f32.mrf.mxu2  ;;  %v5325_v5 = vpop.f32.mrf.mxu3 }
 0x346   :  { %v9389_v6 = vpack.c.bf16 %v6084_v2, %v6083_v1  ;;  %v1083_v7 = vpop.f32.mrf.mxu0  ;;  %v2367_v8 = vpop.f32.mrf.mxu1  ;;  %v4209_v9 = vmax.f32 %v2729_v3, %v3845_v4  ;;  %v9038_v2 = vld [vmem:[%s11509_s0 + $0x7c8] sm:$0xff]  ;;  %v9136_v3 = vld [vmem:[%s11509_s0 + $0xad8] sm:$0xff] }
 0x347   :  { %v2730_v11 = vmax.f32 %v1083_v7, %v2367_v8 }
 0x348   :  { %9711 = vst [vmem:[%s11511_s3 + $0x148] sm:$0xff] %v9389_v6   ;;  %v5689_v10 = vmax.f32 %v4209_v9, %v5325_v5 }
 0x34a   :  { %v5889_v21 = vadd.f32 %v10580_v30, %v5689_v10 }
 0x34c   :  { %v6085_v24 = vmax.f32 %v5889_v21, 0.0  ;;  %v8941_v21 = vld [vmem:[%s11509_s0 + $0x4c0] sm:$0xff] }
 0x34d   :  { %v3847_v12 = vpop.f32.mrf.mxu2  ;;  %v5327_v13 = vpop.f32.mrf.mxu3 }
 0x34e   :  { %v4210_v16 = vmax.f32 %v2730_v11, %v3847_v12  ;;  %v1086_v17 = vpop.f32.mrf.mxu0  ;;  %v2370_v18 = vpop.f32.mrf.mxu1 }
 0x34f   :  { %v2731_v25 = vmax.f32 %v1086_v17, %v2370_v18 }
 0x350   :  { %v5690_v22 = vmax.f32 %v4210_v16, %v5327_v13 }
 0x351   :  { %1125 = vmatmul.bf16.gmra.mxu0 %v8840_v14  ;;  %2409 = vmatmul.bf16.gmra.mxu1 %v8938_v15 }
 0x352   :  { %v5890_v23 = vadd.f32 %v10580_v30, %v5690_v22  ;;  %3889 = vmatmul.bf16.gmra.mxu2 %v9036_v19  ;;  %5369 = vmatmul.bf16.gmra.mxu3 %v9134_v20  ;;  %v8843_v20 = vld [vmem:[%s11509_s0 + $0x1b0] sm:$0xff] }
 0x354   :  { %v6086_v35 = vmax.f32 %v5890_v23, 0.0 }
 0x355   :  { %v3850_v26 = vpop.f32.mrf.mxu2  ;;  %v5330_v27 = vpop.f32.mrf.mxu3 }
 0x356   :  { %v9394_v28 = vpack.c.bf16 %v6086_v35, %v6085_v24  ;;  %v1088_v53 = vpop.f32.mrf.mxu0  ;;  %v2372_v29 = vpop.f32.mrf.mxu1  ;;  %v4211_v31 = vmax.f32 %v2731_v25, %v3850_v26  ;;  %v9039_v35 = vld [vmem:[%s11509_s0 + $0x7d0] sm:$0xff]  ;;  %v9137_v25 = vld [vmem:[%s11509_s0 + $0xae0] sm:$0xff] }
 0x357   :  { %v2732_v33 = vmax.f32 %v1088_v53, %v2372_v29 }
 0x358   :  { %9712 = vst [vmem:[%s11511_s3 + $0x150] sm:$0xff] %v9394_v28   ;;  %v5691_v32 = vmax.f32 %v4211_v31, %v5330_v27 }
 0x35a   :  { %v5891_v44 = vadd.f32 %v10580_v30, %v5691_v32 }
 0x35c   :  { %v6087_v47 = vmax.f32 %v5891_v44, 0.0  ;;  %v8942_v44 = vld [vmem:[%s11509_s0 + $0x4c8] sm:$0xff] }
 0x35d   :  { %v3852_v34 = vpop.f32.mrf.mxu2  ;;  %v5332_v36 = vpop.f32.mrf.mxu3 }
 0x35e   :  { %v4212_v39 = vmax.f32 %v2732_v33, %v3852_v34  ;;  %v1091_v40 = vpop.f32.mrf.mxu0  ;;  %v2375_v41 = vpop.f32.mrf.mxu1 }
 0x35f   :  { %v2733_v49 = vmax.f32 %v1091_v40, %v2375_v41 }
 0x360   :  { %v5692_v45 = vmax.f32 %v4212_v39, %v5332_v36 }
 0x361   :  { %1130 = vmatmul.bf16.gmra.mxu0 %v8841_v37  ;;  %2414 = vmatmul.bf16.gmra.mxu1 %v8939_v38 }
 0x362   :  { %v5892_v46 = vadd.f32 %v10580_v30, %v5692_v45  ;;  %3894 = vmatmul.bf16.gmra.mxu2 %v9037_v42  ;;  %5374 = vmatmul.bf16.gmra.mxu3 %v9135_v43  ;;  %v8844_v43 = vld [vmem:[%s11509_s0 + $0x1b8] sm:$0xff] }
 0x364   :  { %v6088_v48 = vmax.f32 %v5892_v46, 0.0 }
 0x365   :  { %v3855_v50 = vpop.f32.mrf.mxu2  ;;  %v5335_v51 = vpop.f32.mrf.mxu3 }
 0x366   :  { %v9399_v52 = vpack.c.bf16 %v6088_v48, %v6087_v47  ;;  %v1093_v54 = vpop.f32.mrf.mxu0  ;;  %v2377_v55 = vpop.f32.mrf.mxu1  ;;  %v4213_v56 = vmax.f32 %v2733_v49, %v3855_v50  ;;  %v9040_v48 = vld [vmem:[%s11509_s0 + $0x7d8] sm:$0xff]  ;;  %v9138_v49 = vld [vmem:[%s11509_s0 + $0xae8] sm:$0xff] }
 0x367   :  { %v2734_v58 = vmax.f32 %v1093_v54, %v2377_v55 }
 0x368   :  { %9713 = vst [vmem:[%s11511_s3 + $0x158] sm:$0xff] %v9399_v52   ;;  %v5693_v57 = vmax.f32 %v4213_v56, %v5335_v51 }
 0x36a   :  { %v5893_v4 = vadd.f32 %v10580_v30, %v5693_v57 }
 0x36c   :  { %v6089_v7 = vmax.f32 %v5893_v4, 0.0  ;;  %v8943_v4 = vld [vmem:[%s11509_s0 + $0x4d0] sm:$0xff] }
 0x36d   :  { %v3857_v59 = vpop.f32.mrf.mxu2  ;;  %v5337_v60 = vpop.f32.mrf.mxu3 }
 0x36e   :  { %v4214_v63 = vmax.f32 %v2734_v58, %v3857_v59  ;;  %v1096_v0 = vpop.f32.mrf.mxu0  ;;  %v2380_v1 = vpop.f32.mrf.mxu1 }
 0x36f   :  { %v2735_v9 = vmax.f32 %v1096_v0, %v2380_v1 }
 0x370   :  { %v5694_v5 = vmax.f32 %v4214_v63, %v5337_v60 }
 0x371   :  { %1135 = vmatmul.bf16.gmra.mxu0 %v8842_v61  ;;  %2419 = vmatmul.bf16.gmra.mxu1 %v8940_v62 }
 0x372   :  { %v5894_v6 = vadd.f32 %v10580_v30, %v5694_v5  ;;  %3899 = vmatmul.bf16.gmra.mxu2 %v9038_v2  ;;  %5379 = vmatmul.bf16.gmra.mxu3 %v9136_v3  ;;  %v8845_v3 = vld [vmem:[%s11509_s0 + $0x1c0] sm:$0xff] }
 0x374   :  { %v6090_v8 = vmax.f32 %v5894_v6, 0.0 }
 0x375   :  { %v3860_v10 = vpop.f32.mrf.mxu2  ;;  %v5340_v11 = vpop.f32.mrf.mxu3 }
 0x376   :  { %v9404_v12 = vpack.c.bf16 %v6090_v8, %v6089_v7  ;;  %v1098_v13 = vpop.f32.mrf.mxu0  ;;  %v2382_v14 = vpop.f32.mrf.mxu1  ;;  %v4215_v15 = vmax.f32 %v2735_v9, %v3860_v10  ;;  %v9041_v8 = vld [vmem:[%s11509_s0 + $0x7e0] sm:$0xff]  ;;  %v9139_v9 = vld [vmem:[%s11509_s0 + $0xaf0] sm:$0xff] }
 0x377   :  { %v2736_v17 = vmax.f32 %v1098_v13, %v2382_v14 }
 0x378   :  { %9714 = vst [vmem:[%s11511_s3 + $0x160] sm:$0xff] %v9404_v12   ;;  %v5695_v16 = vmax.f32 %v4215_v15, %v5340_v11 }
 0x37a   :  { %v5895_v26 = vadd.f32 %v10580_v30, %v5695_v16 }
 0x37c   :  { %v6091_v53 = vmax.f32 %v5895_v26, 0.0  ;;  %v8944_v26 = vld [vmem:[%s11509_s0 + $0x4d8] sm:$0xff] }
 0x37d   :  { %v3862_v18 = vpop.f32.mrf.mxu2  ;;  %v5342_v19 = vpop.f32.mrf.mxu3 }
 0x37e   :  { %v4216_v22 = vmax.f32 %v2736_v17, %v3862_v18  ;;  %v1101_v23 = vpop.f32.mrf.mxu0  ;;  %v2385_v24 = vpop.f32.mrf.mxu1 }
 0x37f   :  { %v2737_v31 = vmax.f32 %v1101_v23, %v2385_v24 }
 0x380   :  { %v5696_v27 = vmax.f32 %v4216_v22, %v5342_v19 }
 0x381   :  { %1140 = vmatmul.bf16.gmra.mxu0 %v8843_v20  ;;  %2424 = vmatmul.bf16.gmra.mxu1 %v8941_v21 }
 0x382   :  { %v5896_v28 = vadd.f32 %v10580_v30, %v5696_v27  ;;  %3904 = vmatmul.bf16.gmra.mxu2 %v9039_v35  ;;  %5384 = vmatmul.bf16.gmra.mxu3 %v9137_v25  ;;  %v8846_v25 = vld [vmem:[%s11509_s0 + $0x1c8] sm:$0xff] }
 0x384   :  { %v6092_v29 = vmax.f32 %v5896_v28, 0.0 }
 0x385   :  { %v3865_v32 = vpop.f32.mrf.mxu2  ;;  %v5345_v33 = vpop.f32.mrf.mxu3 }
 0x386   :  { %v9409_v34 = vpack.c.bf16 %v6092_v29, %v6091_v53  ;;  %v1103_v36 = vpop.f32.mrf.mxu0  ;;  %v2387_v37 = vpop.f32.mrf.mxu1  ;;  %v4217_v38 = vmax.f32 %v2737_v31, %v3865_v32  ;;  %v9042_v29 = vld [vmem:[%s11509_s0 + $0x7e8] sm:$0xff]  ;;  %v9140_v31 = vld [vmem:[%s11509_s0 + $0xaf8] sm:$0xff] }
 0x387   :  { %v2738_v40 = vmax.f32 %v1103_v36, %v2387_v37 }
 0x388   :  { %9715 = vst [vmem:[%s11511_s3 + $0x168] sm:$0xff] %v9409_v34   ;;  %v5697_v39 = vmax.f32 %v4217_v38, %v5345_v33 }
 0x38a   :  { %v5897_v50 = vadd.f32 %v10580_v30, %v5697_v39 }
 0x38c   :  { %v6093_v54 = vmax.f32 %v5897_v50, 0.0  ;;  %v8945_v50 = vld [vmem:[%s11509_s0 + $0x4e0] sm:$0xff] }
 0x38d   :  { %v3867_v41 = vpop.f32.mrf.mxu2  ;;  %v5347_v42 = vpop.f32.mrf.mxu3 }
 0x38e   :  { %v4218_v45 = vmax.f32 %v2738_v40, %v3867_v41  ;;  %v1106_v46 = vpop.f32.mrf.mxu0  ;;  %v2390_v47 = vpop.f32.mrf.mxu1 }
 0x38f   :  { %v2739_v56 = vmax.f32 %v1106_v46, %v2390_v47 }
 0x390   :  { %v5698_v51 = vmax.f32 %v4218_v45, %v5347_v42 }
 0x391   :  { %1145 = vmatmul.bf16.gmra.mxu0 %v8844_v43  ;;  %2429 = vmatmul.bf16.gmra.mxu1 %v8942_v44 }
 0x392   :  { %v5898_v52 = vadd.f32 %v10580_v30, %v5698_v51  ;;  %3909 = vmatmul.bf16.gmra.mxu2 %v9040_v48  ;;  %5389 = vmatmul.bf16.gmra.mxu3 %v9138_v49  ;;  %v8847_v49 = vld [vmem:[%s11509_s0 + $0x1d0] sm:$0xff] }
 0x394   :  { %v6094_v55 = vmax.f32 %v5898_v52, 0.0 }
 0x395   :  { %v3870_v57 = vpop.f32.mrf.mxu2  ;;  %v5350_v58 = vpop.f32.mrf.mxu3 }
 0x396   :  { %v9414_v59 = vpack.c.bf16 %v6094_v55, %v6093_v54  ;;  %v1108_v60 = vpop.f32.mrf.mxu0  ;;  %v2392_v61 = vpop.f32.mrf.mxu1  ;;  %v4219_v62 = vmax.f32 %v2739_v56, %v3870_v57  ;;  %v9043_v55 = vld [vmem:[%s11509_s0 + $0x7f0] sm:$0xff]  ;;  %v9141_v56 = vld [vmem:[%s11509_s0 + $0xb00] sm:$0xff] }
 0x397   :  { %v2740_v0 = vmax.f32 %v1108_v60, %v2392_v61 }
 0x398   :  { %9716 = vst [vmem:[%s11511_s3 + $0x170] sm:$0xff] %v9414_v59   ;;  %v5699_v63 = vmax.f32 %v4219_v62, %v5350_v58 }
 0x39a   :  { %v5899_v10 = vadd.f32 %v10580_v30, %v5699_v63 }
 0x39c   :  { %v6095_v13 = vmax.f32 %v5899_v10, 0.0  ;;  %v8946_v10 = vld [vmem:[%s11509_s0 + $0x4e8] sm:$0xff] }
 0x39d   :  { %v3872_v1 = vpop.f32.mrf.mxu2  ;;  %v5352_v2 = vpop.f32.mrf.mxu3 }
 0x39e   :  { %v4220_v5 = vmax.f32 %v2740_v0, %v3872_v1  ;;  %v1111_v6 = vpop.f32.mrf.mxu0  ;;  %v2395_v7 = vpop.f32.mrf.mxu1 }
 0x39f   :  { %v2741_v15 = vmax.f32 %v1111_v6, %v2395_v7 }
 0x3a0   :  { %v5700_v11 = vmax.f32 %v4220_v5, %v5352_v2 }
 0x3a1   :  { %1150 = vmatmul.bf16.gmra.mxu0 %v8845_v3  ;;  %2434 = vmatmul.bf16.gmra.mxu1 %v8943_v4 }
 0x3a2   :  { %v5900_v12 = vadd.f32 %v10580_v30, %v5700_v11  ;;  %3914 = vmatmul.bf16.gmra.mxu2 %v9041_v8  ;;  %5394 = vmatmul.bf16.gmra.mxu3 %v9139_v9  ;;  %v8848_v9 = vld [vmem:[%s11509_s0 + $0x1d8] sm:$0xff] }
 0x3a4   :  { %v6096_v14 = vmax.f32 %v5900_v12, 0.0 }
 0x3a5   :  { %v3875_v16 = vpop.f32.mrf.mxu2  ;;  %v5355_v17 = vpop.f32.mrf.mxu3 }
 0x3a6   :  { %v9419_v18 = vpack.c.bf16 %v6096_v14, %v6095_v13  ;;  %v1113_v19 = vpop.f32.mrf.mxu0  ;;  %v2397_v20 = vpop.f32.mrf.mxu1  ;;  %v4221_v21 = vmax.f32 %v2741_v15, %v3875_v16  ;;  %v9044_v14 = vld [vmem:[%s11509_s0 + $0x7f8] sm:$0xff]  ;;  %v9142_v15 = vld [vmem:[%s11509_s0 + $0xb08] sm:$0xff] }
 0x3a7   :  { %v2742_v23 = vmax.f32 %v1113_v19, %v2397_v20 }
 0x3a8   :  { %9717 = vst [vmem:[%s11511_s3 + $0x178] sm:$0xff] %v9419_v18   ;;  %v5701_v22 = vmax.f32 %v4221_v21, %v5355_v17 }
 0x3aa   :  { %v5901_v32 = vadd.f32 %v10580_v30, %v5701_v22 }
 0x3ac   :  { %v6097_v36 = vmax.f32 %v5901_v32, 0.0  ;;  %v8947_v32 = vld [vmem:[%s11509_s0 + $0x4f0] sm:$0xff] }
 0x3ad   :  { %v3877_v24 = vpop.f32.mrf.mxu2  ;;  %v5357_v35 = vpop.f32.mrf.mxu3 }
 0x3ae   :  { %v4222_v27 = vmax.f32 %v2742_v23, %v3877_v24  ;;  %v1116_v28 = vpop.f32.mrf.mxu0  ;;  %v2400_v53 = vpop.f32.mrf.mxu1 }
 0x3af   :  { %v2743_v38 = vmax.f32 %v1116_v28, %v2400_v53 }
 0x3b0   :  { %v5702_v33 = vmax.f32 %v4222_v27, %v5357_v35 }
 0x3b1   :  { %1155 = vmatmul.bf16.gmra.mxu0 %v8846_v25  ;;  %2439 = vmatmul.bf16.gmra.mxu1 %v8944_v26 }
 0x3b2   :  { %v5902_v34 = vadd.f32 %v10580_v30, %v5702_v33  ;;  %3919 = vmatmul.bf16.gmra.mxu2 %v9042_v29  ;;  %5399 = vmatmul.bf16.gmra.mxu3 %v9140_v31  ;;  %v8849_v31 = vld [vmem:[%s11509_s0 + $0x1e0] sm:$0xff] }
 0x3b4   :  { %v6098_v37 = vmax.f32 %v5902_v34, 0.0 }
 0x3b5   :  { %v3880_v39 = vpop.f32.mrf.mxu2  ;;  %v5360_v40 = vpop.f32.mrf.mxu3 }
 0x3b6   :  { %v9424_v41 = vpack.c.bf16 %v6098_v37, %v6097_v36  ;;  %v1118_v42 = vpop.f32.mrf.mxu0  ;;  %v2402_v43 = vpop.f32.mrf.mxu1  ;;  %v4223_v44 = vmax.f32 %v2743_v38, %v3880_v39  ;;  %v9045_v37 = vld [vmem:[%s11509_s0 + $0x800] sm:$0xff]  ;;  %v9143_v38 = vld [vmem:[%s11509_s0 + $0xb10] sm:$0xff] }
 0x3b7   :  { %v2744_v46 = vmax.f32 %v1118_v42, %v2402_v43 }
 0x3b8   :  { %9718 = vst [vmem:[%s11511_s3 + $0x180] sm:$0xff] %v9424_v41   ;;  %v5703_v45 = vmax.f32 %v4223_v44, %v5360_v40 }
 0x3ba   :  { %v5903_v57 = vadd.f32 %v10580_v30, %v5703_v45 }
 0x3bc   :  { %v6099_v60 = vmax.f32 %v5903_v57, 0.0  ;;  %v8948_v57 = vld [vmem:[%s11509_s0 + $0x4f8] sm:$0xff] }
 0x3bd   :  { %v3882_v47 = vpop.f32.mrf.mxu2  ;;  %v5362_v48 = vpop.f32.mrf.mxu3 }
 0x3be   :  { %v4224_v51 = vmax.f32 %v2744_v46, %v3882_v47  ;;  %v1121_v52 = vpop.f32.mrf.mxu0  ;;  %v2405_v54 = vpop.f32.mrf.mxu1 }
 0x3bf   :  { %v2745_v62 = vmax.f32 %v1121_v52, %v2405_v54 }
 0x3c0   :  { %v5704_v58 = vmax.f32 %v4224_v51, %v5362_v48 }
 0x3c1   :  { %1160 = vmatmul.bf16.gmra.mxu0 %v8847_v49  ;;  %2444 = vmatmul.bf16.gmra.mxu1 %v8945_v50 }
 0x3c2   :  { %v5904_v59 = vadd.f32 %v10580_v30, %v5704_v58  ;;  %3924 = vmatmul.bf16.gmra.mxu2 %v9043_v55  ;;  %5404 = vmatmul.bf16.gmra.mxu3 %v9141_v56  ;;  %v8850_v56 = vld [vmem:[%s11509_s0 + $0x1e8] sm:$0xff] }
 0x3c4   :  { %v6100_v61 = vmax.f32 %v5904_v59, 0.0 }
 0x3c5   :  { %v3885_v63 = vpop.f32.mrf.mxu2  ;;  %v5365_v0 = vpop.f32.mrf.mxu3 }
 0x3c6   :  { %v9429_v1 = vpack.c.bf16 %v6100_v61, %v6099_v60  ;;  %v1123_v2 = vpop.f32.mrf.mxu0  ;;  %v2407_v3 = vpop.f32.mrf.mxu1  ;;  %v4225_v4 = vmax.f32 %v2745_v62, %v3885_v63  ;;  %v9046_v61 = vld [vmem:[%s11509_s0 + $0x808] sm:$0xff]  ;;  %v9144_v62 = vld [vmem:[%s11509_s0 + $0xb18] sm:$0xff] }
 0x3c7   :  { %v2746_v6 = vmax.f32 %v1123_v2, %v2407_v3 }
 0x3c8   :  { %9719 = vst [vmem:[%s11511_s3 + $0x188] sm:$0xff] %v9429_v1   ;;  %v5705_v5 = vmax.f32 %v4225_v4, %v5365_v0 }
 0x3ca   :  { %v5905_v16 = vadd.f32 %v10580_v30, %v5705_v5 }
 0x3cc   :  { %v6101_v19 = vmax.f32 %v5905_v16, 0.0  ;;  %v8949_v16 = vld [vmem:[%s11509_s0 + $0x500] sm:$0xff] }
 0x3cd   :  { %v3887_v7 = vpop.f32.mrf.mxu2  ;;  %v5367_v8 = vpop.f32.mrf.mxu3 }
 0x3ce   :  { %v4226_v11 = vmax.f32 %v2746_v6, %v3887_v7  ;;  %v1126_v12 = vpop.f32.mrf.mxu0  ;;  %v2410_v13 = vpop.f32.mrf.mxu1 }
 0x3cf   :  { %v2747_v21 = vmax.f32 %v1126_v12, %v2410_v13 }
 0x3d0   :  { %v5706_v17 = vmax.f32 %v4226_v11, %v5367_v8 }
 0x3d1   :  { %1165 = vmatmul.bf16.gmra.mxu0 %v8848_v9  ;;  %2449 = vmatmul.bf16.gmra.mxu1 %v8946_v10 }
 0x3d2   :  { %v5906_v18 = vadd.f32 %v10580_v30, %v5706_v17  ;;  %3929 = vmatmul.bf16.gmra.mxu2 %v9044_v14  ;;  %5409 = vmatmul.bf16.gmra.mxu3 %v9142_v15  ;;  %v8851_v15 = vld [vmem:[%s11509_s0 + $0x1f0] sm:$0xff] }
 0x3d4   :  { %v6102_v20 = vmax.f32 %v5906_v18, 0.0 }
 0x3d5   :  { %v3890_v22 = vpop.f32.mrf.mxu2  ;;  %v5370_v23 = vpop.f32.mrf.mxu3 }
 0x3d6   :  { %v9434_v24 = vpack.c.bf16 %v6102_v20, %v6101_v19  ;;  %v1128_v35 = vpop.f32.mrf.mxu0  ;;  %v2412_v25 = vpop.f32.mrf.mxu1  ;;  %v4227_v26 = vmax.f32 %v2747_v21, %v3890_v22  ;;  %v9047_v20 = vld [vmem:[%s11509_s0 + $0x810] sm:$0xff]  ;;  %v9145_v21 = vld [vmem:[%s11509_s0 + $0xb20] sm:$0xff] }
 0x3d7   :  { %v2748_v28 = vmax.f32 %v1128_v35, %v2412_v25 }
 0x3d8   :  { %9720 = vst [vmem:[%s11511_s3 + $0x190] sm:$0xff] %v9434_v24   ;;  %v5707_v27 = vmax.f32 %v4227_v26, %v5370_v23 }
 0x3da   :  { %v5907_v39 = vadd.f32 %v10580_v30, %v5707_v27 }
 0x3dc   :  { %v6103_v42 = vmax.f32 %v5907_v39, 0.0  ;;  %v8950_v39 = vld [vmem:[%s11509_s0 + $0x508] sm:$0xff] }
 0x3dd   :  { %v3892_v53 = vpop.f32.mrf.mxu2  ;;  %v5372_v29 = vpop.f32.mrf.mxu3 }
 0x3de   :  { %v4228_v33 = vmax.f32 %v2748_v28, %v3892_v53  ;;  %v1131_v34 = vpop.f32.mrf.mxu0  ;;  %v2415_v36 = vpop.f32.mrf.mxu1 }
 0x3df   :  { %v2749_v44 = vmax.f32 %v1131_v34, %v2415_v36 }
 0x3e0   :  { %v5708_v40 = vmax.f32 %v4228_v33, %v5372_v29 }
 0x3e1   :  { %1170 = vmatmul.bf16.gmra.mxu0 %v8849_v31  ;;  %2454 = vmatmul.bf16.gmra.mxu1 %v8947_v32 }
 0x3e2   :  { %v5908_v41 = vadd.f32 %v10580_v30, %v5708_v40  ;;  %3934 = vmatmul.bf16.gmra.mxu2 %v9045_v37  ;;  %5414 = vmatmul.bf16.gmra.mxu3 %v9143_v38  ;;  %v8852_v38 = vld [vmem:[%s11509_s0 + $0x1f8] sm:$0xff] }
 0x3e4   :  { %v6104_v43 = vmax.f32 %v5908_v41, 0.0 }
 0x3e5   :  { %v3895_v45 = vpop.f32.mrf.mxu2  ;;  %v5375_v46 = vpop.f32.mrf.mxu3 }
 0x3e6   :  { %v9439_v47 = vpack.c.bf16 %v6104_v43, %v6103_v42  ;;  %v1133_v48 = vpop.f32.mrf.mxu0  ;;  %v2417_v49 = vpop.f32.mrf.mxu1  ;;  %v4229_v50 = vmax.f32 %v2749_v44, %v3895_v45  ;;  %v9048_v43 = vld [vmem:[%s11509_s0 + $0x818] sm:$0xff]  ;;  %v9146_v44 = vld [vmem:[%s11509_s0 + $0xb28] sm:$0xff] }
 0x3e7   :  { %v2750_v52 = vmax.f32 %v1133_v48, %v2417_v49 }
 0x3e8   :  { %9721 = vst [vmem:[%s11511_s3 + $0x198] sm:$0xff] %v9439_v47   ;;  %v5709_v51 = vmax.f32 %v4229_v50, %v5375_v46 }
 0x3ea   :  { %v5909_v63 = vadd.f32 %v10580_v30, %v5709_v51 }
 0x3ec   :  { %v6105_v2 = vmax.f32 %v5909_v63, 0.0  ;;  %v8951_v63 = vld [vmem:[%s11509_s0 + $0x510] sm:$0xff] }
 0x3ed   :  { %v3897_v54 = vpop.f32.mrf.mxu2  ;;  %v5377_v55 = vpop.f32.mrf.mxu3 }
 0x3ee   :  { %v4230_v58 = vmax.f32 %v2750_v52, %v3897_v54  ;;  %v1136_v59 = vpop.f32.mrf.mxu0  ;;  %v2420_v60 = vpop.f32.mrf.mxu1 }
 0x3ef   :  { %v2751_v4 = vmax.f32 %v1136_v59, %v2420_v60 }
 0x3f0   :  { %v5710_v0 = vmax.f32 %v4230_v58, %v5377_v55 }
 0x3f1   :  { %1175 = vmatmul.bf16.gmra.mxu0 %v8850_v56  ;;  %2459 = vmatmul.bf16.gmra.mxu1 %v8948_v57 }
 0x3f2   :  { %v5910_v1 = vadd.f32 %v10580_v30, %v5710_v0  ;;  %3939 = vmatmul.bf16.gmra.mxu2 %v9046_v61  ;;  %5419 = vmatmul.bf16.gmra.mxu3 %v9144_v62  ;;  %v8853_v62 = vld [vmem:[%s11509_s0 + $0x200] sm:$0xff] }
 0x3f4   :  { %v6106_v3 = vmax.f32 %v5910_v1, 0.0 }
 0x3f5   :  { %v3900_v5 = vpop.f32.mrf.mxu2  ;;  %v5380_v6 = vpop.f32.mrf.mxu3 }
 0x3f6   :  { %v9444_v7 = vpack.c.bf16 %v6106_v3, %v6105_v2  ;;  %v1138_v8 = vpop.f32.mrf.mxu0  ;;  %v2422_v9 = vpop.f32.mrf.mxu1  ;;  %v4231_v10 = vmax.f32 %v2751_v4, %v3900_v5  ;;  %v9049_v3 = vld [vmem:[%s11509_s0 + $0x820] sm:$0xff]  ;;  %v9147_v4 = vld [vmem:[%s11509_s0 + $0xb30] sm:$0xff] }
 0x3f7   :  { %v2752_v12 = vmax.f32 %v1138_v8, %v2422_v9 }
 0x3f8   :  { %9722 = vst [vmem:[%s11511_s3 + $0x1a0] sm:$0xff] %v9444_v7   ;;  %v5711_v11 = vmax.f32 %v4231_v10, %v5380_v6 }
 0x3fa   :  { %v5911_v22 = vadd.f32 %v10580_v30, %v5711_v11 }
 0x3fc   :  { %v6107_v35 = vmax.f32 %v5911_v22, 0.0 }
 0x3fd   :  { %v3902_v13 = vpop.f32.mrf.mxu2  ;;  %v5382_v14 = vpop.f32.mrf.mxu3 }
 0x3fe   :  { %v4232_v17 = vmax.f32 %v2752_v12, %v3902_v13  ;;  %v1141_v18 = vpop.f32.mrf.mxu0  ;;  %v2425_v19 = vpop.f32.mrf.mxu1 }
 0x3ff   :  { %v2753_v26 = vmax.f32 %v1141_v18, %v2425_v19 }
 0x400   :  { %v5712_v23 = vmax.f32 %v4232_v17, %v5382_v14 }
 0x401   :  { %1180 = vmatmul.bf16.gmra.mxu0 %v8851_v15  ;;  %2464 = vmatmul.bf16.gmra.mxu1 %v8949_v16 }
 0x402   :  { %v5912_v24 = vadd.f32 %v10580_v30, %v5712_v23  ;;  %3944 = vmatmul.bf16.gmra.mxu2 %v9047_v20  ;;  %5424 = vmatmul.bf16.gmra.mxu3 %v9145_v21  ;;  %v8952_v21 = vld [vmem:[%s11509_s0 + $0x518] sm:$0xff] }
 0x404   :  { %v6108_v25 = vmax.f32 %v5912_v24, 0.0 }
 0x405   :  { %v3905_v27 = vpop.f32.mrf.mxu2  ;;  %v5385_v28 = vpop.f32.mrf.mxu3 }
 0x406   :  { %v9449_v53 = vpack.c.bf16 %v6108_v25, %v6107_v35  ;;  %v1143_v29 = vpop.f32.mrf.mxu0  ;;  %v2427_v31 = vpop.f32.mrf.mxu1  ;;  %v4233_v32 = vmax.f32 %v2753_v26, %v3905_v27  ;;  %v9050_v35 = vld [vmem:[%s11509_s0 + $0x828] sm:$0xff]  ;;  %v9148_v25 = vld [vmem:[%s11509_s0 + $0xb38] sm:$0xff]  ;;  %v10908_v26 = vld [vmem:[%s11510_s2] ss:$0 sm:$0xff] }
 0x407   :  { %v2754_v34 = vmax.f32 %v1143_v29, %v2427_v31 }
 0x408   :  { %9723 = vst [vmem:[%s11511_s3 + $0x1a8] sm:$0xff] %v9449_v53   ;;  %v5713_v33 = vmax.f32 %v4233_v32, %v5385_v28 }
 0x40a   :  { %v5913_v45 = vadd.f32 %v10580_v30, %v5713_v33 }
 0x40c   :  { %v6109_v48 = vmax.f32 %v5913_v45, 0.0  ;;  %v8953_v45 = vld [vmem:[%s11509_s0 + $0x520] sm:$0xff] }
 0x40d   :  { %v3907_v36 = vpop.f32.mrf.mxu2  ;;  %v5387_v37 = vpop.f32.mrf.mxu3 }
 0x40e   :  { %v4234_v40 = vmax.f32 %v2754_v34, %v3907_v36  ;;  %v1146_v41 = vpop.f32.mrf.mxu0  ;;  %v2430_v42 = vpop.f32.mrf.mxu1 }
 0x40f   :  { %v2755_v50 = vmax.f32 %v1146_v41, %v2430_v42 }
 0x410   :  { %v5714_v46 = vmax.f32 %v4234_v40, %v5387_v37 }
 0x411   :  { %1185 = vmatmul.bf16.gmra.mxu0 %v8852_v38  ;;  %2469 = vmatmul.bf16.gmra.mxu1 %v8950_v39 }
 0x412   :  { %v5914_v47 = vadd.f32 %v10580_v30, %v5714_v46  ;;  %3949 = vmatmul.bf16.gmra.mxu2 %v9048_v43  ;;  %5429 = vmatmul.bf16.gmra.mxu3 %v9146_v44  ;;  %v8855_v44 = vld [vmem:[%s11509_s0 + $0x210] sm:$0xff] }
 0x414   :  { %v6110_v49 = vmax.f32 %v5914_v47, 0.0 }
 0x415   :  { %v3910_v51 = vpop.f32.mrf.mxu2  ;;  %v5390_v52 = vpop.f32.mrf.mxu3 }
 0x416   :  { %v9454_v54 = vpack.c.bf16 %v6110_v49, %v6109_v48  ;;  %v1148_v55 = vpop.f32.mrf.mxu0  ;;  %v2432_v56 = vpop.f32.mrf.mxu1  ;;  %v4235_v57 = vmax.f32 %v2755_v50, %v3910_v51  ;;  %v9051_v49 = vld [vmem:[%s11509_s0 + $0x830] sm:$0xff]  ;;  %v9149_v50 = vld [vmem:[%s11509_s0 + $0xb40] sm:$0xff] }
 0x417   :  { %v2756_v59 = vmax.f32 %v1148_v55, %v2432_v56 }
 0x418   :  { %9724 = vst [vmem:[%s11511_s3 + $0x1b0] sm:$0xff] %v9454_v54   ;;  %v5715_v58 = vmax.f32 %v4235_v57, %v5390_v52 }
 0x41a   :  { %v5915_v5 = vadd.f32 %v10580_v30, %v5715_v58 }
 0x41c   :  { %v6111_v8 = vmax.f32 %v5915_v5, 0.0  ;;  %v8954_v5 = vld [vmem:[%s11509_s0 + $0x528] sm:$0xff] }
 0x41d   :  { %v3912_v60 = vpop.f32.mrf.mxu2  ;;  %v5392_v61 = vpop.f32.mrf.mxu3 }
 0x41e   :  { %v4236_v0 = vmax.f32 %v2756_v59, %v3912_v60  ;;  %v1151_v1 = vpop.f32.mrf.mxu0  ;;  %v2435_v2 = vpop.f32.mrf.mxu1 }
 0x41f   :  { %v2757_v10 = vmax.f32 %v1151_v1, %v2435_v2 }
 0x420   :  { %v5716_v6 = vmax.f32 %v4236_v0, %v5392_v61 }
 0x421   :  { %1190 = vmatmul.bf16.gmra.mxu0 %v8853_v62  ;;  %2474 = vmatmul.bf16.gmra.mxu1 %v8951_v63 }
 0x422   :  { %v5916_v7 = vadd.f32 %v10580_v30, %v5716_v6  ;;  %3954 = vmatmul.bf16.gmra.mxu2 %v9049_v3  ;;  %5434 = vmatmul.bf16.gmra.mxu3 %v9147_v4  ;;  %v8854_v30 = vld [vmem:[%s11509_s0 + $0x208] sm:$0xff]  ;;  %v8856_v4 = vld [vmem:[%s11509_s0 + $0x218] sm:$0xff] }
 0x424   :  { %v6112_v9 = vmax.f32 %v5916_v7, 0.0 }
 0x425   :  { %v3915_v11 = vpop.f32.mrf.mxu2  ;;  %v5395_v12 = vpop.f32.mrf.mxu3 }
 0x426   :  { %v9459_v13 = vpack.c.bf16 %v6112_v9, %v6111_v8  ;;  %v1153_v14 = vpop.f32.mrf.mxu0  ;;  %v2437_v15 = vpop.f32.mrf.mxu1  ;;  %v4237_v16 = vmax.f32 %v2757_v10, %v3915_v11  ;;  %v9052_v9 = vld [vmem:[%s11509_s0 + $0x838] sm:$0xff]  ;;  %v9150_v10 = vld [vmem:[%s11509_s0 + $0xb48] sm:$0xff] }
 0x427   :  { %v2758_v18 = vmax.f32 %v1153_v14, %v2437_v15 }
 0x428   :  { %9725 = vst [vmem:[%s11511_s3 + $0x1b8] sm:$0xff] %v9459_v13   ;;  %v5717_v17 = vmax.f32 %v4237_v16, %v5395_v12 }
 0x42a   :  { %v5917_v27 = vadd.f32 %v10908_v26, %v5717_v17 }
 0x42c   :  { %v6113_v29 = vmax.f32 %v5917_v27, 0.0  ;;  %v8955_v27 = vld [vmem:[%s11509_s0 + $0x530] sm:$0xff] }
 0x42d   :  { %v3917_v19 = vpop.f32.mrf.mxu2  ;;  %v5397_v20 = vpop.f32.mrf.mxu3 }
 0x42e   :  { %v4238_v22 = vmax.f32 %v2758_v18, %v3917_v19  ;;  %v1156_v23 = vpop.f32.mrf.mxu0  ;;  %v2440_v24 = vpop.f32.mrf.mxu1 }
 0x42f   :  { %v2759_v32 = vmax.f32 %v1156_v23, %v2440_v24 }
 0x430   :  { %v5718_v28 = vmax.f32 %v4238_v22, %v5397_v20 }
 0x431   :  { %1195 = vmatmul.bf16.gmra.mxu0 %v8854_v30  ;;  %2479 = vmatmul.bf16.gmra.mxu1 %v8952_v21 }
 0x432   :  { %v5918_v53 = vadd.f32 %v10908_v26, %v5718_v28  ;;  %3959 = vmatmul.bf16.gmra.mxu2 %v9050_v35  ;;  %5439 = vmatmul.bf16.gmra.mxu3 %v9148_v25  ;;  %v8857_v25 = vld [vmem:[%s11509_s0 + $0x220] sm:$0xff] }
 0x434   :  { %v6114_v31 = vmax.f32 %v5918_v53, 0.0 }
 0x435   :  { %v3920_v33 = vpop.f32.mrf.mxu2  ;;  %v5400_v34 = vpop.f32.mrf.mxu3 }
 0x436   :  { %v9464_v36 = vpack.c.bf16 %v6114_v31, %v6113_v29  ;;  %v1158_v37 = vpop.f32.mrf.mxu0  ;;  %v2442_v38 = vpop.f32.mrf.mxu1  ;;  %v4239_v39 = vmax.f32 %v2759_v32, %v3920_v33  ;;  %v9053_v31 = vld [vmem:[%s11509_s0 + $0x840] sm:$0xff]  ;;  %v9151_v32 = vld [vmem:[%s11509_s0 + $0xb50] sm:$0xff] }
 0x437   :  { %v2760_v41 = vmax.f32 %v1158_v37, %v2442_v38 }
 0x438   :  { %9726 = vst [vmem:[%s11511_s3 + $0x1c0] sm:$0xff] %v9464_v36   ;;  %v5719_v40 = vmax.f32 %v4239_v39, %v5400_v34 }
 0x43a   :  { %v5919_v51 = vadd.f32 %v10908_v26, %v5719_v40 }
 0x43c   :  { %v6115_v55 = vmax.f32 %v5919_v51, 0.0  ;;  %v8956_v51 = vld [vmem:[%s11509_s0 + $0x538] sm:$0xff] }
 0x43d   :  { %v3922_v42 = vpop.f32.mrf.mxu2  ;;  %v5402_v43 = vpop.f32.mrf.mxu3 }
 0x43e   :  { %v4240_v46 = vmax.f32 %v2760_v41, %v3922_v42  ;;  %v1161_v47 = vpop.f32.mrf.mxu0  ;;  %v2445_v48 = vpop.f32.mrf.mxu1 }
 0x43f   :  { %v2761_v57 = vmax.f32 %v1161_v47, %v2445_v48 }
 0x440   :  { %v5720_v52 = vmax.f32 %v4240_v46, %v5402_v43 }
 0x441   :  { %1200 = vmatmul.bf16.gmra.mxu0 %v8855_v44  ;;  %2484 = vmatmul.bf16.gmra.mxu1 %v8953_v45 }
 0x442   :  { %v5920_v54 = vadd.f32 %v10908_v26, %v5720_v52  ;;  %3964 = vmatmul.bf16.gmra.mxu2 %v9051_v49  ;;  %5444 = vmatmul.bf16.gmra.mxu3 %v9149_v50  ;;  %v8858_v50 = vld [vmem:[%s11509_s0 + $0x228] sm:$0xff] }
 0x444   :  { %v6116_v56 = vmax.f32 %v5920_v54, 0.0 }
 0x445   :  { %v3925_v58 = vpop.f32.mrf.mxu2  ;;  %v5405_v59 = vpop.f32.mrf.mxu3 }
 0x446   :  { %v9469_v60 = vpack.c.bf16 %v6116_v56, %v6115_v55  ;;  %v1163_v61 = vpop.f32.mrf.mxu0  ;;  %v2447_v62 = vpop.f32.mrf.mxu1  ;;  %v4241_v63 = vmax.f32 %v2761_v57, %v3925_v58  ;;  %v9054_v56 = vld [vmem:[%s11509_s0 + $0x848] sm:$0xff]  ;;  %v9152_v57 = vld [vmem:[%s11509_s0 + $0xb58] sm:$0xff] }
 0x447   :  { %v2762_v1 = vmax.f32 %v1163_v61, %v2447_v62 }
 0x448   :  { %9727 = vst [vmem:[%s11511_s3 + $0x1c8] sm:$0xff] %v9469_v60   ;;  %v5721_v0 = vmax.f32 %v4241_v63, %v5405_v59 }
 0x44a   :  { %v5921_v11 = vadd.f32 %v10908_v26, %v5721_v0 }
 0x44c   :  { %v6117_v14 = vmax.f32 %v5921_v11, 0.0  ;;  %v8957_v11 = vld [vmem:[%s11509_s0 + $0x540] sm:$0xff] }
 0x44d   :  { %v3927_v2 = vpop.f32.mrf.mxu2  ;;  %v5407_v3 = vpop.f32.mrf.mxu3 }
 0x44e   :  { %v4242_v6 = vmax.f32 %v2762_v1, %v3927_v2  ;;  %v1166_v7 = vpop.f32.mrf.mxu0  ;;  %v2450_v8 = vpop.f32.mrf.mxu1 }
 0x44f   :  { %v2763_v16 = vmax.f32 %v1166_v7, %v2450_v8 }
 0x450   :  { %v5722_v12 = vmax.f32 %v4242_v6, %v5407_v3 }
 0x451   :  { %1205 = vmatmul.bf16.gmra.mxu0 %v8856_v4  ;;  %2489 = vmatmul.bf16.gmra.mxu1 %v8954_v5 }
 0x452   :  { %v5922_v13 = vadd.f32 %v10908_v26, %v5722_v12  ;;  %3969 = vmatmul.bf16.gmra.mxu2 %v9052_v9  ;;  %5449 = vmatmul.bf16.gmra.mxu3 %v9150_v10  ;;  %v8859_v10 = vld [vmem:[%s11509_s0 + $0x230] sm:$0xff] }
 0x454   :  { %v6118_v15 = vmax.f32 %v5922_v13, 0.0 }
 0x455   :  { %v3930_v17 = vpop.f32.mrf.mxu2  ;;  %v5410_v18 = vpop.f32.mrf.mxu3 }
 0x456   :  { %v9474_v19 = vpack.c.bf16 %v6118_v15, %v6117_v14  ;;  %v1168_v20 = vpop.f32.mrf.mxu0  ;;  %v2452_v30 = vpop.f32.mrf.mxu1  ;;  %v4243_v21 = vmax.f32 %v2763_v16, %v3930_v17  ;;  %v9055_v15 = vld [vmem:[%s11509_s0 + $0x850] sm:$0xff]  ;;  %v9153_v16 = vld [vmem:[%s11509_s0 + $0xb60] sm:$0xff] }
 0x457   :  { %v2764_v23 = vmax.f32 %v1168_v20, %v2452_v30 }
 0x458   :  { %9728 = vst [vmem:[%s11511_s3 + $0x1d0] sm:$0xff] %v9474_v19   ;;  %v5723_v22 = vmax.f32 %v4243_v21, %v5410_v18 }
 0x45a   :  { %v5923_v33 = vadd.f32 %v10908_v26, %v5723_v22 }
 0x45c   :  { %v6119_v37 = vmax.f32 %v5923_v33, 0.0  ;;  %v8958_v33 = vld [vmem:[%s11509_s0 + $0x548] sm:$0xff] }
 0x45d   :  { %v3932_v24 = vpop.f32.mrf.mxu2  ;;  %v5412_v35 = vpop.f32.mrf.mxu3 }
 0x45e   :  { %v4244_v28 = vmax.f32 %v2764_v23, %v3932_v24  ;;  %v1171_v53 = vpop.f32.mrf.mxu0  ;;  %v2455_v29 = vpop.f32.mrf.mxu1 }
 0x45f   :  { %v2765_v39 = vmax.f32 %v1171_v53, %v2455_v29 }
 0x460   :  { %v5724_v34 = vmax.f32 %v4244_v28, %v5412_v35 }
 0x461   :  { %1210 = vmatmul.bf16.gmra.mxu0 %v8857_v25  ;;  %2494 = vmatmul.bf16.gmra.mxu1 %v8955_v27 }
 0x462   :  { %v5924_v36 = vadd.f32 %v10908_v26, %v5724_v34  ;;  %3974 = vmatmul.bf16.gmra.mxu2 %v9053_v31  ;;  %5454 = vmatmul.bf16.gmra.mxu3 %v9151_v32  ;;  %v8860_v32 = vld [vmem:[%s11509_s0 + $0x238] sm:$0xff] }
 0x464   :  { %v6120_v38 = vmax.f32 %v5924_v36, 0.0 }
 0x465   :  { %v3935_v40 = vpop.f32.mrf.mxu2  ;;  %v5415_v41 = vpop.f32.mrf.mxu3 }
 0x466   :  { %v9479_v42 = vpack.c.bf16 %v6120_v38, %v6119_v37  ;;  %v1173_v43 = vpop.f32.mrf.mxu0  ;;  %v2457_v44 = vpop.f32.mrf.mxu1  ;;  %v4245_v45 = vmax.f32 %v2765_v39, %v3935_v40  ;;  %v9056_v38 = vld [vmem:[%s11509_s0 + $0x858] sm:$0xff]  ;;  %v9154_v39 = vld [vmem:[%s11509_s0 + $0xb68] sm:$0xff] }
 0x467   :  { %v2766_v47 = vmax.f32 %v1173_v43, %v2457_v44 }
 0x468   :  { %9729 = vst [vmem:[%s11511_s3 + $0x1d8] sm:$0xff] %v9479_v42   ;;  %v5725_v46 = vmax.f32 %v4245_v45, %v5415_v41 }
 0x46a   :  { %v5925_v58 = vadd.f32 %v10908_v26, %v5725_v46 }
 0x46c   :  { %v6121_v61 = vmax.f32 %v5925_v58, 0.0  ;;  %v8959_v58 = vld [vmem:[%s11509_s0 + $0x550] sm:$0xff] }
 0x46d   :  { %v3937_v48 = vpop.f32.mrf.mxu2  ;;  %v5417_v49 = vpop.f32.mrf.mxu3 }
 0x46e   :  { %v4246_v52 = vmax.f32 %v2766_v47, %v3937_v48  ;;  %v1176_v54 = vpop.f32.mrf.mxu0  ;;  %v2460_v55 = vpop.f32.mrf.mxu1 }
 0x46f   :  { %v2767_v63 = vmax.f32 %v1176_v54, %v2460_v55 }
 0x470   :  { %v5726_v59 = vmax.f32 %v4246_v52, %v5417_v49 }
 0x471   :  { %1215 = vmatmul.bf16.gmra.mxu0 %v8858_v50  ;;  %2499 = vmatmul.bf16.gmra.mxu1 %v8956_v51 }
 0x472   :  { %v5926_v60 = vadd.f32 %v10908_v26, %v5726_v59  ;;  %3979 = vmatmul.bf16.gmra.mxu2 %v9054_v56  ;;  %5459 = vmatmul.bf16.gmra.mxu3 %v9152_v57  ;;  %v8861_v57 = vld [vmem:[%s11509_s0 + $0x240] sm:$0xff] }
 0x474   :  { %v6122_v62 = vmax.f32 %v5926_v60, 0.0 }
 0x475   :  { %v3940_v0 = vpop.f32.mrf.mxu2  ;;  %v5420_v1 = vpop.f32.mrf.mxu3 }
 0x476   :  { %v9484_v2 = vpack.c.bf16 %v6122_v62, %v6121_v61  ;;  %v1178_v3 = vpop.f32.mrf.mxu0  ;;  %v2462_v4 = vpop.f32.mrf.mxu1  ;;  %v4247_v5 = vmax.f32 %v2767_v63, %v3940_v0  ;;  %v9057_v62 = vld [vmem:[%s11509_s0 + $0x860] sm:$0xff]  ;;  %v9155_v63 = vld [vmem:[%s11509_s0 + $0xb70] sm:$0xff] }
 0x477   :  { %v2768_v7 = vmax.f32 %v1178_v3, %v2462_v4 }
 0x478   :  { %9730 = vst [vmem:[%s11511_s3 + $0x1e0] sm:$0xff] %v9484_v2   ;;  %v5727_v6 = vmax.f32 %v4247_v5, %v5420_v1 }
 0x47a   :  { %v5927_v17 = vadd.f32 %v10908_v26, %v5727_v6 }
 0x47c   :  { %v6123_v20 = vmax.f32 %v5927_v17, 0.0  ;;  %v8960_v17 = vld [vmem:[%s11509_s0 + $0x558] sm:$0xff] }
 0x47d   :  { %v3942_v8 = vpop.f32.mrf.mxu2  ;;  %v5422_v9 = vpop.f32.mrf.mxu3 }
 0x47e   :  { %v4248_v12 = vmax.f32 %v2768_v7, %v3942_v8  ;;  %v1181_v13 = vpop.f32.mrf.mxu0  ;;  %v2465_v14 = vpop.f32.mrf.mxu1 }
 0x47f   :  { %v2769_v21 = vmax.f32 %v1181_v13, %v2465_v14 }
 0x480   :  { %v5728_v18 = vmax.f32 %v4248_v12, %v5422_v9 }
 0x481   :  { %1220 = vmatmul.bf16.gmra.mxu0 %v8859_v10  ;;  %2504 = vmatmul.bf16.gmra.mxu1 %v8957_v11 }
 0x482   :  { %v5928_v19 = vadd.f32 %v10908_v26, %v5728_v18  ;;  %3984 = vmatmul.bf16.gmra.mxu2 %v9055_v15  ;;  %5464 = vmatmul.bf16.gmra.mxu3 %v9153_v16  ;;  %v8862_v16 = vld [vmem:[%s11509_s0 + $0x248] sm:$0xff] }
 0x484   :  { %v6124_v30 = vmax.f32 %v5928_v19, 0.0 }
 0x485   :  { %v3945_v22 = vpop.f32.mrf.mxu2  ;;  %v5425_v23 = vpop.f32.mrf.mxu3 }
 0x486   :  { %v9489_v24 = vpack.c.bf16 %v6124_v30, %v6123_v20  ;;  %v1183_v35 = vpop.f32.mrf.mxu0  ;;  %v2467_v25 = vpop.f32.mrf.mxu1  ;;  %v4249_v27 = vmax.f32 %v2769_v21, %v3945_v22  ;;  %v9058_v30 = vld [vmem:[%s11509_s0 + $0x868] sm:$0xff]  ;;  %v9156_v21 = vld [vmem:[%s11509_s0 + $0xb78] sm:$0xff] }
 0x487   :  { %v2770_v53 = vmax.f32 %v1183_v35, %v2467_v25 }
 0x488   :  { %9731 = vst [vmem:[%s11511_s3 + $0x1e8] sm:$0xff] %v9489_v24   ;;  %v5729_v28 = vmax.f32 %v4249_v27, %v5425_v23 }
 0x48a   :  { %v5929_v40 = vadd.f32 %v10908_v26, %v5729_v28 }
 0x48c   :  { %v6125_v43 = vmax.f32 %v5929_v40, 0.0  ;;  %v8961_v40 = vld [vmem:[%s11509_s0 + $0x560] sm:$0xff] }
 0x48d   :  { %v3947_v29 = vpop.f32.mrf.mxu2  ;;  %v5427_v31 = vpop.f32.mrf.mxu3 }
 0x48e   :  { %v4250_v34 = vmax.f32 %v2770_v53, %v3947_v29  ;;  %v1186_v36 = vpop.f32.mrf.mxu0  ;;  %v2470_v37 = vpop.f32.mrf.mxu1 }
 0x48f   :  { %v2771_v45 = vmax.f32 %v1186_v36, %v2470_v37 }
 0x490   :  { %v5730_v41 = vmax.f32 %v4250_v34, %v5427_v31 }
 0x491   :  { %1225 = vmatmul.bf16.gmra.mxu0 %v8860_v32  ;;  %2509 = vmatmul.bf16.gmra.mxu1 %v8958_v33 }
 0x492   :  { %v5930_v42 = vadd.f32 %v10908_v26, %v5730_v41  ;;  %3989 = vmatmul.bf16.gmra.mxu2 %v9056_v38  ;;  %5469 = vmatmul.bf16.gmra.mxu3 %v9154_v39  ;;  %v8863_v39 = vld [vmem:[%s11509_s0 + $0x250] sm:$0xff] }
 0x494   :  { %v6126_v44 = vmax.f32 %v5930_v42, 0.0 }
 0x495   :  { %v3950_v46 = vpop.f32.mrf.mxu2  ;;  %v5430_v47 = vpop.f32.mrf.mxu3 }
 0x496   :  { %v9494_v48 = vpack.c.bf16 %v6126_v44, %v6125_v43  ;;  %v1188_v49 = vpop.f32.mrf.mxu0  ;;  %v2472_v50 = vpop.f32.mrf.mxu1  ;;  %v4251_v51 = vmax.f32 %v2771_v45, %v3950_v46  ;;  %v9059_v44 = vld [vmem:[%s11509_s0 + $0x870] sm:$0xff]  ;;  %v9157_v45 = vld [vmem:[%s11509_s0 + $0xb80] sm:$0xff] }
 0x497   :  { %v2772_v54 = vmax.f32 %v1188_v49, %v2472_v50 }
 0x498   :  { %9732 = vst [vmem:[%s11511_s3 + $0x1f0] sm:$0xff] %v9494_v48   ;;  %v5731_v52 = vmax.f32 %v4251_v51, %v5430_v47 }
 0x49a   :  { %v5931_v0 = vadd.f32 %v10908_v26, %v5731_v52 }
 0x49c   :  { %v6127_v3 = vmax.f32 %v5931_v0, 0.0  ;;  %v8962_v0 = vld [vmem:[%s11509_s0 + $0x568] sm:$0xff] }
 0x49d   :  { %v3952_v55 = vpop.f32.mrf.mxu2  ;;  %v5432_v56 = vpop.f32.mrf.mxu3 }
 0x49e   :  { %v4252_v59 = vmax.f32 %v2772_v54, %v3952_v55  ;;  %v1191_v60 = vpop.f32.mrf.mxu0  ;;  %v2475_v61 = vpop.f32.mrf.mxu1 }
 0x49f   :  { %v2773_v5 = vmax.f32 %v1191_v60, %v2475_v61 }
 0x4a0   :  { %v5732_v1 = vmax.f32 %v4252_v59, %v5432_v56 }
 0x4a1   :  { %1230 = vmatmul.bf16.gmra.mxu0 %v8861_v57  ;;  %2514 = vmatmul.bf16.gmra.mxu1 %v8959_v58 }
 0x4a2   :  { %v5932_v2 = vadd.f32 %v10908_v26, %v5732_v1  ;;  %3994 = vmatmul.bf16.gmra.mxu2 %v9057_v62  ;;  %5474 = vmatmul.bf16.gmra.mxu3 %v9155_v63  ;;  %v8864_v63 = vld [vmem:[%s11509_s0 + $0x258] sm:$0xff] }
 0x4a4   :  { %v6128_v4 = vmax.f32 %v5932_v2, 0.0 }
 0x4a5   :  { %v3955_v6 = vpop.f32.mrf.mxu2  ;;  %v5435_v7 = vpop.f32.mrf.mxu3 }
 0x4a6   :  { %v9499_v8 = vpack.c.bf16 %v6128_v4, %v6127_v3  ;;  %v1193_v9 = vpop.f32.mrf.mxu0  ;;  %v2477_v10 = vpop.f32.mrf.mxu1  ;;  %v4253_v11 = vmax.f32 %v2773_v5, %v3955_v6  ;;  %v9060_v4 = vld [vmem:[%s11509_s0 + $0x878] sm:$0xff]  ;;  %v9158_v5 = vld [vmem:[%s11509_s0 + $0xb88] sm:$0xff] }
 0x4a7   :  { %v2774_v13 = vmax.f32 %v1193_v9, %v2477_v10 }
 0x4a8   :  { %9733 = vst [vmem:[%s11511_s3 + $0x1f8] sm:$0xff] %v9499_v8   ;;  %v5733_v12 = vmax.f32 %v4253_v11, %v5435_v7 }
 0x4aa   :  { %v5933_v22 = vadd.f32 %v10908_v26, %v5733_v12 }
 0x4ac   :  { %v6129_v35 = vmax.f32 %v5933_v22, 0.0  ;;  %v8963_v22 = vld [vmem:[%s11509_s0 + $0x570] sm:$0xff] }
 0x4ad   :  { %v3957_v14 = vpop.f32.mrf.mxu2  ;;  %v5437_v15 = vpop.f32.mrf.mxu3 }
 0x4ae   :  { %v4254_v18 = vmax.f32 %v2774_v13, %v3957_v14  ;;  %v1196_v19 = vpop.f32.mrf.mxu0  ;;  %v2480_v20 = vpop.f32.mrf.mxu1 }
 0x4af   :  { %v2775_v27 = vmax.f32 %v1196_v19, %v2480_v20 }
 0x4b0   :  { %v5734_v23 = vmax.f32 %v4254_v18, %v5437_v15 }
 0x4b1   :  { %1235 = vmatmul.bf16.gmra.mxu0 %v8862_v16  ;;  %2519 = vmatmul.bf16.gmra.mxu1 %v8960_v17 }
 0x4b2   :  { %v5934_v24 = vadd.f32 %v10908_v26, %v5734_v23  ;;  %3999 = vmatmul.bf16.gmra.mxu2 %v9058_v30  ;;  %5479 = vmatmul.bf16.gmra.mxu3 %v9156_v21  ;;  %v8865_v21 = vld [vmem:[%s11509_s0 + $0x260] sm:$0xff] }
 0x4b4   :  { %v6130_v25 = vmax.f32 %v5934_v24, 0.0 }
 0x4b5   :  { %v3960_v28 = vpop.f32.mrf.mxu2  ;;  %v5440_v53 = vpop.f32.mrf.mxu3 }
 0x4b6   :  { %v9504_v29 = vpack.c.bf16 %v6130_v25, %v6129_v35  ;;  %v1198_v31 = vpop.f32.mrf.mxu0  ;;  %v2482_v32 = vpop.f32.mrf.mxu1  ;;  %v4255_v33 = vmax.f32 %v2775_v27, %v3960_v28  ;;  %v9061_v25 = vld [vmem:[%s11509_s0 + $0x880] sm:$0xff]  ;;  %v9159_v27 = vld [vmem:[%s11509_s0 + $0xb90] sm:$0xff] }
 0x4b7   :  { %v2776_v36 = vmax.f32 %v1198_v31, %v2482_v32 }
 0x4b8   :  { %9734 = vst [vmem:[%s11511_s3 + $0x200] sm:$0xff] %v9504_v29   ;;  %v5735_v34 = vmax.f32 %v4255_v33, %v5440_v53 }
 0x4ba   :  { %v5935_v46 = vadd.f32 %v10908_v26, %v5735_v34 }
 0x4bc   :  { %v6131_v49 = vmax.f32 %v5935_v46, 0.0  ;;  %v8964_v46 = vld [vmem:[%s11509_s0 + $0x578] sm:$0xff] }
 0x4bd   :  { %v3962_v37 = vpop.f32.mrf.mxu2  ;;  %v5442_v38 = vpop.f32.mrf.mxu3 }
 0x4be   :  { %v4256_v41 = vmax.f32 %v2776_v36, %v3962_v37  ;;  %v1201_v42 = vpop.f32.mrf.mxu0  ;;  %v2485_v43 = vpop.f32.mrf.mxu1 }
 0x4bf   :  { %v2777_v51 = vmax.f32 %v1201_v42, %v2485_v43 }
 0x4c0   :  { %v5736_v47 = vmax.f32 %v4256_v41, %v5442_v38 }
 0x4c1   :  { %1240 = vmatmul.bf16.gmra.mxu0 %v8863_v39  ;;  %2524 = vmatmul.bf16.gmra.mxu1 %v8961_v40 }
 0x4c2   :  { %v5936_v48 = vadd.f32 %v10908_v26, %v5736_v47  ;;  %4004 = vmatmul.bf16.gmra.mxu2 %v9059_v44  ;;  %5484 = vmatmul.bf16.gmra.mxu3 %v9157_v45  ;;  %v8866_v45 = vld [vmem:[%s11509_s0 + $0x268] sm:$0xff] }
 0x4c4   :  { %v6132_v50 = vmax.f32 %v5936_v48, 0.0 }
 0x4c5   :  { %v3965_v52 = vpop.f32.mrf.mxu2  ;;  %v5445_v54 = vpop.f32.mrf.mxu3 }
 0x4c6   :  { %v9509_v55 = vpack.c.bf16 %v6132_v50, %v6131_v49  ;;  %v1203_v56 = vpop.f32.mrf.mxu0  ;;  %v2487_v57 = vpop.f32.mrf.mxu1  ;;  %v4257_v58 = vmax.f32 %v2777_v51, %v3965_v52  ;;  %v9062_v50 = vld [vmem:[%s11509_s0 + $0x888] sm:$0xff]  ;;  %v9160_v51 = vld [vmem:[%s11509_s0 + $0xb98] sm:$0xff] }
 0x4c7   :  { %v2778_v60 = vmax.f32 %v1203_v56, %v2487_v57 }
 0x4c8   :  { %9735 = vst [vmem:[%s11511_s3 + $0x208] sm:$0xff] %v9509_v55   ;;  %v5737_v59 = vmax.f32 %v4257_v58, %v5445_v54 }
 0x4ca   :  { %v5937_v6 = vadd.f32 %v10908_v26, %v5737_v59 }
 0x4cc   :  { %v6133_v9 = vmax.f32 %v5937_v6, 0.0  ;;  %v8965_v6 = vld [vmem:[%s11509_s0 + $0x580] sm:$0xff] }
 0x4cd   :  { %v3967_v61 = vpop.f32.mrf.mxu2  ;;  %v5447_v62 = vpop.f32.mrf.mxu3 }
 0x4ce   :  { %v4258_v1 = vmax.f32 %v2778_v60, %v3967_v61  ;;  %v1206_v2 = vpop.f32.mrf.mxu0  ;;  %v2490_v3 = vpop.f32.mrf.mxu1 }
 0x4cf   :  { %v2779_v11 = vmax.f32 %v1206_v2, %v2490_v3 }
 0x4d0   :  { %v5738_v7 = vmax.f32 %v4258_v1, %v5447_v62 }
 0x4d1   :  { %1245 = vmatmul.bf16.gmra.mxu0 %v8864_v63  ;;  %2529 = vmatmul.bf16.gmra.mxu1 %v8962_v0 }
 0x4d2   :  { %v5938_v8 = vadd.f32 %v10908_v26, %v5738_v7  ;;  %4009 = vmatmul.bf16.gmra.mxu2 %v9060_v4  ;;  %5489 = vmatmul.bf16.gmra.mxu3 %v9158_v5  ;;  %v8867_v5 = vld [vmem:[%s11509_s0 + $0x270] sm:$0xff] }
 0x4d4   :  { %v6134_v10 = vmax.f32 %v5938_v8, 0.0 }
 0x4d5   :  { %v3970_v12 = vpop.f32.mrf.mxu2  ;;  %v5450_v13 = vpop.f32.mrf.mxu3 }
 0x4d6   :  { %v9514_v14 = vpack.c.bf16 %v6134_v10, %v6133_v9  ;;  %v1208_v15 = vpop.f32.mrf.mxu0  ;;  %v2492_v16 = vpop.f32.mrf.mxu1  ;;  %v4259_v17 = vmax.f32 %v2779_v11, %v3970_v12  ;;  %v9063_v10 = vld [vmem:[%s11509_s0 + $0x890] sm:$0xff]  ;;  %v9161_v11 = vld [vmem:[%s11509_s0 + $0xba0] sm:$0xff] }
 0x4d7   :  { %v2780_v19 = vmax.f32 %v1208_v15, %v2492_v16 }
 0x4d8   :  { %9736 = vst [vmem:[%s11511_s3 + $0x210] sm:$0xff] %v9514_v14   ;;  %v5739_v18 = vmax.f32 %v4259_v17, %v5450_v13 }
 0x4da   :  { %v5939_v28 = vadd.f32 %v10908_v26, %v5739_v18 }
 0x4dc   :  { %v6135_v31 = vmax.f32 %v5939_v28, 0.0  ;;  %v8966_v28 = vld [vmem:[%s11509_s0 + $0x588] sm:$0xff] }
 0x4dd   :  { %v3972_v20 = vpop.f32.mrf.mxu2  ;;  %v5452_v30 = vpop.f32.mrf.mxu3 }
 0x4de   :  { %v4260_v23 = vmax.f32 %v2780_v19, %v3972_v20  ;;  %v1211_v24 = vpop.f32.mrf.mxu0  ;;  %v2495_v35 = vpop.f32.mrf.mxu1 }
 0x4df   :  { %v2781_v33 = vmax.f32 %v1211_v24, %v2495_v35 }
 0x4e0   :  { %v5740_v53 = vmax.f32 %v4260_v23, %v5452_v30 }
 0x4e1   :  { %1250 = vmatmul.bf16.gmra.mxu0 %v8865_v21  ;;  %2534 = vmatmul.bf16.gmra.mxu1 %v8963_v22 }
 0x4e2   :  { %v5940_v29 = vadd.f32 %v10908_v26, %v5740_v53  ;;  %4014 = vmatmul.bf16.gmra.mxu2 %v9061_v25  ;;  %5494 = vmatmul.bf16.gmra.mxu3 %v9159_v27  ;;  %v8868_v27 = vld [vmem:[%s11509_s0 + $0x278] sm:$0xff] }
 0x4e4   :  { %v6136_v32 = vmax.f32 %v5940_v29, 0.0 }
 0x4e5   :  { %v3975_v34 = vpop.f32.mrf.mxu2  ;;  %v5455_v36 = vpop.f32.mrf.mxu3 }
 0x4e6   :  { %v9519_v37 = vpack.c.bf16 %v6136_v32, %v6135_v31  ;;  %v1213_v38 = vpop.f32.mrf.mxu0  ;;  %v2497_v39 = vpop.f32.mrf.mxu1  ;;  %v4261_v40 = vmax.f32 %v2781_v33, %v3975_v34  ;;  %v9064_v32 = vld [vmem:[%s11509_s0 + $0x898] sm:$0xff]  ;;  %v9162_v33 = vld [vmem:[%s11509_s0 + $0xba8] sm:$0xff] }
 0x4e7   :  { %v2782_v42 = vmax.f32 %v1213_v38, %v2497_v39 }
 0x4e8   :  { %9737 = vst [vmem:[%s11511_s3 + $0x218] sm:$0xff] %v9519_v37   ;;  %v5741_v41 = vmax.f32 %v4261_v40, %v5455_v36 }
 0x4ea   :  { %v5941_v52 = vadd.f32 %v10908_v26, %v5741_v41 }
 0x4ec   :  { %v6137_v56 = vmax.f32 %v5941_v52, 0.0  ;;  %v8967_v52 = vld [vmem:[%s11509_s0 + $0x590] sm:$0xff] }
 0x4ed   :  { %v3977_v43 = vpop.f32.mrf.mxu2  ;;  %v5457_v44 = vpop.f32.mrf.mxu3 }
 0x4ee   :  { %v4262_v47 = vmax.f32 %v2782_v42, %v3977_v43  ;;  %v1216_v48 = vpop.f32.mrf.mxu0  ;;  %v2500_v49 = vpop.f32.mrf.mxu1 }
 0x4ef   :  { %v2783_v58 = vmax.f32 %v1216_v48, %v2500_v49 }
 0x4f0   :  { %v5742_v54 = vmax.f32 %v4262_v47, %v5457_v44 }
 0x4f1   :  { %1255 = vmatmul.bf16.gmra.mxu0 %v8866_v45  ;;  %2539 = vmatmul.bf16.gmra.mxu1 %v8964_v46 }
 0x4f2   :  { %v5942_v55 = vadd.f32 %v10908_v26, %v5742_v54  ;;  %4019 = vmatmul.bf16.gmra.mxu2 %v9062_v50  ;;  %5499 = vmatmul.bf16.gmra.mxu3 %v9160_v51  ;;  %v8869_v51 = vld [vmem:[%s11509_s0 + $0x280] sm:$0xff] }
 0x4f4   :  { %v6138_v57 = vmax.f32 %v5942_v55, 0.0 }
 0x4f5   :  { %v3980_v59 = vpop.f32.mrf.mxu2  ;;  %v5460_v60 = vpop.f32.mrf.mxu3 }
 0x4f6   :  { %v9524_v61 = vpack.c.bf16 %v6138_v57, %v6137_v56  ;;  %v1218_v62 = vpop.f32.mrf.mxu0  ;;  %v2502_v63 = vpop.f32.mrf.mxu1  ;;  %v4263_v0 = vmax.f32 %v2783_v58, %v3980_v59  ;;  %v9065_v57 = vld [vmem:[%s11509_s0 + $0x8a0] sm:$0xff]  ;;  %v9163_v58 = vld [vmem:[%s11509_s0 + $0xbb0] sm:$0xff] }
 0x4f7   :  { %v2784_v2 = vmax.f32 %v1218_v62, %v2502_v63 }
 0x4f8   :  { %9738 = vst [vmem:[%s11511_s3 + $0x220] sm:$0xff] %v9524_v61   ;;  %v5743_v1 = vmax.f32 %v4263_v0, %v5460_v60 }
 0x4fa   :  { %v5943_v12 = vadd.f32 %v10908_v26, %v5743_v1 }
 0x4fc   :  { %v6139_v15 = vmax.f32 %v5943_v12, 0.0  ;;  %v8968_v12 = vld [vmem:[%s11509_s0 + $0x598] sm:$0xff] }
 0x4fd   :  { %v3982_v3 = vpop.f32.mrf.mxu2  ;;  %v5462_v4 = vpop.f32.mrf.mxu3 }
 0x4fe   :  { %v4264_v7 = vmax.f32 %v2784_v2, %v3982_v3  ;;  %v1221_v8 = vpop.f32.mrf.mxu0  ;;  %v2505_v9 = vpop.f32.mrf.mxu1 }
 0x4ff   :  { %v2785_v17 = vmax.f32 %v1221_v8, %v2505_v9 }
 0x500   :  { %v5744_v13 = vmax.f32 %v4264_v7, %v5462_v4 }
 0x501   :  { %1260 = vmatmul.bf16.gmra.mxu0 %v8867_v5  ;;  %2544 = vmatmul.bf16.gmra.mxu1 %v8965_v6 }
 0x502   :  { %v5944_v14 = vadd.f32 %v10908_v26, %v5744_v13  ;;  %4024 = vmatmul.bf16.gmra.mxu2 %v9063_v10  ;;  %5504 = vmatmul.bf16.gmra.mxu3 %v9161_v11  ;;  %v8870_v11 = vld [vmem:[%s11509_s0 + $0x288] sm:$0xff] }
 0x504   :  { %v6140_v16 = vmax.f32 %v5944_v14, 0.0 }
 0x505   :  { %v3985_v18 = vpop.f32.mrf.mxu2  ;;  %v5465_v19 = vpop.f32.mrf.mxu3 }
 0x506   :  { %v9529_v20 = vpack.c.bf16 %v6140_v16, %v6139_v15  ;;  %v1223_v30 = vpop.f32.mrf.mxu0  ;;  %v2507_v21 = vpop.f32.mrf.mxu1  ;;  %v4265_v22 = vmax.f32 %v2785_v17, %v3985_v18  ;;  %v9066_v16 = vld [vmem:[%s11509_s0 + $0x8a8] sm:$0xff]  ;;  %v9164_v17 = vld [vmem:[%s11509_s0 + $0xbb8] sm:$0xff] }
 0x507   :  { %v2786_v24 = vmax.f32 %v1223_v30, %v2507_v21 }
 0x508   :  { %9739 = vst [vmem:[%s11511_s3 + $0x228] sm:$0xff] %v9529_v20   ;;  %v5745_v23 = vmax.f32 %v4265_v22, %v5465_v19 }
 0x50a   :  { %v5945_v34 = vadd.f32 %v10908_v26, %v5745_v23 }
 0x50c   :  { %v6141_v38 = vmax.f32 %v5945_v34, 0.0  ;;  %v8969_v34 = vld [vmem:[%s11509_s0 + $0x5a0] sm:$0xff] }
 0x50d   :  { %v3987_v35 = vpop.f32.mrf.mxu2  ;;  %v5467_v25 = vpop.f32.mrf.mxu3 }
 0x50e   :  { %v4266_v53 = vmax.f32 %v2786_v24, %v3987_v35  ;;  %v1226_v29 = vpop.f32.mrf.mxu0  ;;  %v2510_v31 = vpop.f32.mrf.mxu1 }
 0x50f   :  { %v2787_v40 = vmax.f32 %v1226_v29, %v2510_v31 }
 0x510   :  { %v5746_v36 = vmax.f32 %v4266_v53, %v5467_v25 }
 0x511   :  { %1265 = vmatmul.bf16.gmra.mxu0 %v8868_v27  ;;  %2549 = vmatmul.bf16.gmra.mxu1 %v8966_v28 }
 0x512   :  { %v5946_v37 = vadd.f32 %v10908_v26, %v5746_v36  ;;  %4029 = vmatmul.bf16.gmra.mxu2 %v9064_v32  ;;  %5509 = vmatmul.bf16.gmra.mxu3 %v9162_v33  ;;  %v8871_v33 = vld [vmem:[%s11509_s0 + $0x290] sm:$0xff] }
 0x514   :  { %v6142_v39 = vmax.f32 %v5946_v37, 0.0 }
 0x515   :  { %v3990_v41 = vpop.f32.mrf.mxu2  ;;  %v5470_v42 = vpop.f32.mrf.mxu3 }
 0x516   :  { %v9534_v43 = vpack.c.bf16 %v6142_v39, %v6141_v38  ;;  %v1228_v44 = vpop.f32.mrf.mxu0  ;;  %v2512_v45 = vpop.f32.mrf.mxu1  ;;  %v4267_v46 = vmax.f32 %v2787_v40, %v3990_v41  ;;  %v9067_v39 = vld [vmem:[%s11509_s0 + $0x8b0] sm:$0xff]  ;;  %v9165_v40 = vld [vmem:[%s11509_s0 + $0xbc0] sm:$0xff] }
 0x517   :  { %v2788_v48 = vmax.f32 %v1228_v44, %v2512_v45 }
 0x518   :  { %9740 = vst [vmem:[%s11511_s3 + $0x230] sm:$0xff] %v9534_v43   ;;  %v5747_v47 = vmax.f32 %v4267_v46, %v5470_v42 }
 0x51a   :  { %v5947_v59 = vadd.f32 %v10908_v26, %v5747_v47 }
 0x51c   :  { %v6143_v62 = vmax.f32 %v5947_v59, 0.0  ;;  %v8970_v59 = vld [vmem:[%s11509_s0 + $0x5a8] sm:$0xff] }
 0x51d   :  { %v3992_v49 = vpop.f32.mrf.mxu2  ;;  %v5472_v50 = vpop.f32.mrf.mxu3 }
 0x51e   :  { %v4268_v54 = vmax.f32 %v2788_v48, %v3992_v49  ;;  %v1231_v55 = vpop.f32.mrf.mxu0  ;;  %v2515_v56 = vpop.f32.mrf.mxu1 }
 0x51f   :  { %v2789_v0 = vmax.f32 %v1231_v55, %v2515_v56 }
 0x520   :  { %v5748_v60 = vmax.f32 %v4268_v54, %v5472_v50 }
 0x521   :  { %1270 = vmatmul.bf16.gmra.mxu0 %v8869_v51  ;;  %2554 = vmatmul.bf16.gmra.mxu1 %v8967_v52 }
 0x522   :  { %v5948_v61 = vadd.f32 %v10908_v26, %v5748_v60  ;;  %4034 = vmatmul.bf16.gmra.mxu2 %v9065_v57  ;;  %5514 = vmatmul.bf16.gmra.mxu3 %v9163_v58  ;;  %v8872_v58 = vld [vmem:[%s11509_s0 + $0x298] sm:$0xff] }
 0x524   :  { %v6144_v63 = vmax.f32 %v5948_v61, 0.0 }
 0x525   :  { %v3995_v1 = vpop.f32.mrf.mxu2  ;;  %v5475_v2 = vpop.f32.mrf.mxu3 }
 0x526   :  { %v9539_v3 = vpack.c.bf16 %v6144_v63, %v6143_v62  ;;  %v1233_v4 = vpop.f32.mrf.mxu0  ;;  %v2517_v5 = vpop.f32.mrf.mxu1  ;;  %v4269_v6 = vmax.f32 %v2789_v0, %v3995_v1  ;;  %v9068_v63 = vld [vmem:[%s11509_s0 + $0x8b8] sm:$0xff]  ;;  %v9166_v0 = vld [vmem:[%s11509_s0 + $0xbc8] sm:$0xff] }
 0x527   :  { %v2790_v8 = vmax.f32 %v1233_v4, %v2517_v5 }
 0x528   :  { %9741 = vst [vmem:[%s11511_s3 + $0x238] sm:$0xff] %v9539_v3   ;;  %v5749_v7 = vmax.f32 %v4269_v6, %v5475_v2 }
 0x52a   :  { %v5949_v18 = vadd.f32 %v10908_v26, %v5749_v7 }
 0x52c   :  { %v6145_v30 = vmax.f32 %v5949_v18, 0.0 }
 0x52d   :  { %v3997_v9 = vpop.f32.mrf.mxu2  ;;  %v5477_v10 = vpop.f32.mrf.mxu3 }
 0x52e   :  { %v4270_v13 = vmax.f32 %v2790_v8, %v3997_v9  ;;  %v1236_v14 = vpop.f32.mrf.mxu0  ;;  %v2520_v15 = vpop.f32.mrf.mxu1 }
 0x52f   :  { %v2791_v22 = vmax.f32 %v1236_v14, %v2520_v15 }
 0x530   :  { %v5750_v19 = vmax.f32 %v4270_v13, %v5477_v10 }
 0x531   :  { %1275 = vmatmul.bf16.gmra.mxu0 %v8870_v11  ;;  %2559 = vmatmul.bf16.gmra.mxu1 %v8968_v12 }
 0x532   :  { %v5950_v20 = vadd.f32 %v10908_v26, %v5750_v19  ;;  %4039 = vmatmul.bf16.gmra.mxu2 %v9066_v16  ;;  %5519 = vmatmul.bf16.gmra.mxu3 %v9164_v17  ;;  %v8971_v17 = vld [vmem:[%s11509_s0 + $0x5b0] sm:$0xff] }
 0x534   :  { %v6146_v21 = vmax.f32 %v5950_v20, 0.0 }
 0x535   :  { %v4000_v23 = vpop.f32.mrf.mxu2  ;;  %v5480_v24 = vpop.f32.mrf.mxu3 }
 0x536   :  { %v9544_v35 = vpack.c.bf16 %v6146_v21, %v6145_v30  ;;  %v1238_v25 = vpop.f32.mrf.mxu0  ;;  %v2522_v27 = vpop.f32.mrf.mxu1  ;;  %v4271_v28 = vmax.f32 %v2791_v22, %v4000_v23  ;;  %v9069_v30 = vld [vmem:[%s11509_s0 + $0x8c0] sm:$0xff]  ;;  %v9167_v21 = vld [vmem:[%s11509_s0 + $0xbd0] sm:$0xff] }
 0x537   :  { %v2792_v29 = vmax.f32 %v1238_v25, %v2522_v27  ;;  %v11236_v22 = vld [vmem:[%s11510_s2] ss:$0 sm:$0xff] }
 0x538   :  { %9742 = vst [vmem:[%s11511_s3 + $0x240] sm:$0xff] %v9544_v35   ;;  %v5751_v53 = vmax.f32 %v4271_v28, %v5480_v24 }
 0x53a   :  { %v5951_v41 = vadd.f32 %v10908_v26, %v5751_v53 }
 0x53c   :  { %v6147_v44 = vmax.f32 %v5951_v41, 0.0  ;;  %v8972_v41 = vld [vmem:[%s11509_s0 + $0x5b8] sm:$0xff] }
 0x53d   :  { %v4002_v31 = vpop.f32.mrf.mxu2  ;;  %v5482_v32 = vpop.f32.mrf.mxu3 }
 0x53e   :  { %v4272_v36 = vmax.f32 %v2792_v29, %v4002_v31  ;;  %v1241_v37 = vpop.f32.mrf.mxu0  ;;  %v2525_v38 = vpop.f32.mrf.mxu1 }
 0x53f   :  { %v2793_v46 = vmax.f32 %v1241_v37, %v2525_v38 }
 0x540   :  { %v5752_v42 = vmax.f32 %v4272_v36, %v5482_v32 }
 0x541   :  { %1280 = vmatmul.bf16.gmra.mxu0 %v8871_v33  ;;  %2564 = vmatmul.bf16.gmra.mxu1 %v8969_v34 }
 0x542   :  { %v5952_v43 = vadd.f32 %v10908_v26, %v5752_v42  ;;  %4044 = vmatmul.bf16.gmra.mxu2 %v9067_v39  ;;  %5524 = vmatmul.bf16.gmra.mxu3 %v9165_v40  ;;  %v8874_v40 = vld [vmem:[%s11509_s0 + $0x2a8] sm:$0xff] }
 0x544   :  { %v6148_v45 = vmax.f32 %v5952_v43, 0.0 }
 0x545   :  { %v4005_v47 = vpop.f32.mrf.mxu2  ;;  %v5485_v48 = vpop.f32.mrf.mxu3 }
 0x546   :  { %v9549_v49 = vpack.c.bf16 %v6148_v45, %v6147_v44  ;;  %v1243_v50 = vpop.f32.mrf.mxu0  ;;  %v2527_v51 = vpop.f32.mrf.mxu1  ;;  %v4273_v52 = vmax.f32 %v2793_v46, %v4005_v47  ;;  %v9070_v45 = vld [vmem:[%s11509_s0 + $0x8c8] sm:$0xff]  ;;  %v9168_v46 = vld [vmem:[%s11509_s0 + $0xbd8] sm:$0xff] }
 0x547   :  { %v2794_v55 = vmax.f32 %v1243_v50, %v2527_v51 }
 0x548   :  { %9743 = vst [vmem:[%s11511_s3 + $0x248] sm:$0xff] %v9549_v49   ;;  %v5753_v54 = vmax.f32 %v4273_v52, %v5485_v48 }
 0x54a   :  { %v5953_v1 = vadd.f32 %v10908_v26, %v5753_v54 }
 0x54c   :  { %v6149_v4 = vmax.f32 %v5953_v1, 0.0  ;;  %v8973_v1 = vld [vmem:[%s11509_s0 + $0x5c0] sm:$0xff] }
 0x54d   :  { %v4007_v56 = vpop.f32.mrf.mxu2  ;;  %v5487_v57 = vpop.f32.mrf.mxu3 }
 0x54e   :  { %v4274_v60 = vmax.f32 %v2794_v55, %v4007_v56  ;;  %v1246_v61 = vpop.f32.mrf.mxu0  ;;  %v2530_v62 = vpop.f32.mrf.mxu1 }
 0x54f   :  { %v2795_v6 = vmax.f32 %v1246_v61, %v2530_v62 }
 0x550   :  { %v5754_v2 = vmax.f32 %v4274_v60, %v5487_v57 }
 0x551   :  { %1285 = vmatmul.bf16.gmra.mxu0 %v8872_v58  ;;  %2569 = vmatmul.bf16.gmra.mxu1 %v8970_v59 }
 0x552   :  { %v5954_v3 = vadd.f32 %v10908_v26, %v5754_v2  ;;  %4049 = vmatmul.bf16.gmra.mxu2 %v9068_v63  ;;  %5529 = vmatmul.bf16.gmra.mxu3 %v9166_v0  ;;  %v8873_v26 = vld [vmem:[%s11509_s0 + $0x2a0] sm:$0xff]  ;;  %v8875_v0 = vld [vmem:[%s11509_s0 + $0x2b0] sm:$0xff] }
 0x554   :  { %v6150_v5 = vmax.f32 %v5954_v3, 0.0 }
 0x555   :  { %v4010_v7 = vpop.f32.mrf.mxu2  ;;  %v5490_v8 = vpop.f32.mrf.mxu3 }
 0x556   :  { %v9554_v9 = vpack.c.bf16 %v6150_v5, %v6149_v4  ;;  %v1248_v10 = vpop.f32.mrf.mxu0  ;;  %v2532_v11 = vpop.f32.mrf.mxu1  ;;  %v4275_v12 = vmax.f32 %v2795_v6, %v4010_v7  ;;  %v9071_v5 = vld [vmem:[%s11509_s0 + $0x8d0] sm:$0xff]  ;;  %v9169_v6 = vld [vmem:[%s11509_s0 + $0xbe0] sm:$0xff] }
 0x557   :  { %v2796_v14 = vmax.f32 %v1248_v10, %v2532_v11 }
 0x558   :  { %9744 = vst [vmem:[%s11511_s3 + $0x250] sm:$0xff] %v9554_v9   ;;  %v5755_v13 = vmax.f32 %v4275_v12, %v5490_v8 }
 0x55a   :  { %v5955_v23 = vadd.f32 %v11236_v22, %v5755_v13 }
 0x55c   :  { %v6151_v25 = vmax.f32 %v5955_v23, 0.0  ;;  %v8974_v23 = vld [vmem:[%s11509_s0 + $0x5c8] sm:$0xff] }
 0x55d   :  { %v4012_v15 = vpop.f32.mrf.mxu2  ;;  %v5492_v16 = vpop.f32.mrf.mxu3 }
 0x55e   :  { %v4276_v18 = vmax.f32 %v2796_v14, %v4012_v15  ;;  %v1251_v19 = vpop.f32.mrf.mxu0  ;;  %v2535_v20 = vpop.f32.mrf.mxu1 }
 0x55f   :  { %v2797_v28 = vmax.f32 %v1251_v19, %v2535_v20 }
 0x560   :  { %v5756_v24 = vmax.f32 %v4276_v18, %v5492_v16 }
 0x561   :  { %1290 = vmatmul.bf16.gmra.mxu0 %v8873_v26  ;;  %2574 = vmatmul.bf16.gmra.mxu1 %v8971_v17 }
 0x562   :  { %v5956_v35 = vadd.f32 %v11236_v22, %v5756_v24  ;;  %4054 = vmatmul.bf16.gmra.mxu2 %v9069_v30  ;;  %5534 = vmatmul.bf16.gmra.mxu3 %v9167_v21  ;;  %v8876_v21 = vld [vmem:[%s11509_s0 + $0x2b8] sm:$0xff] }
 0x564   :  { %v6152_v27 = vmax.f32 %v5956_v35, 0.0 }
 0x565   :  { %v4015_v53 = vpop.f32.mrf.mxu2  ;;  %v5495_v29 = vpop.f32.mrf.mxu3 }
 0x566   :  { %v9559_v31 = vpack.c.bf16 %v6152_v27, %v6151_v25  ;;  %v1253_v32 = vpop.f32.mrf.mxu0  ;;  %v2537_v33 = vpop.f32.mrf.mxu1  ;;  %v4277_v34 = vmax.f32 %v2797_v28, %v4015_v53  ;;  %v9072_v27 = vld [vmem:[%s11509_s0 + $0x8d8] sm:$0xff]  ;;  %v9170_v28 = vld [vmem:[%s11509_s0 + $0xbe8] sm:$0xff] }
 0x567   :  { %v2798_v37 = vmax.f32 %v1253_v32, %v2537_v33 }
 0x568   :  { %9745 = vst [vmem:[%s11511_s3 + $0x258] sm:$0xff] %v9559_v31   ;;  %v5757_v36 = vmax.f32 %v4277_v34, %v5495_v29 }
 0x56a   :  { %v5957_v47 = vadd.f32 %v11236_v22, %v5757_v36 }
 0x56c   :  { %v6153_v50 = vmax.f32 %v5957_v47, 0.0  ;;  %v8975_v47 = vld [vmem:[%s11509_s0 + $0x5d0] sm:$0xff] }
 0x56d   :  { %v4017_v38 = vpop.f32.mrf.mxu2  ;;  %v5497_v39 = vpop.f32.mrf.mxu3 }
 0x56e   :  { %v4278_v42 = vmax.f32 %v2798_v37, %v4017_v38  ;;  %v1256_v43 = vpop.f32.mrf.mxu0  ;;  %v2540_v44 = vpop.f32.mrf.mxu1 }
 0x56f   :  { %v2799_v52 = vmax.f32 %v1256_v43, %v2540_v44 }
 0x570   :  { %v5758_v48 = vmax.f32 %v4278_v42, %v5497_v39 }
 0x571   :  { %1295 = vmatmul.bf16.gmra.mxu0 %v8874_v40  ;;  %2579 = vmatmul.bf16.gmra.mxu1 %v8972_v41 }
 0x572   :  { %v5958_v49 = vadd.f32 %v11236_v22, %v5758_v48  ;;  %4059 = vmatmul.bf16.gmra.mxu2 %v9070_v45  ;;  %5539 = vmatmul.bf16.gmra.mxu3 %v9168_v46  ;;  %v8877_v46 = vld [vmem:[%s11509_s0 + $0x2c0] sm:$0xff] }
 0x574   :  { %v6154_v51 = vmax.f32 %v5958_v49, 0.0 }
 0x575   :  { %v4020_v54 = vpop.f32.mrf.mxu2  ;;  %v5500_v55 = vpop.f32.mrf.mxu3 }
 0x576   :  { %v9564_v56 = vpack.c.bf16 %v6154_v51, %v6153_v50  ;;  %v1258_v57 = vpop.f32.mrf.mxu0  ;;  %v2542_v58 = vpop.f32.mrf.mxu1  ;;  %v4279_v59 = vmax.f32 %v2799_v52, %v4020_v54  ;;  %v9073_v51 = vld [vmem:[%s11509_s0 + $0x8e0] sm:$0xff]  ;;  %v9171_v52 = vld [vmem:[%s11509_s0 + $0xbf0] sm:$0xff] }
 0x577   :  { %v2800_v61 = vmax.f32 %v1258_v57, %v2542_v58 }
 0x578   :  { %9746 = vst [vmem:[%s11511_s3 + $0x260] sm:$0xff] %v9564_v56   ;;  %v5759_v60 = vmax.f32 %v4279_v59, %v5500_v55 }
 0x57a   :  { %v5959_v7 = vadd.f32 %v11236_v22, %v5759_v60 }
 0x57c   :  { %v6155_v10 = vmax.f32 %v5959_v7, 0.0  ;;  %v8976_v7 = vld [vmem:[%s11509_s0 + $0x5d8] sm:$0xff] }
 0x57d   :  { %v4022_v62 = vpop.f32.mrf.mxu2  ;;  %v5502_v63 = vpop.f32.mrf.mxu3 }
 0x57e   :  { %v4280_v2 = vmax.f32 %v2800_v61, %v4022_v62  ;;  %v1261_v3 = vpop.f32.mrf.mxu0  ;;  %v2545_v4 = vpop.f32.mrf.mxu1 }
 0x57f   :  { %v2801_v12 = vmax.f32 %v1261_v3, %v2545_v4 }
 0x580   :  { %v5760_v8 = vmax.f32 %v4280_v2, %v5502_v63 }
 0x581   :  { %1300 = vmatmul.bf16.gmra.mxu0 %v8875_v0  ;;  %2584 = vmatmul.bf16.gmra.mxu1 %v8973_v1 }
 0x582   :  { %v5960_v9 = vadd.f32 %v11236_v22, %v5760_v8  ;;  %4064 = vmatmul.bf16.gmra.mxu2 %v9071_v5  ;;  %5544 = vmatmul.bf16.gmra.mxu3 %v9169_v6  ;;  %v8878_v6 = vld [vmem:[%s11509_s0 + $0x2c8] sm:$0xff] }
 0x584   :  { %v6156_v11 = vmax.f32 %v5960_v9, 0.0 }
 0x585   :  { %v4025_v13 = vpop.f32.mrf.mxu2  ;;  %v5505_v14 = vpop.f32.mrf.mxu3 }
 0x586   :  { %v9569_v15 = vpack.c.bf16 %v6156_v11, %v6155_v10  ;;  %v1263_v16 = vpop.f32.mrf.mxu0  ;;  %v2547_v26 = vpop.f32.mrf.mxu1  ;;  %v4281_v17 = vmax.f32 %v2801_v12, %v4025_v13  ;;  %v9074_v11 = vld [vmem:[%s11509_s0 + $0x8e8] sm:$0xff]  ;;  %v9172_v12 = vld [vmem:[%s11509_s0 + $0xbf8] sm:$0xff] }
 0x587   :  { %v2802_v19 = vmax.f32 %v1263_v16, %v2547_v26 }
 0x588   :  { %9747 = vst [vmem:[%s11511_s3 + $0x268] sm:$0xff] %v9569_v15   ;;  %v5761_v18 = vmax.f32 %v4281_v17, %v5505_v14 }
 0x58a   :  { %v5961_v53 = vadd.f32 %v11236_v22, %v5761_v18 }
 0x58c   :  { %v6157_v32 = vmax.f32 %v5961_v53, 0.0  ;;  %v8977_v53 = vld [vmem:[%s11509_s0 + $0x5e0] sm:$0xff] }
 0x58d   :  { %v4027_v20 = vpop.f32.mrf.mxu2  ;;  %v5507_v30 = vpop.f32.mrf.mxu3 }
 0x58e   :  { %v4282_v24 = vmax.f32 %v2802_v19, %v4027_v20  ;;  %v1266_v35 = vpop.f32.mrf.mxu0  ;;  %v2550_v25 = vpop.f32.mrf.mxu1 }
 0x58f   :  { %v2803_v34 = vmax.f32 %v1266_v35, %v2550_v25 }
 0x590   :  { %v5762_v29 = vmax.f32 %v4282_v24, %v5507_v30 }
 0x591   :  { %1305 = vmatmul.bf16.gmra.mxu0 %v8876_v21  ;;  %2589 = vmatmul.bf16.gmra.mxu1 %v8974_v23 }
 0x592   :  { %v5962_v31 = vadd.f32 %v11236_v22, %v5762_v29  ;;  %4069 = vmatmul.bf16.gmra.mxu2 %v9072_v27  ;;  %5549 = vmatmul.bf16.gmra.mxu3 %v9170_v28  ;;  %v8879_v28 = vld [vmem:[%s11509_s0 + $0x2d0] sm:$0xff] }
 0x594   :  { %v6158_v33 = vmax.f32 %v5962_v31, 0.0 }
 0x595   :  { %v4030_v36 = vpop.f32.mrf.mxu2  ;;  %v5510_v37 = vpop.f32.mrf.mxu3 }
 0x596   :  { %v9574_v38 = vpack.c.bf16 %v6158_v33, %v6157_v32  ;;  %v1268_v39 = vpop.f32.mrf.mxu0  ;;  %v2552_v40 = vpop.f32.mrf.mxu1  ;;  %v4283_v41 = vmax.f32 %v2803_v34, %v4030_v36  ;;  %v9075_v33 = vld [vmem:[%s11509_s0 + $0x8f0] sm:$0xff]  ;;  %v9173_v34 = vld [vmem:[%s11509_s0 + $0xc00] sm:$0xff] }
 0x597   :  { %v2804_v43 = vmax.f32 %v1268_v39, %v2552_v40 }
 0x598   :  { %9748 = vst [vmem:[%s11511_s3 + $0x270] sm:$0xff] %v9574_v38   ;;  %v5763_v42 = vmax.f32 %v4283_v41, %v5510_v37 }
 0x59a   :  { %v5963_v54 = vadd.f32 %v11236_v22, %v5763_v42 }
 0x59c   :  { %v6159_v57 = vmax.f32 %v5963_v54, 0.0  ;;  %v8978_v54 = vld [vmem:[%s11509_s0 + $0x5e8] sm:$0xff] }
 0x59d   :  { %v4032_v44 = vpop.f32.mrf.mxu2  ;;  %v5512_v45 = vpop.f32.mrf.mxu3 }
 0x59e   :  { %v4284_v48 = vmax.f32 %v2804_v43, %v4032_v44  ;;  %v1271_v49 = vpop.f32.mrf.mxu0  ;;  %v2555_v50 = vpop.f32.mrf.mxu1 }
 0x59f   :  { %v2805_v59 = vmax.f32 %v1271_v49, %v2555_v50 }
 0x5a0   :  { %v5764_v55 = vmax.f32 %v4284_v48, %v5512_v45 }
 0x5a1   :  { %1310 = vmatmul.bf16.gmra.mxu0 %v8877_v46  ;;  %2594 = vmatmul.bf16.gmra.mxu1 %v8975_v47 }
 0x5a2   :  { %v5964_v56 = vadd.f32 %v11236_v22, %v5764_v55  ;;  %4074 = vmatmul.bf16.gmra.mxu2 %v9073_v51  ;;  %5554 = vmatmul.bf16.gmra.mxu3 %v9171_v52  ;;  %v8880_v52 = vld [vmem:[%s11509_s0 + $0x2d8] sm:$0xff] }
 0x5a4   :  { %v6160_v58 = vmax.f32 %v5964_v56, 0.0 }
 0x5a5   :  { %v4035_v60 = vpop.f32.mrf.mxu2  ;;  %v5515_v61 = vpop.f32.mrf.mxu3 }
 0x5a6   :  { %v9579_v62 = vpack.c.bf16 %v6160_v58, %v6159_v57  ;;  %v1273_v63 = vpop.f32.mrf.mxu0  ;;  %v2557_v0 = vpop.f32.mrf.mxu1  ;;  %v4285_v1 = vmax.f32 %v2805_v59, %v4035_v60  ;;  %v9076_v58 = vld [vmem:[%s11509_s0 + $0x8f8] sm:$0xff]  ;;  %v9174_v59 = vld [vmem:[%s11509_s0 + $0xc08] sm:$0xff] }
 0x5a7   :  { %v2806_v3 = vmax.f32 %v1273_v63, %v2557_v0 }
 0x5a8   :  { %9749 = vst [vmem:[%s11511_s3 + $0x278] sm:$0xff] %v9579_v62   ;;  %v5765_v2 = vmax.f32 %v4285_v1, %v5515_v61 }
 0x5aa   :  { %v5965_v13 = vadd.f32 %v11236_v22, %v5765_v2 }
 0x5ac   :  { %v6161_v16 = vmax.f32 %v5965_v13, 0.0  ;;  %v8979_v13 = vld [vmem:[%s11509_s0 + $0x5f0] sm:$0xff] }
 0x5ad   :  { %v4037_v4 = vpop.f32.mrf.mxu2  ;;  %v5517_v5 = vpop.f32.mrf.mxu3 }
 0x5ae   :  { %v4286_v8 = vmax.f32 %v2806_v3, %v4037_v4  ;;  %v1276_v9 = vpop.f32.mrf.mxu0  ;;  %v2560_v10 = vpop.f32.mrf.mxu1 }
 0x5af   :  { %v2807_v17 = vmax.f32 %v1276_v9, %v2560_v10 }
 0x5b0   :  { %v5766_v14 = vmax.f32 %v4286_v8, %v5517_v5 }
 0x5b1   :  { %1315 = vmatmul.bf16.gmra.mxu0 %v8878_v6  ;;  %2599 = vmatmul.bf16.gmra.mxu1 %v8976_v7 }
 0x5b2   :  { %v5966_v15 = vadd.f32 %v11236_v22, %v5766_v14  ;;  %4079 = vmatmul.bf16.gmra.mxu2 %v9074_v11  ;;  %5559 = vmatmul.bf16.gmra.mxu3 %v9172_v12  ;;  %v8881_v12 = vld [vmem:[%s11509_s0 + $0x2e0] sm:$0xff] }
 0x5b4   :  { %v6162_v26 = vmax.f32 %v5966_v15, 0.0 }
 0x5b5   :  { %v4040_v18 = vpop.f32.mrf.mxu2  ;;  %v5520_v19 = vpop.f32.mrf.mxu3 }
 0x5b6   :  { %v9584_v20 = vpack.c.bf16 %v6162_v26, %v6161_v16  ;;  %v1278_v30 = vpop.f32.mrf.mxu0  ;;  %v2562_v21 = vpop.f32.mrf.mxu1  ;;  %v4287_v23 = vmax.f32 %v2807_v17, %v4040_v18  ;;  %v9077_v26 = vld [vmem:[%s11509_s0 + $0x900] sm:$0xff]  ;;  %v9175_v17 = vld [vmem:[%s11509_s0 + $0xc10] sm:$0xff] }
 0x5b7   :  { %v2808_v35 = vmax.f32 %v1278_v30, %v2562_v21 }
 0x5b8   :  { %9750 = vst [vmem:[%s11511_s3 + $0x280] sm:$0xff] %v9584_v20   ;;  %v5767_v24 = vmax.f32 %v4287_v23, %v5520_v19 }
 0x5ba   :  { %v5967_v36 = vadd.f32 %v11236_v22, %v5767_v24 }
 0x5bc   :  { %v6163_v39 = vmax.f32 %v5967_v36, 0.0  ;;  %v8980_v36 = vld [vmem:[%s11509_s0 + $0x5f8] sm:$0xff] }
 0x5bd   :  { %v4042_v25 = vpop.f32.mrf.mxu2  ;;  %v5522_v27 = vpop.f32.mrf.mxu3 }
 0x5be   :  { %v4288_v29 = vmax.f32 %v2808_v35, %v4042_v25  ;;  %v1281_v31 = vpop.f32.mrf.mxu0  ;;  %v2565_v32 = vpop.f32.mrf.mxu1 }
 0x5bf   :  { %v2809_v41 = vmax.f32 %v1281_v31, %v2565_v32 }
 0x5c0   :  { %v5768_v37 = vmax.f32 %v4288_v29, %v5522_v27 }
 0x5c1   :  { %1320 = vmatmul.bf16.gmra.mxu0 %v8879_v28  ;;  %2604 = vmatmul.bf16.gmra.mxu1 %v8977_v53 }
 0x5c2   :  { %v5968_v38 = vadd.f32 %v11236_v22, %v5768_v37  ;;  %4084 = vmatmul.bf16.gmra.mxu2 %v9075_v33  ;;  %5564 = vmatmul.bf16.gmra.mxu3 %v9173_v34  ;;  %v8882_v34 = vld [vmem:[%s11509_s0 + $0x2e8] sm:$0xff] }
 0x5c4   :  { %v6164_v40 = vmax.f32 %v5968_v38, 0.0 }
 0x5c5   :  { %v4045_v42 = vpop.f32.mrf.mxu2  ;;  %v5525_v43 = vpop.f32.mrf.mxu3 }
 0x5c6   :  { %v9589_v44 = vpack.c.bf16 %v6164_v40, %v6163_v39  ;;  %v1283_v45 = vpop.f32.mrf.mxu0  ;;  %v2567_v46 = vpop.f32.mrf.mxu1  ;;  %v4289_v47 = vmax.f32 %v2809_v41, %v4045_v42  ;;  %v9078_v40 = vld [vmem:[%s11509_s0 + $0x908] sm:$0xff]  ;;  %v9176_v41 = vld [vmem:[%s11509_s0 + $0xc18] sm:$0xff] }
 0x5c7   :  { %v2810_v49 = vmax.f32 %v1283_v45, %v2567_v46 }
 0x5c8   :  { %9751 = vst [vmem:[%s11511_s3 + $0x288] sm:$0xff] %v9589_v44   ;;  %v5769_v48 = vmax.f32 %v4289_v47, %v5525_v43 }
 0x5ca   :  { %v5969_v60 = vadd.f32 %v11236_v22, %v5769_v48 }
 0x5cc   :  { %v6165_v63 = vmax.f32 %v5969_v60, 0.0  ;;  %v8981_v60 = vld [vmem:[%s11509_s0 + $0x600] sm:$0xff] }
 0x5cd   :  { %v4047_v50 = vpop.f32.mrf.mxu2  ;;  %v5527_v51 = vpop.f32.mrf.mxu3 }
 0x5ce   :  { %v4290_v55 = vmax.f32 %v2810_v49, %v4047_v50  ;;  %v1286_v56 = vpop.f32.mrf.mxu0  ;;  %v2570_v57 = vpop.f32.mrf.mxu1 }
 0x5cf   :  { %v2811_v1 = vmax.f32 %v1286_v56, %v2570_v57 }
 0x5d0   :  { %v5770_v61 = vmax.f32 %v4290_v55, %v5527_v51 }
 0x5d1   :  { %1325 = vmatmul.bf16.gmra.mxu0 %v8880_v52  ;;  %2609 = vmatmul.bf16.gmra.mxu1 %v8978_v54 }
 0x5d2   :  { %v5970_v62 = vadd.f32 %v11236_v22, %v5770_v61  ;;  %4089 = vmatmul.bf16.gmra.mxu2 %v9076_v58  ;;  %5569 = vmatmul.bf16.gmra.mxu3 %v9174_v59  ;;  %v8883_v59 = vld [vmem:[%s11509_s0 + $0x2f0] sm:$0xff] }
 0x5d4   :  { %v6166_v0 = vmax.f32 %v5970_v62, 0.0 }
 0x5d5   :  { %v4050_v2 = vpop.f32.mrf.mxu2  ;;  %v5530_v3 = vpop.f32.mrf.mxu3 }
 0x5d6   :  { %v9594_v4 = vpack.c.bf16 %v6166_v0, %v6165_v63  ;;  %v1288_v5 = vpop.f32.mrf.mxu0  ;;  %v2572_v6 = vpop.f32.mrf.mxu1  ;;  %v4291_v7 = vmax.f32 %v2811_v1, %v4050_v2  ;;  %v9079_v0 = vld [vmem:[%s11509_s0 + $0x910] sm:$0xff]  ;;  %v9177_v1 = vld [vmem:[%s11509_s0 + $0xc20] sm:$0xff] }
 0x5d7   :  { %v2812_v9 = vmax.f32 %v1288_v5, %v2572_v6 }
 0x5d8   :  { %9752 = vst [vmem:[%s11511_s3 + $0x290] sm:$0xff] %v9594_v4   ;;  %v5771_v8 = vmax.f32 %v4291_v7, %v5530_v3 }
 0x5da   :  { %v5971_v18 = vadd.f32 %v11236_v22, %v5771_v8 }
 0x5dc   :  { %v6167_v30 = vmax.f32 %v5971_v18, 0.0  ;;  %v8982_v18 = vld [vmem:[%s11509_s0 + $0x608] sm:$0xff] }
 0x5dd   :  { %v4052_v10 = vpop.f32.mrf.mxu2  ;;  %v5532_v11 = vpop.f32.mrf.mxu3 }
 0x5de   :  { %v4292_v14 = vmax.f32 %v2812_v9, %v4052_v10  ;;  %v1291_v15 = vpop.f32.mrf.mxu0  ;;  %v2575_v16 = vpop.f32.mrf.mxu1 }
 0x5df   :  { %v2813_v23 = vmax.f32 %v1291_v15, %v2575_v16 }
 0x5e0   :  { %v5772_v19 = vmax.f32 %v4292_v14, %v5532_v11 }
 0x5e1   :  { %1330 = vmatmul.bf16.gmra.mxu0 %v8881_v12  ;;  %2614 = vmatmul.bf16.gmra.mxu1 %v8979_v13 }
 0x5e2   :  { %v5972_v20 = vadd.f32 %v11236_v22, %v5772_v19  ;;  %4094 = vmatmul.bf16.gmra.mxu2 %v9077_v26  ;;  %5574 = vmatmul.bf16.gmra.mxu3 %v9175_v17  ;;  %v8884_v17 = vld [vmem:[%s11509_s0 + $0x2f8] sm:$0xff] }
 0x5e4   :  { %v6168_v21 = vmax.f32 %v5972_v20, 0.0 }
 0x5e5   :  { %v4055_v24 = vpop.f32.mrf.mxu2  ;;  %v5535_v35 = vpop.f32.mrf.mxu3 }
 0x5e6   :  { %v9599_v25 = vpack.c.bf16 %v6168_v21, %v6167_v30  ;;  %v1293_v27 = vpop.f32.mrf.mxu0  ;;  %v2577_v28 = vpop.f32.mrf.mxu1  ;;  %v4293_v53 = vmax.f32 %v2813_v23, %v4055_v24  ;;  %v9080_v21 = vld [vmem:[%s11509_s0 + $0x918] sm:$0xff]  ;;  %v9178_v23 = vld [vmem:[%s11509_s0 + $0xc28] sm:$0xff] }
 0x5e7   :  { %v2814_v31 = vmax.f32 %v1293_v27, %v2577_v28 }
 0x5e8   :  { %9753 = vst [vmem:[%s11511_s3 + $0x298] sm:$0xff] %v9599_v25   ;;  %v5773_v29 = vmax.f32 %v4293_v53, %v5535_v35 }
 0x5ea   :  { %v5973_v42 = vadd.f32 %v11236_v22, %v5773_v29 }
 0x5ec   :  { %v6169_v45 = vmax.f32 %v5973_v42, 0.0  ;;  %v8983_v42 = vld [vmem:[%s11509_s0 + $0x610] sm:$0xff] }
 0x5ed   :  { %v4057_v32 = vpop.f32.mrf.mxu2  ;;  %v5537_v33 = vpop.f32.mrf.mxu3 }
 0x5ee   :  { %v4294_v37 = vmax.f32 %v2814_v31, %v4057_v32  ;;  %v1296_v38 = vpop.f32.mrf.mxu0  ;;  %v2580_v39 = vpop.f32.mrf.mxu1 }
 0x5ef   :  { %v2815_v47 = vmax.f32 %v1296_v38, %v2580_v39 }
 0x5f0   :  { %v5774_v43 = vmax.f32 %v4294_v37, %v5537_v33 }
 0x5f1   :  { %1335 = vmatmul.bf16.gmra.mxu0 %v8882_v34  ;;  %2619 = vmatmul.bf16.gmra.mxu1 %v8980_v36 }
 0x5f2   :  { %v5974_v44 = vadd.f32 %v11236_v22, %v5774_v43  ;;  %4099 = vmatmul.bf16.gmra.mxu2 %v9078_v40  ;;  %5579 = vmatmul.bf16.gmra.mxu3 %v9176_v41  ;;  %v8885_v41 = vld [vmem:[%s11509_s0 + $0x300] sm:$0xff] }
 0x5f4   :  { %v6170_v46 = vmax.f32 %v5974_v44, 0.0 }
 0x5f5   :  { %v4060_v48 = vpop.f32.mrf.mxu2  ;;  %v5540_v49 = vpop.f32.mrf.mxu3 }
 0x5f6   :  { %v9604_v50 = vpack.c.bf16 %v6170_v46, %v6169_v45  ;;  %v1298_v51 = vpop.f32.mrf.mxu0  ;;  %v2582_v52 = vpop.f32.mrf.mxu1  ;;  %v4295_v54 = vmax.f32 %v2815_v47, %v4060_v48  ;;  %v9081_v46 = vld [vmem:[%s11509_s0 + $0x920] sm:$0xff]  ;;  %v9179_v47 = vld [vmem:[%s11509_s0 + $0xc30] sm:$0xff] }
 0x5f7   :  { %v2816_v56 = vmax.f32 %v1298_v51, %v2582_v52 }
 0x5f8   :  { %9754 = vst [vmem:[%s11511_s3 + $0x2a0] sm:$0xff] %v9604_v50   ;;  %v5775_v55 = vmax.f32 %v4295_v54, %v5540_v49 }
 0x5fa   :  { %v5975_v2 = vadd.f32 %v11236_v22, %v5775_v55 }
 0x5fc   :  { %v6171_v5 = vmax.f32 %v5975_v2, 0.0  ;;  %v8984_v2 = vld [vmem:[%s11509_s0 + $0x618] sm:$0xff] }
 0x5fd   :  { %v4062_v57 = vpop.f32.mrf.mxu2  ;;  %v5542_v58 = vpop.f32.mrf.mxu3 }
 0x5fe   :  { %v4296_v61 = vmax.f32 %v2816_v56, %v4062_v57  ;;  %v1301_v62 = vpop.f32.mrf.mxu0  ;;  %v2585_v63 = vpop.f32.mrf.mxu1 }
 0x5ff   :  { %v2817_v7 = vmax.f32 %v1301_v62, %v2585_v63 }
 0x600   :  { %v5776_v3 = vmax.f32 %v4296_v61, %v5542_v58 }
 0x601   :  { %1340 = vmatmul.bf16.gmra.mxu0 %v8883_v59  ;;  %2624 = vmatmul.bf16.gmra.mxu1 %v8981_v60 }
 0x602   :  { %v5976_v4 = vadd.f32 %v11236_v22, %v5776_v3  ;;  %4104 = vmatmul.bf16.gmra.mxu2 %v9079_v0  ;;  %5584 = vmatmul.bf16.gmra.mxu3 %v9177_v1  ;;  %v8886_v1 = vld [vmem:[%s11509_s0 + $0x308] sm:$0xff] }
 0x604   :  { %v6172_v6 = vmax.f32 %v5976_v4, 0.0 }
 0x605   :  { %v4065_v8 = vpop.f32.mrf.mxu2  ;;  %v5545_v9 = vpop.f32.mrf.mxu3 }
 0x606   :  { %v9609_v10 = vpack.c.bf16 %v6172_v6, %v6171_v5  ;;  %v1303_v11 = vpop.f32.mrf.mxu0  ;;  %v2587_v12 = vpop.f32.mrf.mxu1  ;;  %v4297_v13 = vmax.f32 %v2817_v7, %v4065_v8  ;;  %v9082_v6 = vld [vmem:[%s11509_s0 + $0x928] sm:$0xff]  ;;  %v9180_v7 = vld [vmem:[%s11509_s0 + $0xc38] sm:$0xff] }
 0x607   :  { %v2818_v15 = vmax.f32 %v1303_v11, %v2587_v12 }
 0x608   :  { %9755 = vst [vmem:[%s11511_s3 + $0x2a8] sm:$0xff] %v9609_v10   ;;  %v5777_v14 = vmax.f32 %v4297_v13, %v5545_v9 }
 0x60a   :  { %v5977_v24 = vadd.f32 %v11236_v22, %v5777_v14 }
 0x60c   :  { %v6173_v27 = vmax.f32 %v5977_v24, 0.0 }
 0x60d   :  { %v4067_v16 = vpop.f32.mrf.mxu2  ;;  %v5547_v26 = vpop.f32.mrf.mxu3 }
 0x60e   :  { %v4298_v19 = vmax.f32 %v2818_v15, %v4067_v16  ;;  %v1306_v20 = vpop.f32.mrf.mxu0  ;;  %v2590_v30 = vpop.f32.mrf.mxu1 }
 0x60f   :  { %v2819_v53 = vmax.f32 %v1306_v20, %v2590_v30 }
 0x610   :  { %v5778_v35 = vmax.f32 %v4298_v19, %v5547_v26 }
 0x611   :  { %1345 = vmatmul.bf16.gmra.mxu0 %v8884_v17  ;;  %2629 = vmatmul.bf16.gmra.mxu1 %v8982_v18 }
 0x612   :  { %v5978_v25 = vadd.f32 %v11236_v22, %v5778_v35  ;;  %4109 = vmatmul.bf16.gmra.mxu2 %v9080_v21  ;;  %5589 = vmatmul.bf16.gmra.mxu3 %v9178_v23 }
 0x614   :  { %v6174_v28 = vmax.f32 %v5978_v25, 0.0 }
 0x615   :  { %v4070_v29 = vpop.f32.mrf.mxu2  ;;  %v5550_v31 = vpop.f32.mrf.mxu3 }
 0x616   :  { %v9614_v32 = vpack.c.bf16 %v6174_v28, %v6173_v27  ;;  %v1308_v33 = vpop.f32.mrf.mxu0  ;;  %v2592_v34 = vpop.f32.mrf.mxu1  ;;  %v4299_v36 = vmax.f32 %v2819_v53, %v4070_v29 }
 0x617   :  { %v2820_v38 = vmax.f32 %v1308_v33, %v2592_v34 }
 0x618   :  { %9756 = vst [vmem:[%s11511_s3 + $0x2b0] sm:$0xff] %v9614_v32   ;;  %v5779_v37 = vmax.f32 %v4299_v36, %v5550_v31 }
 0x61a   :  { %v5979_v48 = vadd.f32 %v11236_v22, %v5779_v37 }
 0x61c   :  { %v6175_v51 = vmax.f32 %v5979_v48, 0.0 }
 0x61d   :  { %v4072_v39 = vpop.f32.mrf.mxu2  ;;  %v5552_v40 = vpop.f32.mrf.mxu3 }
 0x61e   :  { %v4300_v43 = vmax.f32 %v2820_v38, %v4072_v39  ;;  %v1311_v44 = vpop.f32.mrf.mxu0  ;;  %v2595_v45 = vpop.f32.mrf.mxu1 }
 0x61f   :  { %v2821_v54 = vmax.f32 %v1311_v44, %v2595_v45 }
 0x620   :  { %v5780_v49 = vmax.f32 %v4300_v43, %v5552_v40 }
 0x621   :  { %1350 = vmatmul.bf16.gmra.mxu0 %v8885_v41  ;;  %2634 = vmatmul.bf16.gmra.mxu1 %v8983_v42 }
 0x622   :  { %v5980_v50 = vadd.f32 %v11236_v22, %v5780_v49  ;;  %4114 = vmatmul.bf16.gmra.mxu2 %v9081_v46  ;;  %5594 = vmatmul.bf16.gmra.mxu3 %v9179_v47 }
 0x624   :  { %v6176_v52 = vmax.f32 %v5980_v50, 0.0 }
 0x625   :  { %v4075_v55 = vpop.f32.mrf.mxu2  ;;  %v5555_v56 = vpop.f32.mrf.mxu3 }
 0x626   :  { %v9619_v57 = vpack.c.bf16 %v6176_v52, %v6175_v51  ;;  %v1313_v58 = vpop.f32.mrf.mxu0  ;;  %v2597_v59 = vpop.f32.mrf.mxu1  ;;  %v4301_v60 = vmax.f32 %v2821_v54, %v4075_v55 }
 0x627   :  { %v2822_v62 = vmax.f32 %v1313_v58, %v2597_v59 }
 0x628   :  { %9757 = vst [vmem:[%s11511_s3 + $0x2b8] sm:$0xff] %v9619_v57   ;;  %v5781_v61 = vmax.f32 %v4301_v60, %v5555_v56 }
 0x62a   :  { %v5981_v8 = vadd.f32 %v11236_v22, %v5781_v61 }
 0x62c   :  { %v6177_v11 = vmax.f32 %v5981_v8, 0.0 }
 0x62d   :  { %v4077_v63 = vpop.f32.mrf.mxu2  ;;  %v5557_v0 = vpop.f32.mrf.mxu3 }
 0x62e   :  { %v4302_v3 = vmax.f32 %v2822_v62, %v4077_v63  ;;  %v1316_v4 = vpop.f32.mrf.mxu0  ;;  %v2600_v5 = vpop.f32.mrf.mxu1 }
 0x62f   :  { %v2823_v13 = vmax.f32 %v1316_v4, %v2600_v5 }
 0x630   :  { %v5782_v9 = vmax.f32 %v4302_v3, %v5557_v0 }
 0x631   :  { %1355 = vmatmul.bf16.gmra.mxu0 %v8886_v1  ;;  %2639 = vmatmul.bf16.gmra.mxu1 %v8984_v2 }
 0x632   :  { %v5982_v10 = vadd.f32 %v11236_v22, %v5782_v9  ;;  %4119 = vmatmul.bf16.gmra.mxu2 %v9082_v6  ;;  %5599 = vmatmul.bf16.gmra.mxu3 %v9180_v7 }
 0x634   :  { %v6178_v12 = vmax.f32 %v5982_v10, 0.0 }
 0x635   :  { %v4080_v14 = vpop.f32.mrf.mxu2  ;;  %v5560_v15 = vpop.f32.mrf.mxu3 }
 0x636   :  { %v9624_v16 = vpack.c.bf16 %v6178_v12, %v6177_v11  ;;  %v1318_v26 = vpop.f32.mrf.mxu0  ;;  %v2602_v17 = vpop.f32.mrf.mxu1  ;;  %v4303_v18 = vmax.f32 %v2823_v13, %v4080_v14 }
 0x637   :  { %v2824_v20 = vmax.f32 %v1318_v26, %v2602_v17 }
 0x638   :  { %9758 = vst [vmem:[%s11511_s3 + $0x2c0] sm:$0xff] %v9624_v16   ;;  %v5783_v19 = vmax.f32 %v4303_v18, %v5560_v15 }
 0x63a   :  { %v5983_v25 = vadd.f32 %v11236_v22, %v5783_v19 }
 0x63c   :  { %v6179_v53 = vmax.f32 %v5983_v25, 0.0 }
 0x63d   :  { %v4082_v30 = vpop.f32.mrf.mxu2  ;;  %v5562_v21 = vpop.f32.mrf.mxu3 }
 0x63e   :  { %v4304_v23 = vmax.f32 %v2824_v20, %v4082_v30  ;;  %v1321_v24 = vpop.f32.mrf.mxu0  ;;  %v2605_v35 = vpop.f32.mrf.mxu1 }
 0x63f   :  { %v2825_v31 = vmax.f32 %v1321_v24, %v2605_v35 }
 0x640   :  { %v5784_v27 = vmax.f32 %v4304_v23, %v5562_v21 }
 0x642   :  { %v5984_v28 = vadd.f32 %v11236_v22, %v5784_v27 }
 0x644   :  { %v6180_v29 = vmax.f32 %v5984_v28, 0.0 }
 0x645   :  { %v4085_v32 = vpop.f32.mrf.mxu2  ;;  %v5565_v33 = vpop.f32.mrf.mxu3 }
 0x646   :  { %v9629_v34 = vpack.c.bf16 %v6180_v29, %v6179_v53  ;;  %v1323_v36 = vpop.f32.mrf.mxu0  ;;  %v2607_v37 = vpop.f32.mrf.mxu1  ;;  %v4305_v38 = vmax.f32 %v2825_v31, %v4085_v32 }
 0x647   :  { %v2826_v40 = vmax.f32 %v1323_v36, %v2607_v37 }
 0x648   :  { %9759 = vst [vmem:[%s11511_s3 + $0x2c8] sm:$0xff] %v9629_v34   ;;  %v5785_v39 = vmax.f32 %v4305_v38, %v5565_v33 }
 0x64a   :  { %v5985_v46 = vadd.f32 %v11236_v22, %v5785_v39 }
 0x64c   :  { %v6181_v49 = vmax.f32 %v5985_v46, 0.0 }
 0x64d   :  { %v4087_v41 = vpop.f32.mrf.mxu2  ;;  %v5567_v42 = vpop.f32.mrf.mxu3 }
 0x64e   :  { %v4306_v43 = vmax.f32 %v2826_v40, %v4087_v41  ;;  %v1326_v44 = vpop.f32.mrf.mxu0  ;;  %v2610_v45 = vpop.f32.mrf.mxu1 }
 0x64f   :  { %v2827_v51 = vmax.f32 %v1326_v44, %v2610_v45 }
 0x650   :  { %v5786_v47 = vmax.f32 %v4306_v43, %v5567_v42 }
 0x652   :  { %v5986_v48 = vadd.f32 %v11236_v22, %v5786_v47 }
 0x654   :  { %v6182_v50 = vmax.f32 %v5986_v48, 0.0 }
 0x655   :  { %v4090_v52 = vpop.f32.mrf.mxu2  ;;  %v5570_v54 = vpop.f32.mrf.mxu3 }
 0x656   :  { %v9634_v55 = vpack.c.bf16 %v6182_v50, %v6181_v49  ;;  %v1328_v56 = vpop.f32.mrf.mxu0  ;;  %v2612_v57 = vpop.f32.mrf.mxu1  ;;  %v4307_v58 = vmax.f32 %v2827_v51, %v4090_v52 }
 0x657   :  { %v2828_v60 = vmax.f32 %v1328_v56, %v2612_v57 }
 0x658   :  { %9760 = vst [vmem:[%s11511_s3 + $0x2d0] sm:$0xff] %v9634_v55   ;;  %v5787_v59 = vmax.f32 %v4307_v58, %v5570_v54 }
 0x65a   :  { %v5987_v2 = vadd.f32 %v11236_v22, %v5787_v59 }
 0x65c   :  { %v6183_v5 = vmax.f32 %v5987_v2, 0.0 }
 0x65d   :  { %v4092_v61 = vpop.f32.mrf.mxu2  ;;  %v5572_v62 = vpop.f32.mrf.mxu3 }
 0x65e   :  { %v4308_v63 = vmax.f32 %v2828_v60, %v4092_v61  ;;  %v1331_v0 = vpop.f32.mrf.mxu0  ;;  %v2615_v1 = vpop.f32.mrf.mxu1 }
 0x65f   :  { %v2829_v7 = vmax.f32 %v1331_v0, %v2615_v1 }
 0x660   :  { %v5788_v3 = vmax.f32 %v4308_v63, %v5572_v62 }
 0x662   :  { %v5988_v4 = vadd.f32 %v11236_v22, %v5788_v3 }
 0x664   :  { %v6184_v6 = vmax.f32 %v5988_v4, 0.0 }
 0x665   :  { %v4095_v8 = vpop.f32.mrf.mxu2  ;;  %v5575_v9 = vpop.f32.mrf.mxu3 }
 0x666   :  { %v9639_v10 = vpack.c.bf16 %v6184_v6, %v6183_v5  ;;  %v1333_v11 = vpop.f32.mrf.mxu0  ;;  %v2617_v12 = vpop.f32.mrf.mxu1  ;;  %v4309_v13 = vmax.f32 %v2829_v7, %v4095_v8 }
 0x667   :  { %v2830_v15 = vmax.f32 %v1333_v11, %v2617_v12 }
 0x668   :  { %9761 = vst [vmem:[%s11511_s3 + $0x2d8] sm:$0xff] %v9639_v10   ;;  %v5789_v14 = vmax.f32 %v4309_v13, %v5575_v9 }
 0x66a   :  { %v5989_v20 = vadd.f32 %v11236_v22, %v5789_v14 }
 0x66c   :  { %v6185_v23 = vmax.f32 %v5989_v20, 0.0 }
 0x66d   :  { %v4097_v16 = vpop.f32.mrf.mxu2  ;;  %v5577_v26 = vpop.f32.mrf.mxu3 }
 0x66e   :  { %v4310_v17 = vmax.f32 %v2830_v15, %v4097_v16  ;;  %v1336_v18 = vpop.f32.mrf.mxu0  ;;  %v2620_v19 = vpop.f32.mrf.mxu1 }
 0x66f   :  { %v2831_v35 = vmax.f32 %v1336_v18, %v2620_v19 }
 0x670   :  { %v5790_v30 = vmax.f32 %v4310_v17, %v5577_v26 }
 0x672   :  { %v5990_v21 = vadd.f32 %v11236_v22, %v5790_v30 }
 0x674   :  { %v6186_v24 = vmax.f32 %v5990_v21, 0.0 }
 0x675   :  { %v4100_v25 = vpop.f32.mrf.mxu2  ;;  %v5580_v27 = vpop.f32.mrf.mxu3 }
 0x676   :  { %v9644_v28 = vpack.c.bf16 %v6186_v24, %v6185_v23  ;;  %v1338_v53 = vpop.f32.mrf.mxu0  ;;  %v2622_v29 = vpop.f32.mrf.mxu1  ;;  %v4311_v31 = vmax.f32 %v2831_v35, %v4100_v25 }
 0x677   :  { %v2832_v33 = vmax.f32 %v1338_v53, %v2622_v29 }
 0x678   :  { %9762 = vst [vmem:[%s11511_s3 + $0x2e0] sm:$0xff] %v9644_v28   ;;  %v5791_v32 = vmax.f32 %v4311_v31, %v5580_v27 }
 0x67a   :  { %v5991_v40 = vadd.f32 %v11236_v22, %v5791_v32  ;;  %v9773_v32 = vld [vmem:[%s11510_s2] ss:$0 sm:$0xff] }
 0x67c   :  { %v6187_v43 = vmax.f32 %v5991_v40, 0.0 }
 0x67d   :  { %v4102_v34 = vpop.f32.mrf.mxu2  ;;  %v5582_v36 = vpop.f32.mrf.mxu3 }
 0x67e   :  { %v4312_v37 = vmax.f32 %v2832_v33, %v4102_v34  ;;  %v1341_v38 = vpop.f32.mrf.mxu0  ;;  %v2625_v39 = vpop.f32.mrf.mxu1 }
 0x67f   :  { %v2833_v45 = vmax.f32 %v1341_v38, %v2625_v39 }
 0x680   :  { %v5792_v41 = vmax.f32 %v4312_v37, %v5582_v36 }
 0x682   :  { %v5992_v42 = vadd.f32 %v11236_v22, %v5792_v41 }
 0x684   :  { %v6188_v44 = vmax.f32 %v5992_v42, 0.0 }
 0x685   :  { %v4105_v46 = vpop.f32.mrf.mxu2  ;;  %v5585_v47 = vpop.f32.mrf.mxu3 }
 0x686   :  { %v9649_v48 = vpack.c.bf16 %v6188_v44, %v6187_v43  ;;  %v1343_v49 = vpop.f32.mrf.mxu0  ;;  %v2627_v50 = vpop.f32.mrf.mxu1  ;;  %v4313_v51 = vmax.f32 %v2833_v45, %v4105_v46 }
 0x687   :  { %v2834_v54 = vmax.f32 %v1343_v49, %v2627_v50 }
 0x688   :  { %9763 = vst [vmem:[%s11511_s3 + $0x2e8] sm:$0xff] %v9649_v48   ;;  %v5793_v52 = vmax.f32 %v4313_v51, %v5585_v47 }
 0x68a   :  { %v5993_v60 = vadd.f32 %v11236_v22, %v5793_v52 }
 0x68c   :  { %v6189_v63 = vmax.f32 %v5993_v60, 0.0 }
 0x68d   :  { %v4107_v55 = vpop.f32.mrf.mxu2  ;;  %v5587_v56 = vpop.f32.mrf.mxu3 }
 0x68e   :  { %v4314_v57 = vmax.f32 %v2834_v54, %v4107_v55  ;;  %v1346_v58 = vpop.f32.mrf.mxu0  ;;  %v2630_v59 = vpop.f32.mrf.mxu1 }
 0x68f   :  { %v2835_v1 = vmax.f32 %v1346_v58, %v2630_v59 }
 0x690   :  { %v5794_v61 = vmax.f32 %v4314_v57, %v5587_v56 }
 0x692   :  { %v5994_v62 = vadd.f32 %v11236_v22, %v5794_v61 }
 0x694   :  { %v6190_v0 = vmax.f32 %v5994_v62, 0.0 }
 0x695   :  { %v4110_v2 = vpop.f32.mrf.mxu2  ;;  %v5590_v3 = vpop.f32.mrf.mxu3 }
 0x696   :  { %v9654_v4 = vpack.c.bf16 %v6190_v0, %v6189_v63  ;;  %v1348_v5 = vpop.f32.mrf.mxu0  ;;  %v2632_v6 = vpop.f32.mrf.mxu1  ;;  %v4315_v7 = vmax.f32 %v2835_v1, %v4110_v2 }
 0x697   :  { %v2836_v9 = vmax.f32 %v1348_v5, %v2632_v6 }
 0x698   :  { %9764 = vst [vmem:[%s11511_s3 + $0x2f0] sm:$0xff] %v9654_v4   ;;  %v5795_v8 = vmax.f32 %v4315_v7, %v5590_v3 }
 0x69a   :  { %v5995_v15 = vadd.f32 %v11236_v22, %v5795_v8 }
 0x69c   :  { %v6191_v17 = vmax.f32 %v5995_v15, 0.0 }
 0x69d   :  { %v4112_v10 = vpop.f32.mrf.mxu2  ;;  %v5592_v11 = vpop.f32.mrf.mxu3 }
 0x69e   :  { %v4316_v12 = vmax.f32 %v2836_v9, %v4112_v10  ;;  %v1351_v13 = vpop.f32.mrf.mxu0  ;;  %v2635_v14 = vpop.f32.mrf.mxu1 }
 0x69f   :  { %v2837_v19 = vmax.f32 %v1351_v13, %v2635_v14 }
 0x6a0   :  { %v5796_v16 = vmax.f32 %v4316_v12, %v5592_v11 }
 0x6a2   :  { %v5996_v26 = vadd.f32 %v11236_v22, %v5796_v16 }
 0x6a4   :  { %v6192_v18 = vmax.f32 %v5996_v26, 0.0 }
 0x6a5   :  { %v4115_v20 = vpop.f32.mrf.mxu2  ;;  %v5595_v30 = vpop.f32.mrf.mxu3 }
 0x6a6   :  { %v9659_v21 = vpack.c.bf16 %v6192_v18, %v6191_v17  ;;  %v1353_v23 = vpop.f32.mrf.mxu0  ;;  %v2637_v24 = vpop.f32.mrf.mxu1  ;;  %v4317_v35 = vmax.f32 %v2837_v19, %v4115_v20 }
 0x6a7   :  { %v2838_v27 = vmax.f32 %v1353_v23, %v2637_v24 }
 0x6a8   :  { %9765 = vst [vmem:[%s11511_s3 + $0x2f8] sm:$0xff] %v9659_v21   ;;  %v5797_v25 = vmax.f32 %v4317_v35, %v5595_v30 }
 0x6aa   :  { %v5997_v33 = vadd.f32 %v9773_v32, %v5797_v25 }
 0x6ac   :  { %v6193_v37 = vmax.f32 %v5997_v33, 0.0 }
 0x6ad   :  { %v4117_v28 = vpop.f32.mrf.mxu2  ;;  %v5597_v53 = vpop.f32.mrf.mxu3 }
 0x6ae   :  { %v4318_v29 = vmax.f32 %v2838_v27, %v4117_v28  ;;  %v1356_v31 = vpop.f32.mrf.mxu0  ;;  %v2640_v22 = vpop.f32.mrf.mxu1 }
 0x6af   :  { %v2839_v39 = vmax.f32 %v1356_v31, %v2640_v22 }
 0x6b0   :  { %v5798_v34 = vmax.f32 %v4318_v29, %v5597_v53 }
 0x6b2   :  { %v5998_v36 = vadd.f32 %v9773_v32, %v5798_v34 }
 0x6b4   :  { %v6194_v38 = vmax.f32 %v5998_v36, 0.0 }
 0x6b5   :  { %v4120_v40 = vpop.f32.mrf.mxu2  ;;  %v5600_v41 = vpop.f32.mrf.mxu3 }
 0x6b6   :  { %v9664_v42 = vpack.c.bf16 %v6194_v38, %v6193_v37  ;;  %v4319_v43 = vmax.f32 %v2839_v39, %v4120_v40  ;;  %v1358_v44 = vpop.f32.mrf.mxu0  ;;  %v2642_v45 = vpop.f32.mrf.mxu1 }
 0x6b7   :  { %v2840_v47 = vmax.f32 %v1358_v44, %v2642_v45 }
 0x6b8   :  { %9766 = vst [vmem:[%s11511_s3 + $0x300] sm:$0xff] %v9664_v42   ;;  %v5799_v46 = vmax.f32 %v4319_v43, %v5600_v41 }
 0x6ba   :  { %v5999_v51 = vadd.f32 %v9773_v32, %v5799_v46 }
 0x6bc   :  { %v6195_v55 = vmax.f32 %v5999_v51, 0.0 }
 0x6bd   :  { %v4122_v48 = vpop.f32.mrf.mxu2  ;;  %v5602_v50 = vpop.f32.mrf.mxu3 }
 0x6be   :  { %v4320_v49 = vmax.f32 %v2840_v47, %v4122_v48 }
 0x6c0   :  { %v5800_v52 = vmax.f32 %v4320_v49, %v5602_v50 }
 0x6c2   :  { %v6000_v54 = vadd.f32 %v9773_v32, %v5800_v52 }
 0x6c4   :  { %v6196_v56 = vmax.f32 %v6000_v54, 0.0 }
 0x6c6   :  { %v9669_v57 = vpack.c.bf16 %v6196_v56, %v6195_v55 }
 0x6c8   :  { %9767 = vst [vmem:[%s11511_s3 + $0x308] sm:$0xff] %v9669_v57  }

// kernel: _lambda_.3
= control target key start
LH: loop header
LB: loop body
LE: loop exit
PB: predicated region body
PF: predicated region fallthrough
CT: control target
= control target key end

     0   :  { %19 = vsyncpa [#allocation4], 0  ;;  %s9423_s0 = inlined_call_operand.vmem [shape: bf16[4,200,512], index: 0, kind: input, shape index: {}]   ;;  %s9424_s1 = inlined_call_operand.vmem [shape: bf16[512,128], index: 1, kind: input, shape index: {}]   ;;  %s9425_s2 = inlined_call_operand.vmem [shape: f32[1,128], index: 2, kind: input, shape index: {}]   ;;  %s9426_s3 = inlined_call_operand.vmem [shape: f32[25,128,50], index: 3, kind: input, shape index: {}]   ;;  %s9427_s4 = inlined_call_operand.vmem [shape: f32[1,50], index: 4, kind: input, shape index: {}]   ;;  %s9428_s5 = inlined_call_operand.vmem [shape: f32[50,50], index: 5, kind: input, shape index: {}]   ;;  %s9429_s6 = inlined_call_operand.vmem [shape: f32[50,50], index: 6, kind: input, shape index: {}]   ;;  %s9430_s7 = inlined_call_operand.vmem [shape: f32[1,50], index: 7, kind: input, shape index: {}]   ;;  %s9431_s8 = inlined_call_operand.vmem [shape: f32[50,25], index: 8, kind: input, shape index: {}]   ;;  %s9432_s9 = inlined_call_operand.vmem [shape: f32[1,25], index: 9, kind: input, shape index: {}]   ;;  %s9433_s10 = inlined_call_operand.vmem [shape: f32[25,2], index: 10, kind: input, shape index: {}]   ;;  %s9434_s11 = inlined_call_operand.vmem [shape: f32[1,2], index: 11, kind: input, shape index: {}]   ;;  %s9435_s12 = inlined_call_operand.hbm [shape: f32[1,2], index: 12, kind: output, shape index: {0}]   ;;  %s9436_s13 = inlined_call_operand.hbm [shape: f32[1,1], index: 13, kind: output, shape index: {1}]  }
   0x1   :  { %v6023_v0 = vld [vmem:[%s9424_s1 + $0x38] sm:$0xff]  ;;  %v6045_v4 = vld [vmem:[%s9424_s1 + $0x30] sm:$0xff]  ;;  %v6069_v8 = vld [vmem:[%s9424_s1 + $0x28] sm:$0xff] }
   0x2   :  { %v6028_v1 = vld [vmem:[%s9424_s1 + $0x78] sm:$0xff]  ;;  %605 = vmatpush.bf16.msra.mxu0 %v6023_v0  ;;  %v6050_v5 = vld [vmem:[%s9424_s1 + $0x70] sm:$0xff]  ;;  %v6074_v9 = vld [vmem:[%s9424_s1 + $0x68] sm:$0xff] }
   0x3   :  { %v6033_v2 = vld [vmem:[%s9424_s1 + $0xb8] sm:$0xff]  ;;  %678 = vmatpush.bf16.msra.mxu1 %v6028_v1  ;;  %v6057_v6 = vld [vmem:[%s9424_s1 + $0xb0] sm:$0xff]  ;;  %v6081_v10 = vld [vmem:[%s9424_s1 + $0xa8] sm:$0xff] }
   0x4   :  { %v6038_v3 = vld [vmem:[%s9424_s1 + $0xf8] sm:$0xff]  ;;  %751 = vmatpush.bf16.msra.mxu2 %v6033_v2  ;;  %v6062_v7 = vld [vmem:[%s9424_s1 + $0xf0] sm:$0xff]  ;;  %v6086_v11 = vld [vmem:[%s9424_s1 + $0xe8] sm:$0xff] }
   0x5   :  { %824 = vmatpush.bf16.msra.mxu3 %v6038_v3  ;;  %v6093_v12 = vld [vmem:[%s9424_s1 + $0x20] sm:$0xff]  ;;  %v6115_v16 = vld [vmem:[%s9424_s1 + $0x18] sm:$0xff] }
   0x6   :  { %606 = vmatpush.bf16.msra.mxu0 %v6045_v4  ;;  %v6098_v13 = vld [vmem:[%s9424_s1 + $0x60] sm:$0xff]  ;;  %v6120_v17 = vld [vmem:[%s9424_s1 + $0x58] sm:$0xff] }
   0x7   :  { %679 = vmatpush.bf16.msra.mxu1 %v6050_v5  ;;  %v6105_v14 = vld [vmem:[%s9424_s1 + $0xa0] sm:$0xff] }
   0x8   :  { %752 = vmatpush.bf16.msra.mxu2 %v6057_v6  ;;  %v6110_v15 = vld [vmem:[%s9424_s1 + $0xe0] sm:$0xff] }
   0x9   :  { %825 = vmatpush.bf16.msra.mxu3 %v6062_v7 }
   0xa   :  { %607 = vmatpush.bf16.msra.mxu0 %v6069_v8 }
   0xb   :  { %680 = vmatpush.bf16.msra.mxu1 %v6074_v9 }
   0xc   :  { %753 = vmatpush.bf16.msra.mxu2 %v6081_v10 }
   0xd   :  { %826 = vmatpush.bf16.msra.mxu3 %v6086_v11 }
   0xe   :  { %608 = vmatpush.bf16.msra.mxu0 %v6093_v12 }
   0xf   :  { %681 = vmatpush.bf16.msra.mxu1 %v6098_v13 }
  0x10   :  { %20 = vsyncpa [#allocation6], 0  ;;  %754 = vmatpush.bf16.msra.mxu2 %v6105_v14  ;;  %v6129_v18 = vld [vmem:[%s9424_s1 + $0x98] sm:$0xff]  ;;  %v6141_v20 = vld [vmem:[%s9424_s1 + $0x10] sm:$0xff]  ;;  %vm3839_vm0 = vcmask 1041408   ;;  %vm3820_vm1 = vcmask 408576  }
  0x11   :  { %827 = vmatpush.bf16.msra.mxu3 %v6110_v15  ;;  %v6134_v19 = vld [vmem:[%s9424_s1 + $0xd8] sm:$0xff]  ;;  %v6146_v21 = vld [vmem:[%s9424_s1 + $0x50] sm:$0xff]  ;;  %v6165_v24 = vld [vmem:[%s9424_s1 + $0x8] sm:$0xff]  ;;  %vm4039_vm8 = vcmask 401408   ;;  %vm4116_vm9 = vcmask 1040384   ;;  %vm3955_vm10 = vcmask 64512  }
  0x12   :  { %609 = vmatpush.bf16.msra.mxu0 %v6115_v16  ;;  %v6153_v22 = vld [vmem:[%s9424_s1 + $0x90] sm:$0xff]  ;;  %v6170_v25 = vld [vmem:[%s9424_s1 + $0x48] sm:$0xff]  ;;  %v6187_v28 = vld [vmem:[%s9424_s1] sm:$0xff]  ;;  %vm4112_vm12 = vcmask 203776   ;;  %s4190_s15 = sshll.u32 %s9436_s13, 4  ;;  %s5949_s16 = smov [#allocation3]   ;;  %s4191_s15 = int_to_ptr.hbm [resolvable:$true] %s4190_s15 }
  0x13   :  { %682 = vmatpush.bf16.msra.mxu1 %v6120_v17  ;;  %v6158_v23 = vld [vmem:[%s9424_s1 + $0xd0] sm:$0xff]  ;;  %v6177_v26 = vld [vmem:[%s9424_s1 + $0x88] sm:$0xff]  ;;  %v6192_v29 = vld [vmem:[%s9424_s1 + $0x40] sm:$0xff]  ;;  %s4179_s17 = sshll.u32 %s9435_s12, 4  ;;  %s4180_s17 = int_to_ptr.hbm [resolvable:$true] %s4179_s17 }
  0x14   :  { %755 = vmatpush.bf16.msra.mxu2 %v6129_v18  ;;  %v6182_v27 = vld [vmem:[%s9424_s1 + $0xc8] sm:$0xff]  ;;  %v6197_v30 = vld [vmem:[%s9424_s1 + $0x80] sm:$0xff]  ;;  %v5682_v33 = vld [vmem:[%s9423_s0 + $0xc] sm:$0xf0] }
  0x15   :  { %828 = vmatpush.bf16.msra.mxu3 %v6134_v19  ;;  %v6202_v31 = vld [vmem:[%s9424_s1 + $0xc0] sm:$0xff]  ;;  %v4208_v35 = vld [vmem:[%s9423_s0 + $0x10] sm:$0xf0]  ;;  %v4214_v36 = vld [vmem:[%s9423_s0 + $0x8] sm:$0xf] }
  0x16   :  { %610 = vmatpush.bf16.msra.mxu0 %v6141_v20  ;;  %v4206_v32 = vld [vmem:[%s9423_s0] sm:$0xf]  ;;  %v5680_v34 = vld [vmem:[%s9423_s0 + $0x4] sm:$0xf]  ;;  %v5683_v37 = vld [vmem:[%s9423_s0 + $0x14] sm:$0xf0] }
  0x17   :  { %683 = vmatpush.bf16.msra.mxu1 %v6146_v21  ;;  %v5681_v38 = vld [vmem:[%s9423_s0 + $0xc] sm:$0xf]  ;;  %v4216_v39 = vld [vmem:[%s9423_s0 + $0x18] sm:$0xf0]  ;;  %v4207_v40 = vor.u32 %v5682_v33, %v4206_v32  ;;  %v4211_v41 = vor.u32 %v5680_v34, %v4208_v35  ;;  %v4215_v42 = vor.u32 %v5683_v37, %v4214_v36  ;;  %v4222_v44 = vld [vmem:[%s9423_s0 + $0x20] sm:$0xf] }
  0x18   :  { %756 = vmatpush.bf16.msra.mxu2 %v6153_v22  ;;  %v4219_v43 = vor.u32 %v5681_v38, %v4216_v39  ;;  %v5686_v45 = vld [vmem:[%s9423_s0 + $0x2c] sm:$0xf0]  ;;  %v5684_v46 = vld [vmem:[%s9423_s0 + $0x24] sm:$0xf]  ;;  %v4224_v47 = vld [vmem:[%s9423_s0 + $0x30] sm:$0xf0] }
  0x19   :  { %829 = vmatpush.bf16.msra.mxu3 %v6158_v23  ;;  %v4230_v48 = vld [vmem:[%s9423_s0 + $0x28] sm:$0xf]  ;;  %v5687_v49 = vld [vmem:[%s9423_s0 + $0x34] sm:$0xf0]  ;;  %v5685_v50 = vld [vmem:[%s9423_s0 + $0x2c] sm:$0xf]  ;;  %v4223_v52 = vor.u32 %v5686_v45, %v4222_v44  ;;  %v4227_v53 = vor.u32 %v5684_v46, %v4224_v47 }
  0x1a   :  { %611 = vmatpush.bf16.msra.mxu0 %v6165_v24  ;;  %v4232_v51 = vld [vmem:[%s9423_s0 + $0x38] sm:$0xf0]  ;;  %v4231_v54 = vor.u32 %v5687_v49, %v4230_v48  ;;  %v4238_v56 = vld [vmem:[%s9423_s0 + $0x40] sm:$0xf]  ;;  %v5690_v57 = vld [vmem:[%s9423_s0 + $0x4c] sm:$0xf0] }
  0x1b   :  { %684 = vmatpush.bf16.msra.mxu1 %v6170_v25  ;;  %v4235_v55 = vor.u32 %v5685_v50, %v4232_v51  ;;  %v5688_v58 = vld [vmem:[%s9423_s0 + $0x44] sm:$0xf]  ;;  %v4240_v59 = vld [vmem:[%s9423_s0 + $0x50] sm:$0xf0]  ;;  %v4246_v60 = vld [vmem:[%s9423_s0 + $0x48] sm:$0xf]  ;;  %v4239_v32 = vor.u32 %v5690_v57, %v4238_v56 }
  0x1c   :  { %757 = vmatpush.bf16.msra.mxu2 %v6177_v26  ;;  %v5691_v61 = vld [vmem:[%s9423_s0 + $0x54] sm:$0xf0]  ;;  %v5689_v62 = vld [vmem:[%s9423_s0 + $0x4c] sm:$0xf]  ;;  %v4248_v63 = vld [vmem:[%s9423_s0 + $0x58] sm:$0xf0]  ;;  %v4243_v33 = vor.u32 %v5688_v58, %v4240_v59 }
  0x1d   :  { %830 = vmatpush.bf16.msra.mxu3 %v6182_v27  ;;  %v4247_v34 = vor.u32 %v5691_v61, %v4246_v60  ;;  %v4251_v35 = vor.u32 %v5689_v62, %v4248_v63  ;;  %v4254_v36 = vld [vmem:[%s9423_s0 + $0x60] sm:$0xf]  ;;  %v5694_v37 = vld [vmem:[%s9423_s0 + $0x6c] sm:$0xf0]  ;;  %v5692_v38 = vld [vmem:[%s9423_s0 + $0x64] sm:$0xf] }
  0x1e   :  { %612 = vmatpush.bf16.msra.mxu0 %v6187_v28  ;;  %v4256_v39 = vld [vmem:[%s9423_s0 + $0x70] sm:$0xf0]  ;;  %v4255_v44 = vor.u32 %v5694_v37, %v4254_v36  ;;  %v4270_v48 = vld [vmem:[%s9423_s0 + $0x80] sm:$0xf]  ;;  %v5698_v49 = vld [vmem:[%s9423_s0 + $0x8c] sm:$0xf0] }
  0x1f   :  { %685 = vmatpush.bf16.msra.mxu1 %v6192_v29  ;;  %v4259_v45 = vor.u32 %v5692_v38, %v4256_v39  ;;  %v5696_v50 = vld [vmem:[%s9423_s0 + $0x84] sm:$0xf]  ;;  %v4272_v51 = vld [vmem:[%s9423_s0 + $0x90] sm:$0xf0]  ;;  %v4271_v56 = vor.u32 %v5698_v49, %v4270_v48  ;;  %v4286_v60 = vld [vmem:[%s9423_s0 + $0xa0] sm:$0xf] }
  0x20   :  { %758 = vmatpush.bf16.msra.mxu2 %v6197_v30  ;;  %v4275_v57 = vor.u32 %v5696_v50, %v4272_v51  ;;  %v5702_v61 = vld [vmem:[%s9423_s0 + $0xac] sm:$0xf0]  ;;  %v5700_v62 = vld [vmem:[%s9423_s0 + $0xa4] sm:$0xf]  ;;  %v4288_v63 = vld [vmem:[%s9423_s0 + $0xb0] sm:$0xf0] }
  0x21   :  { %831 = vmatpush.bf16.msra.mxu3 %v6202_v31  ;;  %613 = vmatmul.bf16.vlgmr.msra.gmra.mxu0 %v4207_v40  ;;  %v4262_v40 = vld [vmem:[%s9423_s0 + $0x68] sm:$0xf]  ;;  %v4287_v36 = vor.u32 %v5702_v61, %v4286_v60  ;;  %v4291_v37 = vor.u32 %v5700_v62, %v4288_v63 }
  0x22   :  { %686 = vmatmul.bf16.vlgmr.msra.gmra.mxu1 %v4211_v41  ;;  %1202 = vmatpush.bf16.msrb.mxu0 %v6023_v0  ;;  %v5695_v41 = vld [vmem:[%s9423_s0 + $0x74] sm:$0xf0] }
  0x23   :  { %759 = vmatmul.bf16.vlgmr.msra.gmra.mxu2 %v4215_v42  ;;  %1275 = vmatpush.bf16.msrb.mxu1 %v6028_v1  ;;  %v5693_v42 = vld [vmem:[%s9423_s0 + $0x6c] sm:$0xf]  ;;  %v4263_v46 = vor.u32 %v5695_v41, %v4262_v40  ;;  %v4302_v40 = vld [vmem:[%s9423_s0 + $0xc0] sm:$0xf]  ;;  %v5706_v41 = vld [vmem:[%s9423_s0 + $0xcc] sm:$0xf0] }
  0x24   :  { %1348 = vmatpush.bf16.msrb.mxu2 %v6033_v2  ;;  %832 = vmatmul.bf16.vlgmr.msra.gmra.mxu3 %v4219_v43  ;;  %v4264_v43 = vld [vmem:[%s9423_s0 + $0x78] sm:$0xf0]  ;;  %v4303_v48 = vor.u32 %v5706_v41, %v4302_v40 }
  0x25   :  { %1421 = vmatpush.bf16.msrb.mxu3 %v6038_v3  ;;  %v4267_v47 = vor.u32 %v5693_v42, %v4264_v43  ;;  %v5704_v42 = vld [vmem:[%s9423_s0 + $0xc4] sm:$0xf]  ;;  %v4304_v43 = vld [vmem:[%s9423_s0 + $0xd0] sm:$0xf0] }
  0x26   :  { %1203 = vmatpush.bf16.msrb.mxu0 %v6045_v4  ;;  %v4307_v49 = vor.u32 %v5704_v42, %v4304_v43 }
  0x27   :  { %1276 = vmatpush.bf16.msrb.mxu1 %v6050_v5 }
  0x28   :  { %1349 = vmatpush.bf16.msrb.mxu2 %v6057_v6 }
  0x29   :  { %1422 = vmatpush.bf16.msrb.mxu3 %v6062_v7 }
  0x2a   :  { %1204 = vmatpush.bf16.msrb.mxu0 %v6069_v8 }
  0x2b   :  { %1277 = vmatpush.bf16.msrb.mxu1 %v6074_v9 }
  0x2c   :  { %1350 = vmatpush.bf16.msrb.mxu2 %v6081_v10 }
  0x2d   :  { %1423 = vmatpush.bf16.msrb.mxu3 %v6086_v11 }
  0x2e   :  { %1205 = vmatpush.bf16.msrb.mxu0 %v6093_v12 }
  0x2f   :  { %1278 = vmatpush.bf16.msrb.mxu1 %v6098_v13 }
  0x30   :  { %1351 = vmatpush.bf16.msrb.mxu2 %v6105_v14 }
  0x31   :  { %1424 = vmatpush.bf16.msrb.mxu3 %v6110_v15  ;;  %618 = vmatmul.bf16.gmra.mxu0 %v4223_v52  ;;  %v4278_v52 = vld [vmem:[%s9423_s0 + $0x88] sm:$0xf] }
  0x32   :  { %691 = vmatmul.bf16.gmra.mxu1 %v4227_v53  ;;  %1206 = vmatpush.bf16.msrb.mxu0 %v6115_v16  ;;  %v5699_v53 = vld [vmem:[%s9423_s0 + $0x94] sm:$0xf0] }
  0x33   :  { %764 = vmatmul.bf16.gmra.mxu2 %v4231_v54  ;;  %1279 = vmatpush.bf16.msrb.mxu1 %v6120_v17  ;;  %v5697_v54 = vld [vmem:[%s9423_s0 + $0x8c] sm:$0xf]  ;;  %v4279_v58 = vor.u32 %v5699_v53, %v4278_v52  ;;  %v4318_v52 = vld [vmem:[%s9423_s0 + $0xe0] sm:$0xf]  ;;  %v5710_v53 = vld [vmem:[%s9423_s0 + $0xec] sm:$0xf0] }
  0x34   :  { %1352 = vmatpush.bf16.msrb.mxu2 %v6129_v18  ;;  %837 = vmatmul.bf16.gmra.mxu3 %v4235_v55  ;;  %v4280_v55 = vld [vmem:[%s9423_s0 + $0x98] sm:$0xf0]  ;;  %v4319_v60 = vor.u32 %v5710_v53, %v4318_v52 }
  0x35   :  { %1425 = vmatpush.bf16.msrb.mxu3 %v6134_v19  ;;  %v4283_v59 = vor.u32 %v5697_v54, %v4280_v55  ;;  %v5708_v54 = vld [vmem:[%s9423_s0 + $0xe4] sm:$0xf]  ;;  %v4320_v55 = vld [vmem:[%s9423_s0 + $0xf0] sm:$0xf0] }
  0x36   :  { %1207 = vmatpush.bf16.msrb.mxu0 %v6141_v20  ;;  %v4323_v61 = vor.u32 %v5708_v54, %v4320_v55  ;;  %v4350_v54 = vld [vmem:[%s9423_s0 + $0x120] sm:$0xf]  ;;  %v5718_v55 = vld [vmem:[%s9423_s0 + $0x12c] sm:$0xf0] }
  0x37   :  { %1280 = vmatpush.bf16.msrb.mxu1 %v6146_v21 }
  0x38   :  { %1353 = vmatpush.bf16.msrb.mxu2 %v6153_v22 }
  0x39   :  { %1426 = vmatpush.bf16.msrb.mxu3 %v6158_v23 }
  0x3a   :  { %1208 = vmatpush.bf16.msrb.mxu0 %v6165_v24 }
  0x3b   :  { %1281 = vmatpush.bf16.msrb.mxu1 %v6170_v25 }
  0x3c   :  { %1354 = vmatpush.bf16.msrb.mxu2 %v6177_v26 }
  0x3d   :  { %1427 = vmatpush.bf16.msrb.mxu3 %v6182_v27 }
  0x3e   :  { %1209 = vmatpush.bf16.msrb.mxu0 %v6187_v28 }
  0x3f   :  { %1282 = vmatpush.bf16.msrb.mxu1 %v6192_v29 }
  0x40   :  { %1355 = vmatpush.bf16.msrb.mxu2 %v6197_v30 }
  0x41   :  { %1428 = vmatpush.bf16.msrb.mxu3 %v6202_v31  ;;  %623 = vmatmul.bf16.gmra.mxu0 %v4239_v32  ;;  %v4294_v32 = vld [vmem:[%s9423_s0 + $0xa8] sm:$0xf] }
  0x42   :  { %1824 = vmatpush.bf16.msra.mxu0 %v6023_v0  ;;  %696 = vmatmul.bf16.gmra.mxu1 %v4243_v33  ;;  %v5703_v33 = vld [vmem:[%s9423_s0 + $0xb4] sm:$0xf0] }
  0x43   :  { %1897 = vmatpush.bf16.msra.mxu1 %v6028_v1  ;;  %769 = vmatmul.bf16.gmra.mxu2 %v4247_v34  ;;  %v5701_v34 = vld [vmem:[%s9423_s0 + $0xac] sm:$0xf]  ;;  %v4295_v38 = vor.u32 %v5703_v33, %v4294_v32  ;;  %v4334_v32 = vld [vmem:[%s9423_s0 + $0x100] sm:$0xf]  ;;  %v5714_v33 = vld [vmem:[%s9423_s0 + $0x10c] sm:$0xf0] }
  0x44   :  { %1970 = vmatpush.bf16.msra.mxu2 %v6033_v2  ;;  %842 = vmatmul.bf16.gmra.mxu3 %v4251_v35  ;;  %v4296_v35 = vld [vmem:[%s9423_s0 + $0xb8] sm:$0xf0]  ;;  %v4335_v40 = vor.u32 %v5714_v33, %v4334_v32  ;;  %v4351_v32 = vor.u32 %v5718_v55, %v4350_v54  ;;  %v5723_v54 = vld [vmem:[%s9423_s0 + $0x154] sm:$0xf0]  ;;  %v5721_v55 = vld [vmem:[%s9423_s0 + $0x14c] sm:$0xf] }
  0x45   :  { %2043 = vmatpush.bf16.msra.mxu3 %v6038_v3  ;;  %v4299_v39 = vor.u32 %v5701_v34, %v4296_v35  ;;  %v5712_v34 = vld [vmem:[%s9423_s0 + $0x104] sm:$0xf]  ;;  %v4336_v35 = vld [vmem:[%s9423_s0 + $0x110] sm:$0xf0] }
  0x46   :  { %1825 = vmatpush.bf16.msra.mxu0 %v6045_v4  ;;  %v4339_v41 = vor.u32 %v5712_v34, %v4336_v35 }
  0x47   :  { %1898 = vmatpush.bf16.msra.mxu1 %v6050_v5 }
  0x48   :  { %1971 = vmatpush.bf16.msra.mxu2 %v6057_v6 }
  0x49   :  { %2044 = vmatpush.bf16.msra.mxu3 %v6062_v7 }
  0x4a   :  { %1826 = vmatpush.bf16.msra.mxu0 %v6069_v8 }
  0x4b   :  { %1899 = vmatpush.bf16.msra.mxu1 %v6074_v9 }
  0x4c   :  { %1972 = vmatpush.bf16.msra.mxu2 %v6081_v10 }
  0x4d   :  { %2045 = vmatpush.bf16.msra.mxu3 %v6086_v11 }
  0x4e   :  { %1827 = vmatpush.bf16.msra.mxu0 %v6093_v12 }
  0x4f   :  { %1900 = vmatpush.bf16.msra.mxu1 %v6098_v13 }
  0x50   :  { %1973 = vmatpush.bf16.msra.mxu2 %v6105_v14 }
  0x51   :  { %2046 = vmatpush.bf16.msra.mxu3 %v6110_v15  ;;  %628 = vmatmul.bf16.gmra.mxu0 %v4255_v44  ;;  %v4310_v44 = vld [vmem:[%s9423_s0 + $0xc8] sm:$0xf] }
  0x52   :  { %1828 = vmatpush.bf16.msra.mxu0 %v6115_v16  ;;  %701 = vmatmul.bf16.gmra.mxu1 %v4259_v45  ;;  %v5707_v45 = vld [vmem:[%s9423_s0 + $0xd4] sm:$0xf0] }
  0x53   :  { %1901 = vmatpush.bf16.msra.mxu1 %v6120_v17  ;;  %774 = vmatmul.bf16.gmra.mxu2 %v4263_v46  ;;  %v5705_v46 = vld [vmem:[%s9423_s0 + $0xcc] sm:$0xf]  ;;  %v4311_v50 = vor.u32 %v5707_v45, %v4310_v44 }
  0x54   :  { %1974 = vmatpush.bf16.msra.mxu2 %v6129_v18  ;;  %847 = vmatmul.bf16.gmra.mxu3 %v4267_v47  ;;  %v4312_v47 = vld [vmem:[%s9423_s0 + $0xd8] sm:$0xf0] }
  0x55   :  { %2047 = vmatpush.bf16.msra.mxu3 %v6134_v19  ;;  %v4315_v51 = vor.u32 %v5705_v46, %v4312_v47 }
  0x56   :  { %1829 = vmatpush.bf16.msra.mxu0 %v6141_v20 }
  0x57   :  { %1902 = vmatpush.bf16.msra.mxu1 %v6146_v21 }
  0x58   :  { %1975 = vmatpush.bf16.msra.mxu2 %v6153_v22 }
  0x59   :  { %2048 = vmatpush.bf16.msra.mxu3 %v6158_v23 }
  0x5a   :  { %1830 = vmatpush.bf16.msra.mxu0 %v6165_v24 }
  0x5b   :  { %1903 = vmatpush.bf16.msra.mxu1 %v6170_v25 }
  0x5c   :  { %1976 = vmatpush.bf16.msra.mxu2 %v6177_v26 }
  0x5d   :  { %2049 = vmatpush.bf16.msra.mxu3 %v6182_v27 }
  0x5e   :  { %1831 = vmatpush.bf16.msra.mxu0 %v6187_v28 }
  0x5f   :  { %1904 = vmatpush.bf16.msra.mxu1 %v6192_v29 }
  0x60   :  { %1977 = vmatpush.bf16.msra.mxu2 %v6197_v30 }
  0x61   :  { %2050 = vmatpush.bf16.msra.mxu3 %v6202_v31  ;;  %633 = vmatmul.bf16.gmra.mxu0 %v4271_v56  ;;  %v4326_v56 = vld [vmem:[%s9423_s0 + $0xe8] sm:$0xf] }
  0x62   :  { %706 = vmatmul.bf16.gmra.mxu1 %v4275_v57  ;;  %v5711_v57 = vld [vmem:[%s9423_s0 + $0xf4] sm:$0xf0] }
  0x63   :  { %779 = vmatmul.bf16.gmra.mxu2 %v4279_v58  ;;  %v5709_v58 = vld [vmem:[%s9423_s0 + $0xec] sm:$0xf]  ;;  %v4327_v62 = vor.u32 %v5711_v57, %v4326_v56  ;;  %v5716_v56 = vld [vmem:[%s9423_s0 + $0x124] sm:$0xf]  ;;  %v4352_v57 = vld [vmem:[%s9423_s0 + $0x130] sm:$0xf0] }
  0x64   :  { %852 = vmatmul.bf16.gmra.mxu3 %v4283_v59  ;;  %v4328_v59 = vld [vmem:[%s9423_s0 + $0xf8] sm:$0xf0]  ;;  %v4355_v33 = vor.u32 %v5716_v56, %v4352_v57 }
  0x65   :  { %v4331_v63 = vor.u32 %v5709_v58, %v4328_v59  ;;  %v4358_v58 = vld [vmem:[%s9423_s0 + $0x128] sm:$0xf]  ;;  %v5719_v59 = vld [vmem:[%s9423_s0 + $0x134] sm:$0xf0]  ;;  %v4376_v56 = vld [vmem:[%s9423_s0 + $0x158] sm:$0xf0] }
  0x71   :  { %638 = vmatmul.bf16.gmra.mxu0 %v4287_v36  ;;  %v4342_v36 = vld [vmem:[%s9423_s0 + $0x108] sm:$0xf] }
  0x72   :  { %711 = vmatmul.bf16.gmra.mxu1 %v4291_v37  ;;  %v5715_v37 = vld [vmem:[%s9423_s0 + $0x114] sm:$0xf0] }
  0x73   :  { %784 = vmatmul.bf16.gmra.mxu2 %v4295_v38  ;;  %v5713_v38 = vld [vmem:[%s9423_s0 + $0x10c] sm:$0xf]  ;;  %v4343_v44 = vor.u32 %v5715_v37, %v4342_v36  ;;  %v4359_v37 = vor.u32 %v5719_v59, %v4358_v58 }
  0x74   :  { %857 = vmatmul.bf16.gmra.mxu3 %v4299_v39  ;;  %v4344_v39 = vld [vmem:[%s9423_s0 + $0x118] sm:$0xf0] }
  0x75   :  { %v4347_v45 = vor.u32 %v5713_v38, %v4344_v39 }
  0x81   :  { %643 = vmatmul.bf16.gmra.mxu0 %v4303_v48 }
  0x82   :  { %716 = vmatmul.bf16.gmra.mxu1 %v4307_v49 }
  0x83   :  { %789 = vmatmul.bf16.gmra.mxu2 %v4311_v50 }
  0x84   :  { %862 = vmatmul.bf16.gmra.mxu3 %v4315_v51 }
  0x91   :  { %648 = vmatmul.bf16.gmra.mxu0 %v4319_v60  ;;  %v5717_v60 = vld [vmem:[%s9423_s0 + $0x12c] sm:$0xf] }
  0x92   :  { %721 = vmatmul.bf16.gmra.mxu1 %v4323_v61  ;;  %v4360_v61 = vld [vmem:[%s9423_s0 + $0x138] sm:$0xf0] }
  0x93   :  { %794 = vmatmul.bf16.gmra.mxu2 %v4327_v62  ;;  %v4363_v38 = vor.u32 %v5717_v60, %v4360_v61 }
  0x94   :  { %867 = vmatmul.bf16.gmra.mxu3 %v4331_v63 }
  0x9e   :  { %v614_v42 = vpop.f32.mrf.mxu0 }
  0x9f   :  { %v687_v43 = vpop.f32.mrf.mxu1 }
  0xa0   :  { %v688_v46 = vadd.f32 %v687_v43, %v614_v42 }
  0xa1   :  { %653 = vmatmul.bf16.gmra.mxu0 %v4335_v40 }
  0xa2   :  { %726 = vmatmul.bf16.gmra.mxu1 %v4339_v41 }
  0xa3   :  { %799 = vmatmul.bf16.gmra.mxu2 %v4343_v44 }
  0xa4   :  { %872 = vmatmul.bf16.gmra.mxu3 %v4347_v45 }
  0xa6   :  { %v760_v47 = vpop.f32.mrf.mxu2  ;;  %v616_v50 = vpop.f32.mrf.mxu0 }
  0xa7   :  { %v833_v48 = vpop.f32.mrf.mxu3  ;;  %v761_v49 = vadd.f32 %v760_v47, %v688_v46  ;;  %v689_v51 = vpop.f32.mrf.mxu1 }
  0xa8   :  { %v690_v52 = vadd.f32 %v689_v51, %v616_v50  ;;  %v5720_v50 = vld [vmem:[%s9423_s0 + $0x144] sm:$0xf]  ;;  %v4368_v51 = vld [vmem:[%s9423_s0 + $0x150] sm:$0xf0] }
  0xa9   :  { %v6492_v53 = vadd.f32 %v833_v48, %v761_v49  ;;  %v4366_v48 = vld [vmem:[%s9423_s0 + $0x140] sm:$0xf]  ;;  %v5722_v49 = vld [vmem:[%s9423_s0 + $0x14c] sm:$0xf0]  ;;  %v4371_v60 = vor.u32 %v5720_v50, %v4368_v51  ;;  %v5727_v50 = vld [vmem:[%s9423_s0 + $0x174] sm:$0xf0] }
  0xaa   :  { %v4367_v59 = vor.u32 %v5722_v49, %v4366_v48  ;;  %v4384_v48 = vld [vmem:[%s9423_s0 + $0x170] sm:$0xf0]  ;;  %v4390_v49 = vld [vmem:[%s9423_s0 + $0x168] sm:$0xf]  ;;  %v5725_v51 = vld [vmem:[%s9423_s0 + $0x16c] sm:$0xf] }
  0xae   :  { %v762_v62 = vpop.f32.mrf.mxu2  ;;  %v619_v35 = vpop.f32.mrf.mxu0 }
  0xaf   :  { %v835_v63 = vpop.f32.mrf.mxu3  ;;  %v763_v34 = vadd.f32 %v762_v62, %v690_v52  ;;  %v692_v36 = vpop.f32.mrf.mxu1  ;;  %v4374_v52 = vld [vmem:[%s9423_s0 + $0x148] sm:$0xf] }
  0xb0   :  { %v693_v39 = vadd.f32 %v692_v36, %v619_v35 }
  0xb1   :  { %v6518_v40 = vadd.f32 %v835_v63, %v763_v34  ;;  %658 = vmatmul.bf16.gmra.mxu0 %v4351_v32  ;;  %v4375_v32 = vor.u32 %v5723_v54, %v4374_v52  ;;  %v4392_v52 = vld [vmem:[%s9423_s0 + $0x178] sm:$0xf0] }
  0xb2   :  { %731 = vmatmul.bf16.gmra.mxu1 %v4355_v33  ;;  %v4379_v33 = vor.u32 %v5721_v55, %v4376_v56 }
  0xb3   :  { %804 = vmatmul.bf16.gmra.mxu2 %v4359_v37 }
  0xb4   :  { %877 = vmatmul.bf16.gmra.mxu3 %v4363_v38 }
  0xb6   :  { %v765_v41 = vpop.f32.mrf.mxu2  ;;  %v621_v44 = vpop.f32.mrf.mxu0 }
  0xb7   :  { %v838_v42 = vpop.f32.mrf.mxu3  ;;  %v766_v43 = vadd.f32 %v765_v41, %v693_v39  ;;  %v694_v45 = vpop.f32.mrf.mxu1 }
  0xb8   :  { %v695_v46 = vadd.f32 %v694_v45, %v621_v44  ;;  %v4382_v44 = vld [vmem:[%s9423_s0 + $0x160] sm:$0xf]  ;;  %v5726_v45 = vld [vmem:[%s9423_s0 + $0x16c] sm:$0xf0] }
  0xb9   :  { %v6520_v47 = vadd.f32 %v838_v42, %v766_v43  ;;  %v4383_v56 = vor.u32 %v5726_v45, %v4382_v44 }
  0xbe   :  { %v767_v57 = vpop.f32.mrf.mxu2  ;;  %v624_v62 = vpop.f32.mrf.mxu0 }
  0xbf   :  { %v840_v58 = vpop.f32.mrf.mxu3  ;;  %v768_v61 = vadd.f32 %v767_v57, %v695_v46  ;;  %v697_v63 = vpop.f32.mrf.mxu1  ;;  %v5724_v46 = vld [vmem:[%s9423_s0 + $0x164] sm:$0xf] }
  0xc0   :  { %v698_v34 = vadd.f32 %v697_v63, %v624_v62  ;;  %v4387_v57 = vor.u32 %v5724_v46, %v4384_v48  ;;  %v4395_v62 = vor.u32 %v5725_v51, %v4392_v52 }
  0xc1   :  { %v6546_v35 = vadd.f32 %v840_v58, %v768_v61  ;;  %663 = vmatmul.bf16.gmra.mxu0 %v4367_v59  ;;  %v4391_v61 = vor.u32 %v5727_v50, %v4390_v49 }
  0xc2   :  { %736 = vmatmul.bf16.gmra.mxu1 %v4371_v60 }
  0xc3   :  { %809 = vmatmul.bf16.gmra.mxu2 %v4375_v32 }
  0xc4   :  { %882 = vmatmul.bf16.gmra.mxu3 %v4379_v33 }
  0xc6   :  { %v770_v36 = vpop.f32.mrf.mxu2  ;;  %v626_v39 = vpop.f32.mrf.mxu0 }
  0xc7   :  { %v843_v37 = vpop.f32.mrf.mxu3  ;;  %v771_v38 = vadd.f32 %v770_v36, %v698_v34  ;;  %v699_v41 = vpop.f32.mrf.mxu1 }
  0xc8   :  { %v700_v42 = vadd.f32 %v699_v41, %v626_v39  ;;  %v157_v39 = vld [vmem:[%s9423_s0 + $0x180] sm:$0xff] }
  0xc9   :  { %v6548_v43 = vadd.f32 %v843_v37, %v771_v38  ;;  %v305_v45 = vunpack.c.l.b16 %v157_v39  ;;  %v306_v46 = vunpack.c.h.b16 %v157_v39  ;;  %v4576_v39 = vld [vmem:[%s9423_s0 + $0x190] sm:$0xf] }
  0xcb   :  { %v357_v52 = vpack.c.b16 %v305_v45, %v305_v45  ;;  %v4578_v45 = vld [vmem:[%s9423_s0 + $0x1a0] sm:$0xf0] }
  0xce   :  { %v772_v54 = vpop.f32.mrf.mxu2  ;;  %v629_v59 = vpop.f32.mrf.mxu0 }
  0xcf   :  { %v845_v55 = vpop.f32.mrf.mxu3  ;;  %v773_v58 = vadd.f32 %v772_v54, %v700_v42  ;;  %v702_v60 = vpop.f32.mrf.mxu1  ;;  %v158_v42 = vld [vmem:[%s9423_s0 + $0x188] sm:$0xff]  ;;  %v358_v54 = vpack.c.b16 %v306_v46, %v306_v46  ;;  %v4584_v46 = vld [vmem:[%s9423_s0 + $0x198] sm:$0xf] }
  0xd0   :  { %v703_v63 = vadd.f32 %v702_v60, %v629_v59  ;;  %v307_v48 = vunpack.c.l.b16 %v158_v42  ;;  %v308_v49 = vunpack.c.h.b16 %v158_v42  ;;  %v5728_v42 = vld [vmem:[%s9423_s0 + $0x194] sm:$0xf] }
  0xd1   :  { %v6574_v32 = vadd.f32 %v845_v55, %v773_v58  ;;  %668 = vmatmul.bf16.gmra.mxu0 %v4383_v56 }
  0xd2   :  { %741 = vmatmul.bf16.gmra.mxu1 %v4387_v57  ;;  %v359_v58 = vpack.c.b16 %v307_v48, %v307_v48  ;;  %v360_v59 = vpack.c.b16 %v308_v49, %v308_v49  ;;  %v5731_v48 = vld [vmem:[%s9423_s0 + $0x1a4] sm:$0xf0]  ;;  %v5729_v49 = vld [vmem:[%s9423_s0 + $0x19c] sm:$0xf] }
  0xd3   :  { %814 = vmatmul.bf16.gmra.mxu2 %v4391_v61 }
  0xd4   :  { %887 = vmatmul.bf16.gmra.mxu3 %v4395_v62 }
  0xd6   :  { %v775_v33 = vpop.f32.mrf.mxu2  ;;  %v631_v37 = vpop.f32.mrf.mxu0 }
  0xd7   :  { %v848_v34 = vpop.f32.mrf.mxu3  ;;  %v776_v36 = vadd.f32 %v775_v33, %v703_v63  ;;  %v704_v38 = vpop.f32.mrf.mxu1 }
  0xd8   :  { %v705_v41 = vadd.f32 %v704_v38, %v631_v37 }
  0xd9   :  { %v6582_v44 = vadd.f32 %v848_v34, %v776_v36 }
  0xde   :  { %v777_v50 = vpop.f32.mrf.mxu2  ;;  %v634_v56 = vpop.f32.mrf.mxu0 }
  0xdf   :  { %v850_v51 = vpop.f32.mrf.mxu3  ;;  %v778_v55 = vadd.f32 %v777_v50, %v705_v41  ;;  %v707_v57 = vpop.f32.mrf.mxu1  ;;  %v5730_v41 = vld [vmem:[%s9423_s0 + $0x19c] sm:$0xf0]  ;;  %v4586_v50 = vld [vmem:[%s9423_s0 + $0x1a8] sm:$0xf0] }
  0xe0   :  { %v708_v60 = vadd.f32 %v707_v57, %v634_v56 }
  0xe1   :  { %v6584_v61 = vadd.f32 %v850_v51, %v778_v55  ;;  %673 = vmatmul.bf16.gmra.mxu0 %v357_v52  ;;  %v4581_v55 = vor.u32 %v5728_v42, %v4578_v45 }
  0xe2   :  { %746 = vmatmul.bf16.gmra.mxu1 %v358_v54  ;;  %v4577_v54 = vor.u32 %v5730_v41, %v4576_v39 }
  0xe3   :  { %819 = vmatmul.bf16.gmra.mxu2 %v359_v58 }
  0xe4   :  { %892 = vmatmul.bf16.gmra.mxu3 %v360_v59  ;;  %v4585_v59 = vor.u32 %v5731_v48, %v4584_v46 }
  0xe6   :  { %v780_v62 = vpop.f32.mrf.mxu2  ;;  %v636_v34 = vpop.f32.mrf.mxu0 }
  0xe7   :  { %v853_v63 = vpop.f32.mrf.mxu3  ;;  %v781_v33 = vadd.f32 %v780_v62, %v708_v60  ;;  %v709_v36 = vpop.f32.mrf.mxu1  ;;  %v4589_v60 = vor.u32 %v5729_v49, %v4586_v50 }
  0xe8   :  { %v710_v37 = vadd.f32 %v709_v36, %v636_v34 }
  0xe9   :  { %v6586_v38 = vadd.f32 %v853_v63, %v781_v33 }
  0xee   :  { %v782_v51 = vpop.f32.mrf.mxu2  ;;  %v639_v57 = vpop.f32.mrf.mxu0 }
  0xef   :  { %v855_v52 = vpop.f32.mrf.mxu3  ;;  %v783_v56 = vadd.f32 %v782_v51, %v710_v37  ;;  %v712_v58 = vpop.f32.mrf.mxu1 }
  0xf0   :  { %v713_v62 = vadd.f32 %v712_v58, %v639_v57 }
  0xf1   :  { %v6612_v63 = vadd.f32 %v855_v52, %v783_v56  ;;  %1210 = vmatmul.bf16.vlgmr.msrb.gmra.mxu0 %v4577_v54 }
  0xf2   :  { %1283 = vmatmul.bf16.vlgmr.msrb.gmra.mxu1 %v4581_v55  ;;  %2446 = vmatpush.bf16.msrb.mxu0 %v6023_v0  ;;  %v4592_v0 = vld [vmem:[%s9423_s0 + $0x1b0] sm:$0xf] }
  0xf3   :  { %1356 = vmatmul.bf16.vlgmr.msrb.gmra.mxu2 %v4585_v59  ;;  %2519 = vmatpush.bf16.msrb.mxu1 %v6028_v1  ;;  %v5734_v1 = vld [vmem:[%s9423_s0 + $0x1bc] sm:$0xf0] }
  0xf4   :  { %1429 = vmatmul.bf16.vlgmr.msrb.gmra.mxu3 %v4589_v60  ;;  %2592 = vmatpush.bf16.msrb.mxu2 %v6033_v2  ;;  %v5732_v2 = vld [vmem:[%s9423_s0 + $0x1b4] sm:$0xf]  ;;  %v4593_v48 = vor.u32 %v5734_v1, %v4592_v0 }
  0xf5   :  { %2665 = vmatpush.bf16.msrb.mxu3 %v6038_v3  ;;  %v4594_v3 = vld [vmem:[%s9423_s0 + $0x1c0] sm:$0xf0] }
  0xf6   :  { %v785_v33 = vpop.f32.mrf.mxu2  ;;  %v641_v37 = vpop.f32.mrf.mxu0  ;;  %2447 = vmatpush.bf16.msrb.mxu0 %v6045_v4  ;;  %v4600_v4 = vld [vmem:[%s9423_s0 + $0x1b8] sm:$0xf]  ;;  %v4597_v49 = vor.u32 %v5732_v2, %v4594_v3 }
  0xf7   :  { %v858_v34 = vpop.f32.mrf.mxu3  ;;  %v786_v36 = vadd.f32 %v785_v33, %v713_v62  ;;  %v714_v39 = vpop.f32.mrf.mxu1  ;;  %2520 = vmatpush.bf16.msrb.mxu1 %v6050_v5  ;;  %v5735_v5 = vld [vmem:[%s9423_s0 + $0x1c4] sm:$0xf0]  ;;  %v4632_v3 = vld [vmem:[%s9423_s0 + $0x1f8] sm:$0xf] }
  0xf8   :  { %v715_v41 = vadd.f32 %v714_v39, %v641_v37  ;;  %2593 = vmatpush.bf16.msrb.mxu2 %v6057_v6  ;;  %v5733_v6 = vld [vmem:[%s9423_s0 + $0x1bc] sm:$0xf]  ;;  %v4601_v54 = vor.u32 %v5735_v5, %v4600_v4  ;;  %v5743_v4 = vld [vmem:[%s9423_s0 + $0x204] sm:$0xf0] }
  0xf9   :  { %2666 = vmatpush.bf16.msrb.mxu3 %v6062_v7  ;;  %v6620_v42 = vadd.f32 %v858_v34, %v786_v36  ;;  %v4602_v7 = vld [vmem:[%s9423_s0 + $0x1c8] sm:$0xf0]  ;;  %v5741_v5 = vld [vmem:[%s9423_s0 + $0x1fc] sm:$0xf] }
  0xfa   :  { %2448 = vmatpush.bf16.msrb.mxu0 %v6069_v8  ;;  %v4605_v55 = vor.u32 %v5733_v6, %v4602_v7  ;;  %v4634_v6 = vld [vmem:[%s9423_s0 + $0x208] sm:$0xf0] }
  0xfb   :  { %2521 = vmatpush.bf16.msrb.mxu1 %v6074_v9 }
  0xfc   :  { %2594 = vmatpush.bf16.msrb.mxu2 %v6081_v10 }
  0xfd   :  { %2667 = vmatpush.bf16.msrb.mxu3 %v6086_v11 }
  0xfe   :  { %v787_v45 = vpop.f32.mrf.mxu2  ;;  %v644_v51 = vpop.f32.mrf.mxu0  ;;  %2449 = vmatpush.bf16.msrb.mxu0 %v6093_v12 }
  0xff   :  { %v860_v46 = vpop.f32.mrf.mxu3  ;;  %v788_v50 = vadd.f32 %v787_v45, %v715_v41  ;;  %v717_v52 = vpop.f32.mrf.mxu1  ;;  %2522 = vmatpush.bf16.msrb.mxu1 %v6098_v13 }
 0x100   :  { %v718_v56 = vadd.f32 %v717_v52, %v644_v51  ;;  %2595 = vmatpush.bf16.msrb.mxu2 %v6105_v14  ;;  %v4633_v52 = vor.u32 %v5743_v4, %v4632_v3  ;;  %v5750_v3 = vld [vmem:[%s9423_s0 + $0x23c] sm:$0xf0]  ;;  %v5748_v4 = vld [vmem:[%s9423_s0 + $0x234] sm:$0xf] }
 0x101   :  { %2668 = vmatpush.bf16.msrb.mxu3 %v6110_v15  ;;  %v6654_v10 = vadd.f32 %v860_v46, %v788_v50  ;;  %1215 = vmatmul.bf16.gmra.mxu0 %v4593_v48 }
 0x102   :  { %1288 = vmatmul.bf16.gmra.mxu1 %v4597_v49  ;;  %2450 = vmatpush.bf16.msrb.mxu0 %v6115_v16  ;;  %v4608_v16 = vld [vmem:[%s9423_s0 + $0x1d0] sm:$0xf] }
 0x103   :  { %1361 = vmatmul.bf16.gmra.mxu2 %v4601_v54  ;;  %2523 = vmatpush.bf16.msrb.mxu1 %v6120_v17  ;;  %v5738_v17 = vld [vmem:[%s9423_s0 + $0x1dc] sm:$0xf0]  ;;  %v4637_v54 = vor.u32 %v5741_v5, %v4634_v6  ;;  %v4658_v5 = vld [vmem:[%s9423_s0 + $0x240] sm:$0xf0]  ;;  %v4664_v6 = vld [vmem:[%s9423_s0 + $0x238] sm:$0xf] }
 0x104   :  { %1434 = vmatmul.bf16.gmra.mxu3 %v4605_v55  ;;  %2596 = vmatpush.bf16.msrb.mxu2 %v6129_v18  ;;  %v5736_v18 = vld [vmem:[%s9423_s0 + $0x1d4] sm:$0xf]  ;;  %v4609_v59 = vor.u32 %v5738_v17, %v4608_v16  ;;  %v4640_v17 = vld [vmem:[%s9423_s0 + $0x210] sm:$0xf] }
 0x105   :  { %2669 = vmatpush.bf16.msrb.mxu3 %v6134_v19  ;;  %v4610_v19 = vld [vmem:[%s9423_s0 + $0x1e0] sm:$0xf0] }
 0x106   :  { %v790_v8 = vpop.f32.mrf.mxu2  ;;  %v646_v14 = vpop.f32.mrf.mxu0  ;;  %2451 = vmatpush.bf16.msrb.mxu0 %v6141_v20  ;;  %v4616_v20 = vld [vmem:[%s9423_s0 + $0x1d8] sm:$0xf]  ;;  %v4613_v60 = vor.u32 %v5736_v18, %v4610_v19  ;;  %v5746_v18 = vld [vmem:[%s9423_s0 + $0x21c] sm:$0xf0]  ;;  %v5744_v19 = vld [vmem:[%s9423_s0 + $0x214] sm:$0xf] }
 0x107   :  { %v863_v9 = vpop.f32.mrf.mxu3  ;;  %v791_v11 = vadd.f32 %v790_v8, %v718_v56  ;;  %v719_v15 = vpop.f32.mrf.mxu1  ;;  %2524 = vmatpush.bf16.msrb.mxu1 %v6146_v21  ;;  %v5739_v21 = vld [vmem:[%s9423_s0 + $0x1e4] sm:$0xf0] }
 0x108   :  { %v720_v12 = vadd.f32 %v719_v15, %v646_v14  ;;  %2597 = vmatpush.bf16.msrb.mxu2 %v6153_v22  ;;  %v5737_v22 = vld [vmem:[%s9423_s0 + $0x1dc] sm:$0xf]  ;;  %v4617_v36 = vor.u32 %v5739_v21, %v4616_v20  ;;  %v4642_v20 = vld [vmem:[%s9423_s0 + $0x220] sm:$0xf0]  ;;  %v4648_v21 = vld [vmem:[%s9423_s0 + $0x218] sm:$0xf] }
 0x109   :  { %2670 = vmatpush.bf16.msrb.mxu3 %v6158_v23  ;;  %v6664_v13 = vadd.f32 %v863_v9, %v791_v11  ;;  %v4618_v23 = vld [vmem:[%s9423_s0 + $0x1e8] sm:$0xf0] }
 0x10a   :  { %2452 = vmatpush.bf16.msrb.mxu0 %v6165_v24  ;;  %v4621_v37 = vor.u32 %v5737_v22, %v4618_v23  ;;  %v5747_v22 = vld [vmem:[%s9423_s0 + $0x224] sm:$0xf0]  ;;  %v5745_v23 = vld [vmem:[%s9423_s0 + $0x21c] sm:$0xf] }
 0x10b   :  { %2525 = vmatpush.bf16.msrb.mxu1 %v6170_v25 }
 0x10c   :  { %2598 = vmatpush.bf16.msrb.mxu2 %v6177_v26 }
 0x10d   :  { %2671 = vmatpush.bf16.msrb.mxu3 %v6182_v27 }
 0x10e   :  { %v792_v57 = vpop.f32.mrf.mxu2  ;;  %v649_v33 = vpop.f32.mrf.mxu0  ;;  %2453 = vmatpush.bf16.msrb.mxu0 %v6187_v28  ;;  %v5742_v28 = vld [vmem:[%s9423_s0 + $0x1fc] sm:$0xf0] }
 0x10f   :  { %v865_v58 = vpop.f32.mrf.mxu3  ;;  %v793_v62 = vadd.f32 %v792_v57, %v720_v12  ;;  %v722_v34 = vpop.f32.mrf.mxu1  ;;  %2526 = vmatpush.bf16.msrb.mxu1 %v6192_v29  ;;  %v5740_v29 = vld [vmem:[%s9423_s0 + $0x1f4] sm:$0xf]  ;;  %v4650_v57 = vld [vmem:[%s9423_s0 + $0x228] sm:$0xf0] }
 0x110   :  { %v723_v39 = vadd.f32 %v722_v34, %v649_v33  ;;  %2599 = vmatpush.bf16.msrb.mxu2 %v6197_v30  ;;  %v4624_v30 = vld [vmem:[%s9423_s0 + $0x1f0] sm:$0xf] }
 0x111   :  { %2672 = vmatpush.bf16.msrb.mxu3 %v6202_v31  ;;  %v6698_v26 = vadd.f32 %v865_v58, %v793_v62  ;;  %1220 = vmatmul.bf16.gmra.mxu0 %v4609_v59  ;;  %v4626_v31 = vld [vmem:[%s9423_s0 + $0x200] sm:$0xf0]  ;;  %v4625_v46 = vor.u32 %v5742_v28, %v4624_v30  ;;  %v4645_v62 = vor.u32 %v5744_v19, %v4642_v20 }
 0x112   :  { %1293 = vmatmul.bf16.gmra.mxu1 %v4613_v60  ;;  %v4629_v48 = vor.u32 %v5740_v29, %v4626_v31  ;;  %v4641_v60 = vor.u32 %v5746_v18, %v4640_v17  ;;  %v4656_v31 = vld [vmem:[%s9423_s0 + $0x230] sm:$0xf] }
 0x113   :  { %1366 = vmatmul.bf16.gmra.mxu2 %v4617_v36 }
 0x114   :  { %1439 = vmatmul.bf16.gmra.mxu3 %v4621_v37  ;;  %v4649_v37 = vor.u32 %v5747_v22, %v4648_v21  ;;  %v4672_v22 = vld [vmem:[%s9423_s0 + $0x250] sm:$0xf] }
 0x116   :  { %v795_v24 = vpop.f32.mrf.mxu2  ;;  %v651_v41 = vpop.f32.mrf.mxu0 }
 0x117   :  { %v868_v25 = vpop.f32.mrf.mxu3  ;;  %v796_v27 = vadd.f32 %v795_v24, %v723_v39  ;;  %v724_v0 = vpop.f32.mrf.mxu1  ;;  %v4653_v39 = vor.u32 %v5745_v23, %v4650_v57  ;;  %v5754_v23 = vld [vmem:[%s9423_s0 + $0x25c] sm:$0xf0]  ;;  %v5752_v57 = vld [vmem:[%s9423_s0 + $0x254] sm:$0xf] }
 0x118   :  { %v725_v1 = vadd.f32 %v724_v0, %v651_v41 }
 0x119   :  { %v6702_v2 = vadd.f32 %v868_v25, %v796_v27 }
 0x11e   :  { %v797_v7 = vpop.f32.mrf.mxu2  ;;  %v654_v50 = vpop.f32.mrf.mxu0 }
 0x11f   :  { %v870_v45 = vpop.f32.mrf.mxu3  ;;  %v798_v49 = vadd.f32 %v797_v7, %v725_v1  ;;  %v727_v51 = vpop.f32.mrf.mxu1  ;;  %v5751_v7 = vld [vmem:[%s9423_s0 + $0x244] sm:$0xf0] }
 0x120   :  { %v728_v55 = vadd.f32 %v727_v51, %v654_v50  ;;  %v4657_v50 = vor.u32 %v5750_v3, %v4656_v31  ;;  %v4661_v51 = vor.u32 %v5748_v4, %v4658_v5 }
 0x121   :  { %v6728_v56 = vadd.f32 %v870_v45, %v798_v49  ;;  %1225 = vmatmul.bf16.gmra.mxu0 %v4625_v46  ;;  %v5749_v45 = vld [vmem:[%s9423_s0 + $0x23c] sm:$0xf]  ;;  %v4666_v46 = vld [vmem:[%s9423_s0 + $0x248] sm:$0xf0] }
 0x122   :  { %1298 = vmatmul.bf16.gmra.mxu1 %v4629_v48 }
 0x123   :  { %1371 = vmatmul.bf16.gmra.mxu2 %v4633_v52 }
 0x124   :  { %1444 = vmatmul.bf16.gmra.mxu3 %v4637_v54 }
 0x126   :  { %v800_v8 = vpop.f32.mrf.mxu2  ;;  %v656_v14 = vpop.f32.mrf.mxu0 }
 0x127   :  { %v873_v9 = vpop.f32.mrf.mxu3  ;;  %v801_v11 = vadd.f32 %v800_v8, %v728_v55  ;;  %v729_v15 = vpop.f32.mrf.mxu1  ;;  %v4665_v8 = vor.u32 %v5751_v7, %v4664_v6 }
 0x128   :  { %v730_v12 = vadd.f32 %v729_v15, %v656_v14 }
 0x129   :  { %v6730_v16 = vadd.f32 %v873_v9, %v801_v11  ;;  %v4669_v9 = vor.u32 %v5749_v45, %v4666_v46  ;;  %v4688_v46 = vld [vmem:[%s9423_s0 + $0x270] sm:$0xf] }
 0x12b   :  { %9447 = vst [vmem:[#allocation9_spill] sm:$0xff] %v6730_v16 }
 0x12e   :  { %v802_v58 = vpop.f32.mrf.mxu2  ;;  %v659_v34 = vpop.f32.mrf.mxu0 }
 0x12f   :  { %v875_v59 = vpop.f32.mrf.mxu3  ;;  %v803_v33 = vadd.f32 %v802_v58, %v730_v12  ;;  %v732_v36 = vpop.f32.mrf.mxu1  ;;  %v4674_v58 = vld [vmem:[%s9423_s0 + $0x260] sm:$0xf0] }
 0x130   :  { %v733_v24 = vadd.f32 %v732_v36, %v659_v34 }
 0x131   :  { %v6756_v25 = vadd.f32 %v875_v59, %v803_v33  ;;  %1230 = vmatmul.bf16.gmra.mxu0 %v4641_v60  ;;  %v4680_v59 = vld [vmem:[%s9423_s0 + $0x258] sm:$0xf]  ;;  %v5755_v60 = vld [vmem:[%s9423_s0 + $0x264] sm:$0xf0]  ;;  %v4682_v33 = vld [vmem:[%s9423_s0 + $0x268] sm:$0xf0] }
 0x132   :  { %1303 = vmatmul.bf16.gmra.mxu1 %v4645_v62  ;;  %v5753_v62 = vld [vmem:[%s9423_s0 + $0x25c] sm:$0xf] }
 0x133   :  { %1376 = vmatmul.bf16.gmra.mxu2 %v4649_v37  ;;  %v4673_v37 = vor.u32 %v5754_v23, %v4672_v22 }
 0x134   :  { %1449 = vmatmul.bf16.gmra.mxu3 %v4653_v39  ;;  %v4677_v39 = vor.u32 %v5752_v57, %v4674_v58 }
 0x136   :  { %v805_v27 = vpop.f32.mrf.mxu2  ;;  %v661_v1 = vpop.f32.mrf.mxu0 }
 0x137   :  { %v878_v41 = vpop.f32.mrf.mxu3  ;;  %v806_v0 = vadd.f32 %v805_v27, %v733_v24  ;;  %v734_v30 = vpop.f32.mrf.mxu1 }
 0x138   :  { %v735_v28 = vadd.f32 %v734_v30, %v661_v1  ;;  %v4685_v1 = vor.u32 %v5753_v62, %v4682_v33 }
 0x139   :  { %v6758_v29 = vadd.f32 %v878_v41, %v806_v0  ;;  %v4681_v0 = vor.u32 %v5755_v60, %v4680_v59 }
 0x13b   :  { %9448 = vst [vmem:[#allocation10_spill] sm:$0xff] %v6758_v29 }
 0x13e   :  { %v807_v48 = vpop.f32.mrf.mxu2  ;;  %v664_v54 = vpop.f32.mrf.mxu0 }
 0x13f   :  { %v880_v49 = vpop.f32.mrf.mxu3  ;;  %v808_v52 = vadd.f32 %v807_v48, %v735_v28  ;;  %v737_v55 = vpop.f32.mrf.mxu1  ;;  %v5758_v48 = vld [vmem:[%s9423_s0 + $0x27c] sm:$0xf0] }
 0x140   :  { %v738_v11 = vadd.f32 %v737_v55, %v664_v54  ;;  %v5757_v54 = vld [vmem:[%s9423_s0 + $0x27c] sm:$0xf]  ;;  %v4698_v55 = vld [vmem:[%s9423_s0 + $0x288] sm:$0xf0] }
 0x141   :  { %v6784_v14 = vadd.f32 %v880_v49, %v808_v52  ;;  %1235 = vmatmul.bf16.gmra.mxu0 %v4657_v50  ;;  %v5756_v49 = vld [vmem:[%s9423_s0 + $0x274] sm:$0xf]  ;;  %v4690_v50 = vld [vmem:[%s9423_s0 + $0x280] sm:$0xf0]  ;;  %v5759_v52 = vld [vmem:[%s9423_s0 + $0x284] sm:$0xf0] }
 0x142   :  { %1308 = vmatmul.bf16.gmra.mxu1 %v4661_v51  ;;  %v4696_v51 = vld [vmem:[%s9423_s0 + $0x278] sm:$0xf] }
 0x143   :  { %1381 = vmatmul.bf16.gmra.mxu2 %v4665_v8 }
 0x144   :  { %1454 = vmatmul.bf16.gmra.mxu3 %v4669_v9 }
 0x146   :  { %v810_v15 = vpop.f32.mrf.mxu2  ;;  %v666_v18 = vpop.f32.mrf.mxu0 }
 0x147   :  { %v883_v12 = vpop.f32.mrf.mxu3  ;;  %v811_v17 = vadd.f32 %v810_v15, %v738_v11  ;;  %v739_v19 = vpop.f32.mrf.mxu1  ;;  %v4689_v11 = vor.u32 %v5758_v48, %v4688_v46  ;;  %v4693_v15 = vor.u32 %v5756_v49, %v4690_v50 }
 0x148   :  { %v740_v20 = vadd.f32 %v739_v19, %v666_v18  ;;  %v4697_v19 = vor.u32 %v5759_v52, %v4696_v51 }
 0x149   :  { %v6786_v21 = vadd.f32 %v883_v12, %v811_v17 }
 0x14b   :  { %9449 = vst [vmem:[#allocation11_spill] sm:$0xff] %v6786_v21 }
 0x14e   :  { %v812_v34 = vpop.f32.mrf.mxu2  ;;  %v669_v27 = vpop.f32.mrf.mxu0 }
 0x14f   :  { %v885_v36 = vpop.f32.mrf.mxu3  ;;  %v813_v24 = vadd.f32 %v812_v34, %v740_v20  ;;  %v742_v41 = vpop.f32.mrf.mxu1  ;;  %v4701_v20 = vor.u32 %v5757_v54, %v4698_v55  ;;  %v4704_v34 = vld [vmem:[%s9423_s0 + $0x290] sm:$0xf] }
 0x150   :  { %v743_v30 = vadd.f32 %v742_v41, %v669_v27  ;;  %v5763_v27 = vld [vmem:[%s9423_s0 + $0x2a4] sm:$0xf0]  ;;  %v5761_v41 = vld [vmem:[%s9423_s0 + $0x29c] sm:$0xf] }
 0x151   :  { %v6812_v28 = vadd.f32 %v885_v36, %v813_v24  ;;  %1240 = vmatmul.bf16.gmra.mxu0 %v4673_v37  ;;  %v5762_v36 = vld [vmem:[%s9423_s0 + $0x29c] sm:$0xf0]  ;;  %v5760_v37 = vld [vmem:[%s9423_s0 + $0x294] sm:$0xf]  ;;  %v4712_v24 = vld [vmem:[%s9423_s0 + $0x298] sm:$0xf] }
 0x152   :  { %1313 = vmatmul.bf16.gmra.mxu1 %v4677_v39  ;;  %v4706_v39 = vld [vmem:[%s9423_s0 + $0x2a0] sm:$0xf0] }
 0x153   :  { %1386 = vmatmul.bf16.gmra.mxu2 %v4681_v0  ;;  %v4714_v0 = vld [vmem:[%s9423_s0 + $0x2a8] sm:$0xf0] }
 0x154   :  { %1459 = vmatmul.bf16.gmra.mxu3 %v4685_v1 }
 0x156   :  { %v815_v31 = vpop.f32.mrf.mxu2  ;;  %v671_v5 = vpop.f32.mrf.mxu0 }
 0x157   :  { %v888_v3 = vpop.f32.mrf.mxu3  ;;  %v816_v4 = vadd.f32 %v815_v31, %v743_v30  ;;  %v744_v6 = vpop.f32.mrf.mxu1  ;;  %v4705_v31 = vor.u32 %v5762_v36, %v4704_v34 }
 0x158   :  { %v745_v7 = vadd.f32 %v744_v6, %v671_v5  ;;  %v4713_v6 = vor.u32 %v5763_v27, %v4712_v24 }
 0x159   :  { %v6814_v45 = vadd.f32 %v888_v3, %v816_v4  ;;  %v4709_v3 = vor.u32 %v5760_v37, %v4706_v39 }
 0x15b   :  { %9450 = vst [vmem:[#allocation12_spill] sm:$0xff] %v6814_v45 }
 0x15e   :  { %v817_v8 = vpop.f32.mrf.mxu2  ;;  %v674_v17 = vpop.f32.mrf.mxu0 }
 0x15f   :  { %v890_v9 = vpop.f32.mrf.mxu3  ;;  %v818_v12 = vadd.f32 %v817_v8, %v745_v7  ;;  %v747_v18 = vpop.f32.mrf.mxu1  ;;  %v4717_v7 = vor.u32 %v5761_v41, %v4714_v0  ;;  %v4720_v8 = vld [vmem:[%s9423_s0 + $0x2b0] sm:$0xf] }
 0x160   :  { %v748_v22 = vadd.f32 %v747_v18, %v674_v17  ;;  %v4728_v17 = vld [vmem:[%s9423_s0 + $0x2b8] sm:$0xf]  ;;  %v5767_v18 = vld [vmem:[%s9423_s0 + $0x2c4] sm:$0xf0] }
 0x161   :  { %v6840_v23 = vadd.f32 %v890_v9, %v818_v12  ;;  %1245 = vmatmul.bf16.gmra.mxu0 %v4689_v11  ;;  %v5766_v9 = vld [vmem:[%s9423_s0 + $0x2bc] sm:$0xf0]  ;;  %v4722_v12 = vld [vmem:[%s9423_s0 + $0x2c0] sm:$0xf0]  ;;  %v4729_v36 = vor.u32 %v5767_v18, %v4728_v17 }
 0x162   :  { %1318 = vmatmul.bf16.gmra.mxu1 %v4693_v15  ;;  %v5764_v15 = vld [vmem:[%s9423_s0 + $0x2b4] sm:$0xf] }
 0x163   :  { %1391 = vmatmul.bf16.gmra.mxu2 %v4697_v19  ;;  %v5765_v19 = vld [vmem:[%s9423_s0 + $0x2bc] sm:$0xf] }
 0x164   :  { %1464 = vmatmul.bf16.gmra.mxu3 %v4701_v20  ;;  %v4730_v20 = vld [vmem:[%s9423_s0 + $0x2c8] sm:$0xf0] }
 0x165   :  { %v4733_v37 = vor.u32 %v5765_v19, %v4730_v20 }
 0x166   :  { %v820_v57 = vpop.f32.mrf.mxu2  ;;  %v676_v60 = vpop.f32.mrf.mxu0 }
 0x167   :  { %v893_v58 = vpop.f32.mrf.mxu3  ;;  %v821_v59 = vadd.f32 %v820_v57, %v748_v22  ;;  %v749_v62 = vpop.f32.mrf.mxu1 }
 0x169   :  { %v6842_v33 = vadd.f32 %v893_v58, %v821_v59  ;;  %v4721_v58 = vor.u32 %v5766_v9, %v4720_v8  ;;  %v4725_v59 = vor.u32 %v5764_v15, %v4722_v12 }
 0x16b   :  { %9451 = vst [vmem:[#allocation13_spill] sm:$0xff] %v6842_v33 }
 0x16e   :  { %v822_v1 = vpop.f32.mrf.mxu2  ;;  %v1211_v4 = vpop.f32.mrf.mxu0 }
 0x16f   :  { %v895_v30 = vpop.f32.mrf.mxu3  ;;  %v1284_v5 = vpop.f32.mrf.mxu1 }
 0x170   :  { %v1285_v46 = vadd.f32 %v1284_v5, %v1211_v4  ;;  %v4736_v5 = vld [vmem:[%s9423_s0 + $0x2d0] sm:$0xf] }
 0x171   :  { %1250 = vmatmul.bf16.gmra.mxu0 %v4705_v31 }
 0x172   :  { %1323 = vmatmul.bf16.gmra.mxu1 %v4709_v3 }
 0x173   :  { %1396 = vmatmul.bf16.gmra.mxu2 %v4713_v6  ;;  %v5770_v6 = vld [vmem:[%s9423_s0 + $0x2dc] sm:$0xf0] }
 0x174   :  { %1469 = vmatmul.bf16.gmra.mxu3 %v4717_v7  ;;  %v4737_v9 = vor.u32 %v5770_v6, %v4736_v5  ;;  %v5775_v5 = vld [vmem:[%s9423_s0 + $0x304] sm:$0xf0]  ;;  %v5773_v6 = vld [vmem:[%s9423_s0 + $0x2fc] sm:$0xf] }
 0x176   :  { %v1357_v48 = vpop.f32.mrf.mxu2  ;;  %v1213_v51 = vpop.f32.mrf.mxu0 }
 0x177   :  { %v1430_v49 = vpop.f32.mrf.mxu3  ;;  %v1358_v50 = vadd.f32 %v1357_v48, %v1285_v46  ;;  %v1286_v52 = vpop.f32.mrf.mxu1  ;;  %v5768_v46 = vld [vmem:[%s9423_s0 + $0x2d4] sm:$0xf]  ;;  %v4738_v48 = vld [vmem:[%s9423_s0 + $0x2e0] sm:$0xf0] }
 0x178   :  { %v1287_v54 = vadd.f32 %v1286_v52, %v1213_v51  ;;  %v5769_v51 = vld [vmem:[%s9423_s0 + $0x2dc] sm:$0xf]  ;;  %v4746_v52 = vld [vmem:[%s9423_s0 + $0x2e8] sm:$0xf0]  ;;  %v4741_v15 = vor.u32 %v5768_v46, %v4738_v48 }
 0x179   :  { %v6868_v55 = vadd.f32 %v1430_v49, %v1358_v50  ;;  %v4744_v49 = vld [vmem:[%s9423_s0 + $0x2d8] sm:$0xf]  ;;  %v5771_v50 = vld [vmem:[%s9423_s0 + $0x2e4] sm:$0xf0]  ;;  %v4749_v20 = vor.u32 %v5769_v51, %v4746_v52  ;;  %v4762_v46 = vld [vmem:[%s9423_s0 + $0x308] sm:$0xf0] }
 0x17a   :  { %v4745_v19 = vor.u32 %v5771_v50, %v4744_v49 }
 0x17e   :  { %v1359_v22 = vpop.f32.mrf.mxu2  ;;  %v1216_v62 = vpop.f32.mrf.mxu0 }
 0x17f   :  { %v1432_v57 = vpop.f32.mrf.mxu3  ;;  %v1360_v60 = vadd.f32 %v1359_v22, %v1287_v54  ;;  %v1289_v34 = vpop.f32.mrf.mxu1 }
 0x180   :  { %v1290_v39 = vadd.f32 %v1289_v34, %v1216_v62 }
 0x181   :  { %v6896_v24 = vadd.f32 %v1432_v57, %v1360_v60  ;;  %1255 = vmatmul.bf16.gmra.mxu0 %v4721_v58 }
 0x182   :  { %1328 = vmatmul.bf16.gmra.mxu1 %v4725_v59 }
 0x183   :  { %1401 = vmatmul.bf16.gmra.mxu2 %v4729_v36 }
 0x184   :  { %1474 = vmatmul.bf16.gmra.mxu3 %v4733_v37 }
 0x186   :  { %v1362_v41 = vpop.f32.mrf.mxu2  ;;  %v1218_v30 = vpop.f32.mrf.mxu0 }
 0x187   :  { %v1435_v0 = vpop.f32.mrf.mxu3  ;;  %v1363_v1 = vadd.f32 %v1362_v41, %v1290_v39  ;;  %v1291_v31 = vpop.f32.mrf.mxu1  ;;  %v4752_v41 = vld [vmem:[%s9423_s0 + $0x2f0] sm:$0xf] }
 0x188   :  { %v1292_v3 = vadd.f32 %v1291_v31, %v1218_v30  ;;  %v5772_v30 = vld [vmem:[%s9423_s0 + $0x2f4] sm:$0xf]  ;;  %v4754_v31 = vld [vmem:[%s9423_s0 + $0x300] sm:$0xf0] }
 0x189   :  { %v6900_v4 = vadd.f32 %v1435_v0, %v1363_v1  ;;  %v5774_v0 = vld [vmem:[%s9423_s0 + $0x2fc] sm:$0xf0]  ;;  %v4757_v51 = vor.u32 %v5772_v30, %v4754_v31 }
 0x18a   :  { %v4753_v50 = vor.u32 %v5774_v0, %v4752_v41 }
 0x18e   :  { %v1364_v54 = vpop.f32.mrf.mxu2  ;;  %v1221_v17 = vpop.f32.mrf.mxu0 }
 0x18f   :  { %v1437_v8 = vpop.f32.mrf.mxu3  ;;  %v1365_v12 = vadd.f32 %v1364_v54, %v1292_v3  ;;  %v1294_v18 = vpop.f32.mrf.mxu1  ;;  %v4760_v3 = vld [vmem:[%s9423_s0 + $0x2f8] sm:$0xf] }
 0x190   :  { %v1295_v22 = vadd.f32 %v1294_v18, %v1221_v17 }
 0x191   :  { %v6928_v57 = vadd.f32 %v1437_v8, %v1365_v12  ;;  %1260 = vmatmul.bf16.gmra.mxu0 %v4737_v9  ;;  %v4761_v9 = vor.u32 %v5775_v5, %v4760_v3 }
 0x192   :  { %1333 = vmatmul.bf16.gmra.mxu1 %v4741_v15  ;;  %v4765_v15 = vor.u32 %v5773_v6, %v4762_v46 }
 0x193   :  { %1406 = vmatmul.bf16.gmra.mxu2 %v4745_v19 }
 0x194   :  { %1479 = vmatmul.bf16.gmra.mxu3 %v4749_v20 }
 0x196   :  { %v1367_v59 = vpop.f32.mrf.mxu2  ;;  %v1223_v34 = vpop.f32.mrf.mxu0 }
 0x197   :  { %v1440_v60 = vpop.f32.mrf.mxu3  ;;  %v1368_v62 = vadd.f32 %v1367_v59, %v1295_v22  ;;  %v1296_v36 = vpop.f32.mrf.mxu1 }
 0x198   :  { %v1297_v37 = vadd.f32 %v1296_v36, %v1223_v34  ;;  %v4573_v36 = vld [vmem:[%s9423_s0 + $0x318] sm:$0xff] }
 0x199   :  { %v6932_v39 = vadd.f32 %v1440_v60, %v1368_v62  ;;  %v4572_v62 = vld [vmem:[%s9423_s0 + $0x310] sm:$0xff]  ;;  %v1096_v31 = vunpack.c.l.b16 %v4573_v36  ;;  %v1097_v3 = vunpack.c.h.b16 %v4573_v36 }
 0x19a   :  { %v1094_v41 = vunpack.c.l.b16 %v4572_v62  ;;  %v1095_v0 = vunpack.c.h.b16 %v4572_v62  ;;  %v5778_v36 = vld [vmem:[%s9423_s0 + $0x32c] sm:$0xf0] }
 0x19c   :  { %v1146_v46 = vpack.c.b16 %v1094_v41, %v1094_v41 }
 0x19e   :  { %v1369_v48 = vpop.f32.mrf.mxu2  ;;  %v1226_v54 = vpop.f32.mrf.mxu0 }
 0x19f   :  { %v1442_v49 = vpop.f32.mrf.mxu3  ;;  %v1370_v52 = vadd.f32 %v1369_v48, %v1297_v37  ;;  %v1299_v8 = vpop.f32.mrf.mxu1  ;;  %v1147_v48 = vpack.c.b16 %v1095_v0, %v1095_v0  ;;  %v5776_v0 = vld [vmem:[%s9423_s0 + $0x324] sm:$0xf] }
 0x1a0   :  { %v1300_v12 = vadd.f32 %v1299_v8, %v1226_v54  ;;  %v1149_v54 = vpack.c.b16 %v1097_v3, %v1097_v3  ;;  %v4826_v3 = vld [vmem:[%s9423_s0 + $0x328] sm:$0xf] }
 0x1a1   :  { %v6960_v17 = vadd.f32 %v1442_v49, %v1370_v52  ;;  %1265 = vmatmul.bf16.gmra.mxu0 %v4753_v50  ;;  %v1148_v52 = vpack.c.b16 %v1096_v31, %v1096_v31  ;;  %v4820_v31 = vld [vmem:[%s9423_s0 + $0x330] sm:$0xf0] }
 0x1a2   :  { %1338 = vmatmul.bf16.gmra.mxu1 %v4757_v51 }
 0x1a3   :  { %1411 = vmatmul.bf16.gmra.mxu2 %v4761_v9 }
 0x1a4   :  { %1484 = vmatmul.bf16.gmra.mxu3 %v4765_v15 }
 0x1a6   :  { %v1372_v19 = vpop.f32.mrf.mxu2  ;;  %v1228_v59 = vpop.f32.mrf.mxu0 }
 0x1a7   :  { %v1445_v20 = vpop.f32.mrf.mxu3  ;;  %v1373_v22 = vadd.f32 %v1372_v19, %v1300_v12  ;;  %v1301_v60 = vpop.f32.mrf.mxu1 }
 0x1a8   :  { %v1302_v34 = vadd.f32 %v1301_v60, %v1228_v59 }
 0x1a9   :  { %v6970_v37 = vadd.f32 %v1445_v20, %v1373_v22 }
 0x1ae   :  { %v1374_v5 = vpop.f32.mrf.mxu2  ;;  %v1231_v50 = vpop.f32.mrf.mxu0 }
 0x1af   :  { %v1447_v6 = vpop.f32.mrf.mxu3  ;;  %v1375_v49 = vadd.f32 %v1374_v5, %v1302_v34  ;;  %v1304_v51 = vpop.f32.mrf.mxu1  ;;  %v4818_v34 = vld [vmem:[%s9423_s0 + $0x320] sm:$0xf]  ;;  %v5779_v5 = vld [vmem:[%s9423_s0 + $0x334] sm:$0xf0] }
 0x1b0   :  { %v1305_v8 = vadd.f32 %v1304_v51, %v1231_v50  ;;  %v4819_v50 = vor.u32 %v5778_v36, %v4818_v34  ;;  %v4823_v51 = vor.u32 %v5776_v0, %v4820_v31  ;;  %v4834_v31 = vld [vmem:[%s9423_s0 + $0x340] sm:$0xf] }
 0x1b1   :  { %v6974_v9 = vadd.f32 %v1447_v6, %v1375_v49  ;;  %1270 = vmatmul.bf16.gmra.mxu0 %v1146_v46  ;;  %v5777_v6 = vld [vmem:[%s9423_s0 + $0x32c] sm:$0xf]  ;;  %v4828_v46 = vld [vmem:[%s9423_s0 + $0x338] sm:$0xf0] }
 0x1b2   :  { %1343 = vmatmul.bf16.gmra.mxu1 %v1147_v48 }
 0x1b3   :  { %1416 = vmatmul.bf16.gmra.mxu2 %v1148_v52 }
 0x1b4   :  { %1489 = vmatmul.bf16.gmra.mxu3 %v1149_v54 }
 0x1b6   :  { %v1377_v12 = vpop.f32.mrf.mxu2  ;;  %v1233_v22 = vpop.f32.mrf.mxu0 }
 0x1b7   :  { %v1450_v19 = vpop.f32.mrf.mxu3  ;;  %v1378_v20 = vadd.f32 %v1377_v12, %v1305_v8  ;;  %v1306_v59 = vpop.f32.mrf.mxu1  ;;  %v4827_v12 = vor.u32 %v5779_v5, %v4826_v3  ;;  %v5782_v3 = vld [vmem:[%s9423_s0 + $0x34c] sm:$0xf0] }
 0x1b8   :  { %v1307_v60 = vadd.f32 %v1306_v59, %v1233_v22 }
 0x1b9   :  { %v6978_v62 = vadd.f32 %v1450_v19, %v1378_v20  ;;  %v4831_v19 = vor.u32 %v5777_v6, %v4828_v46  ;;  %v5783_v6 = vld [vmem:[%s9423_s0 + $0x354] sm:$0xf0]  ;;  %v5781_v46 = vld [vmem:[%s9423_s0 + $0x34c] sm:$0xf] }
 0x1be   :  { %v1379_v48 = vpop.f32.mrf.mxu2  ;;  %v1236_v54 = vpop.f32.mrf.mxu0 }
 0x1bf   :  { %v1452_v49 = vpop.f32.mrf.mxu3  ;;  %v1380_v52 = vadd.f32 %v1379_v48, %v1307_v60  ;;  %v1309_v8 = vpop.f32.mrf.mxu1  ;;  %v4844_v48 = vld [vmem:[%s9423_s0 + $0x358] sm:$0xf0] }
 0x1c0   :  { %v1310_v20 = vadd.f32 %v1309_v8, %v1236_v54 }
 0x1c1   :  { %v7006_v22 = vadd.f32 %v1452_v49, %v1380_v52  ;;  %1832 = vmatmul.bf16.vlgmr.msra.gmra.mxu0 %v4819_v50 }
 0x1c2   :  { %1905 = vmatmul.bf16.vlgmr.msra.gmra.mxu1 %v4823_v51  ;;  %v4835_v51 = vor.u32 %v5782_v3, %v4834_v31 }
 0x1c3   :  { %1978 = vmatmul.bf16.vlgmr.msra.gmra.mxu2 %v4827_v12 }
 0x1c4   :  { %2051 = vmatmul.bf16.vlgmr.msra.gmra.mxu3 %v4831_v19 }
 0x1c6   :  { %v1382_v41 = vpop.f32.mrf.mxu2  ;;  %v1238_v34 = vpop.f32.mrf.mxu0 }
 0x1c7   :  { %v1455_v15 = vpop.f32.mrf.mxu3  ;;  %v1383_v30 = vadd.f32 %v1382_v41, %v1310_v20  ;;  %v1311_v36 = vpop.f32.mrf.mxu1  ;;  %v5780_v41 = vld [vmem:[%s9423_s0 + $0x344] sm:$0xf]  ;;  %v4847_v20 = vor.u32 %v5781_v46, %v4844_v48  ;;  %v5787_v46 = vld [vmem:[%s9423_s0 + $0x374] sm:$0xf0]  ;;  %v5785_v48 = vld [vmem:[%s9423_s0 + $0x36c] sm:$0xf] }
 0x1c8   :  { %v1312_v60 = vadd.f32 %v1311_v36, %v1238_v34 }
 0x1c9   :  { %v7010_v0 = vadd.f32 %v1455_v15, %v1383_v30  ;;  %v4836_v30 = vld [vmem:[%s9423_s0 + $0x350] sm:$0xf0]  ;;  %v4842_v15 = vld [vmem:[%s9423_s0 + $0x348] sm:$0xf] }
 0x1ca   :  { %v4839_v52 = vor.u32 %v5780_v41, %v4836_v30  ;;  %v4843_v19 = vor.u32 %v5783_v6, %v4842_v15  ;;  %v4850_v30 = vld [vmem:[%s9423_s0 + $0x360] sm:$0xf]  ;;  %v5786_v15 = vld [vmem:[%s9423_s0 + $0x36c] sm:$0xf0] }
 0x1ce   :  { %v1384_v49 = vpop.f32.mrf.mxu2  ;;  %v1241_v8 = vpop.f32.mrf.mxu0 }
 0x1cf   :  { %v1457_v50 = vpop.f32.mrf.mxu3  ;;  %v1385_v54 = vadd.f32 %v1384_v49, %v1312_v60  ;;  %v1314_v12 = vpop.f32.mrf.mxu1  ;;  %v4860_v49 = vld [vmem:[%s9423_s0 + $0x378] sm:$0xf0] }
 0x1d0   :  { %v1315_v34 = vadd.f32 %v1314_v12, %v1241_v8 }
 0x1d1   :  { %v7038_v36 = vadd.f32 %v1457_v50, %v1385_v54  ;;  %1837 = vmatmul.bf16.gmra.mxu0 %v4835_v51 }
 0x1d2   :  { %1910 = vmatmul.bf16.gmra.mxu1 %v4839_v52  ;;  %v4851_v52 = vor.u32 %v5786_v15, %v4850_v30 }
 0x1d3   :  { %1983 = vmatmul.bf16.gmra.mxu2 %v4843_v19 }
 0x1d4   :  { %2056 = vmatmul.bf16.gmra.mxu3 %v4847_v20 }
 0x1d6   :  { %v1387_v59 = vpop.f32.mrf.mxu2  ;;  %v1243_v31 = vpop.f32.mrf.mxu0 }
 0x1d7   :  { %v1460_v18 = vpop.f32.mrf.mxu3  ;;  %v1388_v1 = vadd.f32 %v1387_v59, %v1315_v34  ;;  %v1316_v3 = vpop.f32.mrf.mxu1  ;;  %v5784_v59 = vld [vmem:[%s9423_s0 + $0x364] sm:$0xf]  ;;  %v4863_v34 = vor.u32 %v5785_v48, %v4860_v49  ;;  %v5791_v48 = vld [vmem:[%s9423_s0 + $0x394] sm:$0xf0]  ;;  %v5789_v49 = vld [vmem:[%s9423_s0 + $0x38c] sm:$0xf] }
 0x1d8   :  { %v1317_v60 = vadd.f32 %v1316_v3, %v1243_v31 }
 0x1d9   :  { %v7042_v41 = vadd.f32 %v1460_v18, %v1388_v1  ;;  %v4852_v1 = vld [vmem:[%s9423_s0 + $0x370] sm:$0xf0]  ;;  %v4858_v18 = vld [vmem:[%s9423_s0 + $0x368] sm:$0xf] }
 0x1da   :  { %v4855_v54 = vor.u32 %v5784_v59, %v4852_v1  ;;  %v4859_v20 = vor.u32 %v5787_v46, %v4858_v18  ;;  %v4866_v1 = vld [vmem:[%s9423_s0 + $0x380] sm:$0xf]  ;;  %v5790_v18 = vld [vmem:[%s9423_s0 + $0x38c] sm:$0xf0] }
 0x1de   :  { %v1389_v50 = vpop.f32.mrf.mxu2  ;;  %v1246_v12 = vpop.f32.mrf.mxu0 }
 0x1df   :  { %v1462_v51 = vpop.f32.mrf.mxu3  ;;  %v1390_v8 = vadd.f32 %v1389_v50, %v1317_v60  ;;  %v1319_v19 = vpop.f32.mrf.mxu1  ;;  %v4876_v50 = vld [vmem:[%s9423_s0 + $0x398] sm:$0xf0] }
 0x1e0   :  { %v1320_v31 = vadd.f32 %v1319_v19, %v1246_v12 }
 0x1e1   :  { %v7070_v3 = vadd.f32 %v1462_v51, %v1390_v8  ;;  %1842 = vmatmul.bf16.gmra.mxu0 %v4851_v52 }
 0x1e2   :  { %1915 = vmatmul.bf16.gmra.mxu1 %v4855_v54  ;;  %v4867_v54 = vor.u32 %v5790_v18, %v4866_v1 }
 0x1e3   :  { %1988 = vmatmul.bf16.gmra.mxu2 %v4859_v20 }
 0x1e4   :  { %2061 = vmatmul.bf16.gmra.mxu3 %v4863_v34 }
 0x1e6   :  { %v1392_v5 = vpop.f32.mrf.mxu2  ;;  %v1248_v30 = vpop.f32.mrf.mxu0 }
 0x1e7   :  { %v1465_v58 = vpop.f32.mrf.mxu3  ;;  %v1393_v7 = vadd.f32 %v1392_v5, %v1320_v31  ;;  %v1321_v15 = vpop.f32.mrf.mxu1  ;;  %v5788_v5 = vld [vmem:[%s9423_s0 + $0x384] sm:$0xf]  ;;  %v4879_v31 = vor.u32 %v5789_v49, %v4876_v50  ;;  %v5795_v49 = vld [vmem:[%s9423_s0 + $0x3b4] sm:$0xf0]  ;;  %v5793_v50 = vld [vmem:[%s9423_s0 + $0x3ac] sm:$0xf] }
 0x1e8   :  { %v1322_v60 = vadd.f32 %v1321_v15, %v1248_v30 }
 0x1e9   :  { %v7074_v59 = vadd.f32 %v1465_v58, %v1393_v7  ;;  %v4868_v7 = vld [vmem:[%s9423_s0 + $0x390] sm:$0xf0]  ;;  %v4874_v58 = vld [vmem:[%s9423_s0 + $0x388] sm:$0xf] }
 0x1ea   :  { %v4871_v8 = vor.u32 %v5788_v5, %v4868_v7  ;;  %v4875_v34 = vor.u32 %v5791_v48, %v4874_v58  ;;  %v4882_v7 = vld [vmem:[%s9423_s0 + $0x3a0] sm:$0xf]  ;;  %v5794_v58 = vld [vmem:[%s9423_s0 + $0x3ac] sm:$0xf0] }
 0x1ee   :  { %v1394_v51 = vpop.f32.mrf.mxu2  ;;  %v1251_v19 = vpop.f32.mrf.mxu0 }
 0x1ef   :  { %v1467_v52 = vpop.f32.mrf.mxu3  ;;  %v1395_v12 = vadd.f32 %v1394_v51, %v1322_v60  ;;  %v1324_v20 = vpop.f32.mrf.mxu1  ;;  %v4892_v51 = vld [vmem:[%s9423_s0 + $0x3b8] sm:$0xf0] }
 0x1f0   :  { %v1325_v30 = vadd.f32 %v1324_v20, %v1251_v19 }
 0x1f1   :  { %v7102_v15 = vadd.f32 %v1467_v52, %v1395_v12  ;;  %1847 = vmatmul.bf16.gmra.mxu0 %v4867_v54 }
 0x1f2   :  { %1920 = vmatmul.bf16.gmra.mxu1 %v4871_v8  ;;  %v4883_v8 = vor.u32 %v5794_v58, %v4882_v7 }
 0x1f3   :  { %1993 = vmatmul.bf16.gmra.mxu2 %v4875_v34 }
 0x1f4   :  { %2066 = vmatmul.bf16.gmra.mxu3 %v4879_v31 }
 0x1f6   :  { %v1397_v6 = vpop.f32.mrf.mxu2  ;;  %v1253_v1 = vpop.f32.mrf.mxu0 }
 0x1f7   :  { %v1470_v27 = vpop.f32.mrf.mxu3  ;;  %v1398_v11 = vadd.f32 %v1397_v6, %v1325_v30  ;;  %v1326_v18 = vpop.f32.mrf.mxu1  ;;  %v5792_v6 = vld [vmem:[%s9423_s0 + $0x3a4] sm:$0xf]  ;;  %v4895_v30 = vor.u32 %v5793_v50, %v4892_v51  ;;  %v5799_v50 = vld [vmem:[%s9423_s0 + $0x3d4] sm:$0xf0]  ;;  %v5797_v51 = vld [vmem:[%s9423_s0 + $0x3cc] sm:$0xf] }
 0x1f8   :  { %v1327_v60 = vadd.f32 %v1326_v18, %v1253_v1 }
 0x1f9   :  { %v7106_v5 = vadd.f32 %v1470_v27, %v1398_v11  ;;  %v4884_v11 = vld [vmem:[%s9423_s0 + $0x3b0] sm:$0xf0]  ;;  %v4890_v27 = vld [vmem:[%s9423_s0 + $0x3a8] sm:$0xf] }
 0x1fa   :  { %v4887_v12 = vor.u32 %v5792_v6, %v4884_v11  ;;  %v4891_v31 = vor.u32 %v5795_v49, %v4890_v27  ;;  %v4898_v11 = vld [vmem:[%s9423_s0 + $0x3c0] sm:$0xf]  ;;  %v5798_v27 = vld [vmem:[%s9423_s0 + $0x3cc] sm:$0xf0] }
 0x1fb   :  { %9452 = vst [vmem:[#allocation14_spill] sm:$0xff] %v7106_v5 }
 0x1fe   :  { %v1399_v52 = vpop.f32.mrf.mxu2  ;;  %v1256_v20 = vpop.f32.mrf.mxu0 }
 0x1ff   :  { %v1472_v54 = vpop.f32.mrf.mxu3  ;;  %v1400_v19 = vadd.f32 %v1399_v52, %v1327_v60  ;;  %v1329_v34 = vpop.f32.mrf.mxu1  ;;  %v4908_v52 = vld [vmem:[%s9423_s0 + $0x3d8] sm:$0xf0] }
 0x200   :  { %v1330_v1 = vadd.f32 %v1329_v34, %v1256_v20 }
 0x201   :  { %v7134_v18 = vadd.f32 %v1472_v54, %v1400_v19  ;;  %1852 = vmatmul.bf16.gmra.mxu0 %v4883_v8 }
 0x202   :  { %1925 = vmatmul.bf16.gmra.mxu1 %v4887_v12  ;;  %v4899_v12 = vor.u32 %v5798_v27, %v4898_v11 }
 0x203   :  { %1998 = vmatmul.bf16.gmra.mxu2 %v4891_v31 }
 0x204   :  { %2071 = vmatmul.bf16.gmra.mxu3 %v4895_v30 }
 0x206   :  { %v1402_v46 = vpop.f32.mrf.mxu2  ;;  %v1258_v7 = vpop.f32.mrf.mxu0 }
 0x207   :  { %v1475_v5 = vpop.f32.mrf.mxu3  ;;  %v1403_v16 = vadd.f32 %v1402_v46, %v1330_v1  ;;  %v1331_v58 = vpop.f32.mrf.mxu1  ;;  %v5796_v46 = vld [vmem:[%s9423_s0 + $0x3c4] sm:$0xf]  ;;  %v4911_v1 = vor.u32 %v5797_v51, %v4908_v52  ;;  %v5803_v51 = vld [vmem:[%s9423_s0 + $0x3f4] sm:$0xf0]  ;;  %v5801_v52 = vld [vmem:[%s9423_s0 + $0x3ec] sm:$0xf] }
 0x208   :  { %v1332_v60 = vadd.f32 %v1331_v58, %v1258_v7 }
 0x209   :  { %v7138_v6 = vadd.f32 %v1475_v5, %v1403_v16  ;;  %v4900_v16 = vld [vmem:[%s9423_s0 + $0x3d0] sm:$0xf0]  ;;  %v4906_v5 = vld [vmem:[%s9423_s0 + $0x3c8] sm:$0xf] }
 0x20a   :  { %v4903_v19 = vor.u32 %v5796_v46, %v4900_v16  ;;  %v4907_v30 = vor.u32 %v5799_v50, %v4906_v5  ;;  %v4914_v16 = vld [vmem:[%s9423_s0 + $0x3e0] sm:$0xf]  ;;  %v5802_v5 = vld [vmem:[%s9423_s0 + $0x3ec] sm:$0xf0] }
 0x20b   :  { %9453 = vst [vmem:[#allocation15_spill] sm:$0xff] %v7138_v6 }
 0x20e   :  { %v1404_v54 = vpop.f32.mrf.mxu2  ;;  %v1261_v34 = vpop.f32.mrf.mxu0 }
 0x20f   :  { %v1477_v8 = vpop.f32.mrf.mxu3  ;;  %v1405_v20 = vadd.f32 %v1404_v54, %v1332_v60  ;;  %v1334_v31 = vpop.f32.mrf.mxu1  ;;  %v4924_v54 = vld [vmem:[%s9423_s0 + $0x3f8] sm:$0xf0] }
 0x210   :  { %v1335_v7 = vadd.f32 %v1334_v31, %v1261_v34 }
 0x211   :  { %v7166_v58 = vadd.f32 %v1477_v8, %v1405_v20  ;;  %1857 = vmatmul.bf16.gmra.mxu0 %v4899_v12 }
 0x212   :  { %1930 = vmatmul.bf16.gmra.mxu1 %v4903_v19  ;;  %v4915_v19 = vor.u32 %v5802_v5, %v4914_v16 }
 0x213   :  { %2003 = vmatmul.bf16.gmra.mxu2 %v4907_v30 }
 0x214   :  { %2076 = vmatmul.bf16.gmra.mxu3 %v4911_v1 }
 0x216   :  { %v1407_v48 = vpop.f32.mrf.mxu2  ;;  %v1263_v11 = vpop.f32.mrf.mxu0 }
 0x217   :  { %v1480_v6 = vpop.f32.mrf.mxu3  ;;  %v1408_v29 = vadd.f32 %v1407_v48, %v1335_v7  ;;  %v1336_v27 = vpop.f32.mrf.mxu1  ;;  %v5800_v48 = vld [vmem:[%s9423_s0 + $0x3e4] sm:$0xf]  ;;  %v4927_v7 = vor.u32 %v5801_v52, %v4924_v54  ;;  %v5807_v52 = vld [vmem:[%s9423_s0 + $0x414] sm:$0xf0]  ;;  %v5805_v54 = vld [vmem:[%s9423_s0 + $0x40c] sm:$0xf] }
 0x218   :  { %v1337_v60 = vadd.f32 %v1336_v27, %v1263_v11 }
 0x219   :  { %v7170_v46 = vadd.f32 %v1480_v6, %v1408_v29  ;;  %v4916_v29 = vld [vmem:[%s9423_s0 + $0x3f0] sm:$0xf0]  ;;  %v4922_v6 = vld [vmem:[%s9423_s0 + $0x3e8] sm:$0xf] }
 0x21a   :  { %v4919_v20 = vor.u32 %v5800_v48, %v4916_v29  ;;  %v4923_v1 = vor.u32 %v5803_v51, %v4922_v6  ;;  %v4930_v29 = vld [vmem:[%s9423_s0 + $0x400] sm:$0xf]  ;;  %v5806_v6 = vld [vmem:[%s9423_s0 + $0x40c] sm:$0xf0] }
 0x21b   :  { %9454 = vst [vmem:[#allocation16_spill] sm:$0xff] %v7170_v46 }
 0x21e   :  { %v1409_v8 = vpop.f32.mrf.mxu2  ;;  %v1266_v31 = vpop.f32.mrf.mxu0 }
 0x21f   :  { %v1482_v12 = vpop.f32.mrf.mxu3  ;;  %v1410_v34 = vadd.f32 %v1409_v8, %v1337_v60  ;;  %v1339_v30 = vpop.f32.mrf.mxu1  ;;  %v4940_v8 = vld [vmem:[%s9423_s0 + $0x418] sm:$0xf0] }
 0x220   :  { %v1340_v11 = vadd.f32 %v1339_v30, %v1266_v31 }
 0x221   :  { %v7198_v27 = vadd.f32 %v1482_v12, %v1410_v34  ;;  %1862 = vmatmul.bf16.gmra.mxu0 %v4915_v19 }
 0x222   :  { %1935 = vmatmul.bf16.gmra.mxu1 %v4919_v20  ;;  %v4931_v20 = vor.u32 %v5806_v6, %v4930_v29 }
 0x223   :  { %2008 = vmatmul.bf16.gmra.mxu2 %v4923_v1 }
 0x224   :  { %2081 = vmatmul.bf16.gmra.mxu3 %v4927_v7 }
 0x226   :  { %v1412_v49 = vpop.f32.mrf.mxu2  ;;  %v1268_v16 = vpop.f32.mrf.mxu0 }
 0x227   :  { %v1485_v46 = vpop.f32.mrf.mxu3  ;;  %v1413_v21 = vadd.f32 %v1412_v49, %v1340_v11  ;;  %v1341_v5 = vpop.f32.mrf.mxu1  ;;  %v5804_v49 = vld [vmem:[%s9423_s0 + $0x404] sm:$0xf]  ;;  %v4943_v11 = vor.u32 %v5805_v54, %v4940_v8  ;;  %v5809_v54 = vld [vmem:[%s9423_s0 + $0x42c] sm:$0xf]  ;;  %v4956_v8 = vld [vmem:[%s9423_s0 + $0x438] sm:$0xf0] }
 0x228   :  { %v1342_v60 = vadd.f32 %v1341_v5, %v1268_v16 }
 0x229   :  { %v7202_v48 = vadd.f32 %v1485_v46, %v1413_v21  ;;  %v4932_v21 = vld [vmem:[%s9423_s0 + $0x410] sm:$0xf0]  ;;  %v4938_v46 = vld [vmem:[%s9423_s0 + $0x408] sm:$0xf] }
 0x22a   :  { %v4935_v34 = vor.u32 %v5804_v49, %v4932_v21  ;;  %v4939_v7 = vor.u32 %v5807_v52, %v4938_v46  ;;  %v4946_v49 = vld [vmem:[%s9423_s0 + $0x420] sm:$0xf]  ;;  %v5810_v21 = vld [vmem:[%s9423_s0 + $0x42c] sm:$0xf0]  ;;  %v5808_v52 = vld [vmem:[%s9423_s0 + $0x424] sm:$0xf] }
 0x22b   :  { %9455 = vst [vmem:[#allocation17_spill] sm:$0xff] %v7202_v48 }
 0x22e   :  { %v1414_v12 = vpop.f32.mrf.mxu2  ;;  %v1271_v30 = vpop.f32.mrf.mxu0 }
 0x22f   :  { %v1487_v19 = vpop.f32.mrf.mxu3  ;;  %v1415_v31 = vadd.f32 %v1414_v12, %v1342_v60  ;;  %v1344_v1 = vpop.f32.mrf.mxu1 }
 0x230   :  { %v1345_v16 = vadd.f32 %v1344_v1, %v1271_v30 }
 0x231   :  { %v7230_v5 = vadd.f32 %v1487_v19, %v1415_v31  ;;  %1867 = vmatmul.bf16.gmra.mxu0 %v4931_v20  ;;  %v4947_v20 = vor.u32 %v5810_v21, %v4946_v49  ;;  %v4962_v49 = vld [vmem:[%s9423_s0 + $0x440] sm:$0xf]  ;;  %v5814_v21 = vld [vmem:[%s9423_s0 + $0x44c] sm:$0xf0] }
 0x232   :  { %1940 = vmatmul.bf16.gmra.mxu1 %v4935_v34 }
 0x233   :  { %2013 = vmatmul.bf16.gmra.mxu2 %v4939_v7  ;;  %v4959_v7 = vor.u32 %v5809_v54, %v4956_v8  ;;  %v4963_v8 = vor.u32 %v5814_v21, %v4962_v49 }
 0x234   :  { %2086 = vmatmul.bf16.gmra.mxu3 %v4943_v11 }
 0x236   :  { %v1417_v50 = vpop.f32.mrf.mxu2  ;;  %v1273_v29 = vpop.f32.mrf.mxu0 }
 0x237   :  { %v1490_v48 = vpop.f32.mrf.mxu3  ;;  %v1418_v45 = vadd.f32 %v1417_v50, %v1345_v16  ;;  %v1346_v6 = vpop.f32.mrf.mxu1  ;;  %v4954_v50 = vld [vmem:[%s9423_s0 + $0x428] sm:$0xf] }
 0x239   :  { %v7234_v60 = vadd.f32 %v1490_v48, %v1418_v45  ;;  %v4948_v45 = vld [vmem:[%s9423_s0 + $0x430] sm:$0xf0]  ;;  %v5811_v48 = vld [vmem:[%s9423_s0 + $0x434] sm:$0xf0] }
 0x23a   :  { %v4951_v34 = vor.u32 %v5808_v52, %v4948_v45  ;;  %v4955_v1 = vor.u32 %v5811_v48, %v4954_v50  ;;  %v9457_v52 = vmax.f32 %v6492_v53, %v6868_v55  ;;  %v5812_v50 = vld [vmem:[%s9423_s0 + $0x444] sm:$0xf]  ;;  %v5815_v48 = vld [vmem:[%s9423_s0 + $0x454] sm:$0xf0]  ;;  %v5813_v53 = vld [vmem:[%s9423_s0 + $0x44c] sm:$0xf] }
 0x23b   :  { %9456 = vst [vmem:[#allocation18_spill] sm:$0xff] %v7234_v60 }
 0x23e   :  { %v1419_v12 = vpop.f32.mrf.mxu2  ;;  %v1833_v31 = vpop.f32.mrf.mxu0 }
 0x23f   :  { %v1492_v19 = vpop.f32.mrf.mxu3  ;;  %v1906_v30 = vpop.f32.mrf.mxu1 }
 0x240   :  { %v1907_v11 = vadd.f32 %v1906_v30, %v1833_v31 }
 0x241   :  { %1872 = vmatmul.bf16.gmra.mxu0 %v4947_v20 }
 0x242   :  { %1945 = vmatmul.bf16.gmra.mxu1 %v4951_v34 }
 0x243   :  { %2018 = vmatmul.bf16.gmra.mxu2 %v4955_v1 }
 0x244   :  { %2091 = vmatmul.bf16.gmra.mxu3 %v4959_v7 }
 0x246   :  { %v1979_v16 = vpop.f32.mrf.mxu2  ;;  %v1835_v46 = vpop.f32.mrf.mxu0 }
 0x247   :  { %v2052_v29 = vpop.f32.mrf.mxu3  ;;  %v1980_v6 = vadd.f32 %v1979_v16, %v1907_v11  ;;  %v1908_v51 = vpop.f32.mrf.mxu1  ;;  %v9458_v11 = vmax.f32 %v6518_v40, %v6896_v24  ;;  %v9459_v40 = vmax.f32 %v6520_v47, %v6900_v4  ;;  %v5817_v47 = vld [vmem:[%s9423_s0 + $0x46c] sm:$0xf]  ;;  %v4988_v4 = vld [vmem:[%s9423_s0 + $0x478] sm:$0xf0] }
 0x248   :  { %v1909_v60 = vadd.f32 %v1908_v51, %v1835_v46  ;;  %v4964_v51 = vld [vmem:[%s9423_s0 + $0x450] sm:$0xf0]  ;;  %v4970_v46 = vld [vmem:[%s9423_s0 + $0x448] sm:$0xf] }
 0x249   :  { %v2053_v33 = vadd.f32 %v2052_v29, %v1980_v6  ;;  %v4967_v12 = vor.u32 %v5812_v50, %v4964_v51  ;;  %v4971_v31 = vor.u32 %v5815_v48, %v4970_v46  ;;  %v4978_v51 = vld [vmem:[%s9423_s0 + $0x460] sm:$0xf]  ;;  %v5818_v46 = vld [vmem:[%s9423_s0 + $0x46c] sm:$0xf0]  ;;  %v5816_v48 = vld [vmem:[%s9423_s0 + $0x464] sm:$0xf] }
 0x24b   :  { %v7271_v45 = vmax.f32 %v9457_v52, %v2053_v33  ;;  %v4972_v33 = vld [vmem:[%s9423_s0 + $0x458] sm:$0xf0] }
 0x24c   :  { %v4975_v30 = vor.u32 %v5813_v53, %v4972_v33  ;;  %v4980_v53 = vld [vmem:[%s9423_s0 + $0x470] sm:$0xf0]  ;;  %v4986_v33 = vld [vmem:[%s9423_s0 + $0x468] sm:$0xf] }
 0x24e   :  { %v1981_v55 = vpop.f32.mrf.mxu2  ;;  %v1838_v20 = vpop.f32.mrf.mxu0 }
 0x24f   :  { %v2054_v54 = vpop.f32.mrf.mxu3  ;;  %v1982_v19 = vadd.f32 %v1981_v55, %v1909_v60  ;;  %v1911_v34 = vpop.f32.mrf.mxu1  ;;  %v5819_v55 = vld [vmem:[%s9423_s0 + $0x474] sm:$0xf0] }
 0x250   :  { %v1912_v1 = vadd.f32 %v1911_v34, %v1838_v20 }
 0x251   :  { %v2055_v7 = vadd.f32 %v2054_v54, %v1982_v19  ;;  %1877 = vmatmul.bf16.gmra.mxu0 %v4963_v8  ;;  %v4983_v19 = vor.u32 %v5816_v48, %v4980_v53  ;;  %v5822_v48 = vld [vmem:[%s9423_s0 + $0x48c] sm:$0xf0]  ;;  %v5820_v53 = vld [vmem:[%s9423_s0 + $0x484] sm:$0xf] }
 0x252   :  { %1950 = vmatmul.bf16.gmra.mxu1 %v4967_v12  ;;  %v4979_v12 = vor.u32 %v5818_v46, %v4978_v51 }
 0x253   :  { %v7294_v16 = vmax.f32 %v9458_v11, %v2055_v7  ;;  %2023 = vmatmul.bf16.gmra.mxu2 %v4971_v31 }
 0x254   :  { %2096 = vmatmul.bf16.gmra.mxu3 %v4975_v30  ;;  %v4987_v30 = vor.u32 %v5819_v55, %v4986_v33  ;;  %v4996_v33 = vld [vmem:[%s9423_s0 + $0x490] sm:$0xf0]  ;;  %v5002_v55 = vld [vmem:[%s9423_s0 + $0x488] sm:$0xf] }
 0x256   :  { %v1984_v29 = vpop.f32.mrf.mxu2  ;;  %v1840_v21 = vpop.f32.mrf.mxu0 }
 0x257   :  { %v2057_v6 = vpop.f32.mrf.mxu3  ;;  %v1985_v49 = vadd.f32 %v1984_v29, %v1912_v1  ;;  %v1913_v60 = vpop.f32.mrf.mxu1  ;;  %v4991_v1 = vor.u32 %v5817_v47, %v4988_v4  ;;  %v9460_v29 = vmax.f32 %v6546_v35, %v6928_v57  ;;  %v9461_v35 = vmax.f32 %v6548_v43, %v6932_v39  ;;  %v5823_v47 = vld [vmem:[%s9423_s0 + $0x494] sm:$0xf0]  ;;  %v5821_v43 = vld [vmem:[%s9423_s0 + $0x48c] sm:$0xf]  ;;  %v5004_v39 = vld [vmem:[%s9423_s0 + $0x498] sm:$0xf0] }
 0x258   :  { %v1914_v52 = vadd.f32 %v1913_v60, %v1840_v21 }
 0x259   :  { %v2058_v50 = vadd.f32 %v2057_v6, %v1985_v49 }
 0x25b   :  { %v7305_v24 = vmax.f32 %v9459_v40, %v2058_v50  ;;  %v4994_v40 = vld [vmem:[%s9423_s0 + $0x480] sm:$0xf] }
 0x25e   :  { %v1986_v54 = vpop.f32.mrf.mxu2  ;;  %v1843_v34 = vpop.f32.mrf.mxu0 }
 0x25f   :  { %v2059_v8 = vpop.f32.mrf.mxu3  ;;  %v1987_v20 = vadd.f32 %v1986_v54, %v1914_v52  ;;  %v1916_v31 = vpop.f32.mrf.mxu1 }
 0x260   :  { %v1917_v7 = vadd.f32 %v1916_v31, %v1843_v34  ;;  %v5003_v31 = vor.u32 %v5823_v47, %v5002_v55 }
 0x261   :  { %v2060_v11 = vadd.f32 %v2059_v8, %v1987_v20  ;;  %1882 = vmatmul.bf16.gmra.mxu0 %v4979_v12  ;;  %v4995_v8 = vor.u32 %v5822_v48, %v4994_v40  ;;  %v4999_v12 = vor.u32 %v5820_v53, %v4996_v33  ;;  %v4815_v40 = vld [vmem:[%s9423_s0 + $0x4a8] sm:$0xff] }
 0x262   :  { %1955 = vmatmul.bf16.gmra.mxu1 %v4983_v19  ;;  %v1718_v33 = vunpack.c.l.b16 %v4815_v40  ;;  %v1719_v55 = vunpack.c.h.b16 %v4815_v40  ;;  %v5068_v40 = vld [vmem:[%s9423_s0 + $0x4b8] sm:$0xf] }
 0x263   :  { %v7328_v6 = vmax.f32 %v9460_v29, %v2060_v11  ;;  %2028 = vmatmul.bf16.gmra.mxu2 %v4987_v30  ;;  %v5007_v30 = vor.u32 %v5821_v43, %v5004_v39  ;;  %v9462_v11 = vmax.f32 %v6574_v32, %v6960_v17 }
 0x264   :  { %2101 = vmatmul.bf16.gmra.mxu3 %v4991_v1 }
 0x266   :  { %v1989_v49 = vpop.f32.mrf.mxu2  ;;  %v1845_v50 = vpop.f32.mrf.mxu0 }
 0x267   :  { %v2062_v21 = vpop.f32.mrf.mxu3  ;;  %v1990_v60 = vadd.f32 %v1989_v49, %v1917_v7  ;;  %v1918_v52 = vpop.f32.mrf.mxu1 }
 0x268   :  { %v1919_v51 = vadd.f32 %v1918_v52, %v1845_v50 }
 0x269   :  { %v2063_v46 = vadd.f32 %v2062_v21, %v1990_v60 }
 0x26b   :  { %v7339_v57 = vmax.f32 %v9461_v35, %v2063_v46  ;;  %v9463_v35 = vmax.f32 %v6582_v44, %v6970_v37  ;;  %v9464_v44 = vmax.f32 %v6584_v61, %v6974_v9  ;;  %v9465_v61 = vmax.f32 %v6586_v38, %v6978_v62  ;;  %v5825_v38 = vld [vmem:[%s9423_s0 + $0x4bc] sm:$0xf]  ;;  %v5070_v62 = vld [vmem:[%s9423_s0 + $0x4c8] sm:$0xf0] }
 0x26e   :  { %v1991_v4 = vpop.f32.mrf.mxu2  ;;  %v1848_v20 = vpop.f32.mrf.mxu0 }
 0x26f   :  { %v2064_v54 = vpop.f32.mrf.mxu3  ;;  %v1992_v19 = vadd.f32 %v1991_v4, %v1919_v51  ;;  %v1921_v34 = vpop.f32.mrf.mxu1  ;;  %v4814_v51 = vld [vmem:[%s9423_s0 + $0x4a0] sm:$0xff] }
 0x270   :  { %v1922_v1 = vadd.f32 %v1921_v34, %v1848_v20  ;;  %v1716_v32 = vunpack.c.l.b16 %v4814_v51  ;;  %v1717_v17 = vunpack.c.h.b16 %v4814_v51  ;;  %v1771_v20 = vpack.c.b16 %v1719_v55, %v1719_v55  ;;  %v5824_v51 = vld [vmem:[%s9423_s0 + $0x4b4] sm:$0xf] }
 0x271   :  { %v2065_v7 = vadd.f32 %v2064_v54, %v1992_v19  ;;  %1887 = vmatmul.bf16.gmra.mxu0 %v4995_v8  ;;  %v1770_v19 = vpack.c.b16 %v1718_v33, %v1718_v33 }
 0x272   :  { %1960 = vmatmul.bf16.gmra.mxu1 %v4999_v12  ;;  %v1768_v39 = vpack.c.b16 %v1716_v32, %v1716_v32  ;;  %v1769_v4 = vpack.c.b16 %v1717_v17, %v1717_v17 }
 0x273   :  { %v7362_v29 = vmax.f32 %v9462_v11, %v2065_v7  ;;  %2033 = vmatmul.bf16.gmra.mxu2 %v5003_v31 }
 0x274   :  { %2106 = vmatmul.bf16.gmra.mxu3 %v5007_v30 }
 0x276   :  { %v1994_v49 = vpop.f32.mrf.mxu2  ;;  %v1850_v50 = vpop.f32.mrf.mxu0 }
 0x277   :  { %v2067_v21 = vpop.f32.mrf.mxu3  ;;  %v1995_v60 = vadd.f32 %v1994_v49, %v1922_v1  ;;  %v1923_v52 = vpop.f32.mrf.mxu1 }
 0x278   :  { %v1924_v46 = vadd.f32 %v1923_v52, %v1850_v50  ;;  %v5060_v50 = vld [vmem:[%s9423_s0 + $0x4b0] sm:$0xf]  ;;  %v5826_v52 = vld [vmem:[%s9423_s0 + $0x4bc] sm:$0xf0] }
 0x279   :  { %v2068_v48 = vadd.f32 %v2067_v21, %v1995_v60 }
 0x27b   :  { %v7373_v53 = vmax.f32 %v9463_v35, %v2068_v48  ;;  %v5827_v48 = vld [vmem:[%s9423_s0 + $0x4c4] sm:$0xf0]  ;;  %v5061_v35 = vor.u32 %v5826_v52, %v5060_v50  ;;  %v5084_v50 = vld [vmem:[%s9423_s0 + $0x4d8] sm:$0xf] }
 0x27c   :  { %v5831_v52 = vld [vmem:[%s9423_s0 + $0x4e4] sm:$0xf0] }
 0x27e   :  { %v1996_v47 = vpop.f32.mrf.mxu2  ;;  %v1853_v8 = vpop.f32.mrf.mxu0 }
 0x27f   :  { %v2069_v43 = vpop.f32.mrf.mxu3  ;;  %v1997_v54 = vadd.f32 %v1996_v47, %v1924_v46  ;;  %v1926_v12 = vpop.f32.mrf.mxu1  ;;  %v5062_v46 = vld [vmem:[%s9423_s0 + $0x4c0] sm:$0xf0] }
 0x280   :  { %v1927_v34 = vadd.f32 %v1926_v12, %v1853_v8  ;;  %v5065_v33 = vor.u32 %v5824_v51, %v5062_v46  ;;  %v9466_v12 = vmax.f32 %v6612_v63, %v7006_v22  ;;  %v9467_v63 = vmax.f32 %v6620_v42, %v7010_v0  ;;  %v5829_v42 = vld [vmem:[%s9423_s0 + $0x4dc] sm:$0xf]  ;;  %v5086_v0 = vld [vmem:[%s9423_s0 + $0x4e8] sm:$0xf0] }
 0x281   :  { %v2070_v31 = vadd.f32 %v2069_v43, %v1997_v54  ;;  %1892 = vmatmul.bf16.gmra.mxu0 %v1768_v39  ;;  %v5069_v39 = vor.u32 %v5827_v48, %v5068_v40 }
 0x282   :  { %1965 = vmatmul.bf16.gmra.mxu1 %v1769_v4  ;;  %v5073_v4 = vor.u32 %v5825_v38, %v5070_v62 }
 0x283   :  { %v7378_v37 = vmax.f32 %v9464_v44, %v2070_v31  ;;  %2038 = vmatmul.bf16.gmra.mxu2 %v1770_v19 }
 0x284   :  { %2111 = vmatmul.bf16.gmra.mxu3 %v1771_v20 }
 0x286   :  { %v1999_v30 = vpop.f32.mrf.mxu2  ;;  %v1855_v11 = vpop.f32.mrf.mxu0 }
 0x287   :  { %v2072_v1 = vpop.f32.mrf.mxu3  ;;  %v2000_v7 = vadd.f32 %v1999_v30, %v1927_v34  ;;  %v1928_v49 = vpop.f32.mrf.mxu1 }
 0x288   :  { %v1929_v21 = vadd.f32 %v1928_v49, %v1855_v11  ;;  %v5076_v11 = vld [vmem:[%s9423_s0 + $0x4d0] sm:$0xf]  ;;  %v5830_v49 = vld [vmem:[%s9423_s0 + $0x4dc] sm:$0xf0] }
 0x289   :  { %v2073_v60 = vadd.f32 %v2072_v1, %v2000_v7  ;;  %v5077_v46 = vor.u32 %v5830_v49, %v5076_v11 }
 0x28b   :  { %v7389_v9 = vmax.f32 %v9465_v61, %v2073_v60  ;;  %v5078_v60 = vld [vmem:[%s9423_s0 + $0x4e0] sm:$0xf0] }
 0x28e   :  { %v2001_v32 = vpop.f32.mrf.mxu2  ;;  %v1858_v47 = vpop.f32.mrf.mxu0 }
 0x28f   :  { %v2074_v17 = vpop.f32.mrf.mxu3  ;;  %v2002_v55 = vadd.f32 %v2001_v32, %v1929_v21  ;;  %v1931_v43 = vpop.f32.mrf.mxu1  ;;  %v5828_v21 = vld [vmem:[%s9423_s0 + $0x4d4] sm:$0xf]  ;;  %v5085_v32 = vor.u32 %v5831_v52, %v5084_v50 }
 0x290   :  { %v1932_v54 = vadd.f32 %v1931_v43, %v1858_v47  ;;  %v5081_v40 = vor.u32 %v5828_v21, %v5078_v60 }
 0x291   :  { %v2075_v8 = vadd.f32 %v2074_v17, %v2002_v55  ;;  %2454 = vmatmul.bf16.vlgmr.msrb.gmra.mxu0 %v5061_v35  ;;  %v5089_v17 = vor.u32 %v5829_v42, %v5086_v0  ;;  %v9468_v55 = vmax.f32 %v6654_v10, %v7038_v36  ;;  %v9469_v10 = vmax.f32 %v6664_v13, %v7042_v41  ;;  %v5833_v13 = vld [vmem:[%s9423_s0 + $0x4fc] sm:$0xf]  ;;  %v5102_v41 = vld [vmem:[%s9423_s0 + $0x508] sm:$0xf0] }
 0x292   :  { %2527 = vmatmul.bf16.vlgmr.msrb.gmra.mxu1 %v5065_v33  ;;  %v5105_v0 = vor.u32 %v5833_v13, %v5102_v41 }
 0x293   :  { %v7412_v19 = vmax.f32 %v9466_v12, %v2075_v8  ;;  %2600 = vmatmul.bf16.vlgmr.msrb.gmra.mxu2 %v5069_v39 }
 0x294   :  { %2673 = vmatmul.bf16.vlgmr.msrb.gmra.mxu3 %v5073_v4 }
 0x296   :  { %v2004_v20 = vpop.f32.mrf.mxu2  ;;  %v1860_v44 = vpop.f32.mrf.mxu0 }
 0x297   :  { %v2077_v34 = vpop.f32.mrf.mxu3  ;;  %v2005_v31 = vadd.f32 %v2004_v20, %v1932_v54  ;;  %v1933_v30 = vpop.f32.mrf.mxu1 }
 0x298   :  { %v1934_v1 = vadd.f32 %v1933_v30, %v1860_v44  ;;  %v5832_v44 = vld [vmem:[%s9423_s0 + $0x4f4] sm:$0xf]  ;;  %v5094_v30 = vld [vmem:[%s9423_s0 + $0x500] sm:$0xf0] }
 0x299   :  { %v2078_v7 = vadd.f32 %v2077_v34, %v2005_v31  ;;  %v5092_v34 = vld [vmem:[%s9423_s0 + $0x4f0] sm:$0xf]  ;;  %v5834_v31 = vld [vmem:[%s9423_s0 + $0x4fc] sm:$0xf0]  ;;  %v5097_v21 = vor.u32 %v5832_v44, %v5094_v30 }
 0x29b   :  { %v7423_v22 = vmax.f32 %v9467_v63, %v2078_v7  ;;  %v5835_v7 = vld [vmem:[%s9423_s0 + $0x504] sm:$0xf0]  ;;  %v5093_v63 = vor.u32 %v5834_v31, %v5092_v34 }
 0x29e   :  { %v2006_v61 = vpop.f32.mrf.mxu2  ;;  %v1863_v38 = vpop.f32.mrf.mxu0 }
 0x29f   :  { %v2079_v51 = vpop.f32.mrf.mxu3  ;;  %v2007_v48 = vadd.f32 %v2006_v61, %v1934_v1  ;;  %v1936_v62 = vpop.f32.mrf.mxu1  ;;  %v5100_v1 = vld [vmem:[%s9423_s0 + $0x4f8] sm:$0xf] }
 0x2a0   :  { %v1937_v35 = vadd.f32 %v1936_v62, %v1863_v38  ;;  %v5101_v42 = vor.u32 %v5835_v7, %v5100_v1 }
 0x2a1   :  { %v2080_v33 = vadd.f32 %v2079_v51, %v2007_v48  ;;  %2459 = vmatmul.bf16.gmra.mxu0 %v5077_v46  ;;  %v9470_v46 = vmax.f32 %v6698_v26, %v7070_v3  ;;  %v5265_v48 = vld [vmem:[%s9426_s3 + $0xf8] sm:$0xff]  ;;  %v5108_v26 = vld [vmem:[%s9423_s0 + $0x510] sm:$0xf]  ;;  %v5838_v3 = vld [vmem:[%s9423_s0 + $0x51c] sm:$0xf0] }
 0x2a2   :  { %2532 = vmatmul.bf16.gmra.mxu1 %v5081_v40  ;;  %2877 = vmatpush.msra.mxu0 %v5265_v48  ;;  %v5109_v31 = vor.u32 %v5838_v3, %v5108_v26  ;;  %v5842_v48 = vld [vmem:[%s9423_s0 + $0x53c] sm:$0xf0]  ;;  %v2858_v26 = vld [vmem:[%s9426_s3 + $0x78] sm:$0xff]  ;;  %v5843_v3 = vld [vmem:[%s9423_s0 + $0x544] sm:$0xf0] }
 0x2a3   :  { %v7446_v47 = vmax.f32 %v9468_v55, %v2080_v33  ;;  %2605 = vmatmul.bf16.gmra.mxu2 %v5085_v32  ;;  %2897 = vmatpush.msra.mxu1 %v2858_v26  ;;  %v5150_v26 = vld [vmem:[%s9423_s0 + $0x568] sm:$0xf0] }
 0x2a4   :  { %2678 = vmatmul.bf16.gmra.mxu3 %v5089_v17 }
 0x2a6   :  { %v2009_v43 = vpop.f32.mrf.mxu2  ;;  %v1865_v54 = vpop.f32.mrf.mxu0 }
 0x2a7   :  { %v2082_v39 = vpop.f32.mrf.mxu3  ;;  %v2010_v4 = vadd.f32 %v2009_v43, %v1937_v35  ;;  %v1938_v8 = vpop.f32.mrf.mxu1  ;;  %v9471_v43 = vmax.f32 %v6702_v2, %v7074_v59  ;;  %v5837_v2 = vld [vmem:[%s9423_s0 + $0x51c] sm:$0xf]  ;;  %v5118_v59 = vld [vmem:[%s9423_s0 + $0x528] sm:$0xf0] }
 0x2a8   :  { %v1939_v12 = vadd.f32 %v1938_v8, %v1865_v54  ;;  %v5110_v54 = vld [vmem:[%s9423_s0 + $0x520] sm:$0xf0]  ;;  %v5116_v8 = vld [vmem:[%s9423_s0 + $0x518] sm:$0xf]  ;;  %v5121_v13 = vor.u32 %v5837_v2, %v5118_v59 }
 0x2a9   :  { %v2083_v20 = vadd.f32 %v2082_v39, %v2010_v4  ;;  %v5836_v4 = vld [vmem:[%s9423_s0 + $0x514] sm:$0xf] }
 0x2ab   :  { %v7457_v36 = vmax.f32 %v9469_v10, %v2083_v20  ;;  %v5113_v10 = vor.u32 %v5836_v4, %v5110_v54  ;;  %v5134_v4 = vld [vmem:[%s9423_s0 + $0x548] sm:$0xf0] }
 0x2ae   :  { %v2011_v11 = vpop.f32.mrf.mxu2  ;;  %v1868_v50 = vpop.f32.mrf.mxu0 }
 0x2af   :  { %v2084_v49 = vpop.f32.mrf.mxu3  ;;  %v2012_v60 = vadd.f32 %v2011_v11, %v1939_v12  ;;  %v1941_v52 = vpop.f32.mrf.mxu1  ;;  %v5839_v12 = vld [vmem:[%s9423_s0 + $0x524] sm:$0xf0] }
 0x2b0   :  { %v1942_v61 = vadd.f32 %v1941_v52, %v1868_v50  ;;  %v5117_v7 = vor.u32 %v5839_v12, %v5116_v8  ;;  %v5297_v50 = vld [vmem:[%s9426_s3 + $0x1f8] sm:$0xff] }
 0x2b1   :  { %v2085_v51 = vadd.f32 %v2084_v49, %v2012_v60  ;;  %2464 = vmatmul.bf16.gmra.mxu0 %v5093_v63  ;;  %v9472_v49 = vmax.f32 %v6728_v56, %v7102_v15  ;;  %v5281_v60 = vld [vmem:[%s9426_s3 + $0x178] sm:$0xff]  ;;  %2974 = vmatpush.msra.mxu3 %v5297_v50 }
 0x2b2   :  { %2537 = vmatmul.bf16.gmra.mxu1 %v5097_v21  ;;  %v5264_v21 = vld [vmem:[%s9426_s3 + $0xf0] sm:$0xff]  ;;  %2935 = vmatpush.msra.mxu2 %v5281_v60 }
 0x2b3   :  { %v7480_v40 = vmax.f32 %v9470_v46, %v2085_v51  ;;  %2610 = vmatmul.bf16.gmra.mxu2 %v5101_v42  ;;  %2878 = vmatpush.msra.mxu0 %v5264_v21  ;;  %v5124_v46 = vld [vmem:[%s9423_s0 + $0x530] sm:$0xf] }
 0x2b4   :  { %2683 = vmatmul.bf16.gmra.mxu3 %v5105_v0  ;;  %v5125_v12 = vor.u32 %v5842_v48, %v5124_v46  ;;  %v9478_v46 = vld [vmem:[#allocation15_spill] sm:$0xff] }
 0x2b6   :  { %v2014_v38 = vpop.f32.mrf.mxu2  ;;  %v1870_v17 = vpop.f32.mrf.mxu0 }
 0x2b7   :  { %v2087_v62 = vpop.f32.mrf.mxu3  ;;  %v2015_v32 = vadd.f32 %v2014_v38, %v1942_v61  ;;  %v1943_v35 = vpop.f32.mrf.mxu1  ;;  %v5840_v38 = vld [vmem:[%s9423_s0 + $0x534] sm:$0xf] }
 0x2b8   :  { %v1944_v33 = vadd.f32 %v1943_v35, %v1870_v17 }
 0x2b9   :  { %v2088_v55 = vadd.f32 %v2087_v62, %v2015_v32  ;;  %v9473_v62 = vld [vmem:[#allocation9_spill] sm:$0xff]  ;;  %v9474_v32 = vld [vmem:[#allocation14_spill] sm:$0xff] }
 0x2ba   :  { %v9475_v17 = vmax.f32 %v9473_v62, %v9474_v32  ;;  %v5148_v62 = vld [vmem:[%s9423_s0 + $0x558] sm:$0xf]  ;;  %v5262_v32 = vld [vmem:[%s9426_s3 + $0xe0] sm:$0xff] }
 0x2bb   :  { %v7494_v39 = vmax.f32 %v9471_v43, %v2088_v55  ;;  %v5132_v55 = vld [vmem:[%s9423_s0 + $0x538] sm:$0xf]  ;;  %v5841_v43 = vld [vmem:[%s9423_s0 + $0x53c] sm:$0xf] }
 0x2be   :  { %v2016_v20 = vpop.f32.mrf.mxu2  ;;  %v1873_v30 = vpop.f32.mrf.mxu0 }
 0x2bf   :  { %v2089_v34 = vpop.f32.mrf.mxu3  ;;  %v2017_v44 = vadd.f32 %v2016_v20, %v1944_v33  ;;  %v1946_v1 = vpop.f32.mrf.mxu1  ;;  %v5126_v33 = vld [vmem:[%s9423_s0 + $0x540] sm:$0xf0] }
 0x2c0   :  { %v1947_v41 = vadd.f32 %v1946_v1, %v1873_v30  ;;  %v5129_v2 = vor.u32 %v5840_v38, %v5126_v33  ;;  %v9476_v1 = vmax.f32 %v6756_v25, %v7134_v18  ;;  %v2857_v25 = vld [vmem:[%s9426_s3 + $0x70] sm:$0xff]  ;;  %v5847_v33 = vld [vmem:[%s9423_s0 + $0x564] sm:$0xf0] }
 0x2c1   :  { %v2090_v11 = vadd.f32 %v2089_v34, %v2017_v44  ;;  %2469 = vmatmul.bf16.gmra.mxu0 %v5109_v31  ;;  %v5133_v31 = vor.u32 %v5843_v3, %v5132_v55  ;;  %2898 = vmatpush.msra.mxu1 %v2857_v25  ;;  %v5845_v55 = vld [vmem:[%s9423_s0 + $0x55c] sm:$0xf] }
 0x2c2   :  { %2542 = vmatmul.bf16.gmra.mxu1 %v5113_v10  ;;  %v5137_v10 = vor.u32 %v5841_v43, %v5134_v4 }
 0x2c3   :  { %v7517_v63 = vmax.f32 %v9472_v49, %v2090_v11  ;;  %2615 = vmatmul.bf16.gmra.mxu2 %v5117_v7  ;;  %v5296_v11 = vld [vmem:[%s9426_s3 + $0x1f0] sm:$0xff] }
 0x2c4   :  { %2688 = vmatmul.bf16.gmra.mxu3 %v5121_v13  ;;  %v5263_v13 = vld [vmem:[%s9426_s3 + $0xe8] sm:$0xff] }
 0x2c5   :  { %2879 = vmatpush.msra.mxu0 %v5263_v13  ;;  %2975 = vmatpush.msra.mxu3 %v5296_v11 }
 0x2c6   :  { %v2019_v56 = vpop.f32.mrf.mxu2  ;;  %v1875_v42 = vpop.f32.mrf.mxu0 }
 0x2c7   :  { %v2092_v15 = vpop.f32.mrf.mxu3  ;;  %v2020_v52 = vadd.f32 %v2019_v56, %v1947_v41  ;;  %v1948_v0 = vpop.f32.mrf.mxu1  ;;  %v5280_v41 = vld [vmem:[%s9426_s3 + $0x170] sm:$0xff]  ;;  %2880 = vmatpush.msra.mxu0 %v5262_v32  ;;  %v5166_v32 = vld [vmem:[%s9423_s0 + $0x588] sm:$0xf0] }
 0x2c8   :  { %v1949_v61 = vadd.f32 %v1948_v0, %v1875_v42  ;;  %2936 = vmatpush.msra.mxu2 %v5280_v41  ;;  %v5846_v42 = vld [vmem:[%s9423_s0 + $0x55c] sm:$0xf0]  ;;  %v5844_v0 = vld [vmem:[%s9423_s0 + $0x554] sm:$0xf] }
 0x2c9   :  { %v2093_v51 = vadd.f32 %v2092_v15, %v2020_v52  ;;  %v5140_v52 = vld [vmem:[%s9423_s0 + $0x550] sm:$0xf] }
 0x2ca   :  { %v5141_v4 = vor.u32 %v5846_v42, %v5140_v52  ;;  %v9481_v52 = vld [vmem:[#allocation11_spill] sm:$0xff]  ;;  %v9482_v42 = vld [vmem:[#allocation16_spill] sm:$0xff] }
 0x2cb   :  { %v7540_v35 = vmax.f32 %v9475_v17, %v2093_v51  ;;  %v9477_v51 = vld [vmem:[#allocation10_spill] sm:$0xff] }
 0x2cc   :  { %v9479_v48 = vmax.f32 %v9477_v51, %v9478_v46  ;;  %v5279_v17 = vld [vmem:[%s9426_s3 + $0x168] sm:$0xff]  ;;  %v5261_v51 = vld [vmem:[%s9426_s3 + $0xd8] sm:$0xff]  ;;  %v5278_v46 = vld [vmem:[%s9426_s3 + $0x160] sm:$0xff] }
 0x2cd   :  { %2937 = vmatpush.msra.mxu2 %v5279_v17  ;;  %2881 = vmatpush.msra.mxu0 %v5261_v51  ;;  %v2855_v17 = vld [vmem:[%s9426_s3 + $0x60] sm:$0xff] }
 0x2ce   :  { %v2021_v54 = vpop.f32.mrf.mxu2  ;;  %v1878_v20 = vpop.f32.mrf.mxu0 }
 0x2cf   :  { %v2094_v8 = vpop.f32.mrf.mxu3  ;;  %v2022_v59 = vadd.f32 %v2021_v54, %v1949_v61  ;;  %v1951_v34 = vpop.f32.mrf.mxu1  ;;  %v5142_v61 = vld [vmem:[%s9423_s0 + $0x560] sm:$0xf0]  ;;  %2938 = vmatpush.msra.mxu2 %v5278_v46 }
 0x2d0   :  { %v1952_v44 = vadd.f32 %v1951_v34, %v1878_v20  ;;  %v5145_v54 = vor.u32 %v5844_v0, %v5142_v61  ;;  %v5153_v20 = vor.u32 %v5845_v55, %v5150_v26  ;;  %v9483_v0 = vmax.f32 %v9481_v52, %v9482_v42  ;;  %v5182_v52 = vld [vmem:[%s9423_s0 + $0x5a8] sm:$0xf0] }
 0x2d1   :  { %v2095_v30 = vadd.f32 %v2094_v8, %v2022_v59  ;;  %2474 = vmatmul.bf16.gmra.mxu0 %v5125_v12  ;;  %v5149_v59 = vor.u32 %v5847_v33, %v5148_v62  ;;  %v5849_v62 = vld [vmem:[%s9423_s0 + $0x57c] sm:$0xf] }
 0x2d2   :  { %2547 = vmatmul.bf16.gmra.mxu1 %v5129_v2 }
 0x2d3   :  { %v7563_v7 = vmax.f32 %v9476_v1, %v2095_v30  ;;  %2620 = vmatmul.bf16.gmra.mxu2 %v5133_v31  ;;  %v5295_v30 = vld [vmem:[%s9426_s3 + $0x1e8] sm:$0xff] }
 0x2d4   :  { %2693 = vmatmul.bf16.gmra.mxu3 %v5137_v10  ;;  %v9480_v10 = vmax.f32 %v6784_v14, %v7166_v58  ;;  %v2856_v1 = vld [vmem:[%s9426_s3 + $0x68] sm:$0xff] }
 0x2d5   :  { %2976 = vmatpush.msra.mxu3 %v5295_v30  ;;  %2899 = vmatpush.msra.mxu1 %v2856_v1 }
 0x2d6   :  { %v2024_v18 = vpop.f32.mrf.mxu2  ;;  %v1880_v60 = vpop.f32.mrf.mxu0 }
 0x2d7   :  { %v2097_v49 = vpop.f32.mrf.mxu3  ;;  %v2025_v21 = vadd.f32 %v2024_v18, %v1952_v44  ;;  %v1953_v50 = vpop.f32.mrf.mxu1  ;;  %2900 = vmatpush.msra.mxu1 %v2855_v17 }
 0x2d8   :  { %v1954_v56 = vadd.f32 %v1953_v50, %v1880_v60  ;;  %v5848_v60 = vld [vmem:[%s9423_s0 + $0x574] sm:$0xf]  ;;  %v5158_v50 = vld [vmem:[%s9423_s0 + $0x580] sm:$0xf0] }
 0x2d9   :  { %v2098_v15 = vadd.f32 %v2097_v49, %v2025_v21  ;;  %v5156_v49 = vld [vmem:[%s9423_s0 + $0x570] sm:$0xf]  ;;  %v5850_v21 = vld [vmem:[%s9423_s0 + $0x57c] sm:$0xf0] }
 0x2da   :  { %v5157_v26 = vor.u32 %v5850_v21, %v5156_v49  ;;  %v5852_v21 = vld [vmem:[%s9423_s0 + $0x594] sm:$0xf] }
 0x2db   :  { %v7592_v38 = vmax.f32 %v9479_v48, %v2098_v15  ;;  %v5851_v15 = vld [vmem:[%s9423_s0 + $0x584] sm:$0xf0]  ;;  %v5294_v48 = vld [vmem:[%s9426_s3 + $0x1e0] sm:$0xff] }
 0x2dc   :  { %2977 = vmatpush.msra.mxu3 %v5294_v48 }
 0x2de   :  { %v2026_v3 = vpop.f32.mrf.mxu2  ;;  %v1883_v12 = vpop.f32.mrf.mxu0 }
 0x2df   :  { %v2099_v43 = vpop.f32.mrf.mxu3  ;;  %v2027_v8 = vadd.f32 %v2026_v3, %v1954_v56  ;;  %v1956_v2 = vpop.f32.mrf.mxu1  ;;  %v5164_v56 = vld [vmem:[%s9423_s0 + $0x578] sm:$0xf]  ;;  %v5161_v3 = vor.u32 %v5848_v60, %v5158_v50  ;;  %v5174_v60 = vld [vmem:[%s9423_s0 + $0x5a0] sm:$0xf0] }
 0x2e0   :  { %v1957_v34 = vadd.f32 %v1956_v2, %v1883_v12  ;;  %v5169_v12 = vor.u32 %v5849_v62, %v5166_v32  ;;  %v5180_v50 = vld [vmem:[%s9423_s0 + $0x598] sm:$0xf]  ;;  %v5177_v46 = vor.u32 %v5852_v21, %v5174_v60  ;;  %v5857_v21 = vld [vmem:[%s9423_s0 + $0x5bc] sm:$0xf]  ;;  %v5198_v60 = vld [vmem:[%s9423_s0 + $0x5c8] sm:$0xf0] }
 0x2e1   :  { %v2100_v31 = vadd.f32 %v2099_v43, %v2027_v8  ;;  %2479 = vmatmul.bf16.gmra.mxu0 %v5141_v4  ;;  %v5165_v8 = vor.u32 %v5851_v15, %v5164_v56  ;;  %v5855_v56 = vld [vmem:[%s9423_s0 + $0x5a4] sm:$0xf0]  ;;  %v5853_v15 = vld [vmem:[%s9423_s0 + $0x59c] sm:$0xf] }
 0x2e2   :  { %2552 = vmatmul.bf16.gmra.mxu1 %v5145_v54  ;;  %v5181_v17 = vor.u32 %v5855_v56, %v5180_v50 }
 0x2e3   :  { %v7615_v44 = vmax.f32 %v9480_v10, %v2100_v31  ;;  %2625 = vmatmul.bf16.gmra.mxu2 %v5149_v59  ;;  %v5260_v31 = vld [vmem:[%s9426_s3 + $0xd0] sm:$0xff] }
 0x2e4   :  { %2698 = vmatmul.bf16.gmra.mxu3 %v5153_v20  ;;  %v9485_v20 = vmax.f32 %v6812_v28, %v7198_v27  ;;  %2882 = vmatpush.msra.mxu0 %v5260_v31  ;;  %v5172_v28 = vld [vmem:[%s9423_s0 + $0x590] sm:$0xf]  ;;  %v5854_v27 = vld [vmem:[%s9423_s0 + $0x59c] sm:$0xf0] }
 0x2e5   :  { %v5173_v51 = vor.u32 %v5854_v27, %v5172_v28  ;;  %v5856_v27 = vld [vmem:[%s9423_s0 + $0x5b4] sm:$0xf] }
 0x2e6   :  { %v2029_v13 = vpop.f32.mrf.mxu2  ;;  %v1885_v25 = vpop.f32.mrf.mxu0 }
 0x2e7   :  { %v2102_v41 = vpop.f32.mrf.mxu3  ;;  %v2030_v11 = vadd.f32 %v2029_v13, %v1957_v34  ;;  %v1958_v18 = vpop.f32.mrf.mxu1 }
 0x2e8   :  { %v1959_v14 = vadd.f32 %v1958_v18, %v1885_v25  ;;  %v9487_v18 = vld [vmem:[#allocation12_spill] sm:$0xff] }
 0x2e9   :  { %v2103_v58 = vadd.f32 %v2102_v41, %v2030_v11 }
 0x2eb   :  { %v7644_v61 = vmax.f32 %v9483_v0, %v2103_v58 }
 0x2ed   :  { %9484 = vst [vmem:[#allocation9_spill] sm:$0xff] %v7644_v61 }
 0x2ee   :  { %v2031_v33 = vpop.f32.mrf.mxu2  ;;  %v1888_v4 = vpop.f32.mrf.mxu0 }
 0x2ef   :  { %v2104_v55 = vpop.f32.mrf.mxu3  ;;  %v2032_v43 = vadd.f32 %v2031_v33, %v1959_v14  ;;  %v1961_v54 = vpop.f32.mrf.mxu1  ;;  %v9488_v14 = vld [vmem:[#allocation17_spill] sm:$0xff]  ;;  %v5185_v33 = vor.u32 %v5853_v15, %v5182_v52 }
 0x2f0   :  { %v1962_v2 = vadd.f32 %v1961_v54, %v1888_v4  ;;  %v9489_v58 = vmax.f32 %v9487_v18, %v9488_v14  ;;  %v9491_v54 = vmax.f32 %v6840_v23, %v7230_v5  ;;  %v5292_v23 = vld [vmem:[%s9426_s3 + $0x1d0] sm:$0xff]  ;;  %v5190_v18 = vld [vmem:[%s9423_s0 + $0x5c0] sm:$0xf0]  ;;  %v5196_v14 = vld [vmem:[%s9423_s0 + $0x5b8] sm:$0xf] }
 0x2f1   :  { %v2105_v59 = vadd.f32 %v2104_v55, %v2032_v43  ;;  %2484 = vmatmul.bf16.gmra.mxu0 %v5157_v26  ;;  %v5277_v55 = vld [vmem:[%s9426_s3 + $0x158] sm:$0xff]  ;;  %v5193_v52 = vor.u32 %v5856_v27, %v5190_v18  ;;  %v5204_v18 = vld [vmem:[%s9423_s0 + $0x5d0] sm:$0xf] }
 0x2f2   :  { %2557 = vmatmul.bf16.gmra.mxu1 %v5161_v3  ;;  %v5293_v26 = vld [vmem:[%s9426_s3 + $0x1d8] sm:$0xff]  ;;  %2939 = vmatpush.msra.mxu2 %v5277_v55  ;;  %v5258_v55 = vld [vmem:[%s9426_s3 + $0xc0] sm:$0xff] }
 0x2f3   :  { %v7667_v34 = vmax.f32 %v9485_v20, %v2105_v59  ;;  %2630 = vmatmul.bf16.gmra.mxu2 %v5165_v8  ;;  %v2854_v3 = vld [vmem:[%s9426_s3 + $0x58] sm:$0xff]  ;;  %2978 = vmatpush.msra.mxu3 %v5293_v26  ;;  %v2851_v26 = vld [vmem:[%s9426_s3 + $0x40] sm:$0xff] }
 0x2f4   :  { %2703 = vmatmul.bf16.gmra.mxu3 %v5169_v12  ;;  %2901 = vmatpush.msra.mxu1 %v2854_v3  ;;  %v5274_v3 = vld [vmem:[%s9426_s3 + $0x140] sm:$0xff] }
 0x2f5   :  { %9486 = vst [vmem:[#allocation14_spill] sm:$0xff] %v7667_v34  ;;  %2979 = vmatpush.msra.mxu3 %v5292_v23 }
 0x2f6   :  { %v2034_v10 = vpop.f32.mrf.mxu2  ;;  %v1890_v13 = vpop.f32.mrf.mxu0 }
 0x2f7   :  { %v2107_v30 = vpop.f32.mrf.mxu3  ;;  %v2035_v1 = vadd.f32 %v2034_v10, %v1962_v2  ;;  %v1963_v41 = vpop.f32.mrf.mxu1  ;;  %v5259_v10 = vld [vmem:[%s9426_s3 + $0xc8] sm:$0xff] }
 0x2f8   :  { %v1964_v11 = vadd.f32 %v1963_v41, %v1890_v13  ;;  %2883 = vmatpush.msra.mxu0 %v5259_v10  ;;  %v5858_v13 = vld [vmem:[%s9423_s0 + $0x5bc] sm:$0xf0]  ;;  %v9493_v41 = vld [vmem:[#allocation13_spill] sm:$0xff]  ;;  %v2849_v10 = vld [vmem:[%s9426_s3 + $0x30] sm:$0xff] }
 0x2f9   :  { %v2108_v25 = vadd.f32 %v2107_v30, %v2035_v1  ;;  %v5276_v30 = vld [vmem:[%s9426_s3 + $0x150] sm:$0xff] }
 0x2fa   :  { %2940 = vmatpush.msra.mxu2 %v5276_v30  ;;  %v5188_v1 = vld [vmem:[%s9423_s0 + $0x5b0] sm:$0xf]  ;;  %2884 = vmatpush.msra.mxu0 %v5258_v55 }
 0x2fb   :  { %v7681_v49 = vmax.f32 %v9489_v58, %v2108_v25  ;;  %v5859_v58 = vld [vmem:[%s9423_s0 + $0x5c4] sm:$0xf0]  ;;  %v5189_v15 = vor.u32 %v5858_v13, %v5188_v1  ;;  %v5272_v1 = vld [vmem:[%s9426_s3 + $0x130] sm:$0xff] }
 0x2fc   :  { %v5288_v13 = vld [vmem:[%s9426_s3 + $0x1b0] sm:$0xff] }
 0x2fd   :  { %9490 = vst [vmem:[#allocation10_spill] sm:$0xff] %v7681_v49 }
 0x2fe   :  { %v2036_v42 = vpop.f32.mrf.mxu2  ;;  %v1893_v62 = vpop.f32.mrf.mxu0 }
 0x2ff   :  { %v2109_v0 = vpop.f32.mrf.mxu3  ;;  %v2037_v48 = vadd.f32 %v2036_v42, %v1964_v11  ;;  %v1966_v32 = vpop.f32.mrf.mxu1  ;;  %v9494_v11 = vld [vmem:[#allocation18_spill] sm:$0xff] }
 0x300   :  { %v1967_v43 = vadd.f32 %v1966_v32, %v1893_v62  ;;  %v9495_v25 = vmax.f32 %v9493_v41, %v9494_v11  ;;  %v2853_v42 = vld [vmem:[%s9426_s3 + $0x50] sm:$0xff]  ;;  %v5275_v32 = vld [vmem:[%s9426_s3 + $0x148] sm:$0xff] }
 0x301   :  { %v2110_v4 = vadd.f32 %v2109_v0, %v2037_v48  ;;  %2489 = vmatmul.bf16.gmra.mxu0 %v5173_v51  ;;  %v5201_v48 = vor.u32 %v5857_v21, %v5198_v60  ;;  %2902 = vmatpush.msra.mxu1 %v2853_v42  ;;  %v5255_v41 = vld [vmem:[%s9426_s3 + $0xa8] sm:$0xff]  ;;  %v5206_v21 = vld [vmem:[%s9423_s0 + $0x5e0] sm:$0xf0] }
 0x302   :  { %2562 = vmatmul.bf16.gmra.mxu1 %v5177_v46  ;;  %v5197_v46 = vor.u32 %v5859_v58, %v5196_v14  ;;  %2941 = vmatpush.msra.mxu2 %v5275_v32  ;;  %v2848_v11 = vld [vmem:[%s9426_s3 + $0x28] sm:$0xff]  ;;  %v5862_v14 = vld [vmem:[%s9423_s0 + $0x5dc] sm:$0xf0]  ;;  %v5860_v58 = vld [vmem:[%s9423_s0 + $0x5d4] sm:$0xf] }
 0x303   :  { %v7713_v8 = vmax.f32 %v9491_v54, %v2110_v4  ;;  %2635 = vmatmul.bf16.gmra.mxu2 %v5181_v17  ;;  %v2852_v17 = vld [vmem:[%s9426_s3 + $0x48] sm:$0xff]  ;;  %v5257_v4 = vld [vmem:[%s9426_s3 + $0xb8] sm:$0xff]  ;;  %v5270_v42 = vld [vmem:[%s9426_s3 + $0x120] sm:$0xff] }
 0x304   :  { %2708 = vmatmul.bf16.gmra.mxu3 %v5185_v33  ;;  %2903 = vmatpush.msra.mxu1 %v2852_v17  ;;  %v5291_v33 = vld [vmem:[%s9426_s3 + $0x1c8] sm:$0xff]  ;;  %v2850_v54 = vld [vmem:[%s9426_s3 + $0x38] sm:$0xff] }
 0x305   :  { %9492 = vst [vmem:[#allocation15_spill] sm:$0xff] %v7713_v8  ;;  %2980 = vmatpush.msra.mxu3 %v5291_v33  ;;  %2942 = vmatpush.msra.mxu2 %v5274_v3  ;;  %v5287_v60 = vld [vmem:[%s9426_s3 + $0x1a8] sm:$0xff]  ;;  %v2846_v32 = vld [vmem:[%s9426_s3 + $0x18] sm:$0xff]  ;;  %v5205_v3 = vor.u32 %v5862_v14, %v5204_v18  ;;  %v5266_v18 = vld [vmem:[%s9426_s3 + $0x100] sm:$0xff] }
 0x306   :  { %v2039_v12 = vpop.f32.mrf.mxu2  ;;  %v1895_v20 = vpop.f32.mrf.mxu0  ;;  %2904 = vmatpush.msra.mxu1 %v2851_v26  ;;  %2885 = vmatpush.msra.mxu0 %v5257_v4  ;;  %v5269_v17 = vld [vmem:[%s9426_s3 + $0x118] sm:$0xff]  ;;  %v5252_v4 = vld [vmem:[%s9426_s3 + $0x90] sm:$0xff]  ;;  %v5282_v14 = vld [vmem:[%s9426_s3 + $0x180] sm:$0xff] }
 0x307   :  { %v2112_v2 = vpop.f32.mrf.mxu3  ;;  %v2040_v59 = vadd.f32 %v2039_v12, %v1967_v43  ;;  %v1968_v31 = vpop.f32.mrf.mxu1  ;;  %v5290_v43 = vld [vmem:[%s9426_s3 + $0x1c0] sm:$0xff]  ;;  %v5273_v12 = vld [vmem:[%s9426_s3 + $0x138] sm:$0xff] }
 0x308   :  { %2981 = vmatpush.msra.mxu3 %v5290_v43  ;;  %v5289_v20 = vld [vmem:[%s9426_s3 + $0x1b8] sm:$0xff]  ;;  %v5256_v31 = vld [vmem:[%s9426_s3 + $0xb0] sm:$0xff]  ;;  %2905 = vmatpush.msra.mxu1 %v2850_v54  ;;  %v5209_v43 = vor.u32 %v5860_v58, %v5206_v21 }
 0x309   :  { %v2113_v5 = vadd.f32 %v2112_v2, %v2040_v59  ;;  %2943 = vmatpush.msra.mxu2 %v5273_v12  ;;  %2886 = vmatpush.msra.mxu0 %v5256_v31  ;;  %v5285_v33 = vld [vmem:[%s9426_s3 + $0x198] sm:$0xff]  ;;  %v2845_v54 = vld [vmem:[%s9426_s3 + $0x10] sm:$0xff] }
 0x30a   :  { %2982 = vmatpush.msra.mxu3 %v5289_v20  ;;  %2906 = vmatpush.msra.mxu1 %v2849_v10  ;;  %v5268_v12 = vld [vmem:[%s9426_s3 + $0x110] sm:$0xff]  ;;  %v5313_v58 = vld [vmem:[%s9426_s3 + $0x278] sm:$0xff] }
 0x30b   :  { %v7733_v28 = vmax.f32 %v9495_v25, %v2113_v5  ;;  %v5271_v25 = vld [vmem:[%s9426_s3 + $0x128] sm:$0xff]  ;;  %2944 = vmatpush.msra.mxu2 %v5272_v1  ;;  %2887 = vmatpush.msra.mxu0 %v5255_v41  ;;  %v5284_v10 = vld [vmem:[%s9426_s3 + $0x190] sm:$0xff] }
 0x30c   :  { %2983 = vmatpush.msra.mxu3 %v5288_v13  ;;  %2907 = vmatpush.msra.mxu1 %v2848_v11  ;;  %v2844_v1 = vld [vmem:[%s9426_s3 + $0x8] sm:$0xff]  ;;  %v5250_v11 = vld [vmem:[%s9426_s3 + $0x80] sm:$0xff] }
 0x30d   :  { %9496 = vst [vmem:[#allocation11_spill] sm:$0xff] %v7733_v28  ;;  %2945 = vmatpush.msra.mxu2 %v5271_v25  ;;  %v5267_v13 = vld [vmem:[%s9426_s3 + $0x108] sm:$0xff]  ;;  %v2843_v25 = vld [vmem:[%s9426_s3] sm:$0xff] }
 0x30e   :  { %v2041_v50 = vpop.f32.mrf.mxu2  ;;  %v2455_v0 = vpop.f32.mrf.mxu0  ;;  %2984 = vmatpush.msra.mxu3 %v5287_v60  ;;  %v5283_v41 = vld [vmem:[%s9426_s3 + $0x188] sm:$0xff] }
 0x30f   :  { %v2114_v56 = vpop.f32.mrf.mxu3  ;;  %v2528_v51 = vpop.f32.mrf.mxu1  ;;  %v5212_v50 = vld [vmem:[%s9423_s0 + $0x5d8] sm:$0xf]  ;;  %2946 = vmatpush.msra.mxu2 %v5270_v42 }
 0x310   :  { %v2529_v62 = vadd.f32 %v2528_v51, %v2455_v0  ;;  %v5863_v56 = vld [vmem:[%s9423_s0 + $0x5e4] sm:$0xf0]  ;;  %v5861_v51 = vld [vmem:[%s9423_s0 + $0x5dc] sm:$0xf] }
 0x311   :  { %2494 = vmatmul.bf16.gmra.mxu0 %v5189_v15  ;;  %v5254_v15 = vld [vmem:[%s9426_s3 + $0xa0] sm:$0xff]  ;;  %v5213_v20 = vor.u32 %v5863_v56, %v5212_v50  ;;  %2947 = vmatpush.msra.mxu2 %v5269_v17  ;;  %v5329_v50 = vld [vmem:[%s9426_s3 + $0x2f8] sm:$0xff]  ;;  %v5864_v17 = vld [vmem:[%s9423_s0 + $0x5f4] sm:$0xf] }
 0x312   :  { %2567 = vmatmul.bf16.gmra.mxu1 %v5193_v52  ;;  %v2847_v52 = vld [vmem:[%s9426_s3 + $0x20] sm:$0xff]  ;;  %2888 = vmatpush.msra.mxu0 %v5254_v15  ;;  %v5345_v56 = vld [vmem:[%s9426_s3 + $0x378] sm:$0xff] }
 0x313   :  { %2640 = vmatmul.bf16.gmra.mxu2 %v5197_v46  ;;  %v5214_v46 = vld [vmem:[%s9423_s0 + $0x5e8] sm:$0xf0]  ;;  %2908 = vmatpush.msra.mxu1 %v2847_v52  ;;  %v5361_v42 = vld [vmem:[%s9426_s3 + $0x3f8] sm:$0xff] }
 0x314   :  { %2713 = vmatmul.bf16.gmra.mxu3 %v5201_v48  ;;  %v5286_v48 = vld [vmem:[%s9426_s3 + $0x1a0] sm:$0xff]  ;;  %v5217_v31 = vor.u32 %v5861_v51, %v5214_v46  ;;  %2948 = vmatpush.msra.mxu2 %v5268_v12  ;;  %v5312_v51 = vld [vmem:[%s9426_s3 + $0x270] sm:$0xff]  ;;  %v5327_v12 = vld [vmem:[%s9426_s3 + $0x2e8] sm:$0xff] }
 0x315   :  { %2985 = vmatpush.msra.mxu3 %v5286_v48  ;;  %2909 = vmatpush.msra.mxu1 %v2846_v32  ;;  %v5328_v46 = vld [vmem:[%s9426_s3 + $0x2f0] sm:$0xff]  ;;  %v5866_v32 = vld [vmem:[%s9423_s0 + $0x5fc] sm:$0xf0] }
 0x316   :  { %v2601_v2 = vpop.f32.mrf.mxu2  ;;  %v7795_v23 = vpop.f32.mrf.mxu0  ;;  %2949 = vmatpush.msra.mxu2 %v5267_v13  ;;  %v5344_v48 = vld [vmem:[%s9426_s3 + $0x370] sm:$0xff]  ;;  %v5326_v13 = vld [vmem:[%s9426_s3 + $0x2e0] sm:$0xff] }
 0x317   :  { %v2674_v59 = vpop.f32.mrf.mxu3  ;;  %v2602_v30 = vadd.f32 %v2601_v2, %v2529_v62  ;;  %v7797_v5 = vpop.f32.mrf.mxu1  ;;  %v5253_v62 = vld [vmem:[%s9426_s3 + $0x98] sm:$0xff]  ;;  %2986 = vmatpush.msra.mxu3 %v5285_v33  ;;  %2910 = vmatpush.msra.mxu1 %v2845_v54  ;;  %v5222_v33 = vld [vmem:[%s9423_s0 + $0x600] sm:$0xf0]  ;;  %v5867_v54 = vld [vmem:[%s9423_s0 + $0x604] sm:$0xf0] }
 0x318   :  { %2889 = vmatpush.msra.mxu0 %v5253_v62  ;;  %2950 = vmatpush.msra.mxu2 %v5266_v18  ;;  %v5220_v62 = vld [vmem:[%s9423_s0 + $0x5f0] sm:$0xf] }
 0x319   :  { %v7814_v27 = vadd.f32 %v2674_v59, %v2602_v30  ;;  %v5251_v30 = vld [vmem:[%s9426_s3 + $0x88] sm:$0xff]  ;;  %2987 = vmatpush.msra.mxu3 %v5284_v10  ;;  %2911 = vmatpush.msra.mxu1 %v2844_v1 }
 0x31a   :  { %2890 = vmatpush.msra.mxu0 %v5252_v4  ;;  %3091 = vmatpush.msrb.mxu2 %v5345_v56  ;;  %v5228_v4 = vld [vmem:[%s9423_s0 + $0x5f8] sm:$0xf]  ;;  %v5359_v10 = vld [vmem:[%s9426_s3 + $0x3e8] sm:$0xff] }
 0x31b   :  { %2988 = vmatpush.msra.mxu3 %v5283_v41  ;;  %2912 = vmatpush.msra.mxu1 %v2843_v25  ;;  %v5230_v1 = vld [vmem:[%s9423_s0 + $0x608] sm:$0xf0]  ;;  %v5342_v41 = vld [vmem:[%s9426_s3 + $0x360] sm:$0xff]  ;;  %v5309_v25 = vld [vmem:[%s9426_s3 + $0x258] sm:$0xff] }
 0x31c   :  { %2891 = vmatpush.msra.mxu0 %v5251_v30  ;;  %3092 = vmatpush.msrb.mxu2 %v5344_v48  ;;  %v5310_v30 = vld [vmem:[%s9426_s3 + $0x260] sm:$0xff]  ;;  %v5325_v56 = vld [vmem:[%s9426_s3 + $0x2d8] sm:$0xff]  ;;  %v5229_v48 = vor.u32 %v5867_v54, %v5228_v4  ;;  %v5307_v4 = vld [vmem:[%s9426_s3 + $0x248] sm:$0xff] }
 0x31d   :  { %2989 = vmatpush.msra.mxu3 %v5282_v14  ;;  %3052 = vmatpush.msrb.mxu1 %v5329_v50  ;;  %v5225_v50 = vor.u32 %v5864_v17, %v5222_v33  ;;  %v5324_v17 = vld [vmem:[%s9426_s3 + $0x2d0] sm:$0xff]  ;;  %v5323_v54 = vld [vmem:[%s9426_s3 + $0x2c8] sm:$0xff] }
 0x31e   :  { %v7869_v55 = vpop.f32.mrf.mxu2  ;;  %v7882_v2 = vpop.f32.mrf.mxu0  ;;  %2892 = vmatpush.msra.mxu0 %v5250_v11  ;;  %v5358_v11 = vld [vmem:[%s9426_s3 + $0x3e0] sm:$0xff]  ;;  %v5340_v33 = vld [vmem:[%s9426_s3 + $0x350] sm:$0xff] }
 0x31f   :  { %v7871_v26 = vpop.f32.mrf.mxu3  ;;  %v7884_v59 = vpop.f32.mrf.mxu1  ;;  %3130 = vmatpush.msrb.mxu3 %v5361_v42  ;;  %3053 = vmatpush.msrb.mxu1 %v5328_v46  ;;  %v5341_v42 = vld [vmem:[%s9426_s3 + $0x358] sm:$0xff] }
 0x320   :  { %3013 = vmatpush.msrb.mxu0 %v5313_v58  ;;  %v5221_v58 = vor.u32 %v5866_v32, %v5220_v62  ;;  %v5357_v62 = vld [vmem:[%s9426_s3 + $0x3d8] sm:$0xff]  ;;  %v5308_v32 = vld [vmem:[%s9426_s3 + $0x250] sm:$0xff]  ;;  %v2534_v61 = vadd.f32 %v7884_v59, %v7882_v2 }
 0x321   :  { %2499 = vmatmul.bf16.gmra.mxu0 %v5205_v3  ;;  %v5360_v3 = vld [vmem:[%s9426_s3 + $0x3f0] sm:$0xff]  ;;  %3054 = vmatpush.msrb.mxu1 %v5327_v12  ;;  %v5339_v12 = vld [vmem:[%s9426_s3 + $0x348] sm:$0xff] }
 0x322   :  { %2572 = vmatmul.bf16.gmra.mxu1 %v5209_v43  ;;  %v5311_v43 = vld [vmem:[%s9426_s3 + $0x268] sm:$0xff]  ;;  %3014 = vmatpush.msrb.mxu0 %v5312_v51 }
 0x323   :  { %2645 = vmatmul.bf16.gmra.mxu2 %v5213_v20  ;;  %v5343_v20 = vld [vmem:[%s9426_s3 + $0x368] sm:$0xff]  ;;  %3131 = vmatpush.msrb.mxu3 %v5360_v3 }
 0x324   :  { %2718 = vmatmul.bf16.gmra.mxu3 %v5217_v31  ;;  %v5865_v31 = vld [vmem:[%s9423_s0 + $0x5fc] sm:$0xf]  ;;  %3015 = vmatpush.msrb.mxu0 %v5311_v43  ;;  %v5356_v43 = vld [vmem:[%s9426_s3 + $0x3d0] sm:$0xff] }
 0x325   :  { %3093 = vmatpush.msrb.mxu2 %v5343_v20  ;;  %3132 = vmatpush.msrb.mxu3 %v5359_v10  ;;  %v5233_v3 = vor.u32 %v5865_v31, %v5230_v1  ;;  %v5355_v20 = vld [vmem:[%s9426_s3 + $0x3c8] sm:$0xff]  ;;  %v5306_v31 = vld [vmem:[%s9426_s3 + $0x240] sm:$0xff] }
 0x326   :  { %v7916_v21 = vpop.f32.mrf.mxu2  ;;  %v7926_v15 = vpop.f32.mrf.mxu0  ;;  %3016 = vmatpush.msrb.mxu0 %v5310_v30  ;;  %3055 = vmatpush.msrb.mxu1 %v5326_v13  ;;  %v5322_v1 = vld [vmem:[%s9426_s3 + $0x2c0] sm:$0xff] }
 0x327   :  { %v7918_v60 = vpop.f32.mrf.mxu3  ;;  %v7928_v52 = vpop.f32.mrf.mxu1  ;;  %3094 = vmatpush.msrb.mxu2 %v5342_v41  ;;  %3133 = vmatpush.msrb.mxu3 %v5358_v11  ;;  %v5338_v13 = vld [vmem:[%s9426_s3 + $0x340] sm:$0xff] }
 0x328   :  { %3017 = vmatpush.msrb.mxu0 %v5309_v25  ;;  %3056 = vmatpush.msrb.mxu1 %v5325_v56  ;;  %v5354_v25 = vld [vmem:[%s9426_s3 + $0x3c0] sm:$0xff]  ;;  %v5337_v56 = vld [vmem:[%s9426_s3 + $0x338] sm:$0xff] }
 0x329   :  { %3095 = vmatpush.msrb.mxu2 %v5341_v42  ;;  %3134 = vmatpush.msrb.mxu3 %v5357_v62  ;;  %v5236_v42 = vld [vmem:[%s9423_s0 + $0x610] sm:$0xf]  ;;  %v5238_v62 = vld [vmem:[%s9423_s0 + $0x620] sm:$0xf0] }
 0x32a   :  { %3018 = vmatpush.msrb.mxu0 %v5308_v32  ;;  %3057 = vmatpush.msrb.mxu1 %v5324_v17  ;;  %v5353_v32 = vld [vmem:[%s9426_s3 + $0x3b8] sm:$0xff]  ;;  %v5304_v17 = vld [vmem:[%s9426_s3 + $0x230] sm:$0xff] }
 0x32b   :  { %3096 = vmatpush.msrb.mxu2 %v5340_v33  ;;  %3135 = vmatpush.msrb.mxu3 %v5356_v43  ;;  %v5244_v33 = vld [vmem:[%s9423_s0 + $0x618] sm:$0xf]  ;;  %v5871_v43 = vld [vmem:[%s9423_s0 + $0x624] sm:$0xf0] }
 0x32c   :  { %3019 = vmatpush.msrb.mxu0 %v5307_v4  ;;  %3058 = vmatpush.msrb.mxu1 %v5323_v54  ;;  %v5320_v4 = vld [vmem:[%s9426_s3 + $0x2b0] sm:$0xff]  ;;  %v5245_v49 = vor.u32 %v5871_v43, %v5244_v33  ;;  %v5349_v33 = vld [vmem:[%s9426_s3 + $0x398] sm:$0xff] }
 0x32d   :  { %3097 = vmatpush.msrb.mxu2 %v5339_v12  ;;  %3136 = vmatpush.msrb.mxu3 %v5355_v20  ;;  %v5336_v54 = vld [vmem:[%s9426_s3 + $0x330] sm:$0xff]  ;;  %v5869_v12 = vld [vmem:[%s9423_s0 + $0x61c] sm:$0xf] }
 0x32e   :  { %v7996_v18 = vpop.f32.mrf.mxu2  ;;  %v8006_v51 = vpop.f32.mrf.mxu0  ;;  %3020 = vmatpush.msrb.mxu0 %v5306_v31  ;;  %3059 = vmatpush.msrb.mxu1 %v5322_v1  ;;  %v5352_v20 = vld [vmem:[%s9426_s3 + $0x3b0] sm:$0xff]  ;;  %v5303_v31 = vld [vmem:[%s9426_s3 + $0x228] sm:$0xff] }
 0x32f   :  { %v7998_v14 = vpop.f32.mrf.mxu3  ;;  %v8008_v46 = vpop.f32.mrf.mxu1  ;;  %3098 = vmatpush.msrb.mxu2 %v5338_v13  ;;  %3137 = vmatpush.msrb.mxu3 %v5354_v25  ;;  %v5246_v1 = vld [vmem:[%s9423_s0 + $0x628] sm:$0xf0]  ;;  %v5300_v43 = vld [vmem:[%s9426_s3 + $0x210] sm:$0xff] }
 0x330   :  { %v5319_v13 = vld [vmem:[%s9426_s3 + $0x2a8] sm:$0xff]  ;;  %v5249_v34 = vor.u32 %v5869_v12, %v5246_v1  ;;  %v5332_v12 = vld [vmem:[%s9426_s3 + $0x310] sm:$0xff] }
 0x331   :  { %2504 = vmatmul.bf16.gmra.mxu0 %v5221_v58  ;;  %v5305_v58 = vld [vmem:[%s9426_s3 + $0x238] sm:$0xff]  ;;  %3099 = vmatpush.msrb.mxu2 %v5337_v56  ;;  %v5335_v25 = vld [vmem:[%s9426_s3 + $0x328] sm:$0xff] }
 0x332   :  { %2577 = vmatmul.bf16.gmra.mxu1 %v5225_v50  ;;  %v5321_v50 = vld [vmem:[%s9426_s3 + $0x2b8] sm:$0xff]  ;;  %3021 = vmatpush.msrb.mxu0 %v5305_v58  ;;  %v5351_v58 = vld [vmem:[%s9426_s3 + $0x3a8] sm:$0xff] }
 0x333   :  { %2650 = vmatmul.bf16.gmra.mxu2 %v5229_v48  ;;  %v5870_v48 = vld [vmem:[%s9423_s0 + $0x61c] sm:$0xf0]  ;;  %3060 = vmatpush.msrb.mxu1 %v5321_v50  ;;  %v5315_v1 = vld [vmem:[%s9426_s3 + $0x288] sm:$0xff] }
 0x334   :  { %2723 = vmatmul.bf16.gmra.mxu3 %v5233_v3  ;;  %v5868_v3 = vld [vmem:[%s9423_s0 + $0x614] sm:$0xf]  ;;  %3022 = vmatpush.msrb.mxu0 %v5304_v17  ;;  %v5302_v50 = vld [vmem:[%s9426_s3 + $0x220] sm:$0xff]  ;;  %v5237_v17 = vor.u32 %v5870_v48, %v5236_v42  ;;  %v5301_v48 = vld [vmem:[%s9426_s3 + $0x218] sm:$0xff] }
 0x335   :  { %3138 = vmatpush.msrb.mxu3 %v5353_v32  ;;  %3061 = vmatpush.msrb.mxu1 %v5320_v4  ;;  %v5241_v0 = vor.u32 %v5868_v3, %v5238_v62  ;;  %v5318_v4 = vld [vmem:[%s9426_s3 + $0x2a0] sm:$0xff]  ;;  %v5317_v3 = vld [vmem:[%s9426_s3 + $0x298] sm:$0xff] }
 0x336   :  { %v8040_v10 = vpop.f32.mrf.mxu2  ;;  %v8050_v41 = vpop.f32.mrf.mxu0  ;;  %3100 = vmatpush.msrb.mxu2 %v5336_v54  ;;  %3023 = vmatpush.msrb.mxu0 %v5303_v31  ;;  %v5334_v54 = vld [vmem:[%s9426_s3 + $0x320] sm:$0xff]  ;;  %v5333_v62 = vld [vmem:[%s9426_s3 + $0x318] sm:$0xff] }
 0x337   :  { %v8042_v30 = vpop.f32.mrf.mxu3  ;;  %v8052_v11 = vpop.f32.mrf.mxu1  ;;  %3139 = vmatpush.msrb.mxu3 %v5352_v20  ;;  %3062 = vmatpush.msrb.mxu1 %v5319_v13  ;;  %v5350_v42 = vld [vmem:[%s9426_s3 + $0x3a0] sm:$0xff]  ;;  %v5331_v13 = vld [vmem:[%s9426_s3 + $0x308] sm:$0xff] }
 0x338   :  { %3101 = vmatpush.msrb.mxu2 %v5335_v25  ;;  %3024 = vmatpush.msrb.mxu0 %v5302_v50  ;;  %v5056_v50 = vld [vmem:[%s9423_s0 + $0x630] sm:$0xff] }
 0x339   :  { %3140 = vmatpush.msrb.mxu3 %v5351_v58  ;;  %3063 = vmatpush.msrb.mxu1 %v5318_v4  ;;  %v5298_v4 = vld [vmem:[%s9426_s3 + $0x200] sm:$0xff] }
 0x33a   :  { %3102 = vmatpush.msrb.mxu2 %v5334_v54  ;;  %3025 = vmatpush.msrb.mxu0 %v5301_v48  ;;  %v5057_v54 = vld [vmem:[%s9423_s0 + $0x638] sm:$0xff]  ;;  %v5330_v48 = vld [vmem:[%s9426_s3 + $0x300] sm:$0xff] }
 0x33b   :  { %3141 = vmatpush.msrb.mxu3 %v5350_v42  ;;  %3064 = vmatpush.msrb.mxu1 %v5317_v3  ;;  %v5314_v42 = vld [vmem:[%s9426_s3 + $0x280] sm:$0xff] }
 0x33c   :  { %3103 = vmatpush.msrb.mxu2 %v5333_v62  ;;  %3026 = vmatpush.msrb.mxu0 %v5300_v43  ;;  %v5346_v3 = vld [vmem:[%s9426_s3 + $0x380] sm:$0xff]  ;;  %v2338_v62 = vunpack.c.l.b16 %v5056_v50  ;;  %v2340_v43 = vunpack.c.l.b16 %v5057_v54 }
 0x33d   :  { %3142 = vmatpush.msrb.mxu3 %v5349_v33  ;;  %v2339_v33 = vunpack.c.h.b16 %v5056_v50  ;;  %v2536_v50 = vadd.f32 %v7928_v52, %v7926_v15 }
 0x33e   :  { %v8120_v56 = vpop.f32.mrf.mxu2  ;;  %v8130_v28 = vpop.f32.mrf.mxu0  ;;  %3104 = vmatpush.msrb.mxu2 %v5332_v12  ;;  %v2531_v12 = vadd.f32 %v7797_v5, %v7795_v23  ;;  %v2607_v23 = vadd.f32 %v7916_v21, %v2534_v61  ;;  %v8222_v61 = vld [vmem:[%s9425_s2] ss:$0 sm:$0xff] }
 0x33f   :  { %v8122_v32 = vpop.f32.mrf.mxu3  ;;  %v8132_v8 = vpop.f32.mrf.mxu1  ;;  %v2609_v5 = vadd.f32 %v7996_v18, %v2536_v50 }
 0x340   :  { %3105 = vmatpush.msrb.mxu2 %v5331_v13  ;;  %v2391_v13 = vpack.c.b16 %v2339_v33, %v2339_v33  ;;  %v2680_v59 = vadd.f32 %v7918_v60, %v2607_v23  ;;  %v2541_v60 = vadd.f32 %v8052_v11, %v8050_v41  ;;  %v2544_v33 = vadd.f32 %v8132_v8, %v8130_v28  ;;  %v5408_v23 = vld [vmem:[%s9426_s3 + $0x570] sm:$0xff] }
 0x341   :  { %2509 = vmatmul.bf16.gmra.mxu0 %v5237_v17  ;;  %v5347_v17 = vld [vmem:[%s9426_s3 + $0x388] sm:$0xff]  ;;  %v2682_v15 = vadd.f32 %v7998_v14, %v2609_v5 }
 0x342   :  { %2582 = vmatmul.bf16.gmra.mxu1 %v5241_v0  ;;  %v5316_v0 = vld [vmem:[%s9426_s3 + $0x290] sm:$0xff]  ;;  %3106 = vmatpush.msrb.mxu2 %v5330_v48  ;;  %v2604_v48 = vadd.f32 %v7869_v55, %v2531_v12  ;;  %v2740_v18 = vmax.f32 %v7305_v24, %v2680_v59  ;;  %v2614_v12 = vadd.f32 %v8120_v56, %v2541_v60  ;;  %v5391_v5 = vld [vmem:[%s9426_s3 + $0x4e8] sm:$0xff] }
 0x343   :  { %2655 = vmatmul.bf16.gmra.mxu2 %v5245_v49  ;;  %v5299_v49 = vld [vmem:[%s9426_s3 + $0x208] sm:$0xff]  ;;  %3065 = vmatpush.msrb.mxu1 %v5316_v0  ;;  %v2341_v0 = vunpack.c.h.b16 %v5057_v54  ;;  %v2392_v54 = vpack.c.b16 %v2340_v43, %v2340_v43  ;;  %v2741_v14 = vmax.f32 %v7328_v6, %v2682_v15 }
 0x344   :  { %2728 = vmatmul.bf16.gmra.mxu3 %v5249_v34  ;;  %v5348_v34 = vld [vmem:[%s9426_s3 + $0x390] sm:$0xff]  ;;  %3027 = vmatpush.msrb.mxu0 %v5299_v49  ;;  %v2677_v2 = vadd.f32 %v7871_v26, %v2604_v48  ;;  %v2539_v26 = vadd.f32 %v8008_v46, %v8006_v51  ;;  %v9497_v51 = vmax.f32 %v7271_v45, %v7814_v27  ;;  %v5423_v60 = vld [vmem:[%s9426_s3 + $0x5e8] sm:$0xff] }
 0x345   :  { %3143 = vmatpush.msrb.mxu3 %v5348_v34  ;;  %3066 = vmatpush.msrb.mxu1 %v5315_v1  ;;  %v2390_v1 = vpack.c.b16 %v2338_v62, %v2338_v62  ;;  %v2769_v6 = vadd.f32 %v8222_v61, %v2740_v18  ;;  %v2770_v41 = vadd.f32 %v8222_v61, %v2741_v14 }
 0x346   :  { %v8164_v20 = vpop.f32.mrf.mxu2  ;;  %v2472_v25 = vpop.f32.mrf.mxu0  ;;  %3028 = vmatpush.msrb.mxu0 %v5298_v4  ;;  %v2739_v21 = vmax.f32 %v7294_v16, %v2677_v2  ;;  %v2767_v46 = vadd.f32 %v8222_v61, %v9497_v51  ;;  %v2687_v28 = vadd.f32 %v8122_v32, %v2614_v12  ;;  %v5393_v32 = vld [vmem:[%s9426_s3 + $0x4f8] sm:$0xff]  ;;  %v5390_v12 = vld [vmem:[%s9426_s3 + $0x4e0] sm:$0xff] }
 0x347   :  { %v8166_v31 = vpop.f32.mrf.mxu3  ;;  %v2545_v58 = vpop.f32.mrf.mxu1  ;;  %3144 = vmatpush.msrb.mxu3 %v5347_v17  ;;  %3067 = vmatpush.msrb.mxu1 %v5314_v42  ;;  %v2393_v42 = vpack.c.b16 %v2341_v0, %v2341_v0  ;;  %v2612_v0 = vadd.f32 %v8040_v10, %v2539_v26  ;;  %v2617_v16 = vadd.f32 %v8164_v20, %v2544_v33  ;;  %v5407_v26 = vld [vmem:[%s9426_s3 + $0x568] sm:$0xff] }
 0x348   :  { %v2546_v43 = vadd.f32 %v2545_v58, %v2472_v25  ;;  %v2768_v24 = vadd.f32 %v8222_v61, %v2739_v21  ;;  %v2792_v25 = vmax.f32 %v2767_v46, 0.0 }
 0x349   :  { %3145 = vmatpush.msrb.mxu3 %v5346_v3  ;;  %v2685_v8 = vadd.f32 %v8042_v30, %v2612_v0  ;;  %v2690_v56 = vadd.f32 %v8166_v31, %v2617_v16  ;;  %v5377_v30 = vld [vmem:[%s9426_s3 + $0x478] sm:$0xff]  ;;  %v2743_v31 = vmax.f32 %v7362_v29, %v2687_v28  ;;  %v5392_v29 = vld [vmem:[%s9426_s3 + $0x4f0] sm:$0xff]  ;;  %v5374_v0 = vld [vmem:[%s9426_s3 + $0x460] sm:$0xff] }
 0x34a   :  { %v2793_v58 = vmax.f32 %v2768_v24, 0.0  ;;  %v5406_v16 = vld [vmem:[%s9426_s3 + $0x560] sm:$0xff]  ;;  %v5405_v28 = vld [vmem:[%s9426_s3 + $0x558] sm:$0xff] }
 0x34b   :  { %v2742_v50 = vmax.f32 %v7339_v57, %v2685_v8  ;;  %v5376_v57 = vld [vmem:[%s9426_s3 + $0x470] sm:$0xff]  ;;  %v2772_v59 = vadd.f32 %v8222_v61, %v2743_v31  ;;  %v5389_v8 = vld [vmem:[%s9426_s3 + $0x4d8] sm:$0xff] }
 0x34d   :  { %v2771_v2 = vadd.f32 %v8222_v61, %v2742_v50  ;;  %v2797_v46 = vmax.f32 %v2772_v59, 0.0  ;;  %v5387_v50 = vld [vmem:[%s9426_s3 + $0x4c8] sm:$0xff] }
 0x34e   :  { %v2618_v34 = vpop.f32.mrf.mxu2  ;;  %v8201_v17 = vpop.f32.mrf.mxu0 }
 0x34f   :  { %v2691_v49 = vpop.f32.mrf.mxu3  ;;  %v8203_v4 = vpop.f32.mrf.mxu1  ;;  %v2796_v51 = vmax.f32 %v2771_v2, 0.0 }
 0x351   :  { %2514 = vmatmul.bf16.gmra.mxu0 %v2390_v1  ;;  %v2619_v1 = vadd.f32 %v2618_v34, %v2546_v43  ;;  %v2794_v34 = vmax.f32 %v2769_v6, 0.0 }
 0x352   :  { %2587 = vmatmul.bf16.gmra.mxu1 %v2391_v13  ;;  %v2795_v13 = vmax.f32 %v2770_v41, 0.0  ;;  %v5373_v41 = vld [vmem:[%s9426_s3 + $0x458] sm:$0xff] }
 0x353   :  { %2660 = vmatmul.bf16.gmra.mxu2 %v2392_v54  ;;  %v2692_v20 = vadd.f32 %v2691_v49, %v2619_v1  ;;  %v5409_v49 = vld [vmem:[%s9426_s3 + $0x578] sm:$0xff]  ;;  %v5422_v1 = vld [vmem:[%s9426_s3 + $0x5e0] sm:$0xff] }
 0x354   :  { %2733 = vmatmul.bf16.gmra.mxu3 %v2393_v42  ;;  %v5425_v54 = vld [vmem:[%s9426_s3 + $0x5f8] sm:$0xff]  ;;  %v2744_v42 = vmax.f32 %v7373_v53, %v2690_v56  ;;  %v5424_v53 = vld [vmem:[%s9426_s3 + $0x5f0] sm:$0xff] }
 0x355   :  { %v2745_v48 = vmax.f32 %v7378_v37, %v2692_v20  ;;  %v5375_v37 = vld [vmem:[%s9426_s3 + $0x468] sm:$0xff]  ;;  %v5421_v56 = vld [vmem:[%s9426_s3 + $0x5d8] sm:$0xff]  ;;  %v5372_v20 = vld [vmem:[%s9426_s3 + $0x450] sm:$0xff] }
 0x356   :  { %v8211_v52 = vpop.f32.mrf.mxu2  ;;  %v8215_v62 = vpop.f32.mrf.mxu0  ;;  %v2773_v18 = vadd.f32 %v8222_v61, %v2744_v42  ;;  %v5419_v42 = vld [vmem:[%s9426_s3 + $0x5c8] sm:$0xff] }
 0x357   :  { %v8213_v3 = vpop.f32.mrf.mxu3  ;;  %v8217_v55 = vpop.f32.mrf.mxu1  ;;  %v2774_v14 = vadd.f32 %v8222_v61, %v2745_v48  ;;  %v5370_v48 = vld [vmem:[%s9426_s3 + $0x440] sm:$0xff] }
 0x358   :  { %v2798_v24 = vmax.f32 %v2773_v18, 0.0 }
 0x359   :  { %v2799_v6 = vmax.f32 %v2774_v14, 0.0 }
 0x35e   :  { %v8245_v10 = vpop.f32.mrf.mxu2  ;;  %v8250_v45 = vpop.f32.mrf.mxu0 }
 0x35f   :  { %v8247_v11 = vpop.f32.mrf.mxu3  ;;  %v8252_v27 = vpop.f32.mrf.mxu1 }
 0x361   :  { %2893 = vmatmul.f32.vlgmr.msra.gmra.mxu0 %v2793_v58  ;;  %v5404_v58 = vld [vmem:[%s9426_s3 + $0x550] sm:$0xff] }
 0x362   :  { %2913 = vmatmul.f32.vlgmr.msra.gmra.mxu1 %v2792_v25  ;;  %3169 = vmatpush.msra.mxu0 %v5377_v30  ;;  %v5388_v25 = vld [vmem:[%s9426_s3 + $0x4d0] sm:$0xff] }
 0x363   :  { %2951 = vmatmul.f32.vlgmr.msra.gmra.mxu2 %v2794_v34  ;;  %3208 = vmatpush.msra.mxu1 %v5393_v32  ;;  %v5420_v34 = vld [vmem:[%s9426_s3 + $0x5d0] sm:$0xff]  ;;  %v5371_v32 = vld [vmem:[%s9426_s3 + $0x448] sm:$0xff] }
 0x364   :  { %2990 = vmatmul.f32.vlgmr.msra.gmra.mxu3 %v2795_v13  ;;  %3247 = vmatpush.msra.mxu2 %v5409_v49 }
 0x365   :  { %3286 = vmatpush.msra.mxu3 %v5425_v54  ;;  %3170 = vmatpush.msra.mxu0 %v5376_v57  ;;  %v5403_v54 = vld [vmem:[%s9426_s3 + $0x548] sm:$0xff]  ;;  %v5386_v57 = vld [vmem:[%s9426_s3 + $0x4c0] sm:$0xff] }
 0x366   :  { %3209 = vmatpush.msra.mxu1 %v5392_v29  ;;  %v8290_v15 = vpop.f32.mrf.mxu2  ;;  %3248 = vmatpush.msra.mxu2 %v5408_v23  ;;  %v2482_v33 = vpop.f32.mrf.mxu0  ;;  %v2549_v29 = vadd.f32 %v8203_v4, %v8201_v17  ;;  %v2551_v23 = vadd.f32 %v8217_v55, %v8215_v62  ;;  %v5369_v17 = vld [vmem:[%s9426_s3 + $0x438] sm:$0xff] }
 0x367   :  { %v8292_v21 = vpop.f32.mrf.mxu3  ;;  %3287 = vmatpush.msra.mxu3 %v5424_v53  ;;  %v2555_v43 = vpop.f32.mrf.mxu1  ;;  %3171 = vmatpush.msra.mxu0 %v5375_v37  ;;  %v5402_v53 = vld [vmem:[%s9426_s3 + $0x540] sm:$0xff]  ;;  %v5385_v4 = vld [vmem:[%s9426_s3 + $0x4b8] sm:$0xff] }
 0x368   :  { %3210 = vmatpush.msra.mxu1 %v5391_v5  ;;  %3249 = vmatpush.msra.mxu2 %v5407_v26  ;;  %v5418_v37 = vld [vmem:[%s9426_s3 + $0x5c0] sm:$0xff]  ;;  %v2554_v5 = vadd.f32 %v8252_v27, %v8250_v45  ;;  %v2556_v2 = vadd.f32 %v2555_v43, %v2482_v33  ;;  %v2622_v62 = vadd.f32 %v8211_v52, %v2549_v29  ;;  %v5401_v45 = vld [vmem:[%s9426_s3 + $0x538] sm:$0xff]  ;;  %v5368_v52 = vld [vmem:[%s9426_s3 + $0x430] sm:$0xff] }
 0x369   :  { %3288 = vmatpush.msra.mxu3 %v5423_v60  ;;  %3172 = vmatpush.msra.mxu0 %v5374_v0  ;;  %v2624_v55 = vadd.f32 %v8245_v10, %v2551_v23  ;;  %v5417_v27 = vld [vmem:[%s9426_s3 + $0x5b8] sm:$0xff]  ;;  %v5384_v10 = vld [vmem:[%s9426_s3 + $0x4b0] sm:$0xff]  ;;  %v5367_v33 = vld [vmem:[%s9426_s3 + $0x428] sm:$0xff] }
 0x36a   :  { %3211 = vmatpush.msra.mxu1 %v5390_v12  ;;  %3250 = vmatpush.msra.mxu2 %v5406_v16  ;;  %v2627_v59 = vadd.f32 %v8290_v15, %v2554_v5  ;;  %v5400_v60 = vld [vmem:[%s9426_s3 + $0x530] sm:$0xff]  ;;  %v5383_v43 = vld [vmem:[%s9426_s3 + $0x4a8] sm:$0xff]  ;;  %v2695_v16 = vadd.f32 %v8213_v3, %v2622_v62  ;;  %v5366_v3 = vld [vmem:[%s9426_s3 + $0x420] sm:$0xff] }
 0x36b   :  { %3289 = vmatpush.msra.mxu3 %v5422_v1  ;;  %3029 = vmatmul.f32.vlgmr.msrb.gmra.mxu0 %v2796_v51  ;;  %v5416_v15 = vld [vmem:[%s9426_s3 + $0x5b0] sm:$0xff]  ;;  %v2697_v1 = vadd.f32 %v8247_v11, %v2624_v55  ;;  %v5399_v51 = vld [vmem:[%s9426_s3 + $0x528] sm:$0xff]  ;;  %v5382_v11 = vld [vmem:[%s9426_s3 + $0x4a0] sm:$0xff] }
 0x36c   :  { %3068 = vmatmul.f32.vlgmr.msrb.gmra.mxu1 %v2797_v46  ;;  %3107 = vmatmul.f32.vlgmr.msrb.gmra.mxu2 %v2798_v24  ;;  %v5415_v46 = vld [vmem:[%s9426_s3 + $0x5a8] sm:$0xff]  ;;  %v2700_v24 = vadd.f32 %v8292_v21, %v2627_v59  ;;  %v5414_v21 = vld [vmem:[%s9426_s3 + $0x5a0] sm:$0xff] }
 0x36d   :  { %3146 = vmatmul.f32.vlgmr.msrb.gmra.mxu3 %v2799_v6  ;;  %3173 = vmatpush.msra.mxu0 %v5373_v41  ;;  %v5398_v41 = vld [vmem:[%s9426_s3 + $0x520] sm:$0xff]  ;;  %v5395_v23 = vld [vmem:[%s9426_s3 + $0x508] sm:$0xff] }
 0x36e   :  { %3212 = vmatpush.msra.mxu1 %v5389_v8  ;;  %v2628_v13 = vpop.f32.mrf.mxu2  ;;  %3251 = vmatpush.msra.mxu2 %v5405_v28  ;;  %v8344_v31 = vpop.f32.mrf.mxu0  ;;  %v5365_v8 = vld [vmem:[%s9426_s3 + $0x418] sm:$0xff]  ;;  %v5410_v62 = vld [vmem:[%s9426_s3 + $0x580] sm:$0xff] }
 0x36f   :  { %v2701_v30 = vpop.f32.mrf.mxu3  ;;  %3290 = vmatpush.msra.mxu3 %v5421_v56  ;;  %v8346_v49 = vpop.f32.mrf.mxu1  ;;  %3174 = vmatpush.msra.mxu0 %v5372_v20  ;;  %v2629_v26 = vadd.f32 %v2628_v13, %v2556_v2  ;;  %v5381_v28 = vld [vmem:[%s9426_s3 + $0x498] sm:$0xff]  ;;  %v2746_v56 = vmax.f32 %v7389_v9, %v2695_v16  ;;  %v2747_v20 = vmax.f32 %v7412_v19, %v2697_v1  ;;  %v5364_v9 = vld [vmem:[%s9426_s3 + $0x410] sm:$0xff]  ;;  %v5362_v2 = vld [vmem:[%s9426_s3 + $0x400] sm:$0xff] }
 0x370   :  { %3213 = vmatpush.msra.mxu1 %v5388_v25  ;;  %3252 = vmatpush.msra.mxu2 %v5404_v58  ;;  %v5397_v25 = vld [vmem:[%s9426_s3 + $0x518] sm:$0xff]  ;;  %v5380_v19 = vld [vmem:[%s9426_s3 + $0x490] sm:$0xff] }
 0x371   :  { %3291 = vmatpush.msra.mxu3 %v5420_v34  ;;  %3175 = vmatpush.msra.mxu0 %v5371_v32  ;;  %v2702_v6 = vadd.f32 %v2701_v30, %v2629_v26  ;;  %v5413_v58 = vld [vmem:[%s9426_s3 + $0x598] sm:$0xff]  ;;  %v2748_v34 = vmax.f32 %v7423_v22, %v2700_v24  ;;  %v5396_v30 = vld [vmem:[%s9426_s3 + $0x510] sm:$0xff]  ;;  %v2776_v29 = vadd.f32 %v8222_v61, %v2747_v20 }
 0x372   :  { %3214 = vmatpush.msra.mxu1 %v5387_v50  ;;  %3253 = vmatpush.msra.mxu2 %v5403_v54  ;;  %v5412_v22 = vld [vmem:[%s9426_s3 + $0x590] sm:$0xff]  ;;  %v5363_v50 = vld [vmem:[%s9426_s3 + $0x408] sm:$0xff]  ;;  %v5441_v26 = vld [vmem:[%s9426_s3 + $0x678] sm:$0xff] }
 0x373   :  { %3292 = vmatpush.msra.mxu3 %v5419_v42  ;;  %3176 = vmatpush.msra.mxu0 %v5370_v48  ;;  %v2749_v13 = vmax.f32 %v7446_v47, %v2702_v6  ;;  %v5379_v54 = vld [vmem:[%s9426_s3 + $0x488] sm:$0xff]  ;;  %v5456_v16 = vld [vmem:[%s9426_s3 + $0x6f0] sm:$0xff]  ;;  %v5437_v20 = vld [vmem:[%s9426_s3 + $0x658] sm:$0xff] }
 0x374   :  { %3215 = vmatpush.msra.mxu1 %v5386_v57  ;;  %3254 = vmatpush.msra.mxu2 %v5402_v53  ;;  %v2775_v57 = vadd.f32 %v8222_v61, %v2746_v56  ;;  %v5411_v53 = vld [vmem:[%s9426_s3 + $0x588] sm:$0xff]  ;;  %v5488_v24 = vld [vmem:[%s9426_s3 + $0x7f0] sm:$0xff]  ;;  %v5486_v56 = vld [vmem:[%s9426_s3 + $0x7e0] sm:$0xff] }
 0x375   :  { %3293 = vmatpush.msra.mxu3 %v5418_v37  ;;  %3177 = vmatpush.msra.mxu0 %v5369_v17  ;;  %v2777_v37 = vadd.f32 %v8222_v61, %v2748_v34  ;;  %v2778_v5 = vadd.f32 %v8222_v61, %v2749_v13  ;;  %v5378_v17 = vld [vmem:[%s9426_s3 + $0x480] sm:$0xff]  ;;  %v5439_v6 = vld [vmem:[%s9426_s3 + $0x668] sm:$0xff]  ;;  %v5485_v34 = vld [vmem:[%s9426_s3 + $0x7d8] sm:$0xff] }
 0x376   :  { %3216 = vmatpush.msra.mxu1 %v5385_v4  ;;  %v8399_v18 = vpop.f32.mrf.mxu2  ;;  %3255 = vmatpush.msra.mxu2 %v5401_v45  ;;  %v8409_v0 = vpop.f32.mrf.mxu0  ;;  %v5394_v4 = vld [vmem:[%s9426_s3 + $0x500] sm:$0xff]  ;;  %v2800_v55 = vmax.f32 %v2775_v57, 0.0  ;;  %v2801_v45 = vmax.f32 %v2776_v29, 0.0  ;;  %v5484_v57 = vld [vmem:[%s9426_s3 + $0x7d0] sm:$0xff]  ;;  %v5435_v29 = vld [vmem:[%s9426_s3 + $0x648] sm:$0xff] }
 0x377   :  { %v8401_v14 = vpop.f32.mrf.mxu3  ;;  %3294 = vmatpush.msra.mxu3 %v5417_v27  ;;  %v8411_v12 = vpop.f32.mrf.mxu1  ;;  %3178 = vmatpush.msra.mxu0 %v5368_v52  ;;  %v2802_v27 = vmax.f32 %v2777_v37, 0.0  ;;  %v2803_v59 = vmax.f32 %v2778_v5, 0.0  ;;  %v5457_v52 = vld [vmem:[%s9426_s3 + $0x6f8] sm:$0xff]  ;;  %v5483_v37 = vld [vmem:[%s9426_s3 + $0x7c8] sm:$0xff]  ;;  %v5434_v5 = vld [vmem:[%s9426_s3 + $0x640] sm:$0xff] }
 0x378   :  { %3217 = vmatpush.msra.mxu1 %v5384_v10  ;;  %3256 = vmatpush.msra.mxu2 %v5400_v60  ;;  %v5473_v10 = vld [vmem:[%s9426_s3 + $0x778] sm:$0xff] }
 0x379   :  { %3295 = vmatpush.msra.mxu3 %v5416_v15  ;;  %3179 = vmatpush.msra.mxu0 %v5367_v33  ;;  %v5489_v60 = vld [vmem:[%s9426_s3 + $0x7f8] sm:$0xff] }
 0x37a   :  { %3218 = vmatpush.msra.mxu1 %v5383_v43  ;;  %3257 = vmatpush.msra.mxu2 %v5399_v51  ;;  %v5440_v43 = vld [vmem:[%s9426_s3 + $0x670] sm:$0xff] }
 0x37b   :  { %3296 = vmatpush.msra.mxu3 %v5415_v46  ;;  %3180 = vmatpush.msra.mxu0 %v5366_v3  ;;  %v5472_v46 = vld [vmem:[%s9426_s3 + $0x770] sm:$0xff]  ;;  %v5455_v3 = vld [vmem:[%s9426_s3 + $0x6e8] sm:$0xff] }
 0x37c   :  { %3219 = vmatpush.msra.mxu1 %v5382_v11  ;;  %3258 = vmatpush.msra.mxu2 %v5398_v41  ;;  %v5471_v11 = vld [vmem:[%s9426_s3 + $0x768] sm:$0xff] }
 0x37d   :  { %3297 = vmatpush.msra.mxu3 %v5414_v21  ;;  %3181 = vmatpush.msra.mxu0 %v5365_v8  ;;  %v5487_v41 = vld [vmem:[%s9426_s3 + $0x7e8] sm:$0xff]  ;;  %v5438_v21 = vld [vmem:[%s9426_s3 + $0x660] sm:$0xff] }
 0x37e   :  { %3220 = vmatpush.msra.mxu1 %v5381_v28  ;;  %v8462_v47 = vpop.f32.mrf.mxu2  ;;  %3259 = vmatpush.msra.mxu2 %v5397_v25  ;;  %v8472_v42 = vpop.f32.mrf.mxu0  ;;  %v5454_v8 = vld [vmem:[%s9426_s3 + $0x6e0] sm:$0xff]  ;;  %v5453_v25 = vld [vmem:[%s9426_s3 + $0x6d8] sm:$0xff] }
 0x37f   :  { %v8464_v32 = vpop.f32.mrf.mxu3  ;;  %3298 = vmatpush.msra.mxu3 %v5413_v58  ;;  %v8474_v48 = vpop.f32.mrf.mxu1  ;;  %3182 = vmatpush.msra.mxu0 %v5364_v9  ;;  %v5470_v28 = vld [vmem:[%s9426_s3 + $0x760] sm:$0xff]  ;;  %v5469_v58 = vld [vmem:[%s9426_s3 + $0x758] sm:$0xff] }
 0x380   :  { %3221 = vmatpush.msra.mxu1 %v5380_v19  ;;  %3260 = vmatpush.msra.mxu2 %v5396_v30  ;;  %v5436_v19 = vld [vmem:[%s9426_s3 + $0x650] sm:$0xff] }
 0x381   :  { %3299 = vmatpush.msra.mxu3 %v5412_v22  ;;  %3183 = vmatpush.msra.mxu0 %v5363_v50  ;;  %v5452_v30 = vld [vmem:[%s9426_s3 + $0x6d0] sm:$0xff] }
 0x382   :  { %3222 = vmatpush.msra.mxu1 %v5379_v54  ;;  %3261 = vmatpush.msra.mxu2 %v5395_v23  ;;  %v5468_v54 = vld [vmem:[%s9426_s3 + $0x750] sm:$0xff]  ;;  %v5451_v23 = vld [vmem:[%s9426_s3 + $0x6c8] sm:$0xff] }
 0x383   :  { %3300 = vmatpush.msra.mxu3 %v5411_v53  ;;  %3184 = vmatpush.msra.mxu0 %v5362_v2  ;;  %v5467_v53 = vld [vmem:[%s9426_s3 + $0x748] sm:$0xff]  ;;  %v5450_v2 = vld [vmem:[%s9426_s3 + $0x6c0] sm:$0xff] }
 0x384   :  { %3223 = vmatpush.msra.mxu1 %v5378_v17  ;;  %3262 = vmatpush.msra.mxu2 %v5394_v4  ;;  %v2559_v17 = vadd.f32 %v8346_v49, %v8344_v31  ;;  %v2561_v4 = vadd.f32 %v8411_v12, %v8409_v0  ;;  %v5433_v31 = vld [vmem:[%s9426_s3 + $0x638] sm:$0xff] }
 0x385   :  { %3301 = vmatpush.msra.mxu3 %v5410_v62  ;;  %3185 = vmatmul.f32.vlgmr.msra.gmra.mxu0 %v2800_v55  ;;  %v5466_v62 = vld [vmem:[%s9426_s3 + $0x740] sm:$0xff]  ;;  %v5449_v49 = vld [vmem:[%s9426_s3 + $0x6b8] sm:$0xff] }
 0x386   :  { %3224 = vmatmul.f32.vlgmr.msra.gmra.mxu1 %v2801_v45  ;;  %v8510_v15 = vpop.f32.mrf.mxu2  ;;  %3263 = vmatmul.f32.vlgmr.msra.gmra.mxu2 %v2802_v27  ;;  %v2492_v1 = vpop.f32.mrf.mxu0  ;;  %v5482_v55 = vld [vmem:[%s9426_s3 + $0x7c0] sm:$0xff]  ;;  %v2564_v45 = vadd.f32 %v8474_v48, %v8472_v42  ;;  %v2632_v0 = vadd.f32 %v8399_v18, %v2559_v17  ;;  %v2634_v12 = vadd.f32 %v8462_v47, %v2561_v4  ;;  %v5465_v42 = vld [vmem:[%s9426_s3 + $0x738] sm:$0xff]  ;;  %v5432_v18 = vld [vmem:[%s9426_s3 + $0x630] sm:$0xff] }
 0x387   :  { %v8512_v33 = vpop.f32.mrf.mxu3  ;;  %3302 = vmatmul.f32.vlgmr.msra.gmra.mxu3 %v2803_v59  ;;  %v2565_v51 = vpop.f32.mrf.mxu1  ;;  %3325 = vmatpush.msrb.mxu0 %v5441_v26  ;;  %v5481_v48 = vld [vmem:[%s9426_s3 + $0x7b8] sm:$0xff]  ;;  %v5448_v47 = vld [vmem:[%s9426_s3 + $0x6b0] sm:$0xff]  ;;  %v5426_v4 = vld [vmem:[%s9426_s3 + $0x600] sm:$0xff] }
 0x388   :  { %3364 = vmatpush.msrb.mxu1 %v5457_v52  ;;  %3403 = vmatpush.msrb.mxu2 %v5473_v10  ;;  %v2566_v27 = vadd.f32 %v2565_v51, %v2492_v1  ;;  %v2637_v52 = vadd.f32 %v8510_v15, %v2564_v45  ;;  %v5464_v15 = vld [vmem:[%s9426_s3 + $0x730] sm:$0xff]  ;;  %v5431_v1 = vld [vmem:[%s9426_s3 + $0x628] sm:$0xff] }
 0x389   :  { %3442 = vmatpush.msrb.mxu3 %v5489_v60  ;;  %3326 = vmatpush.msrb.mxu0 %v5440_v43  ;;  %v5447_v51 = vld [vmem:[%s9426_s3 + $0x6a8] sm:$0xff] }
 0x38a   :  { %3365 = vmatpush.msrb.mxu1 %v5456_v16  ;;  %3404 = vmatpush.msrb.mxu2 %v5472_v46  ;;  %v5480_v16 = vld [vmem:[%s9426_s3 + $0x7b0] sm:$0xff]  ;;  %v2705_v46 = vadd.f32 %v8401_v14, %v2632_v0  ;;  %v5430_v14 = vld [vmem:[%s9426_s3 + $0x620] sm:$0xff] }
 0x38b   :  { %3443 = vmatpush.msrb.mxu3 %v5488_v24  ;;  %3327 = vmatpush.msrb.mxu0 %v5439_v6  ;;  %v2707_v24 = vadd.f32 %v8464_v32, %v2634_v12  ;;  %v5463_v6 = vld [vmem:[%s9426_s3 + $0x728] sm:$0xff]  ;;  %v5446_v32 = vld [vmem:[%s9426_s3 + $0x6a0] sm:$0xff] }
 0x38c   :  { %3366 = vmatpush.msrb.mxu1 %v5455_v3  ;;  %3405 = vmatpush.msrb.mxu2 %v5471_v11  ;;  %v5479_v3 = vld [vmem:[%s9426_s3 + $0x7a8] sm:$0xff]  ;;  %v2710_v11 = vadd.f32 %v8512_v33, %v2637_v52  ;;  %v5478_v33 = vld [vmem:[%s9426_s3 + $0x7a0] sm:$0xff] }
 0x38d   :  { %3444 = vmatpush.msrb.mxu3 %v5487_v41  ;;  %3328 = vmatpush.msrb.mxu0 %v5438_v21  ;;  %v5462_v21 = vld [vmem:[%s9426_s3 + $0x720] sm:$0xff] }
 0x38e   :  { %3367 = vmatpush.msrb.mxu1 %v5454_v8  ;;  %v2638_v13 = vpop.f32.mrf.mxu2  ;;  %3406 = vmatpush.msrb.mxu2 %v5470_v28  ;;  %v8570_v22 = vpop.f32.mrf.mxu0  ;;  %v5429_v8 = vld [vmem:[%s9426_s3 + $0x618] sm:$0xff] }
 0x38f   :  { %v8562_v9 = vpop.f32.mrf.mxu3  ;;  %3445 = vmatpush.msrb.mxu3 %v5486_v56  ;;  %v8572_v50 = vpop.f32.mrf.mxu1  ;;  %3329 = vmatpush.msrb.mxu0 %v5437_v20  ;;  %v2639_v10 = vadd.f32 %v2638_v13, %v2566_v27  ;;  %v5445_v28 = vld [vmem:[%s9426_s3 + $0x698] sm:$0xff]  ;;  %v2750_v56 = vmax.f32 %v7457_v36, %v2705_v46  ;;  %v2751_v20 = vmax.f32 %v7480_v40, %v2707_v24  ;;  %v5428_v40 = vld [vmem:[%s9426_s3 + $0x610] sm:$0xff]  ;;  %v5503_v46 = vld [vmem:[%s9426_s3 + $0x868] sm:$0xff] }
 0x390   :  { %3368 = vmatpush.msrb.mxu1 %v5453_v25  ;;  %3407 = vmatpush.msrb.mxu2 %v5469_v58  ;;  %v5461_v25 = vld [vmem:[%s9426_s3 + $0x718] sm:$0xff]  ;;  %v5519_v24 = vld [vmem:[%s9426_s3 + $0x8e8] sm:$0xff] }
 0x391   :  { %3446 = vmatpush.msrb.mxu3 %v5485_v34  ;;  %3330 = vmatpush.msrb.mxu0 %v5436_v19  ;;  %v2712_v41 = vadd.f32 %v8562_v9, %v2639_v10  ;;  %v5477_v58 = vld [vmem:[%s9426_s3 + $0x798] sm:$0xff]  ;;  %v2752_v9 = vmax.f32 %v7494_v39, %v2710_v11  ;;  %v5444_v19 = vld [vmem:[%s9426_s3 + $0x690] sm:$0xff]  ;;  %v5502_v11 = vld [vmem:[%s9426_s3 + $0x860] sm:$0xff] }
 0x392   :  { %3369 = vmatpush.msrb.mxu1 %v5452_v30  ;;  %3408 = vmatpush.msrb.mxu2 %v5468_v54  ;;  %v5460_v39 = vld [vmem:[%s9426_s3 + $0x710] sm:$0xff] }
 0x393   :  { %3447 = vmatpush.msrb.mxu3 %v5484_v57  ;;  %3331 = vmatpush.msrb.mxu0 %v5435_v29  ;;  %v2753_v36 = vmax.f32 %v7517_v63, %v2712_v41  ;;  %v5476_v63 = vld [vmem:[%s9426_s3 + $0x790] sm:$0xff]  ;;  %v5427_v57 = vld [vmem:[%s9426_s3 + $0x608] sm:$0xff]  ;;  %v5518_v41 = vld [vmem:[%s9426_s3 + $0x8e0] sm:$0xff] }
 0x394   :  { %3370 = vmatpush.msrb.mxu1 %v5451_v23  ;;  %3409 = vmatpush.msrb.mxu2 %v5467_v53  ;;  %v5443_v29 = vld [vmem:[%s9426_s3 + $0x688] sm:$0xff]  ;;  %v2779_v23 = vadd.f32 %v8222_v61, %v2750_v56  ;;  %v2780_v53 = vadd.f32 %v8222_v61, %v2751_v20 }
 0x395   :  { %3448 = vmatpush.msrb.mxu3 %v5483_v37  ;;  %3332 = vmatpush.msrb.mxu0 %v5434_v5  ;;  %v5459_v37 = vld [vmem:[%s9426_s3 + $0x708] sm:$0xff]  ;;  %v2782_v17 = vadd.f32 %v8222_v61, %v2753_v36  ;;  %v5516_v36 = vld [vmem:[%s9426_s3 + $0x8d0] sm:$0xff] }
 0x396   :  { %3371 = vmatpush.msrb.mxu1 %v5450_v2  ;;  %v8624_v59 = vpop.f32.mrf.mxu2  ;;  %3410 = vmatpush.msrb.mxu2 %v5466_v62  ;;  %v8635_v60 = vpop.f32.mrf.mxu0  ;;  %v5475_v5 = vld [vmem:[%s9426_s3 + $0x788] sm:$0xff]  ;;  %v2781_v2 = vadd.f32 %v8222_v61, %v2752_v9  ;;  %v5442_v62 = vld [vmem:[%s9426_s3 + $0x680] sm:$0xff]  ;;  %v2804_v45 = vmax.f32 %v2779_v23, 0.0  ;;  %v2805_v27 = vmax.f32 %v2780_v53, 0.0  ;;  %v5500_v9 = vld [vmem:[%s9426_s3 + $0x850] sm:$0xff] }
 0x397   :  { %v8626_v26 = vpop.f32.mrf.mxu3  ;;  %3449 = vmatpush.msrb.mxu3 %v5482_v55  ;;  %v8637_v43 = vpop.f32.mrf.mxu1  ;;  %3333 = vmatpush.msrb.mxu0 %v5433_v31  ;;  %v5458_v55 = vld [vmem:[%s9426_s3 + $0x700] sm:$0xff]  ;;  %v2807_v12 = vmax.f32 %v2782_v17, 0.0 }
 0x398   :  { %3372 = vmatpush.msrb.mxu1 %v5449_v49  ;;  %3411 = vmatpush.msrb.mxu2 %v5465_v42  ;;  %v5474_v61 = vld [vmem:[%s9426_s3 + $0x780] sm:$0xff]  ;;  %v2806_v0 = vmax.f32 %v2781_v2, 0.0  ;;  %v5505_v42 = vld [vmem:[%s9426_s3 + $0x878] sm:$0xff] }
 0x399   :  { %3450 = vmatpush.msrb.mxu3 %v5481_v48  ;;  %3334 = vmatpush.msrb.mxu0 %v5432_v18  ;;  %v5521_v48 = vld [vmem:[%s9426_s3 + $0x8f8] sm:$0xff]  ;;  %v5498_v23 = vld [vmem:[%s9426_s3 + $0x840] sm:$0xff] }
 0x39a   :  { %3373 = vmatpush.msrb.mxu1 %v5448_v47  ;;  %3412 = vmatpush.msrb.mxu2 %v5464_v15  ;;  %v5537_v18 = vld [vmem:[%s9426_s3 + $0x978] sm:$0xff]  ;;  %v5504_v15 = vld [vmem:[%s9426_s3 + $0x870] sm:$0xff]  ;;  %v5514_v53 = vld [vmem:[%s9426_s3 + $0x8c0] sm:$0xff] }
 0x39b   :  { %3451 = vmatpush.msrb.mxu3 %v5480_v16  ;;  %3335 = vmatpush.msrb.mxu0 %v5431_v1  ;;  %v5553_v47 = vld [vmem:[%s9426_s3 + $0x9f8] sm:$0xff]  ;;  %v5520_v16 = vld [vmem:[%s9426_s3 + $0x8f0] sm:$0xff]  ;;  %v5530_v2 = vld [vmem:[%s9426_s3 + $0x940] sm:$0xff] }
 0x39c   :  { %3374 = vmatpush.msrb.mxu1 %v5447_v51  ;;  %3413 = vmatpush.msrb.mxu2 %v5463_v6  ;;  %v5536_v1 = vld [vmem:[%s9426_s3 + $0x970] sm:$0xff]  ;;  %v5535_v6 = vld [vmem:[%s9426_s3 + $0x968] sm:$0xff]  ;;  %v5546_v17 = vld [vmem:[%s9426_s3 + $0x9c0] sm:$0xff] }
 0x39d   :  { %3452 = vmatpush.msrb.mxu3 %v5479_v3  ;;  %3336 = vmatpush.msrb.mxu0 %v5430_v14  ;;  %v5552_v51 = vld [vmem:[%s9426_s3 + $0x9f0] sm:$0xff]  ;;  %v5551_v3 = vld [vmem:[%s9426_s3 + $0x9e8] sm:$0xff]  ;;  %v5534_v14 = vld [vmem:[%s9426_s3 + $0x960] sm:$0xff] }
 0x39e   :  { %3375 = vmatpush.msrb.mxu1 %v5446_v32  ;;  %v8687_v34 = vpop.f32.mrf.mxu2  ;;  %3414 = vmatpush.msrb.mxu2 %v5462_v21  ;;  %v8699_v30 = vpop.f32.mrf.mxu0  ;;  %v5550_v32 = vld [vmem:[%s9426_s3 + $0x9e0] sm:$0xff] }
 0x39f   :  { %v8689_v13 = vpop.f32.mrf.mxu3  ;;  %3453 = vmatpush.msrb.mxu3 %v5478_v33  ;;  %v8701_v54 = vpop.f32.mrf.mxu1  ;;  %3337 = vmatpush.msrb.mxu0 %v5429_v8  ;;  %v5501_v8 = vld [vmem:[%s9426_s3 + $0x858] sm:$0xff] }
 0x3a0   :  { %3376 = vmatpush.msrb.mxu1 %v5445_v28  ;;  %3415 = vmatpush.msrb.mxu2 %v5461_v25  ;;  %v5517_v28 = vld [vmem:[%s9426_s3 + $0x8d8] sm:$0xff] }
 0x3a1   :  { %3454 = vmatpush.msrb.mxu3 %v5477_v58  ;;  %3338 = vmatpush.msrb.mxu0 %v5428_v40  ;;  %v5533_v25 = vld [vmem:[%s9426_s3 + $0x958] sm:$0xff]  ;;  %v5532_v40 = vld [vmem:[%s9426_s3 + $0x950] sm:$0xff] }
 0x3a2   :  { %3377 = vmatpush.msrb.mxu1 %v5444_v19  ;;  %3416 = vmatpush.msrb.mxu2 %v5460_v39  ;;  %v5549_v58 = vld [vmem:[%s9426_s3 + $0x9d8] sm:$0xff]  ;;  %v5548_v19 = vld [vmem:[%s9426_s3 + $0x9d0] sm:$0xff]  ;;  %v5499_v39 = vld [vmem:[%s9426_s3 + $0x848] sm:$0xff] }
 0x3a3   :  { %3455 = vmatpush.msrb.mxu3 %v5476_v63  ;;  %3339 = vmatpush.msrb.mxu0 %v5427_v57  ;;  %v5515_v63 = vld [vmem:[%s9426_s3 + $0x8c8] sm:$0xff] }
 0x3a4   :  { %3378 = vmatpush.msrb.mxu1 %v5443_v29  ;;  %3417 = vmatpush.msrb.mxu2 %v5459_v37  ;;  %v5531_v57 = vld [vmem:[%s9426_s3 + $0x948] sm:$0xff]  ;;  %v2569_v37 = vadd.f32 %v8572_v50, %v8570_v22  ;;  %v2574_v22 = vadd.f32 %v8701_v54, %v8699_v30  ;;  %v5529_v54 = vld [vmem:[%s9426_s3 + $0x938] sm:$0xff] }
 0x3a5   :  { %3456 = vmatpush.msrb.mxu3 %v5475_v5  ;;  %3340 = vmatpush.msrb.mxu0 %v5426_v4  ;;  %v5547_v29 = vld [vmem:[%s9426_s3 + $0x9c8] sm:$0xff]  ;;  %v2571_v5 = vadd.f32 %v8637_v43, %v8635_v60  ;;  %v5497_v60 = vld [vmem:[%s9426_s3 + $0x838] sm:$0xff] }
 0x3a6   :  { %3379 = vmatpush.msrb.mxu1 %v5442_v62  ;;  %v8737_v31 = vpop.f32.mrf.mxu2  ;;  %3418 = vmatpush.msrb.mxu2 %v5458_v55  ;;  %v8747_v52 = vpop.f32.mrf.mxu0  ;;  %v5513_v43 = vld [vmem:[%s9426_s3 + $0x8b8] sm:$0xff] }
 0x3a7   :  { %v8739_v49 = vpop.f32.mrf.mxu3  ;;  %3457 = vmatpush.msrb.mxu3 %v5474_v61  ;;  %v8749_v10 = vpop.f32.mrf.mxu1  ;;  %3341 = vmatmul.f32.vlgmr.msrb.gmra.mxu0 %v2804_v45  ;;  %v2642_v45 = vadd.f32 %v8624_v59, %v2569_v37  ;;  %v2644_v30 = vadd.f32 %v8687_v34, %v2571_v5  ;;  %v5496_v59 = vld [vmem:[%s9426_s3 + $0x830] sm:$0xff]  ;;  %v5538_v37 = vld [vmem:[%s9426_s3 + $0x980] sm:$0xff] }
 0x3a8   :  { %3380 = vmatmul.f32.vlgmr.msrb.gmra.mxu1 %v2805_v27  ;;  %3419 = vmatmul.f32.vlgmr.msrb.gmra.mxu2 %v2806_v0  ;;  %v2576_v50 = vadd.f32 %v8749_v10, %v8747_v52  ;;  %v5545_v27 = vld [vmem:[%s9426_s3 + $0x9b8] sm:$0xff]  ;;  %v2647_v0 = vadd.f32 %v8737_v31, %v2574_v22  ;;  %v5512_v34 = vld [vmem:[%s9426_s3 + $0x8b0] sm:$0xff]  ;;  %v5511_v52 = vld [vmem:[%s9426_s3 + $0x8a8] sm:$0xff] }
 0x3a9   :  { %3458 = vmatmul.f32.vlgmr.msrb.gmra.mxu3 %v2807_v12  ;;  %3481 = vmatpush.msra.mxu0 %v5505_v42  ;;  %v5528_v42 = vld [vmem:[%s9426_s3 + $0x930] sm:$0xff]  ;;  %v2715_v10 = vadd.f32 %v8626_v26, %v2642_v45  ;;  %v5494_v26 = vld [vmem:[%s9426_s3 + $0x820] sm:$0xff] }
 0x3aa   :  { %3520 = vmatpush.msra.mxu1 %v5521_v48  ;;  %3559 = vmatpush.msra.mxu2 %v5537_v18  ;;  %v5544_v31 = vld [vmem:[%s9426_s3 + $0x9b0] sm:$0xff]  ;;  %v5495_v48 = vld [vmem:[%s9426_s3 + $0x828] sm:$0xff]  ;;  %v2717_v18 = vadd.f32 %v8689_v13, %v2644_v30  ;;  %v5510_v13 = vld [vmem:[%s9426_s3 + $0x8a0] sm:$0xff] }
 0x3ab   :  { %3598 = vmatpush.msra.mxu3 %v5553_v47  ;;  %3482 = vmatpush.msra.mxu0 %v5504_v15  ;;  %v5527_v47 = vld [vmem:[%s9426_s3 + $0x928] sm:$0xff]  ;;  %v5569_v30 = vld [vmem:[%s9426_s3 + $0xa78] sm:$0xff] }
 0x3ac   :  { %3521 = vmatpush.msra.mxu1 %v5520_v16  ;;  %3560 = vmatpush.msra.mxu2 %v5536_v1  ;;  %v5543_v15 = vld [vmem:[%s9426_s3 + $0x9a8] sm:$0xff]  ;;  %v2720_v16 = vadd.f32 %v8739_v49, %v2647_v0  ;;  %v5542_v49 = vld [vmem:[%s9426_s3 + $0x9a0] sm:$0xff]  ;;  %v5617_v0 = vld [vmem:[%s9426_s3 + $0xbf8] sm:$0xff] }
 0x3ad   :  { %3599 = vmatpush.msra.mxu3 %v5552_v51  ;;  %3483 = vmatpush.msra.mxu0 %v5503_v46  ;;  %v5526_v51 = vld [vmem:[%s9426_s3 + $0x920] sm:$0xff] }
 0x3ae   :  { %3522 = vmatpush.msra.mxu1 %v5519_v24  ;;  %v2648_v21 = vpop.f32.mrf.mxu2  ;;  %3561 = vmatpush.msra.mxu2 %v5535_v6  ;;  %v8801_v56 = vpop.f32.mrf.mxu0  ;;  %v5493_v6 = vld [vmem:[%s9426_s3 + $0x818] sm:$0xff] }
 0x3af   :  { %v8793_v33 = vpop.f32.mrf.mxu3  ;;  %3600 = vmatpush.msra.mxu3 %v5551_v3  ;;  %v8803_v20 = vpop.f32.mrf.mxu1  ;;  %3484 = vmatpush.msra.mxu0 %v5502_v11  ;;  %v2649_v12 = vadd.f32 %v2648_v21, %v2576_v50  ;;  %v5509_v3 = vld [vmem:[%s9426_s3 + $0x898] sm:$0xff] }
 0x3b0   :  { %3523 = vmatpush.msra.mxu1 %v5518_v41  ;;  %3562 = vmatpush.msra.mxu2 %v5534_v14  ;;  %v2754_v14 = vmax.f32 %v7540_v35, %v2715_v10  ;;  %v5525_v21 = vld [vmem:[%s9426_s3 + $0x918] sm:$0xff]  ;;  %v5492_v35 = vld [vmem:[%s9426_s3 + $0x810] sm:$0xff]  ;;  %v5615_v10 = vld [vmem:[%s9426_s3 + $0xbe8] sm:$0xff] }
 0x3b1   :  { %3601 = vmatpush.msra.mxu3 %v5550_v32  ;;  %3485 = vmatpush.msra.mxu0 %v5501_v8  ;;  %v2722_v1 = vadd.f32 %v8793_v33, %v2649_v12  ;;  %v2755_v32 = vmax.f32 %v7563_v7, %v2717_v18  ;;  %v5541_v33 = vld [vmem:[%s9426_s3 + $0x998] sm:$0xff]  ;;  %v2756_v8 = vmax.f32 %v7592_v38, %v2720_v16  ;;  %v5508_v7 = vld [vmem:[%s9426_s3 + $0x890] sm:$0xff]  ;;  %v5582_v16 = vld [vmem:[%s9426_s3 + $0xae0] sm:$0xff] }
 0x3b2   :  { %3524 = vmatpush.msra.mxu1 %v5517_v28  ;;  %3563 = vmatpush.msra.mxu2 %v5533_v25  ;;  %v5524_v25 = vld [vmem:[%s9426_s3 + $0x910] sm:$0xff] }
 0x3b3   :  { %3602 = vmatpush.msra.mxu3 %v5549_v58  ;;  %3486 = vmatpush.msra.mxu0 %v5500_v9  ;;  %v2757_v28 = vmax.f32 %v7615_v44, %v2722_v1  ;;  %v5540_v38 = vld [vmem:[%s9426_s3 + $0x990] sm:$0xff]  ;;  %v5491_v44 = vld [vmem:[%s9426_s3 + $0x808] sm:$0xff]  ;;  %v8963_v9 = vld [vmem:[%s9425_s2] ss:$0 sm:$0xff]  ;;  %s4177_s2 = sshll.u32 %s5949_s16, 4  ;;  %s4178_s2 = int_to_ptr.vmem [resolvable:$true] %s4177_s2 }
 0x3b4   :  { %3525 = vmatpush.msra.mxu1 %v5516_v36  ;;  %3564 = vmatpush.msra.mxu2 %v5532_v40  ;;  %v5507_v58 = vld [vmem:[%s9426_s3 + $0x888] sm:$0xff]  ;;  %v2783_v36 = vadd.f32 %v8963_v9, %v2754_v14  ;;  %v2784_v40 = vadd.f32 %v8963_v9, %v2755_v32  ;;  %v5568_v12 = vld [vmem:[%s9426_s3 + $0xa70] sm:$0xff]  ;;  %v5613_v14 = vld [vmem:[%s9426_s3 + $0xbd8] sm:$0xff] }
 0x3b5   :  { %3603 = vmatpush.msra.mxu3 %v5548_v19  ;;  %3487 = vmatpush.msra.mxu0 %v5499_v39  ;;  %v5523_v19 = vld [vmem:[%s9426_s3 + $0x908] sm:$0xff]  ;;  %v5564_v32 = vld [vmem:[%s9426_s3 + $0xa50] sm:$0xff] }
 0x3b6   :  { %3526 = vmatpush.msra.mxu1 %v5515_v63  ;;  %v8851_v4 = vpop.f32.mrf.mxu2  ;;  %3565 = vmatpush.msra.mxu2 %v5531_v57  ;;  %v8865_v55 = vpop.f32.mrf.mxu0  ;;  %v5539_v39 = vld [vmem:[%s9426_s3 + $0x988] sm:$0xff]  ;;  %v2785_v63 = vadd.f32 %v8963_v9, %v2756_v8  ;;  %v2786_v57 = vadd.f32 %v8963_v9, %v2757_v28  ;;  %v2808_v50 = vmax.f32 %v2783_v36, 0.0  ;;  %v5612_v8 = vld [vmem:[%s9426_s3 + $0xbd0] sm:$0xff]  ;;  %v5578_v36 = vld [vmem:[%s9426_s3 + $0xac0] sm:$0xff] }
 0x3b7   :  { %v8853_v62 = vpop.f32.mrf.mxu3  ;;  %3604 = vmatpush.msra.mxu3 %v5547_v29  ;;  %v8867_v61 = vpop.f32.mrf.mxu1  ;;  %3488 = vmatpush.msra.mxu0 %v5498_v23  ;;  %v5490_v29 = vld [vmem:[%s9426_s3 + $0x800] sm:$0xff]  ;;  %v5563_v28 = vld [vmem:[%s9426_s3 + $0xa48] sm:$0xff] }
 0x3b8   :  { %3527 = vmatpush.msra.mxu1 %v5514_v53  ;;  %3566 = vmatpush.msra.mxu2 %v5530_v2  ;;  %v5506_v23 = vld [vmem:[%s9426_s3 + $0x880] sm:$0xff]  ;;  %v2811_v45 = vmax.f32 %v2786_v57, 0.0 }
 0x3b9   :  { %3605 = vmatpush.msra.mxu3 %v5546_v17  ;;  %3489 = vmatpush.msra.mxu0 %v5497_v60  ;;  %v5522_v53 = vld [vmem:[%s9426_s3 + $0x900] sm:$0xff]  ;;  %v2809_v60 = vmax.f32 %v2784_v40, 0.0 }
 0x3ba   :  { %3528 = vmatpush.msra.mxu1 %v5513_v43  ;;  %3567 = vmatpush.msra.mxu2 %v5529_v54  ;;  %v2810_v43 = vmax.f32 %v2785_v63, 0.0  ;;  %v5585_v54 = vld [vmem:[%s9426_s3 + $0xaf8] sm:$0xff]  ;;  %v2581_v63 = vadd.f32 %v8867_v61, %v8865_v55  ;;  %v5594_v57 = vld [vmem:[%s9426_s3 + $0xb40] sm:$0xff] }
 0x3bb   :  { %3606 = vmatpush.msra.mxu3 %v5545_v27  ;;  %3490 = vmatpush.msra.mxu0 %v5496_v59  ;;  %v5601_v27 = vld [vmem:[%s9426_s3 + $0xb78] sm:$0xff]  ;;  %v5584_v59 = vld [vmem:[%s9426_s3 + $0xaf0] sm:$0xff] }
 0x3bc   :  { %3529 = vmatpush.msra.mxu1 %v5512_v34  ;;  %3568 = vmatpush.msra.mxu2 %v5528_v42  ;;  %v5600_v34 = vld [vmem:[%s9426_s3 + $0xb70] sm:$0xff] }
 0x3bd   :  { %3607 = vmatpush.msra.mxu3 %v5544_v31  ;;  %3491 = vmatpush.msra.mxu0 %v5495_v48  ;;  %v5616_v42 = vld [vmem:[%s9426_s3 + $0xbf0] sm:$0xff]  ;;  %v5567_v31 = vld [vmem:[%s9426_s3 + $0xa68] sm:$0xff] }
 0x3be   :  { %3530 = vmatpush.msra.mxu1 %v5511_v52  ;;  %v8918_v46 = vpop.f32.mrf.mxu2  ;;  %3569 = vmatpush.msra.mxu2 %v5527_v47  ;;  %v8928_v11 = vpop.f32.mrf.mxu0  ;;  %v5583_v48 = vld [vmem:[%s9426_s3 + $0xae8] sm:$0xff] }
 0x3bf   :  { %v8920_v24 = vpop.f32.mrf.mxu3  ;;  %3608 = vmatpush.msra.mxu3 %v5543_v15  ;;  %v8930_v41 = vpop.f32.mrf.mxu1  ;;  %3492 = vmatpush.msra.mxu0 %v5494_v26  ;;  %v5599_v52 = vld [vmem:[%s9426_s3 + $0xb68] sm:$0xff]  ;;  %v5566_v15 = vld [vmem:[%s9426_s3 + $0xa60] sm:$0xff]  ;;  %v2654_v61 = vadd.f32 %v8918_v46, %v2581_v63  ;;  %v5576_v46 = vld [vmem:[%s9426_s3 + $0xab0] sm:$0xff] }
 0x3c0   :  { %3531 = vmatpush.msra.mxu1 %v5510_v13  ;;  %3570 = vmatpush.msra.mxu2 %v5526_v51  ;;  %v5598_v13 = vld [vmem:[%s9426_s3 + $0xb60] sm:$0xff] }
 0x3c1   :  { %3609 = vmatpush.msra.mxu3 %v5542_v49  ;;  %3493 = vmatpush.msra.mxu0 %v5493_v6  ;;  %v5614_v51 = vld [vmem:[%s9426_s3 + $0xbe0] sm:$0xff]  ;;  %v5565_v49 = vld [vmem:[%s9426_s3 + $0xa58] sm:$0xff] }
 0x3c2   :  { %3532 = vmatpush.msra.mxu1 %v5509_v3  ;;  %3571 = vmatpush.msra.mxu2 %v5525_v21  ;;  %v5581_v6 = vld [vmem:[%s9426_s3 + $0xad8] sm:$0xff]  ;;  %v5580_v21 = vld [vmem:[%s9426_s3 + $0xad0] sm:$0xff] }
 0x3c3   :  { %3610 = vmatpush.msra.mxu3 %v5541_v33  ;;  %3494 = vmatpush.msra.mxu0 %v5492_v35  ;;  %v5597_v3 = vld [vmem:[%s9426_s3 + $0xb58] sm:$0xff]  ;;  %v5596_v33 = vld [vmem:[%s9426_s3 + $0xb50] sm:$0xff]  ;;  %v5579_v35 = vld [vmem:[%s9426_s3 + $0xac8] sm:$0xff] }
 0x3c4   :  { %3533 = vmatpush.msra.mxu1 %v5508_v7  ;;  %3572 = vmatpush.msra.mxu2 %v5524_v25  ;;  %v5595_v7 = vld [vmem:[%s9426_s3 + $0xb48] sm:$0xff] }
 0x3c5   :  { %3611 = vmatpush.msra.mxu3 %v5540_v38  ;;  %3495 = vmatpush.msra.mxu0 %v5491_v44  ;;  %v5611_v25 = vld [vmem:[%s9426_s3 + $0xbc8] sm:$0xff] }
 0x3c6   :  { %3534 = vmatpush.msra.mxu1 %v5507_v58  ;;  %v8987_v5 = vpop.f32.mrf.mxu2  ;;  %3573 = vmatpush.msra.mxu2 %v5523_v19  ;;  %v8991_v17 = vpop.f32.mrf.mxu0  ;;  %v5562_v58 = vld [vmem:[%s9426_s3 + $0xa40] sm:$0xff] }
 0x3c7   :  { %v8989_v2 = vpop.f32.mrf.mxu3  ;;  %3612 = vmatpush.msra.mxu3 %v5539_v39  ;;  %v8993_v22 = vpop.f32.mrf.mxu1  ;;  %3496 = vmatpush.msra.mxu0 %v5490_v29  ;;  %v2579_v39 = vadd.f32 %v8803_v20, %v8801_v56  ;;  %v5610_v29 = vld [vmem:[%s9426_s3 + $0xbc0] sm:$0xff]  ;;  %v5561_v56 = vld [vmem:[%s9426_s3 + $0xa38] sm:$0xff] }
 0x3c8   :  { %3535 = vmatpush.msra.mxu1 %v5506_v23  ;;  %3574 = vmatpush.msra.mxu2 %v5522_v53  ;;  %v2584_v23 = vadd.f32 %v8930_v41, %v8928_v11  ;;  %v2586_v53 = vadd.f32 %v8993_v22, %v8991_v17  ;;  %v5577_v20 = vld [vmem:[%s9426_s3 + $0xab8] sm:$0xff]  ;;  %v5592_v22 = vld [vmem:[%s9426_s3 + $0xb30] sm:$0xff] }
 0x3c9   :  { %3613 = vmatpush.msra.mxu3 %v5538_v37  ;;  %3497 = vmatmul.f32.vlgmr.msra.gmra.mxu0 %v2808_v50  ;;  %v2652_v55 = vadd.f32 %v8851_v4, %v2579_v39  ;;  %v5593_v11 = vld [vmem:[%s9426_s3 + $0xb38] sm:$0xff]  ;;  %v5560_v4 = vld [vmem:[%s9426_s3 + $0xa30] sm:$0xff]  ;;  %v5559_v50 = vld [vmem:[%s9426_s3 + $0xa28] sm:$0xff] }
 0x3ca   :  { %3536 = vmatmul.f32.vlgmr.msra.gmra.mxu1 %v2809_v60  ;;  %3575 = vmatmul.f32.vlgmr.msra.gmra.mxu2 %v2810_v43  ;;  %v5609_v41 = vld [vmem:[%s9426_s3 + $0xbb8] sm:$0xff]  ;;  %v2657_v37 = vadd.f32 %v8987_v5, %v2584_v23  ;;  %v5608_v5 = vld [vmem:[%s9426_s3 + $0xbb0] sm:$0xff]  ;;  %v5575_v60 = vld [vmem:[%s9426_s3 + $0xaa8] sm:$0xff] }
 0x3cb   :  { %3614 = vmatmul.f32.vlgmr.msra.gmra.mxu3 %v2811_v45  ;;  %3637 = vmatpush.msrb.mxu0 %v5569_v30  ;;  %v2725_v43 = vadd.f32 %v8853_v62, %v2652_v55  ;;  %v2727_v45 = vadd.f32 %v8920_v24, %v2654_v61  ;;  %v5591_v30 = vld [vmem:[%s9426_s3 + $0xb28] sm:$0xff]  ;;  %v5558_v62 = vld [vmem:[%s9426_s3 + $0xa20] sm:$0xff]  ;;  %v5629_v61 = vld [vmem:[%s9426_s3 + $0xc58] sm:$0xff] }
 0x3cc   :  { %3676 = vmatpush.msrb.mxu1 %v5585_v54  ;;  %3715 = vmatpush.msrb.mxu2 %v5601_v27  ;;  %v5607_v54 = vld [vmem:[%s9426_s3 + $0xba8] sm:$0xff]  ;;  %v5574_v24 = vld [vmem:[%s9426_s3 + $0xaa0] sm:$0xff] }
 0x3cd   :  { %3754 = vmatpush.msrb.mxu3 %v5617_v0  ;;  %3638 = vmatpush.msrb.mxu0 %v5568_v12  ;;  %v2730_v12 = vadd.f32 %v8989_v2, %v2657_v37  ;;  %v5606_v2 = vld [vmem:[%s9426_s3 + $0xba0] sm:$0xff] }
 0x3ce   :  { %3677 = vmatpush.msrb.mxu1 %v5584_v59  ;;  %v9031_v18 = vpop.f32.mrf.mxu2  ;;  %3716 = vmatpush.msrb.mxu2 %v5600_v34  ;;  %v9041_v1 = vpop.f32.mrf.mxu0  ;;  %v5590_v34 = vld [vmem:[%s9426_s3 + $0xb20] sm:$0xff] }
 0x3cf   :  { %v9033_v47 = vpop.f32.mrf.mxu3  ;;  %3755 = vmatpush.msrb.mxu3 %v5616_v42  ;;  %v9043_v26 = vpop.f32.mrf.mxu1  ;;  %3639 = vmatpush.msrb.mxu0 %v5567_v31  ;;  %v2659_v17 = vadd.f32 %v9031_v18, %v2586_v53  ;;  %v5557_v42 = vld [vmem:[%s9426_s3 + $0xa18] sm:$0xff]  ;;  %v5602_v39 = vld [vmem:[%s9426_s3 + $0xb80] sm:$0xff] }
 0x3d0   :  { %3678 = vmatpush.msrb.mxu1 %v5583_v48  ;;  %3717 = vmatpush.msrb.mxu2 %v5599_v52  ;;  %v5573_v31 = vld [vmem:[%s9426_s3 + $0xa98] sm:$0xff]  ;;  %v9498_v48 = vld [vmem:[#allocation9_spill] sm:$0xff]  ;;  %v2589_v37 = vadd.f32 %v9043_v26, %v9041_v1 }
 0x3d1   :  { %3756 = vmatpush.msrb.mxu3 %v5615_v10  ;;  %3640 = vmatpush.msrb.mxu0 %v5566_v15  ;;  %v2732_v59 = vadd.f32 %v9033_v47, %v2659_v17  ;;  %v2758_v52 = vmax.f32 %v9498_v48, %v2725_v43  ;;  %v9499_v10 = vld [vmem:[#allocation14_spill] sm:$0xff]  ;;  %v5589_v47 = vld [vmem:[%s9426_s3 + $0xb18] sm:$0xff]  ;;  %v5630_v55 = vld [vmem:[%s9426_s3 + $0xc60] sm:$0xff] }
 0x3d2   :  { %3679 = vmatpush.msrb.mxu1 %v5582_v16  ;;  %3718 = vmatpush.msrb.mxu2 %v5598_v13  ;;  %v2759_v18 = vmax.f32 %v9499_v10, %v2727_v45  ;;  %v5605_v15 = vld [vmem:[%s9426_s3 + $0xb98] sm:$0xff]  ;;  %v9500_v16 = vld [vmem:[#allocation10_spill] sm:$0xff]  ;;  %v5626_v17 = vld [vmem:[%s9426_s3 + $0xc40] sm:$0xff] }
 0x3d3   :  { %3757 = vmatpush.msrb.mxu3 %v5614_v51  ;;  %3641 = vmatpush.msrb.mxu0 %v5565_v49  ;;  %v2760_v13 = vmax.f32 %v9500_v16, %v2730_v12  ;;  %v9501_v51 = vld [vmem:[#allocation15_spill] sm:$0xff]  ;;  %v5623_v1 = vld [vmem:[%s9426_s3 + $0xc28] sm:$0xff]  ;;  %v5622_v26 = vld [vmem:[%s9426_s3 + $0xc20] sm:$0xff] }
 0x3d4   :  { %3680 = vmatpush.msrb.mxu1 %v5581_v6  ;;  %3719 = vmatpush.msrb.mxu2 %v5597_v3  ;;  %v2761_v49 = vmax.f32 %v9501_v51, %v2732_v59  ;;  %v5556_v6 = vld [vmem:[%s9426_s3 + $0xa10] sm:$0xff]  ;;  %v5633_v53 = vld [vmem:[%s9426_s3 + $0xc78] sm:$0xff]  ;;  %v5619_v45 = vld [vmem:[%s9426_s3 + $0xc08] sm:$0xff] }
 0x3d5   :  { %3758 = vmatpush.msrb.mxu3 %v5613_v14  ;;  %3642 = vmatpush.msrb.mxu0 %v5564_v32  ;;  %v5572_v3 = vld [vmem:[%s9426_s3 + $0xa90] sm:$0xff]  ;;  %v9285_v10 = vld [vmem:[%s9429_s6 + $0x28] sm:$0xff] }
 0x3d6   :  { %3681 = vmatpush.msrb.mxu1 %v5580_v21  ;;  %v9087_v38 = vpop.f32.mrf.mxu2  ;;  %3720 = vmatpush.msrb.mxu2 %v5596_v33  ;;  %v2517_v40 = vpop.f32.mrf.mxu0  ;;  %v5588_v14 = vld [vmem:[%s9426_s3 + $0xb10] sm:$0xff]  ;;  %v5555_v21 = vld [vmem:[%s9426_s3 + $0xa08] sm:$0xff] }
 0x3d7   :  { %v9089_v44 = vpop.f32.mrf.mxu3  ;;  %3759 = vmatpush.msrb.mxu3 %v5612_v8  ;;  %v2590_v19 = vpop.f32.mrf.mxu1  ;;  %3643 = vmatpush.msrb.mxu0 %v5563_v28  ;;  %v5604_v32 = vld [vmem:[%s9426_s3 + $0xb90] sm:$0xff]  ;;  %v5571_v33 = vld [vmem:[%s9426_s3 + $0xa88] sm:$0xff]  ;;  %v2787_v8 = vadd.f32 %v8963_v9, %v2758_v52  ;;  %v2788_v28 = vadd.f32 %v8963_v9, %v2759_v18  ;;  %v5570_v40 = vld [vmem:[%s9426_s3 + $0xa80] sm:$0xff] }
 0x3d8   :  { %3682 = vmatpush.msrb.mxu1 %v5579_v35  ;;  %3721 = vmatpush.msrb.mxu2 %v5595_v7  ;;  %v5587_v35 = vld [vmem:[%s9426_s3 + $0xb08] sm:$0xff]  ;;  %v5586_v19 = vld [vmem:[%s9426_s3 + $0xb00] sm:$0xff]  ;;  %v9280_v52 = vld [vmem:[%s9429_s6 + $0x30] sm:$0x3] }
 0x3d9   :  { %3760 = vmatpush.msrb.mxu3 %v5611_v25  ;;  %3644 = vmatpush.msrb.mxu0 %v5562_v58  ;;  %v5603_v7 = vld [vmem:[%s9426_s3 + $0xb88] sm:$0xff]  ;;  %v2789_v25 = vadd.f32 %v8963_v9, %v2760_v13  ;;  %v2790_v58 = vadd.f32 %v8963_v9, %v2761_v49  ;;  %v2812_v63 = vmax.f32 %v2787_v8, 0.0 }
 0x3da   :  { %3683 = vmatpush.msrb.mxu1 %v5578_v36  ;;  %3722 = vmatpush.msrb.mxu2 %v5594_v57  ;;  %v5554_v36 = vld [vmem:[%s9426_s3 + $0xa00] sm:$0xff]  ;;  %v2813_v57 = vmax.f32 %v2788_v28, 0.0  ;;  %v9299_v28 = vld [vmem:[%s9429_s6 + $0x18] sm:$0xff] }
 0x3db   :  { %3761 = vmatpush.msrb.mxu3 %v5610_v29  ;;  %3645 = vmatpush.msrb.mxu0 %v5561_v56  ;;  %v2814_v29 = vmax.f32 %v2789_v25, 0.0  ;;  %v2815_v23 = vmax.f32 %v2790_v58, 0.0  ;;  %v5632_v56 = vld [vmem:[%s9426_s3 + $0xc70] sm:$0xff] }
 0x3dc   :  { %3684 = vmatpush.msrb.mxu1 %v5577_v20  ;;  %3723 = vmatpush.msrb.mxu2 %v5593_v11  ;;  %v5631_v20 = vld [vmem:[%s9426_s3 + $0xc68] sm:$0xff]  ;;  %v5628_v11 = vld [vmem:[%s9426_s3 + $0xc50] sm:$0xff] }
 0x3dd   :  { %3762 = vmatpush.msrb.mxu3 %v5609_v41  ;;  %3646 = vmatpush.msrb.mxu0 %v5560_v4  ;;  %v5627_v41 = vld [vmem:[%s9426_s3 + $0xc48] sm:$0xff]  ;;  %v2662_v4 = vadd.f32 %v9087_v38, %v2589_v37  ;;  %v9502_v38 = vld [vmem:[#allocation11_spill] sm:$0xff] }
 0x3de   :  { %3685 = vmatpush.msrb.mxu1 %v5576_v46  ;;  %v2663_v27 = vpop.f32.mrf.mxu2  ;;  %3724 = vmatpush.msrb.mxu2 %v5592_v22  ;;  %v5625_v46 = vld [vmem:[%s9426_s3 + $0xc38] sm:$0xff]  ;;  %v5624_v22 = vld [vmem:[%s9426_s3 + $0xc30] sm:$0xff] }
 0x3df   :  { %v2736_v0 = vpop.f32.mrf.mxu3  ;;  %3763 = vmatpush.msrb.mxu3 %v5608_v5  ;;  %3647 = vmatpush.msrb.mxu0 %v5559_v50  ;;  %v2735_v5 = vadd.f32 %v9089_v44, %v2662_v4  ;;  %v5620_v44 = vld [vmem:[%s9426_s3 + $0xc10] sm:$0xff]  ;;  %v2894_v27 = vpop.f32.mrf.mxu0 }
 0x3e0   :  { %3686 = vmatpush.msrb.mxu1 %v5575_v60  ;;  %3725 = vmatpush.msrb.mxu2 %v5591_v30  ;;  %v5621_v60 = vld [vmem:[%s9426_s3 + $0xc18] sm:$0xff]  ;;  %v5618_v30 = vld [vmem:[%s9426_s3 + $0xc00] sm:$0xff]  ;;  %v2914_v0 = vpop.f32.mrf.mxu1  ;;  %v9305_v58 = vld [vmem:[%s9429_s6 + $0x10] sm:$0xff] }
 0x3e1   :  { %3764 = vmatpush.msrb.mxu3 %v5607_v54  ;;  %3648 = vmatpush.msrb.mxu0 %v5558_v62  ;;  %v2762_v50 = vmax.f32 %v9502_v38, %v2735_v5  ;;  %v2915_v59 = vadd.f32 %v2914_v0, %v2894_v27  ;;  %v3831_v37 = vld [vmem:[%s9428_s5 + $0x10] sm:$0xff]  ;;  %v3829_v5 = vld [vmem:[%s9428_s5] sm:$0xff] }
 0x3e2   :  { %3687 = vmatpush.msrb.mxu1 %v5574_v24  ;;  %3726 = vmatpush.msrb.mxu2 %v5590_v34 }
 0x3e3   :  { %3765 = vmatpush.msrb.mxu3 %v5606_v2  ;;  %3649 = vmatpush.msrb.mxu0 %v5557_v42  ;;  %v2791_v43 = vadd.f32 %v8963_v9, %v2762_v50 }
 0x3e4   :  { %3688 = vmatpush.msrb.mxu1 %v5573_v31  ;;  %3727 = vmatpush.msrb.mxu2 %v5589_v47  ;;  %v9292_v47 = vld [vmem:[%s9429_s6 + $0x20] sm:$0xff] }
 0x3e5   :  { %3766 = vmatpush.msrb.mxu3 %v5605_v15  ;;  %3650 = vmatpush.msrb.mxu0 %v5556_v6  ;;  %v2816_v54 = vmax.f32 %v2791_v43, 0.0 }
 0x3e6   :  { %3689 = vmatpush.msrb.mxu1 %v5572_v3  ;;  %3728 = vmatpush.msrb.mxu2 %v5588_v14  ;;  %v2952_v12 = vpop.f32.mrf.mxu2 }
 0x3e7   :  { %3767 = vmatpush.msrb.mxu3 %v5604_v32  ;;  %3651 = vmatpush.msrb.mxu0 %v5555_v21  ;;  %v2955_v62 = vadd.f32 %v2952_v12, %v2915_v59  ;;  %v2991_v24 = vpop.f32.mrf.mxu3 }
 0x3e8   :  { %3690 = vmatpush.msrb.mxu1 %v5571_v33  ;;  %3729 = vmatpush.msrb.mxu2 %v5587_v35  ;;  %v3030_v34 = vpop.f32.mrf.mxu0 }
 0x3e9   :  { %3768 = vmatpush.msrb.mxu3 %v5603_v7  ;;  %3652 = vmatpush.msrb.mxu0 %v5554_v36  ;;  %v2994_v9 = vadd.f32 %v2991_v24, %v2955_v62  ;;  %v3069_v42 = vpop.f32.mrf.mxu1 }
 0x3ea   :  { %3691 = vmatpush.msrb.mxu1 %v5570_v40  ;;  %3730 = vmatpush.msrb.mxu2 %v5586_v19  ;;  %v9311_v40 = vld [vmem:[%s9429_s6 + $0x8] sm:$0xff]  ;;  %v9317_v19 = vld [vmem:[%s9429_s6] sm:$0xff] }
 0x3eb   :  { %3769 = vmatpush.msrb.mxu3 %v5602_v39  ;;  %3653 = vmatmul.f32.vlgmr.msrb.gmra.mxu0 %v2812_v63  ;;  %v3033_v2 = vadd.f32 %v3030_v34, %v2994_v9 }
 0x3ec   :  { %3692 = vmatmul.f32.vlgmr.msrb.gmra.mxu1 %v2813_v57  ;;  %3731 = vmatmul.f32.vlgmr.msrb.gmra.mxu2 %v2814_v29  ;;  %v3835_v29 = vld [vmem:[%s9428_s5 + $0x30] sm:$0x3] }
 0x3ed   :  { %3770 = vmatmul.f32.vlgmr.msrb.gmra.mxu3 %v2815_v23  ;;  %3793 = vmatpush.msra.mxu0 %v5633_v53  ;;  %v3072_v31 = vadd.f32 %v3069_v42, %v3033_v2  ;;  %v3834_v53 = vld [vmem:[%s9428_s5 + $0x28] sm:$0xff] }
 0x3ee   :  { %5636 = vmatpush.msk.msra.mxu2 %vm3839_vm0, %v9280_v52  ;;  %5634 = vmatpush.msk.msra.mxu1 %vm3839_vm0, %v3835_v29 }
 0x3ef   :  { %3794 = vmatpush.msra.mxu0 %v5632_v56  ;;  %v3108_v48 = vpop.f32.mrf.mxu2 }
 0x3f0   :  { %v3111_v18 = vadd.f32 %v3108_v48, %v3072_v31  ;;  %3886 = vmatpush.msra.mxu2 %v9285_v10  ;;  %v3147_v15 = vpop.f32.mrf.mxu3  ;;  %3853 = vmatpush.msra.mxu1 %v3834_v53 }
 0x3f1   :  { %3795 = vmatpush.msra.mxu0 %v5631_v20 }
 0x3f2   :  { %3887 = vmatpush.msra.mxu2 %v9292_v47  ;;  %v3150_v13 = vadd.f32 %v3147_v15, %v3111_v18  ;;  %v5877_v18 = vld [vmem:[%s9430_s7] ss:$0 sm:$0xff] }
 0x3f3   :  { %3796 = vmatpush.msra.mxu0 %v5630_v55  ;;  %v3833_v55 = vld [vmem:[%s9428_s5 + $0x20] sm:$0xff] }
 0x3f4   :  { %3888 = vmatpush.msra.mxu2 %v9299_v28  ;;  %3854 = vmatpush.msra.mxu1 %v3833_v55 }
 0x3f5   :  { %3797 = vmatpush.msra.mxu0 %v5629_v61 }
 0x3f6   :  { %3889 = vmatpush.msra.mxu2 %v9305_v58 }
 0x3f7   :  { %3798 = vmatpush.msra.mxu0 %v5628_v11  ;;  %v3832_v11 = vld [vmem:[%s9428_s5 + $0x18] sm:$0xff] }
 0x3f8   :  { %3890 = vmatpush.msra.mxu2 %v9311_v40  ;;  %3855 = vmatpush.msra.mxu1 %v3832_v11 }
 0x3f9   :  { %3799 = vmatpush.msra.mxu0 %v5627_v41 }
 0x3fa   :  { %3891 = vmatpush.msra.mxu2 %v9317_v19  ;;  %3856 = vmatpush.msra.mxu1 %v3831_v37 }
 0x3fb   :  { %3800 = vmatpush.msra.mxu0 %v5626_v17 }
 0x3fd   :  { %3801 = vmatpush.msra.mxu0 %v5625_v46  ;;  %v3830_v46 = vld [vmem:[%s9428_s5 + $0x8] sm:$0xff] }
 0x3fe   :  { %3857 = vmatpush.msra.mxu1 %v3830_v46 }
 0x3ff   :  { %3802 = vmatpush.msra.mxu0 %v5624_v22 }
 0x400   :  { %3858 = vmatpush.msra.mxu1 %v3829_v5 }
 0x401   :  { %3803 = vmatpush.msra.mxu0 %v5623_v1 }
 0x402   :  { %v3186_v16 = vpop.f32.mrf.mxu0  ;;  %5642 = vmatpush.msk.msrb.mxu1 %vm3839_vm0, %v3835_v29 }
 0x403   :  { %3804 = vmatpush.msra.mxu0 %v5622_v26  ;;  %v3189_v51 = vadd.f32 %v3186_v16, %v3150_v13  ;;  %v3225_v49 = vpop.f32.mrf.mxu1 }
 0x404   :  { %4025 = vmatpush.msrb.mxu1 %v3834_v53 }
 0x405   :  { %3805 = vmatpush.msra.mxu0 %v5621_v60  ;;  %v3228_v3 = vadd.f32 %v3225_v49, %v3189_v51 }
 0x406   :  { %4026 = vmatpush.msrb.mxu1 %v3833_v55 }
 0x407   :  { %3806 = vmatpush.msra.mxu0 %v5620_v44 }
 0x408   :  { %4027 = vmatpush.msrb.mxu1 %v3832_v11 }
 0x409   :  { %3807 = vmatpush.msra.mxu0 %v5619_v45  ;;  %v3264_v6 = vpop.f32.mrf.mxu2  ;;  %v5876_v45 = vld [vmem:[%s9427_s4] ss:$0 sm:$0xff] }
 0x40a   :  { %v3267_v14 = vadd.f32 %v3264_v6, %v3228_v3  ;;  %v3303_v32 = vpop.f32.mrf.mxu3  ;;  %4028 = vmatpush.msrb.mxu1 %v3831_v37 }
 0x40b   :  { %3808 = vmatpush.msra.mxu0 %v5618_v30 }
 0x40c   :  { %3809 = vmatmul.f32.vlgmr.msra.gmra.mxu0 %v2816_v54  ;;  %v3306_v33 = vadd.f32 %v3303_v32, %v3267_v14  ;;  %4029 = vmatpush.msrb.mxu1 %v3830_v46  ;;  %v3898_v46 = vld [vmem:[%s9430_s7] sm:$0x1] }
 0x40e   :  { %4030 = vmatpush.msrb.mxu1 %v3829_v5 }
 0x424   :  { %v3342_v21 = vpop.f32.mrf.mxu0 }
 0x425   :  { %v3345_v8 = vadd.f32 %v3342_v21, %v3306_v33  ;;  %v3381_v35 = vpop.f32.mrf.mxu1 }
 0x427   :  { %v3384_v25 = vadd.f32 %v3381_v35, %v3345_v8 }
 0x42b   :  { %v3420_v7 = vpop.f32.mrf.mxu2 }
 0x42c   :  { %v3423_v36 = vadd.f32 %v3420_v7, %v3384_v25  ;;  %v3459_v39 = vpop.f32.mrf.mxu3 }
 0x42e   :  { %v3462_v57 = vadd.f32 %v3459_v39, %v3423_v36 }
 0x446   :  { %v3498_v63 = vpop.f32.mrf.mxu0 }
 0x447   :  { %v3501_v23 = vadd.f32 %v3498_v63, %v3462_v57  ;;  %v3537_v56 = vpop.f32.mrf.mxu1 }
 0x449   :  { %v3540_v61 = vadd.f32 %v3537_v56, %v3501_v23 }
 0x44d   :  { %v3576_v20 = vpop.f32.mrf.mxu2 }
 0x44e   :  { %v3579_v41 = vadd.f32 %v3576_v20, %v3540_v61  ;;  %v3615_v17 = vpop.f32.mrf.mxu3 }
 0x450   :  { %v3618_v22 = vadd.f32 %v3615_v17, %v3579_v41 }
 0x468   :  { %v3654_v4 = vpop.f32.mrf.mxu0 }
 0x469   :  { %v3657_v1 = vadd.f32 %v3654_v4, %v3618_v22  ;;  %v3693_v26 = vpop.f32.mrf.mxu1 }
 0x46b   :  { %v3696_v50 = vadd.f32 %v3693_v26, %v3657_v1 }
 0x46f   :  { %v3732_v38 = vpop.f32.mrf.mxu2 }
 0x470   :  { %v3735_v60 = vadd.f32 %v3732_v38, %v3696_v50  ;;  %v3771_v44 = vpop.f32.mrf.mxu3 }
 0x472   :  { %v3774_v43 = vadd.f32 %v3771_v44, %v3735_v60  ;;  %v4110_v44 = vld [vmem:[%s9433_s10 + $0x18] sm:$0x1] }
 0x489   :  { %v3810_v30 = vpop.f32.mrf.mxu0 }
 0x48a   :  { %v3813_v54 = vadd.f32 %v3810_v30, %v3774_v43  ;;  %v4109_v43 = vld [vmem:[%s9433_s10 + $0x10] sm:$0xff]  ;;  %v4107_v30 = vld [vmem:[%s9433_s10] sm:$0xff] }
 0x48c   :  { %v3818_v27 = vadd.f32 %v5876_v45, %v3813_v54  ;;  %v4108_v45 = vld [vmem:[%s9433_s10 + $0x8] sm:$0xff] }
 0x48e   :  { %v3819_v0 = vmax.f32 %v3818_v27, 0.0 }
 0x490   :  { %v3821_v12 = vsel %vm3820_vm1, %v3819_v0, 0.0  ;;  %5637 = vmatmul.msk.f32.vlgmr.msra.gmra.mxu2 %vm3820_vm1, %v3819_v0 }
 0x491   :  { %v3822_v59 = vrot.slane %v3821_v12, 4 }
 0x493   :  { %v3823_v62 = vadd.f32 %v3822_v59, %v3821_v12 }
 0x495   :  { %v3824_v24 = vrot.slane %v3823_v62, 2 }
 0x497   :  { %v3825_v9 = vadd.f32 %v3824_v24, %v3823_v62  ;;  %v4077_v24 = vld [vmem:[%s9432_s9] sm:$0x1] }
 0x499   :  { %v3826_v34 = vrot.slane %v3825_v9, 1 }
 0x49b   :  { %v3827_v2 = vadd.f32 %v3826_v34, %v3825_v9 }
 0x49d   :  { %v3828_v42 = vmul.f32 0.125, %v3827_v2 }
 0x49f   :  { %5635 = vmatmul.msk.f32.vlgmr.msra.gmra.mxu1 %vm3820_vm1, %v3828_v42 }
 0x513   :  { %v3893_v15 = vpop.f32.mrf.mxu2 }
 0x51c   :  { %v3860_v31 = vpop.f32.mrf.mxu1 }
 0x51d   :  { %v3896_v48 = vperm.slane %v3860_v31, 0 }
 0x51f   :  { %v3897_v16 = vadd.f32 %v3896_v48, %v3893_v15 }
 0x521   :  { %v3902_v13 = vadd.f32 %v5877_v18, %v3897_v16 }
 0x523   :  { %vm3903_vm2 = vcmp.gt.f32.partialorder %v3902_v13, 0.0  ;;  %v3904_v51 = vmul.f32 0.01, %v3902_v13 }
 0x525   :  { %v3905_v49 = vsel %vm3903_vm2, %v3902_v13, %v3904_v51  ;;  %vm4143_vm2 = vcmask 8192  }
 0x526   :  { %v3906_v6 = vsel %vm3820_vm1, %v3905_v49, -inf  ;;  %v3985_v3 = vsel %vm3820_vm1, %v3905_v49, 0.0 }
 0x527   :  { %v3986_v14 = vrot.slane %v3985_v3, 4  ;;  %3907 = vmax.xlane.f32.xlu0 %v3906_v6 }
 0x529   :  { %v3987_v32 = vadd.f32 %v3986_v14, %v3985_v3  ;;  %v4111_v3 = vld [vmem:[%s9434_s11] sm:$0x1]  ;;  %s5948_s11 = smov [#allocation5]  }
 0x52a   :  { %s4188_s29 = sshll.u32 %s5948_s11, 4  ;;  %s4189_s29 = int_to_ptr.vmem [resolvable:$true] %s4188_s29 }
 0x52b   :  { %v3988_v21 = vrot.slane %v3987_v32, 2 }
 0x52d   :  { %v3989_v33 = vadd.f32 %v3988_v21, %v3987_v32 }
 0x52f   :  { %v3990_v8 = vrot.slane %v3989_v33, 1 }
 0x531   :  { %v3991_v35 = vadd.f32 %v3990_v8, %v3989_v33 }
 0x533   :  { %5643 = vmatmul.msk.f32.vlgmr.msrb.gmra.mxu1 %vm3820_vm1, %v3991_v35 }
 0x59a   :  { %v3908_v7 = vpop.xlane.xlu0 %3907 }
 0x59b   :  { %v3909_v25 = vsub.f32 %v3905_v49, %v3908_v7 }
 0x59d   :  { %v3910_v36 = vmul.f32 1.442695, %v3909_v25 }
 0x59f   :  { %5878 = vpow2.f32 %v3910_v36 }
 0x5a5   :  { %v5879_v39 = vpop.eup %5878 }
 0x5a6   :  { %v3912_v63 = vsel %vm3820_vm1, %v5879_v39, 0.0 }
 0x5a7   :  { %3913 = vadd.xlane.f32.xlu0 %v3912_v63 }
 0x5b0   :  { %v4032_v22 = vpop.f32.mrf.mxu1 }
 0x61a   :  { %v3914_v57 = vpop.xlane.xlu0 %3913 }
 0x61b   :  { %5880 = vrcp.f32 %v3914_v57  ;;  %v3926_v56 = vand.u32 2147483648, %v3914_v57  ;;  %v3924_v55 = vand.u32 2147483647, %v3914_v57  ;;  %vm3920_vm4 = vweird.f32 %v3914_v57 }
 0x61d   :  { %v3927_v11 = vor.u32 1.1754944e-38, %v3926_v56  ;;  %vm3925_vm6 = vcmp.eq.f32.partialorder %v3924_v55, 8.507059e+37 }
 0x621   :  { %v5881_v29 = vpop.eup %5880 }
 0x622   :  { %v3916_v23 = vmul.f32 %v5881_v29, %v3914_v57  ;;  %vm3921_vm3 = vweird.f32 %v5881_v29 }
 0x623   :  { %vm3922_vm5 = vmor %vm3920_vm4, %vm3921_vm3 }
 0x624   :  { %v3917_v53 = vsub.f32 1.0, %v3916_v23 }
 0x626   :  { %v3918_v20 = vmul.f32 %v5881_v29, %v3917_v53 }
 0x628   :  { %v3919_v61 = vadd.f32 %v5881_v29, %v3918_v20 }
 0x62a   :  { %v3923_v41 = vsel %vm3922_vm5, %v5881_v29, %v3919_v61 }
 0x62b   :  { %v3928_v37 = vsel %vm3925_vm6, %v3927_v11, %v3923_v41  ;;  %vm4170_vm6 = vcmask 0  }
 0x62c   :  { %v3929_v17 = vmul.f32 %v5879_v39, %v3928_v37  ;;  %v5947_v37 = vmov 64.0  }
 0x62e   :  { %5638 = vmatpush.xpose.msk.msra.mxu3 %vm3820_vm1, %v3929_v17 }
 0x631   :  { %5639 = vmatmul.msk.f32.vlgmr.msra.gmra.mxu3 %vm3820_vm1, %v3929_v17 }
 0x632   :  { %5640 = vmatpush.msk.msrb.mxu3 %vm3839_vm0, %v9280_v52  ;;  %v4076_v52 = vld [vmem:[%s9431_s8 + $0x30] sm:$0x3] }
 0x633   :  { %5644 = vmatpush.msk.msrb.mxu2 %vm3839_vm0, %v4076_v52 }
 0x634   :  { %4005 = vmatpush.msrb.mxu3 %v9285_v10  ;;  %v4075_v10 = vld [vmem:[%s9431_s8 + $0x28] sm:$0xff] }
 0x635   :  { %4094 = vmatpush.msrb.mxu2 %v4075_v10 }
 0x636   :  { %4006 = vmatpush.msrb.mxu3 %v9292_v47  ;;  %v4074_v47 = vld [vmem:[%s9431_s8 + $0x20] sm:$0xff] }
 0x637   :  { %4095 = vmatpush.msrb.mxu2 %v4074_v47 }
 0x638   :  { %4007 = vmatpush.msrb.mxu3 %v9299_v28  ;;  %v4073_v28 = vld [vmem:[%s9431_s8 + $0x18] sm:$0xff] }
 0x639   :  { %4096 = vmatpush.msrb.mxu2 %v4073_v28 }
 0x63a   :  { %4008 = vmatpush.msrb.mxu3 %v9305_v58  ;;  %v4072_v58 = vld [vmem:[%s9431_s8 + $0x10] sm:$0xff] }
 0x63b   :  { %4097 = vmatpush.msrb.mxu2 %v4072_v58 }
 0x63c   :  { %4009 = vmatpush.msrb.mxu3 %v9311_v40  ;;  %v4071_v40 = vld [vmem:[%s9431_s8 + $0x8] sm:$0xff] }
 0x63d   :  { %4098 = vmatpush.msrb.mxu2 %v4071_v40 }
 0x63e   :  { %4010 = vmatpush.msrb.mxu3 %v9317_v19  ;;  %v4070_v19 = vld [vmem:[%s9431_s8] sm:$0xff] }
 0x63f   :  { %5641 = vmatmul.msk.f32.vlgmr.msrb.gmra.mxu3 %vm3820_vm1, %v3991_v35  ;;  %4099 = vmatpush.msrb.mxu2 %v4070_v19 }
 0x640   :  { %5646 = vmatpush.msk.msra.mxu3 %vm4116_vm9, %v4110_v44 }
 0x642   :  { %4133 = vmatpush.msra.mxu3 %v4109_v43 }
 0x644   :  { %4134 = vmatpush.msra.mxu3 %v4108_v45 }
 0x646   :  { %4135 = vmatpush.msra.mxu3 %v4107_v30 }
 0x6b4   :  { %v3950_v4 = vpop.f32.mrf.mxu3 }
 0x6b5   :  { %v3953_v59 = vsub.f32 1.0, %v3950_v4 }
 0x6b7   :  { %v3954_v34 = vmul.f32 %v3953_v59, %v3953_v59 }
 0x6b9   :  { %v3956_v48 = vsel %vm3955_vm10, %v3954_v34, 0.0 }
 0x6c2   :  { %v4012_v5 = vpop.f32.mrf.mxu3 }
 0x6c3   :  { %v4033_v1 = vadd.f32 %v4032_v22, %v4012_v5 }
 0x6c5   :  { %v4035_v26 = vadd.f32 %v4033_v1, %v3898_v46 }
 0x6c7   :  { %vm4036_vm7 = vcmp.gt.f32.partialorder %v4035_v26, 0.0  ;;  %v4037_v38 = vmul.f32 0.01, %v4035_v26 }
 0x6c9   :  { %v4038_v50 = vsel %vm4036_vm7, %v4035_v26, %v4037_v38 }
 0x6ca   :  { %5645 = vmatmul.msk.f32.vlgmr.msrb.gmra.mxu2 %vm3820_vm1, %v4038_v50  ;;  %v4040_v60 = vsel %vm4039_vm8, %v4038_v50, -inf }
 0x6cb   :  { %4041 = vmax.xlane.f32.xlu1 %v4040_v60 }
 0x73e   :  { %v4042_v54 = vpop.xlane.xlu1 %4041 }
 0x73f   :  { %v4043_v27 = vsub.f32 %v4038_v50, %v4042_v54 }
 0x741   :  { %v4044_v0 = vmul.f32 1.442695, %v4043_v27 }
 0x743   :  { %5882 = vpow2.f32 %v4044_v0 }
 0x749   :  { %v5883_v12 = vpop.eup %5882 }
 0x74a   :  { %v4046_v62 = vsel %vm4039_vm8, %v5883_v12, 0.0 }
 0x74b   :  { %4047 = vadd.xlane.f32.xlu2 %v4046_v62 }
 0x74d   :  { %v4101_v9 = vpop.f32.mrf.mxu2 }
 0x74e   :  { %v4102_v2 = vadd.f32 %v4101_v9, %v4077_v24 }
 0x750   :  { %vm4104_vm11 = vcmp.gt.f32.partialorder %v4102_v2, 0.0  ;;  %v4105_v42 = vmul.f32 0.01, %v4102_v2 }
 0x752   :  { %v4106_v31 = vsel %vm4104_vm11, %v4102_v2, %v4105_v42 }
 0x753   :  { %5647 = vmatmul.msk.f32.vlgmr.msra.gmra.mxu3 %vm4112_vm12, %v4106_v31  ;;  %3957 = vadd.xlane.f32.xlu2 %v3956_v48 }
 0x7be   :  { %v4048_v18 = vpop.xlane.xlu2 %4047 }
 0x7bf   :  { %5884 = vrcp.f32 %v4048_v18  ;;  %v4060_v6 = vand.u32 2147483648, %v4048_v18  ;;  %vm4054_vm14 = vweird.f32 %v4048_v18  ;;  %v4058_v14 = vand.u32 2147483647, %v4048_v18 }
 0x7c1   :  { %v4061_v8 = vor.u32 1.1754944e-38, %v4060_v6  ;;  %vm4059_vm0 = vcmp.eq.f32.partialorder %v4058_v14, 8.507059e+37 }
 0x7c5   :  { %v5885_v15 = vpop.eup %5884 }
 0x7c6   :  { %v4050_v16 = vmul.f32 %v5885_v15, %v4048_v18  ;;  %vm4055_vm13 = vweird.f32 %v5885_v15  ;;  %v3958_v29 = vpop.xlane.xlu2 %3957 }
 0x7c7   :  { %vm4056_vm15 = vmor %vm4054_vm14, %vm4055_vm13  ;;  %v3959_v23 = vrot.slane %v3958_v29, 4 }
 0x7c8   :  { %v4051_v13 = vsub.f32 1.0, %v4050_v16 }
 0x7c9   :  { %v3960_v53 = vadd.f32 %v3959_v23, %v3958_v29 }
 0x7ca   :  { %v4052_v51 = vmul.f32 %v5885_v15, %v4051_v13 }
 0x7cb   :  { %v3961_v56 = vrot.slane %v3960_v53, 2 }
 0x7cc   :  { %v4053_v49 = vadd.f32 %v5885_v15, %v4052_v51 }
 0x7cd   :  { %v3962_v20 = vadd.f32 %v3961_v56, %v3960_v53 }
 0x7ce   :  { %v4057_v21 = vsel %vm4056_vm15, %v5885_v15, %v4053_v49 }
 0x7cf   :  { %v4062_v7 = vsel %vm4059_vm0, %v4061_v8, %v4057_v21  ;;  %v3963_v55 = vrot.slane %v3962_v20, 1 }
 0x7d0   :  { %v4063_v39 = vmul.f32 %v5883_v12, %v4062_v7 }
 0x7d1   :  { %v3964_v61 = vadd.f32 %v3963_v55, %v3962_v20 }
 0x7d2   :  { %v4064_v63 = vmul.f32 %v4063_v39, %v4063_v39 }
 0x7d3   :  { %5886 = vrsqrt.f32 %v3964_v61  ;;  %vm3972_vm3 = vcmp.eq.f32.partialorder %v3964_v61, inf  ;;  %v3975_v38 = vand.u32 2147483648, %v3964_v61  ;;  %vm3974_vm5 = vcmp.eq.f32.partialorder %v3964_v61, 0.0 }
 0x7d4   :  { %v4065_v57 = vsel %vm4039_vm8, %v4064_v63, 0.0  ;;  %5888 = vrcp.f32 %v5947_v37 }
 0x7d6   :  { %v4137_v32 = vpop.f32.mrf.mxu3 }
 0x7d7   :  { %v4138_v33 = vadd.f32 %v4137_v32, %v4111_v3 }
 0x7d9   :  { %v4141_v35 = vmul.f32 0.01, %v4138_v33  ;;  %vm4140_vm1 = vcmp.gt.f32.partialorder %v4138_v33, 0.0  ;;  %v5887_v11 = vpop.eup %5886 }
 0x7da   :  { %v3966_v41 = vmul.f32 %v5887_v11, %v3964_v61  ;;  %v5889_v52 = vpop.eup %5888 }
 0x7db   :  { %v4142_v25 = vsel %vm4140_vm1, %v4138_v33, %v4141_v35  ;;  %v3978_v47 = vmul.f32 64.0, %v5889_v52  ;;  %vm3982_vm4 = vweird.f32 %v5889_v52 }
 0x7dc   :  { %v4144_v36 = vsel %vm4143_vm2, %v4142_v25, -inf  ;;  %v3967_v17 = vmul.f32 %v5887_v11, %v3966_v41 }
 0x7dd   :  { %4145 = vmax.xlane.f32.xlu1 %v4144_v36  ;;  %v3979_v58 = vsub.f32 1.0, %v3978_v47 }
 0x7de   :  { %v3968_v10 = vmul.f32 0.5, %v3967_v17 }
 0x7df   :  { %v3980_v4 = vmul.f32 %v5889_v52, %v3979_v58 }
 0x7e0   :  { %v3969_v28 = vsub.f32 1.5, %v3968_v10 }
 0x7e1   :  { %v3981_v1 = vadd.f32 %v5889_v52, %v3980_v4 }
 0x7e2   :  { %v3970_v40 = vmul.f32 %v5887_v11, %v3969_v28 }
 0x7e3   :  { %v3983_v50 = vsel %vm3982_vm4, %v5889_v52, %v3981_v1 }
 0x7e4   :  { %v3971_v22 = vmul.f32 %v3970_v40, %v3964_v61 }
 0x7e5   :  { %4066 = vadd.xlane.f32.xlu1 %v4065_v57 }
 0x7e6   :  { %v3973_v26 = vsel %vm3972_vm3, %v3964_v61, %v3971_v22 }
 0x7e7   :  { %v3976_v44 = vsel %vm3974_vm5, %v3975_v38, %v3973_v26 }
 0x7e8   :  { %v3984_v30 = vmul.f32 %v3983_v50, %v3976_v44 }
 0x850   :  { %v4146_v19 = vpop.xlane.xlu1 %4145 }
 0x851   :  { %v4147_v46 = vsub.f32 %v4142_v25, %v4146_v19 }
 0x853   :  { %v4148_v5 = vmul.f32 1.442695, %v4147_v46 }
 0x855   :  { %5890 = vpow2.f32 %v4148_v5 }
 0x858   :  { %v4067_v60 = vpop.xlane.xlu1 %4066 }
 0x859   :  { %v4068_v43 = vsub.f32 64.0, %v4067_v60 }
 0x85b   :  { %v5891_v45 = vpop.eup %5890  ;;  %v4069_v54 = vand.u32 2147483647, %v4068_v43 }
 0x85c   :  { %v4150_v27 = vsel %vm4143_vm2, %v5891_v45, 0.0 }
 0x85d   :  { %v4169_v0 = vadd.f32 %v4069_v54, %v3984_v30  ;;  %4151 = vadd.xlane.f32.xlu0 %v4150_v27 }
 0x85f   :  { %4171 = vst.msk [vmem:[#allocation5] sm:$0x1] %vm4170_vm6, %v4169_v0 }
 0x860   :  { %4193 = dma.vmem_to_hbm [thread:$0]  %s4189_s29, 16, %s4191_s15, [#allocation6]  }
 0x8d0   :  { %v4152_v12 = vpop.xlane.xlu0 %4151 }
 0x8d1   :  { %5892 = vrcp.f32 %v4152_v12  ;;  %v4164_v9 = vand.u32 2147483648, %v4152_v12  ;;  %v4162_v2 = vand.u32 2147483647, %v4152_v12  ;;  %vm4158_vm8 = vweird.f32 %v4152_v12 }
 0x8d3   :  { %v4165_v31 = vor.u32 1.1754944e-38, %v4164_v9  ;;  %vm4163_vm10 = vcmp.eq.f32.partialorder %v4162_v2, 8.507059e+37 }
 0x8d7   :  { %v5893_v59 = vpop.eup %5892 }
 0x8d8   :  { %v4154_v62 = vmul.f32 %v5893_v59, %v4152_v12  ;;  %vm4159_vm7 = vweird.f32 %v5893_v59 }
 0x8d9   :  { %vm4160_vm9 = vmor %vm4158_vm8, %vm4159_vm7 }
 0x8da   :  { %v4155_v24 = vsub.f32 1.0, %v4154_v62 }
 0x8dc   :  { %v4156_v34 = vmul.f32 %v5893_v59, %v4155_v24 }
 0x8de   :  { %v4157_v42 = vadd.f32 %v5893_v59, %v4156_v34 }
 0x8e0   :  { %v4161_v48 = vsel %vm4160_vm9, %v5893_v59, %v4157_v42 }
 0x8e1   :  { %v4166_v18 = vsel %vm4163_vm10, %v4165_v31, %v4161_v48 }
 0x8e2   :  { %v4167_v15 = vmul.f32 %v5891_v45, %v4166_v18 }
 0x8e4   :  { %4168 = vst.msk [vmem:[#allocation3] sm:$0x1] %vm4143_vm2, %v4167_v15 }
 0x8e5   :  { %4182 = dma.vmem_to_hbm [thread:$0]  %s4178_s2, 16, %s4180_s17, [#allocation4]  }
 0x8e6   :  { %5943 = dma.done.wait [#allocation4], 16  }
 0x8e7   :  { %5944 = vsyncadd [#allocation4], 4294967280 }
 0x8e8   :  { %5945 = dma.done.wait [#allocation6], 16  }
 0x8e9   :  { %5946 = vsyncadd [#allocation6], 4294967280 }
 0x8ea   :  { %4202 = vsyncpa [#allocation4], 1 }
 0x8eb   :  { %4203 = vsyncpa [#allocation6], 1 }

</bundles_post_ra>
